<compile_context>
chip_gen: v7x
topology: tpu7x:2x2x1
jax: 0.10.0
libtpu: 0.0.40
codegen_flags: <defaults>
</compile_context>

<pallas_src>
import functools

import jax
import jax.numpy as jnp
from jax import lax
from jax.experimental import pallas as pl
from jax.experimental.pallas import tpu as pltpu

CAP_DIM = 4          # the module references a global CAP_DIM; fixed here
LANE = 128
HEAD_LANES = 128     # padded class width of the output head
B_TILE = 128         # sentences per grid step (fills MXU rows on all gens)
NEG_INF = -1e30      # mask value for padded head classes


def _round_up(x, m):
    return ((x + m - 1) // m) * m


def _share_lstm_kernel(wid_ref, cid_ref, table_ref, whh_ref, wout_ref, bout_ref,
                       out_ref, xg_ref, *, t_len, b_tile, cap_shift):
    """One grid step = fused embedding + full LSTM recurrence + head + log_softmax
    for B_TILE sentences.

    wid_ref:  (T*B, 1) int32  word ids, time-major within the tile (row = t*B + b)
    cid_ref:  (T*B, 1) int32  cap ids (zeros when lower=False)
    table_ref:(VTOT, 4HP)     rows [0,vocab): embed@W_ih_emb^T + (b_ih+b_hh);
                              rows [vocab, vocab+CAP): W_ih_cap^T; rest zero.
                              Gate order [i|f|o|g], each gate HP lanes (pad zero).
    whh_ref:  (HP, 4HP)       W_hh^T, same gate layout (padded h rows zero)
    wout_ref: (HP, Cp)        head weight^T (padded rows/cols zero)
    bout_ref: (1, Cp)         head bias, padded classes = -1e30 (softmax mask)
    out_ref:  (B, Cp)         log-softmax scores of the LAST timestep
    xg_ref:   (T*B, 4HP)      VMEM scratch for the hoisted input transform
    """
    T, B = t_len, b_tile
    HP = whh_ref.shape[0]
    VTOT = table_ref.shape[0]

    table = table_ref[...]          # resident for phase 1 only
    whh = whh_ref[...]              # resident across the recurrence

    # ---- Phase 1 (off the serial chain): fused embedding lookup + cap one-hot
    # + input transform for ALL timesteps, written to explicit VMEM scratch.
    # xg[t*B+b, :] = table[word[t,b], :] + table[vocab + cap[t,b], :]
    iota_v = lax.broadcasted_iota(jnp.int32, (B, VTOT), 1)
    for t in range(T):
        idw = wid_ref[t * B:(t + 1) * B, :]                # (B, 1)
        idc = cid_ref[t * B:(t + 1) * B, :] + cap_shift    # (B, 1)
        oh = ((idw == iota_v) | (idc == iota_v)).astype(jnp.float32)   # (B, VTOT)
        xg_ref[t * B:(t + 1) * B, :] = jnp.dot(
            oh, table, preferred_element_type=jnp.float32)

    # ---- Phase 2: serial LSTM recurrence, gates packed at natural 4*HP lanes.
    # Padded gate lanes stay exactly zero (sigmoid(0)=0.5, tanh(0)=0, c_pad=0).
    h = jnp.zeros((B, HP), jnp.float32)   # nn.LSTM default zero initial state
    c = jnp.zeros((B, HP), jnp.float32)
    for t in range(T):
        gates = xg_ref[t * B:(t + 1) * B, :] + jnp.dot(
            h, whh, preferred_element_type=jnp.float32)    # (B, 4HP)
        ifo = jax.nn.sigmoid(gates[:, :3 * HP])   # one EUP region for i, f, o
        g = jnp.tanh(gates[:, 3 * HP:])
        c = ifo[:, HP:2 * HP] * c + ifo[:, :HP] * g
        h = ifo[:, 2 * HP:3 * HP] * jnp.tanh(c)

    # ---- Phase 3: head + numerically stable log_softmax, lane-dense store.
    logits = jnp.dot(h, wout_ref[...], preferred_element_type=jnp.float32) + bout_ref[...]
    m = jnp.max(logits, axis=-1, keepdims=True)
    lse = m + jnp.log(jnp.sum(jnp.exp(logits - m), axis=-1, keepdims=True))
    out_ref[...] = logits - lse


def _prepare_kernel_weights(p):
    """One-time layout prep: gate reorder [i,f,g,o]->[i,f,o,g], bias fold,
    embed @ W_ih_emb^T precompute, pad H to HP (4*HP % 128 == 0), pad heads."""
    H = p["hidden_dim"]
    HP = _round_up(H, 32)
    GW = 4 * HP
    vocab, emb = p["embed"].shape
    lower = p["lower"]
    hp = lax.Precision.HIGHEST

    b_sum = p["b_ih"] + p["b_hh"]
    order = (0, 1, 3, 2)  # torch gate order [i,f,g,o] -> kernel order [i,f,o,g]

    wih_T = p["w_ih"].T                       # (E, 4H)
    wih_emb_T = wih_T[:emb, :]                # (emb, 4H)
    if lower:
        wih_cap_T = wih_T[emb:emb + CAP_DIM, :]
    else:
        wih_cap_T = jnp.zeros((CAP_DIM, 4 * H), jnp.float32)

    # Precompute the word -> gate-preactivation table (fuses the embedding).
    word2g = jnp.dot(p["embed"], wih_emb_T, precision=hp)   # (vocab, 4H)

    def regate(m4h, add_bias):
        out = jnp.zeros((m4h.shape[0], GW), jnp.float32)
        for slot, k in enumerate(order):
            blk = m4h[:, k * H:(k + 1) * H]
            if add_bias:
                blk = blk + b_sum[k * H:(k + 1) * H][None, :]
            out = out.at[:, slot * HP:slot * HP + H].set(blk)
        return out

    VTOT = _round_up(vocab + CAP_DIM, LANE)
    table = jnp.zeros((VTOT, GW), jnp.float32)
    table = table.at[:vocab, :].set(regate(word2g, add_bias=True))
    table = table.at[vocab:vocab + CAP_DIM, :].set(regate(wih_cap_T, add_bias=False))

    whh_p = jnp.zeros((HP, GW), jnp.float32).at[:H, :].set(
        regate(p["w_hh"].T, add_bias=False))

    def head(w, b):
        C = w.shape[0]
        assert C <= HEAD_LANES, "tagset_size must be <= HEAD_LANES"
        wp = jnp.zeros((HP, HEAD_LANES), jnp.float32).at[:H, :C].set(w.T)
        bp = jnp.full((1, HEAD_LANES), NEG_INF, jnp.float32).at[0, :C].set(b)
        return wp, bp

    w1p, b1p = head(p["w1_w"], p["w1_b"])
    w2p, b2p = head(p["w2_w"], p["w2_b"])
    return {"k_table": table, "k_whh": whh_p,
            "k_w1": w1p, "k_b1": b1p, "k_w2": w2p, "k_b2": b2p,
            "k_HP": HP, "k_VTOT": VTOT}


def share_lstm_forward_batched(params, input_words, input_caps=None, data_set=1):
    """Batched forward: input_words (B, T) int32 (all sentences length T),
    input_caps (B, T) int32 if params['lower'].  Returns (B, C) log-softmax
    scores of the last timestep of every sentence."""
    B, T = input_words.shape
    HP, VTOT = params["k_HP"], params["k_VTOT"]
    GW = 4 * HP
    vocab = params["embed"].shape[0]

    Bp = _round_up(B, B_TILE)
    nT = Bp // B_TILE

    def to_col(ids):
        # Pad batch, then produce a per-tile time-major id column:
        # row = tile*T*B_TILE + t*B_TILE + b  (contiguous DMA per grid step).
        idp = jnp.pad(ids.astype(jnp.int32), ((0, Bp - B), (0, 0)))
        return (idp.reshape(nT, B_TILE, T)
                   .transpose(0, 2, 1)
                   .reshape(nT * T * B_TILE, 1))

    wcol = to_col(input_words)
    if params["lower"]:
        assert input_caps is not None
        ccol = to_col(input_caps)
    else:
        ccol = jnp.zeros_like(wcol)

    if data_set == 1:
        wout, bout, C = params["k_w1"], params["k_b1"], params["w1_w"].shape[0]
    else:
        wout, bout, C = params["k_w2"], params["k_b2"], params["w2_w"].shape[0]
    CP = wout.shape[1]

    kernel = functools.partial(_share_lstm_kernel,
                               t_len=T, b_tile=B_TILE, cap_shift=vocab)

    out = pl.pallas_call(
        kernel,
        out_shape=jax.ShapeDtypeStruct((Bp, CP), jnp.float32),
        grid=(nT,),
        in_specs=[
            pl.BlockSpec((T * B_TILE, 1), lambda i: (i, 0)),   # word-id column
            pl.BlockSpec((T * B_TILE, 1), lambda i: (i, 0)),   # cap-id column
            pl.BlockSpec((VTOT, GW), lambda i: (0, 0)),        # fused input table
            pl.BlockSpec((HP, GW), lambda i: (0, 0)),          # W_hh^T (resident)
            pl.BlockSpec((HP, CP), lambda i: (0, 0)),          # head weight^T
            pl.BlockSpec((1, CP), lambda i: (0, 0)),           # head bias (masked)
        ],
        out_specs=pl.BlockSpec((B_TILE, CP), lambda i: (i, 0)),
        scratch_shapes=[pltpu.VMEM((T * B_TILE, GW), jnp.float32)],
        compiler_params=pltpu.CompilerParams(
            dimension_semantics=("parallel",)),
    )(wcol, ccol, params["k_table"], params["k_whh"], wout, bout)
    return out[:B, :C]


def share_lstm_forward(params, input_words, input_caps=None, data_set=1):
    """Mirrors ShareLSTM.forward for a single sentence; returns tag_scores[-1] (C,)."""
    words = input_words[None, :]
    caps = input_caps[None, :] if input_caps is not None else None
    return share_lstm_forward_batched(params, words, caps, data_set)[0]


def init_params(key, vocab_size, embedding_dim, hidden_dim, tagset_size, lower):
    """Deterministic synthetic init matching the module's shapes; kernel-layout
    weights (tables, transposed / padded / gate-reordered) are prepared ONCE here."""
    E = embedding_dim + (CAP_DIM if lower else 0)
    ks = jax.random.split(key, 9)
    s = 0.1
    p = {
        "lower": lower,
        "hidden_dim": hidden_dim,
        "embed": jax.random.normal(ks[0], (vocab_size, embedding_dim), jnp.float32) * s,
        # torch.nn.LSTM parameter shapes: (4H, E), (4H, H), (4H,), (4H,)
        "w_ih": jax.random.normal(ks[1], (4 * hidden_dim, E), jnp.float32) * s,
        "w_hh": jax.random.normal(ks[2], (4 * hidden_dim, hidden_dim), jnp.float32) * s,
        "b_ih": jax.random.normal(ks[3], (4 * hidden_dim,), jnp.float32) * s,
        "b_hh": jax.random.normal(ks[4], (4 * hidden_dim,), jnp.float32) * s,
        # heads: w1 (tagset_size, H), w2 (2, H)
        "w1_w": jax.random.normal(ks[5], (tagset_size, hidden_dim), jnp.float32) * s,
        "w1_b": jax.random.normal(ks[6], (tagset_size,), jnp.float32) * s,
        "w2_w": jax.random.normal(ks[7], (2, hidden_dim), jnp.float32) * s,
        "w2_b": jax.random.normal(ks[8], (2,), jnp.float32) * s,
    }
    p.update(_prepare_kernel_weights(p))
    return p


def _reference_forward(p, input_words, input_caps, data_set):
    """Pure-JAX reference (torch gate order [i,f,g,o]) for correctness checks."""
    hp = lax.Precision.HIGHEST
    H = p["hidden_dim"]
    x = p["embed"][input_words]
    if p["lower"]:
        x = jnp.concatenate(
            [x, jax.nn.one_hot(input_caps, CAP_DIM, dtype=jnp.float32)], axis=1)
    w_ih, w_hh = p["w_ih"], p["w_hh"]
    b = p["b_ih"] + p["b_hh"]

    def step(carry, x_t):
        h, c = carry
        gates = jnp.dot(w_ih, x_t, precision=hp) + jnp.dot(w_hh, h, precision=hp) + b
        i = jax.nn.sigmoid(gates[0:H])
        f = jax.nn.sigmoid(gates[H:2 * H])
        g = jnp.tanh(gates[2 * H:3 * H])
        o = jax.nn.sigmoid(gates[3 * H:4 * H])
        c = f * c + i * g
        h = o * jnp.tanh(c)
        return (h, c), None

    (hT, _), _ = lax.scan(step, (jnp.zeros((H,), jnp.float32),
                                 jnp.zeros((H,), jnp.float32)), x.astype(jnp.float32))
    w, bv = (p["w1_w"], p["w1_b"]) if data_set == 1 else (p["w2_w"], p["w2_b"])
    logits = jnp.dot(w, hT, precision=hp) + bv
    return jax.nn.log_softmax(logits)


if __name__ == "__main__":
    key = jax.random.PRNGKey(0)
    vocab_size, embedding_dim, hidden_dim, tagset_size = 20, 12, 32, 5
    seq_len, batch = 8, 16
    lower = True

    kp, kw, kc, kbw, kbc = jax.random.split(key, 5)
    params = init_params(kp, vocab_size, embedding_dim, hidden_dim, tagset_size, lower)

    # --- single sentence (mirrors ShareLSTM.forward) -------------------------
    input_words = jax.random.randint(kw, (seq_len,), 0, vocab_size)
    input_caps = jax.random.randint(kc, (seq_len,), 0, CAP_DIM)
    scores_ds1 = share_lstm_forward(params, input_words, input_caps, data_set=1)
    scores_ds0 = share_lstm_forward(params, input_words, input_caps, data_set=0)
    jax.block_until_ready((scores_ds1, scores_ds0))

    assert scores_ds1.shape == (tagset_size,)
    assert scores_ds0.shape == (2,)
    assert abs(float(jnp.exp(scores_ds1).sum()) - 1.0) < 1e-4
    assert abs(float(jnp.exp(scores_ds0).sum()) - 1.0) < 1e-4
    ref1 = _reference_forward(params, input_words, input_caps, 1)
    ref0 = _reference_forward(params, input_words, input_caps, 0)
    assert bool(jnp.allclose(scores_ds1, ref1, atol=3e-3, rtol=3e-3))
    assert bool(jnp.allclose(scores_ds0, ref0, atol=3e-3, rtol=3e-3))

    # --- batched path (amortizes launch overhead, fills MXU rows) ------------
    words_b = jax.random.randint(kbw, (batch, seq_len), 0, vocab_size)
    caps_b = jax.random.randint(kbc, (batch, seq_len), 0, CAP_DIM)
    scores_b = share_lstm_forward_batched(params, words_b, caps_b, data_set=1)
    jax.block_until_ready(scores_b)
    assert scores_b.shape == (batch, tagset_size)
    for r in (0, 5, batch - 1):
        rr = _reference_forward(params, words_b[r], caps_b[r], 1)
        assert bool(jnp.allclose(scores_b[r], rr, atol=3e-3, rtol=3e-3))

    print("KERNEL_OK")
</pallas_src>

<mosaic_0001>
module attributes {stable_mosaic.version = 11 : i64} {
  func.func @_share_lstm_kernel(%arg0: i32, %arg1: memref<1024x1xi32, #tpu.memory_space<vmem>>, %arg2: memref<1024x1xi32, #tpu.memory_space<vmem>>, %arg3: memref<128x128xf32, #tpu.memory_space<vmem>>, %arg4: memref<32x128xf32, #tpu.memory_space<vmem>>, %arg5: memref<32x128xf32, #tpu.memory_space<vmem>>, %arg6: memref<1x128xf32, #tpu.memory_space<vmem>>, %arg7: memref<128x128xf32, #tpu.memory_space<vmem>>, %arg8: memref<1024x128xf32, #tpu.memory_space<vmem>>) attributes {dimension_semantics = [#tpu.dimension_semantics<parallel>], iteration_bounds = array<i64: 1>, scalar_prefetch = 0 : i64, scratch_operands = 1 : i64, tpu.core_type = #tpu.core_type<tc>, window_params = [{transform_indices = @transform_0, window_bounds = array<i64: 1024, 1>}, {transform_indices = @transform_1, window_bounds = array<i64: 1024, 1>}, {pipeline_mode = #tpu.pipeline_mode<synchronous>, transform_indices = @transform_2, window_bounds = array<i64: 128, 128>}, {pipeline_mode = #tpu.pipeline_mode<synchronous>, transform_indices = @transform_3, window_bounds = array<i64: 32, 128>}, {pipeline_mode = #tpu.pipeline_mode<synchronous>, transform_indices = @transform_4, window_bounds = array<i64: 32, 128>}, {pipeline_mode = #tpu.pipeline_mode<synchronous>, transform_indices = @transform_5, window_bounds = array<i64: 1, 128>}, {transform_indices = @transform_6, window_bounds = array<i64: 128, 128>}]} {
    %c0 = arith.constant 0 : index
    %c0_0 = arith.constant 0 : index
    %0 = vector.load %arg3[%c0, %c0_0] : memref<128x128xf32, #tpu.memory_space<vmem>>, vector<128x128xf32>
    %c0_1 = arith.constant 0 : index
    %c0_2 = arith.constant 0 : index
    %1 = vector.load %arg4[%c0_1, %c0_2] : memref<32x128xf32, #tpu.memory_space<vmem>>, vector<32x128xf32>
    %2 = tpu.iota {dimensions = array<i32: 1>} : vector<128x128xi32>
    %c0_3 = arith.constant 0 : index
    %c0_4 = arith.constant 0 : index
    %3 = vector.load %arg1[%c0_3, %c0_4] : memref<1024x1xi32, #tpu.memory_space<vmem>>, vector<128x1xi32>
    %c0_5 = arith.constant 0 : index
    %c0_6 = arith.constant 0 : index
    %4 = vector.load %arg2[%c0_5, %c0_6] : memref<1024x1xi32, #tpu.memory_space<vmem>>, vector<128x1xi32>
    %c20_i32 = arith.constant 20 : i32
    %5 = vector.broadcast %c20_i32 : i32 to vector<128x1xi32>
    %6 = arith.addi %4, %5 : vector<128x1xi32>
    %7 = vector.broadcast %3 : vector<128x1xi32> to vector<128x128xi32>
    %8 = arith.cmpi eq, %7, %2 : vector<128x128xi32>
    %9 = vector.broadcast %6 : vector<128x1xi32> to vector<128x128xi32>
    %10 = arith.cmpi eq, %9, %2 : vector<128x128xi32>
    %11 = arith.ori %8, %10 : vector<128x128xi1>
    %12 = arith.extui %11 : vector<128x128xi1> to vector<128x128xi32>
    %13 = arith.sitofp %12 : vector<128x128xi32> to vector<128x128xf32>
    %cst = arith.constant dense<0.000000e+00> : vector<128x128xf32>
    %14 = tpu.matmul %13, %0, %cst {dimension_numbers = #tpu.dot_dimension_numbers<[1], [0], [0], [1], [0, 0, 1, 1], [], []>} : vector<128x128xf32>, vector<128x128xf32>, vector<128x128xf32> -> vector<128x128xf32>
    %c0_7 = arith.constant 0 : index
    %c0_8 = arith.constant 0 : index
    %15 = vector.load %arg8[%c0_7, %c0_8] : memref<1024x128xf32, #tpu.memory_space<vmem>>, vector<128x128xf32>
    tpu.vector_store %arg8[%c0_7, %c0_8], %14 {strides = array<i32>} : memref<1024x128xf32, #tpu.memory_space<vmem>>, vector<128x128xf32>,
    %c128 = arith.constant 128 : index
    %c0_9 = arith.constant 0 : index
    %16 = vector.load %arg1[%c128, %c0_9] : memref<1024x1xi32, #tpu.memory_space<vmem>>, vector<128x1xi32>
    %c128_10 = arith.constant 128 : index
    %c0_11 = arith.constant 0 : index
    %17 = vector.load %arg2[%c128_10, %c0_11] : memref<1024x1xi32, #tpu.memory_space<vmem>>, vector<128x1xi32>
    %c20_i32_12 = arith.constant 20 : i32
    %18 = vector.broadcast %c20_i32_12 : i32 to vector<128x1xi32>
    %19 = arith.addi %17, %18 : vector<128x1xi32>
    %20 = vector.broadcast %16 : vector<128x1xi32> to vector<128x128xi32>
    %21 = arith.cmpi eq, %20, %2 : vector<128x128xi32>
    %22 = vector.broadcast %19 : vector<128x1xi32> to vector<128x128xi32>
    %23 = arith.cmpi eq, %22, %2 : vector<128x128xi32>
    %24 = arith.ori %21, %23 : vector<128x128xi1>
    %25 = arith.extui %24 : vector<128x128xi1> to vector<128x128xi32>
    %26 = arith.sitofp %25 : vector<128x128xi32> to vector<128x128xf32>
    %cst_13 = arith.constant dense<0.000000e+00> : vector<128x128xf32>
    %27 = tpu.matmul %26, %0, %cst_13 {dimension_numbers = #tpu.dot_dimension_numbers<[1], [0], [0], [1], [0, 0, 1, 1], [], []>} : vector<128x128xf32>, vector<128x128xf32>, vector<128x128xf32> -> vector<128x128xf32>
    %c128_14 = arith.constant 128 : index
    %c0_15 = arith.constant 0 : index
    %28 = vector.load %arg8[%c128_14, %c0_15] : memref<1024x128xf32, #tpu.memory_space<vmem>>, vector<128x128xf32>
    tpu.vector_store %arg8[%c128_14, %c0_15], %27 {strides = array<i32>} : memref<1024x128xf32, #tpu.memory_space<vmem>>, vector<128x128xf32>,
    %c256 = arith.constant 256 : index
    %c0_16 = arith.constant 0 : index
    %29 = vector.load %arg1[%c256, %c0_16] : memref<1024x1xi32, #tpu.memory_space<vmem>>, vector<128x1xi32>
    %c256_17 = arith.constant 256 : index
    %c0_18 = arith.constant 0 : index
    %30 = vector.load %arg2[%c256_17, %c0_18] : memref<1024x1xi32, #tpu.memory_space<vmem>>, vector<128x1xi32>
    %c20_i32_19 = arith.constant 20 : i32
    %31 = vector.broadcast %c20_i32_19 : i32 to vector<128x1xi32>
    %32 = arith.addi %30, %31 : vector<128x1xi32>
    %33 = vector.broadcast %29 : vector<128x1xi32> to vector<128x128xi32>
    %34 = arith.cmpi eq, %33, %2 : vector<128x128xi32>
    %35 = vector.broadcast %32 : vector<128x1xi32> to vector<128x128xi32>
    %36 = arith.cmpi eq, %35, %2 : vector<128x128xi32>
    %37 = arith.ori %34, %36 : vector<128x128xi1>
    %38 = arith.extui %37 : vector<128x128xi1> to vector<128x128xi32>
    %39 = arith.sitofp %38 : vector<128x128xi32> to vector<128x128xf32>
    %cst_20 = arith.constant dense<0.000000e+00> : vector<128x128xf32>
    %40 = tpu.matmul %39, %0, %cst_20 {dimension_numbers = #tpu.dot_dimension_numbers<[1], [0], [0], [1], [0, 0, 1, 1], [], []>} : vector<128x128xf32>, vector<128x128xf32>, vector<128x128xf32> -> vector<128x128xf32>
    %c256_21 = arith.constant 256 : index
    %c0_22 = arith.constant 0 : index
    %41 = vector.load %arg8[%c256_21, %c0_22] : memref<1024x128xf32, #tpu.memory_space<vmem>>, vector<128x128xf32>
    tpu.vector_store %arg8[%c256_21, %c0_22], %40 {strides = array<i32>} : memref<1024x128xf32, #tpu.memory_space<vmem>>, vector<128x128xf32>,
    %c384 = arith.constant 384 : index
    %c0_23 = arith.constant 0 : index
    %42 = vector.load %arg1[%c384, %c0_23] : memref<1024x1xi32, #tpu.memory_space<vmem>>, vector<128x1xi32>
    %c384_24 = arith.constant 384 : index
    %c0_25 = arith.constant 0 : index
    %43 = vector.load %arg2[%c384_24, %c0_25] : memref<1024x1xi32, #tpu.memory_space<vmem>>, vector<128x1xi32>
    %c20_i32_26 = arith.constant 20 : i32
    %44 = vector.broadcast %c20_i32_26 : i32 to vector<128x1xi32>
    %45 = arith.addi %43, %44 : vector<128x1xi32>
    %46 = vector.broadcast %42 : vector<128x1xi32> to vector<128x128xi32>
    %47 = arith.cmpi eq, %46, %2 : vector<128x128xi32>
    %48 = vector.broadcast %45 : vector<128x1xi32> to vector<128x128xi32>
    %49 = arith.cmpi eq, %48, %2 : vector<128x128xi32>
    %50 = arith.ori %47, %49 : vector<128x128xi1>
    %51 = arith.extui %50 : vector<128x128xi1> to vector<128x128xi32>
    %52 = arith.sitofp %51 : vector<128x128xi32> to vector<128x128xf32>
    %cst_27 = arith.constant dense<0.000000e+00> : vector<128x128xf32>
    %53 = tpu.matmul %52, %0, %cst_27 {dimension_numbers = #tpu.dot_dimension_numbers<[1], [0], [0], [1], [0, 0, 1, 1], [], []>} : vector<128x128xf32>, vector<128x128xf32>, vector<128x128xf32> -> vector<128x128xf32>
    %c384_28 = arith.constant 384 : index
    %c0_29 = arith.constant 0 : index
    %54 = vector.load %arg8[%c384_28, %c0_29] : memref<1024x128xf32, #tpu.memory_space<vmem>>, vector<128x128xf32>
    tpu.vector_store %arg8[%c384_28, %c0_29], %53 {strides = array<i32>} : memref<1024x128xf32, #tpu.memory_space<vmem>>, vector<128x128xf32>,
    %c512 = arith.constant 512 : index
    %c0_30 = arith.constant 0 : index
    %55 = vector.load %arg1[%c512, %c0_30] : memref<1024x1xi32, #tpu.memory_space<vmem>>, vector<128x1xi32>
    %c512_31 = arith.constant 512 : index
    %c0_32 = arith.constant 0 : index
    %56 = vector.load %arg2[%c512_31, %c0_32] : memref<1024x1xi32, #tpu.memory_space<vmem>>, vector<128x1xi32>
    %c20_i32_33 = arith.constant 20 : i32
    %57 = vector.broadcast %c20_i32_33 : i32 to vector<128x1xi32>
    %58 = arith.addi %56, %57 : vector<128x1xi32>
    %59 = vector.broadcast %55 : vector<128x1xi32> to vector<128x128xi32>
    %60 = arith.cmpi eq, %59, %2 : vector<128x128xi32>
    %61 = vector.broadcast %58 : vector<128x1xi32> to vector<128x128xi32>
    %62 = arith.cmpi eq, %61, %2 : vector<128x128xi32>
    %63 = arith.ori %60, %62 : vector<128x128xi1>
    %64 = arith.extui %63 : vector<128x128xi1> to vector<128x128xi32>
    %65 = arith.sitofp %64 : vector<128x128xi32> to vector<128x128xf32>
    %cst_34 = arith.constant dense<0.000000e+00> : vector<128x128xf32>
    %66 = tpu.matmul %65, %0, %cst_34 {dimension_numbers = #tpu.dot_dimension_numbers<[1], [0], [0], [1], [0, 0, 1, 1], [], []>} : vector<128x128xf32>, vector<128x128xf32>, vector<128x128xf32> -> vector<128x128xf32>
    %c512_35 = arith.constant 512 : index
    %c0_36 = arith.constant 0 : index
    %67 = vector.load %arg8[%c512_35, %c0_36] : memref<1024x128xf32, #tpu.memory_space<vmem>>, vector<128x128xf32>
    tpu.vector_store %arg8[%c512_35, %c0_36], %66 {strides = array<i32>} : memref<1024x128xf32, #tpu.memory_space<vmem>>, vector<128x128xf32>,
    %c640 = arith.constant 640 : index
    %c0_37 = arith.constant 0 : index
    %68 = vector.load %arg1[%c640, %c0_37] : memref<1024x1xi32, #tpu.memory_space<vmem>>, vector<128x1xi32>
    %c640_38 = arith.constant 640 : index
    %c0_39 = arith.constant 0 : index
    %69 = vector.load %arg2[%c640_38, %c0_39] : memref<1024x1xi32, #tpu.memory_space<vmem>>, vector<128x1xi32>
    %c20_i32_40 = arith.constant 20 : i32
    %70 = vector.broadcast %c20_i32_40 : i32 to vector<128x1xi32>
    %71 = arith.addi %69, %70 : vector<128x1xi32>
    %72 = vector.broadcast %68 : vector<128x1xi32> to vector<128x128xi32>
    %73 = arith.cmpi eq, %72, %2 : vector<128x128xi32>
    %74 = vector.broadcast %71 : vector<128x1xi32> to vector<128x128xi32>
    %75 = arith.cmpi eq, %74, %2 : vector<128x128xi32>
    %76 = arith.ori %73, %75 : vector<128x128xi1>
    %77 = arith.extui %76 : vector<128x128xi1> to vector<128x128xi32>
    %78 = arith.sitofp %77 : vector<128x128xi32> to vector<128x128xf32>
    %cst_41 = arith.constant dense<0.000000e+00> : vector<128x128xf32>
    %79 = tpu.matmul %78, %0, %cst_41 {dimension_numbers = #tpu.dot_dimension_numbers<[1], [0], [0], [1], [0, 0, 1, 1], [], []>} : vector<128x128xf32>, vector<128x128xf32>, vector<128x128xf32> -> vector<128x128xf32>
    %c640_42 = arith.constant 640 : index
    %c0_43 = arith.constant 0 : index
    %80 = vector.load %arg8[%c640_42, %c0_43] : memref<1024x128xf32, #tpu.memory_space<vmem>>, vector<128x128xf32>
    tpu.vector_store %arg8[%c640_42, %c0_43], %79 {strides = array<i32>} : memref<1024x128xf32, #tpu.memory_space<vmem>>, vector<128x128xf32>,
    %c768 = arith.constant 768 : index
    %c0_44 = arith.constant 0 : index
    %81 = vector.load %arg1[%c768, %c0_44] : memref<1024x1xi32, #tpu.memory_space<vmem>>, vector<128x1xi32>
    %c768_45 = arith.constant 768 : index
    %c0_46 = arith.constant 0 : index
    %82 = vector.load %arg2[%c768_45, %c0_46] : memref<1024x1xi32, #tpu.memory_space<vmem>>, vector<128x1xi32>
    %c20_i32_47 = arith.constant 20 : i32
    %83 = vector.broadcast %c20_i32_47 : i32 to vector<128x1xi32>
    %84 = arith.addi %82, %83 : vector<128x1xi32>
    %85 = vector.broadcast %81 : vector<128x1xi32> to vector<128x128xi32>
    %86 = arith.cmpi eq, %85, %2 : vector<128x128xi32>
    %87 = vector.broadcast %84 : vector<128x1xi32> to vector<128x128xi32>
    %88 = arith.cmpi eq, %87, %2 : vector<128x128xi32>
    %89 = arith.ori %86, %88 : vector<128x128xi1>
    %90 = arith.extui %89 : vector<128x128xi1> to vector<128x128xi32>
    %91 = arith.sitofp %90 : vector<128x128xi32> to vector<128x128xf32>
    %cst_48 = arith.constant dense<0.000000e+00> : vector<128x128xf32>
    %92 = tpu.matmul %91, %0, %cst_48 {dimension_numbers = #tpu.dot_dimension_numbers<[1], [0], [0], [1], [0, 0, 1, 1], [], []>} : vector<128x128xf32>, vector<128x128xf32>, vector<128x128xf32> -> vector<128x128xf32>
    %c768_49 = arith.constant 768 : index
    %c0_50 = arith.constant 0 : index
    %93 = vector.load %arg8[%c768_49, %c0_50] : memref<1024x128xf32, #tpu.memory_space<vmem>>, vector<128x128xf32>
    tpu.vector_store %arg8[%c768_49, %c0_50], %92 {strides = array<i32>} : memref<1024x128xf32, #tpu.memory_space<vmem>>, vector<128x128xf32>,
    %c896 = arith.constant 896 : index
    %c0_51 = arith.constant 0 : index
    %94 = vector.load %arg1[%c896, %c0_51] : memref<1024x1xi32, #tpu.memory_space<vmem>>, vector<128x1xi32>
    %c896_52 = arith.constant 896 : index
    %c0_53 = arith.constant 0 : index
    %95 = vector.load %arg2[%c896_52, %c0_53] : memref<1024x1xi32, #tpu.memory_space<vmem>>, vector<128x1xi32>
    %c20_i32_54 = arith.constant 20 : i32
    %96 = vector.broadcast %c20_i32_54 : i32 to vector<128x1xi32>
    %97 = arith.addi %95, %96 : vector<128x1xi32>
    %98 = vector.broadcast %94 : vector<128x1xi32> to vector<128x128xi32>
    %99 = arith.cmpi eq, %98, %2 : vector<128x128xi32>
    %100 = vector.broadcast %97 : vector<128x1xi32> to vector<128x128xi32>
    %101 = arith.cmpi eq, %100, %2 : vector<128x128xi32>
    %102 = arith.ori %99, %101 : vector<128x128xi1>
    %103 = arith.extui %102 : vector<128x128xi1> to vector<128x128xi32>
    %104 = arith.sitofp %103 : vector<128x128xi32> to vector<128x128xf32>
    %cst_55 = arith.constant dense<0.000000e+00> : vector<128x128xf32>
    %105 = tpu.matmul %104, %0, %cst_55 {dimension_numbers = #tpu.dot_dimension_numbers<[1], [0], [0], [1], [0, 0, 1, 1], [], []>} : vector<128x128xf32>, vector<128x128xf32>, vector<128x128xf32> -> vector<128x128xf32>
    %c896_56 = arith.constant 896 : index
    %c0_57 = arith.constant 0 : index
    %106 = vector.load %arg8[%c896_56, %c0_57] : memref<1024x128xf32, #tpu.memory_space<vmem>>, vector<128x128xf32>
    tpu.vector_store %arg8[%c896_56, %c0_57], %105 {strides = array<i32>} : memref<1024x128xf32, #tpu.memory_space<vmem>>, vector<128x128xf32>,
    %cst_58 = arith.constant 0.000000e+00 : f32
    %107 = vector.broadcast %cst_58 : f32 to vector<128x32xf32>
    %cst_59 = arith.constant 0.000000e+00 : f32
    %108 = vector.broadcast %cst_59 : f32 to vector<128x32xf32>
    %c0_60 = arith.constant 0 : index
    %c0_61 = arith.constant 0 : index
    %109 = vector.load %arg8[%c0_60, %c0_61] : memref<1024x128xf32, #tpu.memory_space<vmem>>, vector<128x128xf32>
    %cst_62 = arith.constant dense<0.000000e+00> : vector<128x128xf32>
    %110 = tpu.matmul %107, %1, %cst_62 {dimension_numbers = #tpu.dot_dimension_numbers<[1], [0], [0], [1], [0, 0, 1, 1], [], []>} : vector<128x32xf32>, vector<32x128xf32>, vector<128x128xf32> -> vector<128x128xf32>
    %111 = arith.addf %109, %110 : vector<128x128xf32>
    %112 = vector.extract_strided_slice %111 {offsets = [0, 0], sizes = [128, 96], strides = [1, 1]} : vector<128x128xf32> to vector<128x96xf32>
    %113 = arith.negf %112 : vector<128x96xf32>
    %114 = math.exp %113 : vector<128x96xf32>
    %cst_63 = arith.constant 1.000000e+00 : f32
    %115 = vector.broadcast %cst_63 : f32 to vector<128x96xf32>
    %116 = arith.addf %115, %114 : vector<128x96xf32>
    %117 = arith.divf %115, %116 : vector<128x96xf32>
    %118 = vector.extract_strided_slice %111 {offsets = [0, 96], sizes = [128, 32], strides = [1, 1]} : vector<128x128xf32> to vector<128x32xf32>
    %119 = math.tanh %118 : vector<128x32xf32>
    %120 = vector.extract_strided_slice %117 {offsets = [0, 32], sizes = [128, 32], strides = [1, 1]} : vector<128x96xf32> to vector<128x32xf32>
    %121 = arith.mulf %120, %108 : vector<128x32xf32>
    %122 = vector.extract_strided_slice %117 {offsets = [0, 0], sizes = [128, 32], strides = [1, 1]} : vector<128x96xf32> to vector<128x32xf32>
    %123 = arith.mulf %122, %119 : vector<128x32xf32>
    %124 = arith.addf %121, %123 : vector<128x32xf32>
    %125 = vector.extract_strided_slice %117 {offsets = [0, 64], sizes = [128, 32], strides = [1, 1]} : vector<128x96xf32> to vector<128x32xf32>
    %126 = math.tanh %124 : vector<128x32xf32>
    %127 = arith.mulf %125, %126 : vector<128x32xf32>
    %c128_64 = arith.constant 128 : index
    %c0_65 = arith.constant 0 : index
    %128 = vector.load %arg8[%c128_64, %c0_65] : memref<1024x128xf32, #tpu.memory_space<vmem>>, vector<128x128xf32>
    %cst_66 = arith.constant dense<0.000000e+00> : vector<128x128xf32>
    %129 = tpu.matmul %127, %1, %cst_66 {dimension_numbers = #tpu.dot_dimension_numbers<[1], [0], [0], [1], [0, 0, 1, 1], [], []>} : vector<128x32xf32>, vector<32x128xf32>, vector<128x128xf32> -> vector<128x128xf32>
    %130 = arith.addf %128, %129 : vector<128x128xf32>
    %131 = vector.extract_strided_slice %130 {offsets = [0, 0], sizes = [128, 96], strides = [1, 1]} : vector<128x128xf32> to vector<128x96xf32>
    %132 = arith.negf %131 : vector<128x96xf32>
    %133 = math.exp %132 : vector<128x96xf32>
    %cst_67 = arith.constant 1.000000e+00 : f32
    %134 = vector.broadcast %cst_67 : f32 to vector<128x96xf32>
    %135 = arith.addf %134, %133 : vector<128x96xf32>
    %136 = arith.divf %134, %135 : vector<128x96xf32>
    %137 = vector.extract_strided_slice %130 {offsets = [0, 96], sizes = [128, 32], strides = [1, 1]} : vector<128x128xf32> to vector<128x32xf32>
    %138 = math.tanh %137 : vector<128x32xf32>
    %139 = vector.extract_strided_slice %136 {offsets = [0, 32], sizes = [128, 32], strides = [1, 1]} : vector<128x96xf32> to vector<128x32xf32>
    %140 = arith.mulf %139, %124 : vector<128x32xf32>
    %141 = vector.extract_strided_slice %136 {offsets = [0, 0], sizes = [128, 32], strides = [1, 1]} : vector<128x96xf32> to vector<128x32xf32>
    %142 = arith.mulf %141, %138 : vector<128x32xf32>
    %143 = arith.addf %140, %142 : vector<128x32xf32>
    %144 = vector.extract_strided_slice %136 {offsets = [0, 64], sizes = [128, 32], strides = [1, 1]} : vector<128x96xf32> to vector<128x32xf32>
    %145 = math.tanh %143 : vector<128x32xf32>
    %146 = arith.mulf %144, %145 : vector<128x32xf32>
    %c256_68 = arith.constant 256 : index
    %c0_69 = arith.constant 0 : index
    %147 = vector.load %arg8[%c256_68, %c0_69] : memref<1024x128xf32, #tpu.memory_space<vmem>>, vector<128x128xf32>
    %cst_70 = arith.constant dense<0.000000e+00> : vector<128x128xf32>
    %148 = tpu.matmul %146, %1, %cst_70 {dimension_numbers = #tpu.dot_dimension_numbers<[1], [0], [0], [1], [0, 0, 1, 1], [], []>} : vector<128x32xf32>, vector<32x128xf32>, vector<128x128xf32> -> vector<128x128xf32>
    %149 = arith.addf %147, %148 : vector<128x128xf32>
    %150 = vector.extract_strided_slice %149 {offsets = [0, 0], sizes = [128, 96], strides = [1, 1]} : vector<128x128xf32> to vector<128x96xf32>
    %151 = arith.negf %150 : vector<128x96xf32>
    %152 = math.exp %151 : vector<128x96xf32>
    %cst_71 = arith.constant 1.000000e+00 : f32
    %153 = vector.broadcast %cst_71 : f32 to vector<128x96xf32>
    %154 = arith.addf %153, %152 : vector<128x96xf32>
    %155 = arith.divf %153, %154 : vector<128x96xf32>
    %156 = vector.extract_strided_slice %149 {offsets = [0, 96], sizes = [128, 32], strides = [1, 1]} : vector<128x128xf32> to vector<128x32xf32>
    %157 = math.tanh %156 : vector<128x32xf32>
    %158 = vector.extract_strided_slice %155 {offsets = [0, 32], sizes = [128, 32], strides = [1, 1]} : vector<128x96xf32> to vector<128x32xf32>
    %159 = arith.mulf %158, %143 : vector<128x32xf32>
    %160 = vector.extract_strided_slice %155 {offsets = [0, 0], sizes = [128, 32], strides = [1, 1]} : vector<128x96xf32> to vector<128x32xf32>
    %161 = arith.mulf %160, %157 : vector<128x32xf32>
    %162 = arith.addf %159, %161 : vector<128x32xf32>
    %163 = vector.extract_strided_slice %155 {offsets = [0, 64], sizes = [128, 32], strides = [1, 1]} : vector<128x96xf32> to vector<128x32xf32>
    %164 = math.tanh %162 : vector<128x32xf32>
    %165 = arith.mulf %163, %164 : vector<128x32xf32>
    %c384_72 = arith.constant 384 : index
    %c0_73 = arith.constant 0 : index
    %166 = vector.load %arg8[%c384_72, %c0_73] : memref<1024x128xf32, #tpu.memory_space<vmem>>, vector<128x128xf32>
    %cst_74 = arith.constant dense<0.000000e+00> : vector<128x128xf32>
    %167 = tpu.matmul %165, %1, %cst_74 {dimension_numbers = #tpu.dot_dimension_numbers<[1], [0], [0], [1], [0, 0, 1, 1], [], []>} : vector<128x32xf32>, vector<32x128xf32>, vector<128x128xf32> -> vector<128x128xf32>
    %168 = arith.addf %166, %167 : vector<128x128xf32>
    %169 = vector.extract_strided_slice %168 {offsets = [0, 0], sizes = [128, 96], strides = [1, 1]} : vector<128x128xf32> to vector<128x96xf32>
    %170 = arith.negf %169 : vector<128x96xf32>
    %171 = math.exp %170 : vector<128x96xf32>
    %cst_75 = arith.constant 1.000000e+00 : f32
    %172 = vector.broadcast %cst_75 : f32 to vector<128x96xf32>
    %173 = arith.addf %172, %171 : vector<128x96xf32>
    %174 = arith.divf %172, %173 : vector<128x96xf32>
    %175 = vector.extract_strided_slice %168 {offsets = [0, 96], sizes = [128, 32], strides = [1, 1]} : vector<128x128xf32> to vector<128x32xf32>
    %176 = math.tanh %175 : vector<128x32xf32>
    %177 = vector.extract_strided_slice %174 {offsets = [0, 32], sizes = [128, 32], strides = [1, 1]} : vector<128x96xf32> to vector<128x32xf32>
    %178 = arith.mulf %177, %162 : vector<128x32xf32>
    %179 = vector.extract_strided_slice %174 {offsets = [0, 0], sizes = [128, 32], strides = [1, 1]} : vector<128x96xf32> to vector<128x32xf32>
    %180 = arith.mulf %179, %176 : vector<128x32xf32>
    %181 = arith.addf %178, %180 : vector<128x32xf32>
    %182 = vector.extract_strided_slice %174 {offsets = [0, 64], sizes = [128, 32], strides = [1, 1]} : vector<128x96xf32> to vector<128x32xf32>
    %183 = math.tanh %181 : vector<128x32xf32>
    %184 = arith.mulf %182, %183 : vector<128x32xf32>
    %c512_76 = arith.constant 512 : index
    %c0_77 = arith.constant 0 : index
    %185 = vector.load %arg8[%c512_76, %c0_77] : memref<1024x128xf32, #tpu.memory_space<vmem>>, vector<128x128xf32>
    %cst_78 = arith.constant dense<0.000000e+00> : vector<128x128xf32>
    %186 = tpu.matmul %184, %1, %cst_78 {dimension_numbers = #tpu.dot_dimension_numbers<[1], [0], [0], [1], [0, 0, 1, 1], [], []>} : vector<128x32xf32>, vector<32x128xf32>, vector<128x128xf32> -> vector<128x128xf32>
    %187 = arith.addf %185, %186 : vector<128x128xf32>
    %188 = vector.extract_strided_slice %187 {offsets = [0, 0], sizes = [128, 96], strides = [1, 1]} : vector<128x128xf32> to vector<128x96xf32>
    %189 = arith.negf %188 : vector<128x96xf32>
    %190 = math.exp %189 : vector<128x96xf32>
    %cst_79 = arith.constant 1.000000e+00 : f32
    %191 = vector.broadcast %cst_79 : f32 to vector<128x96xf32>
    %192 = arith.addf %191, %190 : vector<128x96xf32>
    %193 = arith.divf %191, %192 : vector<128x96xf32>
    %194 = vector.extract_strided_slice %187 {offsets = [0, 96], sizes = [128, 32], strides = [1, 1]} : vector<128x128xf32> to vector<128x32xf32>
    %195 = math.tanh %194 : vector<128x32xf32>
    %196 = vector.extract_strided_slice %193 {offsets = [0, 32], sizes = [128, 32], strides = [1, 1]} : vector<128x96xf32> to vector<128x32xf32>
    %197 = arith.mulf %196, %181 : vector<128x32xf32>
    %198 = vector.extract_strided_slice %193 {offsets = [0, 0], sizes = [128, 32], strides = [1, 1]} : vector<128x96xf32> to vector<128x32xf32>
    %199 = arith.mulf %198, %195 : vector<128x32xf32>
    %200 = arith.addf %197, %199 : vector<128x32xf32>
    %201 = vector.extract_strided_slice %193 {offsets = [0, 64], sizes = [128, 32], strides = [1, 1]} : vector<128x96xf32> to vector<128x32xf32>
    %202 = math.tanh %200 : vector<128x32xf32>
    %203 = arith.mulf %201, %202 : vector<128x32xf32>
    %c640_80 = arith.constant 640 : index
    %c0_81 = arith.constant 0 : index
    %204 = vector.load %arg8[%c640_80, %c0_81] : memref<1024x128xf32, #tpu.memory_space<vmem>>, vector<128x128xf32>
    %cst_82 = arith.constant dense<0.000000e+00> : vector<128x128xf32>
    %205 = tpu.matmul %203, %1, %cst_82 {dimension_numbers = #tpu.dot_dimension_numbers<[1], [0], [0], [1], [0, 0, 1, 1], [], []>} : vector<128x32xf32>, vector<32x128xf32>, vector<128x128xf32> -> vector<128x128xf32>
    %206 = arith.addf %204, %205 : vector<128x128xf32>
    %207 = vector.extract_strided_slice %206 {offsets = [0, 0], sizes = [128, 96], strides = [1, 1]} : vector<128x128xf32> to vector<128x96xf32>
    %208 = arith.negf %207 : vector<128x96xf32>
    %209 = math.exp %208 : vector<128x96xf32>
    %cst_83 = arith.constant 1.000000e+00 : f32
    %210 = vector.broadcast %cst_83 : f32 to vector<128x96xf32>
    %211 = arith.addf %210, %209 : vector<128x96xf32>
    %212 = arith.divf %210, %211 : vector<128x96xf32>
    %213 = vector.extract_strided_slice %206 {offsets = [0, 96], sizes = [128, 32], strides = [1, 1]} : vector<128x128xf32> to vector<128x32xf32>
    %214 = math.tanh %213 : vector<128x32xf32>
    %215 = vector.extract_strided_slice %212 {offsets = [0, 32], sizes = [128, 32], strides = [1, 1]} : vector<128x96xf32> to vector<128x32xf32>
    %216 = arith.mulf %215, %200 : vector<128x32xf32>
    %217 = vector.extract_strided_slice %212 {offsets = [0, 0], sizes = [128, 32], strides = [1, 1]} : vector<128x96xf32> to vector<128x32xf32>
    %218 = arith.mulf %217, %214 : vector<128x32xf32>
    %219 = arith.addf %216, %218 : vector<128x32xf32>
    %220 = vector.extract_strided_slice %212 {offsets = [0, 64], sizes = [128, 32], strides = [1, 1]} : vector<128x96xf32> to vector<128x32xf32>
    %221 = math.tanh %219 : vector<128x32xf32>
    %222 = arith.mulf %220, %221 : vector<128x32xf32>
    %c768_84 = arith.constant 768 : index
    %c0_85 = arith.constant 0 : index
    %223 = vector.load %arg8[%c768_84, %c0_85] : memref<1024x128xf32, #tpu.memory_space<vmem>>, vector<128x128xf32>
    %cst_86 = arith.constant dense<0.000000e+00> : vector<128x128xf32>
    %224 = tpu.matmul %222, %1, %cst_86 {dimension_numbers = #tpu.dot_dimension_numbers<[1], [0], [0], [1], [0, 0, 1, 1], [], []>} : vector<128x32xf32>, vector<32x128xf32>, vector<128x128xf32> -> vector<128x128xf32>
    %225 = arith.addf %223, %224 : vector<128x128xf32>
    %226 = vector.extract_strided_slice %225 {offsets = [0, 0], sizes = [128, 96], strides = [1, 1]} : vector<128x128xf32> to vector<128x96xf32>
    %227 = arith.negf %226 : vector<128x96xf32>
    %228 = math.exp %227 : vector<128x96xf32>
    %cst_87 = arith.constant 1.000000e+00 : f32
    %229 = vector.broadcast %cst_87 : f32 to vector<128x96xf32>
    %230 = arith.addf %229, %228 : vector<128x96xf32>
    %231 = arith.divf %229, %230 : vector<128x96xf32>
    %232 = vector.extract_strided_slice %225 {offsets = [0, 96], sizes = [128, 32], strides = [1, 1]} : vector<128x128xf32> to vector<128x32xf32>
    %233 = math.tanh %232 : vector<128x32xf32>
    %234 = vector.extract_strided_slice %231 {offsets = [0, 32], sizes = [128, 32], strides = [1, 1]} : vector<128x96xf32> to vector<128x32xf32>
    %235 = arith.mulf %234, %219 : vector<128x32xf32>
    %236 = vector.extract_strided_slice %231 {offsets = [0, 0], sizes = [128, 32], strides = [1, 1]} : vector<128x96xf32> to vector<128x32xf32>
    %237 = arith.mulf %236, %233 : vector<128x32xf32>
    %238 = arith.addf %235, %237 : vector<128x32xf32>
    %239 = vector.extract_strided_slice %231 {offsets = [0, 64], sizes = [128, 32], strides = [1, 1]} : vector<128x96xf32> to vector<128x32xf32>
    %240 = math.tanh %238 : vector<128x32xf32>
    %241 = arith.mulf %239, %240 : vector<128x32xf32>
    %c896_88 = arith.constant 896 : index
    %c0_89 = arith.constant 0 : index
    %242 = vector.load %arg8[%c896_88, %c0_89] : memref<1024x128xf32, #tpu.memory_space<vmem>>, vector<128x128xf32>
    %cst_90 = arith.constant dense<0.000000e+00> : vector<128x128xf32>
    %243 = tpu.matmul %241, %1, %cst_90 {dimension_numbers = #tpu.dot_dimension_numbers<[1], [0], [0], [1], [0, 0, 1, 1], [], []>} : vector<128x32xf32>, vector<32x128xf32>, vector<128x128xf32> -> vector<128x128xf32>
    %244 = arith.addf %242, %243 : vector<128x128xf32>
    %245 = vector.extract_strided_slice %244 {offsets = [0, 0], sizes = [128, 96], strides = [1, 1]} : vector<128x128xf32> to vector<128x96xf32>
    %246 = arith.negf %245 : vector<128x96xf32>
    %247 = math.exp %246 : vector<128x96xf32>
    %cst_91 = arith.constant 1.000000e+00 : f32
    %248 = vector.broadcast %cst_91 : f32 to vector<128x96xf32>
    %249 = arith.addf %248, %247 : vector<128x96xf32>
    %250 = arith.divf %248, %249 : vector<128x96xf32>
    %251 = vector.extract_strided_slice %244 {offsets = [0, 96], sizes = [128, 32], strides = [1, 1]} : vector<128x128xf32> to vector<128x32xf32>
    %252 = math.tanh %251 : vector<128x32xf32>
    %253 = vector.extract_strided_slice %250 {offsets = [0, 32], sizes = [128, 32], strides = [1, 1]} : vector<128x96xf32> to vector<128x32xf32>
    %254 = arith.mulf %253, %238 : vector<128x32xf32>
    %255 = vector.extract_strided_slice %250 {offsets = [0, 0], sizes = [128, 32], strides = [1, 1]} : vector<128x96xf32> to vector<128x32xf32>
    %256 = arith.mulf %255, %252 : vector<128x32xf32>
    %257 = arith.addf %254, %256 : vector<128x32xf32>
    %258 = vector.extract_strided_slice %250 {offsets = [0, 64], sizes = [128, 32], strides = [1, 1]} : vector<128x96xf32> to vector<128x32xf32>
    %259 = math.tanh %257 : vector<128x32xf32>
    %260 = arith.mulf %258, %259 : vector<128x32xf32>
    %c0_92 = arith.constant 0 : index
    %c0_93 = arith.constant 0 : index
    %261 = vector.load %arg5[%c0_92, %c0_93] : memref<32x128xf32, #tpu.memory_space<vmem>>, vector<32x128xf32>
    %cst_94 = arith.constant dense<0.000000e+00> : vector<128x128xf32>
    %262 = tpu.matmul %260, %261, %cst_94 {dimension_numbers = #tpu.dot_dimension_numbers<[1], [0], [0], [1], [0, 0, 1, 1], [], []>} : vector<128x32xf32>, vector<32x128xf32>, vector<128x128xf32> -> vector<128x128xf32>
    %c0_95 = arith.constant 0 : index
    %c0_96 = arith.constant 0 : index
    %263 = vector.load %arg6[%c0_95, %c0_96] : memref<1x128xf32, #tpu.memory_space<vmem>>, vector<1x128xf32>
    %264 = vector.broadcast %263 : vector<1x128xf32> to vector<128x128xf32>
    %265 = arith.addf %262, %264 : vector<128x128xf32>
    %cst_97 = arith.constant dense<0xFF800000> : vector<128xf32>
    %266 = vector.multi_reduction <maximumf>, %265, %cst_97 [1] : vector<128x128xf32> to vector<128xf32>
    %267 = vector.shape_cast %266 : vector<128xf32> to vector<128x1xf32>
    %268 = vector.broadcast %267 : vector<128x1xf32> to vector<128x128xf32>
    %269 = arith.subf %265, %268 : vector<128x128xf32>
    %270 = math.exp %269 : vector<128x128xf32>
    %cst_98 = arith.constant dense<0.000000e+00> : vector<128xf32>
    %271 = vector.multi_reduction <add>, %270, %cst_98 [1] : vector<128x128xf32> to vector<128xf32>
    %272 = vector.shape_cast %271 : vector<128xf32> to vector<128x1xf32>
    %273 = math.log %272 : vector<128x1xf32>
    %274 = arith.addf %267, %273 : vector<128x1xf32>
    %275 = vector.broadcast %274 : vector<128x1xf32> to vector<128x128xf32>
    %276 = arith.subf %265, %275 : vector<128x128xf32>
    %c0_99 = arith.constant 0 : index
    %c0_100 = arith.constant 0 : index
    %277 = vector.load %arg7[%c0_99, %c0_100] : memref<128x128xf32, #tpu.memory_space<vmem>>, vector<128x128xf32>
    tpu.vector_store %arg7[%c0_99, %c0_100], %276 {strides = array<i32>} : memref<128x128xf32, #tpu.memory_space<vmem>>, vector<128x128xf32>,
    return
  }
  func.func @transform_0(%arg0: i32) -> (i32, i32) {
    %c0_i32 = arith.constant 0 : i32
    %c0_i32_0 = arith.constant 0 : i32
    return %arg0, %c0_i32 : i32, i32
  }
  func.func @transform_1(%arg0: i32) -> (i32, i32) {
    %c0_i32 = arith.constant 0 : i32
    %c0_i32_0 = arith.constant 0 : i32
    return %arg0, %c0_i32 : i32, i32
  }
  func.func @transform_2(%arg0: i32) -> (i32, i32) {
    %c0_i32 = arith.constant 0 : i32
    %c0_i32_0 = arith.constant 0 : i32
    %c0_i32_1 = arith.constant 0 : i32
    return %c0_i32, %c0_i32_0 : i32, i32
  }
  func.func @transform_3(%arg0: i32) -> (i32, i32) {
    %c0_i32 = arith.constant 0 : i32
    %c0_i32_0 = arith.constant 0 : i32
    %c0_i32_1 = arith.constant 0 : i32
    return %c0_i32, %c0_i32_0 : i32, i32
  }
  func.func @transform_4(%arg0: i32) -> (i32, i32) {
    %c0_i32 = arith.constant 0 : i32
    %c0_i32_0 = arith.constant 0 : i32
    %c0_i32_1 = arith.constant 0 : i32
    return %c0_i32, %c0_i32_0 : i32, i32
  }
  func.func @transform_5(%arg0: i32) -> (i32, i32) {
    %c0_i32 = arith.constant 0 : i32
    %c0_i32_0 = arith.constant 0 : i32
    %c0_i32_1 = arith.constant 0 : i32
    return %c0_i32, %c0_i32_0 : i32, i32
  }
  func.func @transform_6(%arg0: i32) -> (i32, i32) {
    %c0_i32 = arith.constant 0 : i32
    %c0_i32_0 = arith.constant 0 : i32
    return %arg0, %c0_i32 : i32, i32
  }
}

</mosaic_0001>

<bundles_post_ra>
// kernel: tpu_custom_call.1
= control target key start
LH: loop header
LB: loop body
LE: loop exit
PB: predicated region body
PF: predicated region fallthrough
CT: control target
= control target key end

     0   :  { %v11889_v3 = vmov 0   ;;  %s15585_s0 = inlined_call_operand.vmem [shape: s32[1024,1], index: 0, kind: input, shape index: {}]   ;;  %s15586_s1 = inlined_call_operand.vmem [shape: s32[1024,1], index: 1, kind: input, shape index: {}]   ;;  %s15587_s2 = inlined_call_operand.vmem [shape: f32[128,128], index: 2, kind: input, shape index: {}]   ;;  %s15588_s3 = inlined_call_operand.vmem [shape: f32[32,128], index: 3, kind: input, shape index: {}]   ;;  %s15589_s4 = inlined_call_operand.vmem [shape: f32[32,128], index: 4, kind: input, shape index: {}]   ;;  %s15590_s5 = inlined_call_operand.vmem [shape: f32[1,128], index: 5, kind: input, shape index: {}]   ;;  %s15591_s6 = inlined_call_operand.hbm [shape: f32[128,128], index: 6, kind: output, shape index: {}]  }
   0x1   :  { %v47_v0 = vld [vmem:[%s15585_s0 + $0x8] sm:$0xff]  ;;  %v46_v1 = vld [vmem:[%s15585_s0] sm:$0xff]  ;;  %10776 = vset.pattern.permute.xlu1 %v11889_v3  ;;  %10775 = vset.pattern.permute.xlu0 %v11889_v3  ;;  %v64_v7 = vld [vmem:[%s15586_s1 + $0x10] sm:$0xff] }
   0x2   :  { %v63_v2 = vld [vmem:[%s15586_s1 + $0x8] sm:$0xff]  ;;  %v62_v4 = vld [vmem:[%s15586_s1] sm:$0xff]  ;;  %98 = vperm.xlu1 %10776, %v47_v0   ;;  %95 = vperm.xlu0 %10775, %v46_v1   ;;  %v80_v8 = vadd.s32 20, %v64_v7  ;;  %v48_v9 = vld [vmem:[%s15585_s0 + $0x10] sm:$0xff] }
   0x3   :  { %v79_v5 = vadd.s32 20, %v63_v2  ;;  %v78_v6 = vadd.s32 20, %v62_v4  ;;  %v65_v10 = vld [vmem:[%s15586_s1 + $0x18] sm:$0xff]  ;;  %v66_v13 = vld [vmem:[%s15586_s1 + $0x20] sm:$0xff]  ;;  %v67_v16 = vld [vmem:[%s15586_s1 + $0x28] sm:$0xff] }
   0x4   :  { %v81_v11 = vadd.s32 20, %v65_v10  ;;  %v49_v12 = vld [vmem:[%s15585_s0 + $0x18] sm:$0xff]  ;;  %v82_v14 = vadd.s32 20, %v66_v13  ;;  %v50_v15 = vld [vmem:[%s15585_s0 + $0x20] sm:$0xff]  ;;  %v25_v18 = vld [vmem:[%s15587_s2 + $0x8] sm:$0xff]  ;;  %v83_v19 = vadd.s32 20, %v67_v16 }
   0x5   :  { %v24_v17 = vld [vmem:[%s15587_s2] sm:$0xff]  ;;  %v26_v21 = vld [vmem:[%s15587_s2 + $0x10] sm:$0xff]  ;;  %v51_v22 = vld [vmem:[%s15585_s0 + $0x28] sm:$0xff] }
   0x6   :  { %162 = vperm.xlu1 %10776, %v79_v5   ;;  %159 = vperm.xlu0 %10775, %v78_v6   ;;  %v11971_v20 = vpack.c.bf16 %v25_v18, %v24_v17  ;;  %v68_v23 = vld [vmem:[%s15586_s1 + $0x30] sm:$0xff]  ;;  %v27_v24 = vld [vmem:[%s15587_s2 + $0x18] sm:$0xff]  ;;  %v28_v26 = vld [vmem:[%s15587_s2 + $0x20] sm:$0xff] }
   0x7   :  { %v11986_v25 = vpack.c.bf16 %v27_v24, %v26_v21  ;;  %v29_v27 = vld [vmem:[%s15587_s2 + $0x28] sm:$0xff]  ;;  %v84_v28 = vadd.s32 20, %v68_v23  ;;  %v52_v29 = vld [vmem:[%s15585_s0 + $0x30] sm:$0xff]  ;;  %v69_v30 = vld [vmem:[%s15586_s1 + $0x38] sm:$0xff] }
   0x8   :  { %10308 = vmatprep.subr.bf16.mxu0 %v11971_v20  ;;  %10340 = vmatprep.subr.bf16.mxu1 %v11971_v20  ;;  %v12004_v31 = vpack.c.bf16 %v29_v27, %v28_v26  ;;  %v30_v32 = vld [vmem:[%s15587_s2 + $0x30] sm:$0xff]  ;;  %v31_v33 = vld [vmem:[%s15587_s2 + $0x38] sm:$0xff]  ;;  %v85_v34 = vadd.s32 20, %v69_v30  ;;  %v447_v36 = vld [vmem:[%s15586_s1 + $0x80] sm:$0xff] }
   0x9   :  { %10310 = vmatpush3.bf16.msra.mxu0 %v11971_v20  ;;  %10342 = vmatpush3.bf16.msra.mxu1 %v11971_v20  ;;  %v53_v35 = vld [vmem:[%s15585_s0 + $0x38] sm:$0xff]  ;;  %v12022_v37 = vpack.c.bf16 %v31_v33, %v30_v32  ;;  %v32_v38 = vld [vmem:[%s15587_s2 + $0x40] sm:$0xff]  ;;  %v33_v39 = vld [vmem:[%s15587_s2 + $0x48] sm:$0xff]  ;;  %v463_v40 = vadd.s32 20, %v447_v36 }
   0xa   :  { %165 = vperm.xlu1 %10776, %v80_v8   ;;  %101 = vperm.xlu0 %10775, %v48_v9   ;;  %v431_v41 = vld [vmem:[%s15585_s0 + $0x80] sm:$0xff]  ;;  %v448_v42 = vld [vmem:[%s15586_s1 + $0x88] sm:$0xff]  ;;  %v12040_v43 = vpack.c.bf16 %v33_v39, %v32_v38  ;;  %v34_v44 = vld [vmem:[%s15587_s2 + $0x50] sm:$0xff] }
   0xb   :  { %10312 = vmatprep.subr.bf16.mxu0 %v11986_v25  ;;  %10344 = vmatprep.subr.bf16.mxu1 %v11986_v25  ;;  %v35_v45 = vld [vmem:[%s15587_s2 + $0x58] sm:$0xff] }
   0xd   :  { %10314 = vmatpush3.bf16.msra.mxu0 %v11986_v25  ;;  %10346 = vmatpush3.bf16.msra.mxu1 %v11986_v25 }
   0xe   :  { %168 = vperm.xlu1 %10776, %v81_v11   ;;  %104 = vperm.xlu0 %10775, %v49_v12  }
   0xf   :  { %10316 = vmatprep.subr.bf16.mxu0 %v12004_v31  ;;  %10348 = vmatprep.subr.bf16.mxu1 %v12004_v31 }
  0x11   :  { %10318 = vmatpush3.bf16.msra.mxu0 %v12004_v31  ;;  %10350 = vmatpush3.bf16.msra.mxu1 %v12004_v31 }
  0x12   :  { %171 = vperm.xlu1 %10776, %v82_v14   ;;  %107 = vperm.xlu0 %10775, %v50_v15  }
  0x13   :  { %10320 = vmatprep.subr.bf16.mxu0 %v12022_v37  ;;  %10352 = vmatprep.subr.bf16.mxu1 %v12022_v37 }
  0x16   :  { %174 = vperm.xlu1 %10776, %v83_v19   ;;  %110 = vperm.xlu0 %10775, %v51_v22  }
  0x1a   :  { %177 = vperm.xlu1 %10776, %v84_v28   ;;  %113 = vperm.xlu0 %10775, %v52_v29  }
  0x1e   :  { %180 = vperm.xlu1 %10776, %v85_v34   ;;  %116 = vperm.xlu0 %10775, %v53_v35  }
  0x1f   :  { %11 = vsyncpa [#allocation4], 0  ;;  %10322 = vmatpush3.bf16.msra.mxu0 %v12022_v37  ;;  %10354 = vmatpush3.bf16.msra.mxu1 %v12022_v37  ;;  %v464_v46 = vadd.s32 20, %v448_v42  ;;  %v432_v47 = vld [vmem:[%s15585_s0 + $0x88] sm:$0xff]  ;;  %v70_v48 = vld [vmem:[%s15586_s1 + $0x40] sm:$0xff]  ;;  %v12058_v49 = vpack.c.bf16 %v35_v45, %v34_v44  ;;  %s11893_s24 = smov 64  }
  0x20   :  { %10324 = vmatprep.subr.bf16.mxu0 %v12040_v43  ;;  %10356 = vmatprep.subr.bf16.mxu1 %v12040_v43  ;;  %v36_v50 = vld [vmem:[%s15587_s2 + $0x60] sm:$0xff]  ;;  %v37_v51 = vld [vmem:[%s15587_s2 + $0x68] sm:$0xff]  ;;  %v86_v52 = vadd.s32 20, %v70_v48  ;;  %v38_v56 = vld [vmem:[%s15587_s2 + $0x70] sm:$0xff] }
  0x21   :  { %v54_v53 = vld [vmem:[%s15585_s0 + $0x40] sm:$0xff]  ;;  %v71_v54 = vld [vmem:[%s15586_s1 + $0x48] sm:$0xff]  ;;  %v12076_v55 = vpack.c.bf16 %v37_v51, %v36_v50  ;;  %v39_v57 = vld [vmem:[%s15587_s2 + $0x78] sm:$0xff] }
  0x22   :  { %544 = vperm.xlu1 %10776, %v463_v40   ;;  %480 = vperm.xlu0 %10775, %v431_v41   ;;  %v87_v58 = vadd.s32 20, %v71_v54  ;;  %v55_v59 = vld [vmem:[%s15585_s0 + $0x48] sm:$0xff]  ;;  %v449_v60 = vld [vmem:[%s15586_s1 + $0x90] sm:$0xff]  ;;  %v12094_v61 = vpack.c.bf16 %v39_v57, %v38_v56  ;;  %v450_v0 = vld [vmem:[%s15586_s1 + $0x98] sm:$0xff] }
  0x23   :  { %10326 = vmatpush3.bf16.msra.mxu0 %v12040_v43  ;;  %10358 = vmatpush3.bf16.msra.mxu1 %v12040_v43  ;;  %v465_v62 = vadd.s32 20, %v449_v60  ;;  %v433_v63 = vld [vmem:[%s15585_s0 + $0x90] sm:$0xff]  ;;  %v466_v1 = vadd.s32 20, %v450_v0  ;;  %v434_v2 = vld [vmem:[%s15585_s0 + $0x98] sm:$0xff]  ;;  %v451_v9 = vld [vmem:[%s15586_s1 + $0xa0] sm:$0xff] }
  0x24   :  { %10328 = vmatprep.subr.bf16.mxu0 %v12058_v49  ;;  %10360 = vmatprep.subr.bf16.mxu1 %v12058_v49  ;;  %v72_v3 = vld [vmem:[%s15586_s1 + $0x50] sm:$0xff]  ;;  %v73_v6 = vld [vmem:[%s15586_s1 + $0x58] sm:$0xff]  ;;  %v467_v10 = vadd.s32 20, %v451_v9  ;;  %v435_v11 = vld [vmem:[%s15585_s0 + $0xa0] sm:$0xff] }
  0x25   :  { %v88_v4 = vadd.s32 20, %v72_v3  ;;  %v56_v5 = vld [vmem:[%s15585_s0 + $0x50] sm:$0xff]  ;;  %v89_v7 = vadd.s32 20, %v73_v6  ;;  %v57_v8 = vld [vmem:[%s15585_s0 + $0x58] sm:$0xff]  ;;  %v452_v12 = vld [vmem:[%s15586_s1 + $0xa8] sm:$0xff] }
  0x26   :  { %547 = vperm.xlu1 %10776, %v464_v46   ;;  %483 = vperm.xlu0 %10775, %v432_v47   ;;  %v468_v13 = vadd.s32 20, %v452_v12  ;;  %v436_v14 = vld [vmem:[%s15585_s0 + $0xa8] sm:$0xff]  ;;  %v74_v15 = vld [vmem:[%s15586_s1 + $0x60] sm:$0xff]  ;;  %v453_v22 = vld [vmem:[%s15586_s1 + $0xb0] sm:$0xff] }
  0x27   :  { %10330 = vmatpush3.bf16.msra.mxu0 %v12058_v49  ;;  %10362 = vmatpush3.bf16.msra.mxu1 %v12058_v49  ;;  %v90_v16 = vadd.s32 20, %v74_v15  ;;  %v58_v17 = vld [vmem:[%s15585_s0 + $0x60] sm:$0xff]  ;;  %v75_v18 = vld [vmem:[%s15586_s1 + $0x68] sm:$0xff]  ;;  %v469_v23 = vadd.s32 20, %v453_v22  ;;  %v437_v24 = vld [vmem:[%s15585_s0 + $0xb0] sm:$0xff] }
  0x28   :  { %10332 = vmatprep.subr.bf16.mxu0 %v12076_v55  ;;  %10364 = vmatprep.subr.bf16.mxu1 %v12076_v55  ;;  %v91_v19 = vadd.s32 20, %v75_v18  ;;  %v59_v21 = vld [vmem:[%s15585_s0 + $0x68] sm:$0xff]  ;;  %v454_v26 = vld [vmem:[%s15586_s1 + $0xb8] sm:$0xff]  ;;  %v76_v29 = vld [vmem:[%s15586_s1 + $0x70] sm:$0xff] }
  0x29   :  { %v470_v27 = vadd.s32 20, %v454_v26  ;;  %v438_v28 = vld [vmem:[%s15585_s0 + $0xb8] sm:$0xff]  ;;  %v92_v30 = vadd.s32 20, %v76_v29  ;;  %v60_v32 = vld [vmem:[%s15585_s0 + $0x70] sm:$0xff]  ;;  %v455_v36 = vld [vmem:[%s15586_s1 + $0xc0] sm:$0xff] }
  0x2a   :  { %183 = vperm.xlu1 %10776, %v86_v52   ;;  %119 = vperm.xlu0 %10775, %v54_v53   ;;  %v77_v33 = vld [vmem:[%s15586_s1 + $0x78] sm:$0xff]  ;;  %v471_v38 = vadd.s32 20, %v455_v36  ;;  %v439_v39 = vld [vmem:[%s15585_s0 + $0xc0] sm:$0xff]  ;;  %v456_v40 = vld [vmem:[%s15586_s1 + $0xc8] sm:$0xff] }
  0x2b   :  { %10334 = vmatpush3.bf16.msra.mxu0 %v12076_v55  ;;  %10366 = vmatpush3.bf16.msra.mxu1 %v12076_v55  ;;  %v93_v34 = vadd.s32 20, %v77_v33  ;;  %v61_v35 = vld [vmem:[%s15585_s0 + $0x78] sm:$0xff]  ;;  %v472_v41 = vadd.s32 20, %v456_v40  ;;  %v440_v42 = vld [vmem:[%s15585_s0 + $0xc8] sm:$0xff]  ;;  %v832_v44 = vld [vmem:[%s15586_s1 + $0x100] sm:$0xff] }
  0x2c   :  { %10336 = vmatprep.subr.bf16.mxu0 %v12094_v61  ;;  %10368 = vmatprep.subr.bf16.mxu1 %v12094_v61  ;;  %v848_v45 = vadd.s32 20, %v832_v44  ;;  %v816_v46 = vld [vmem:[%s15585_s0 + $0x100] sm:$0xff]  ;;  %v833_v47 = vld [vmem:[%s15586_s1 + $0x108] sm:$0xff]  ;;  %v457_v51 = vld [vmem:[%s15586_s1 + $0xd0] sm:$0xff] }
  0x2d   :  { %v849_v48 = vadd.s32 20, %v833_v47  ;;  %v817_v50 = vld [vmem:[%s15585_s0 + $0x108] sm:$0xff]  ;;  %v473_v52 = vadd.s32 20, %v457_v51  ;;  %v441_v53 = vld [vmem:[%s15585_s0 + $0xd0] sm:$0xff]  ;;  %v458_v54 = vld [vmem:[%s15586_s1 + $0xd8] sm:$0xff] }
  0x2e   :  { %186 = vperm.xlu1 %10776, %v87_v58   ;;  %122 = vperm.xlu0 %10775, %v55_v59   ;;  %v474_v56 = vadd.s32 20, %v458_v54  ;;  %v442_v57 = vld [vmem:[%s15585_s0 + $0xd8] sm:$0xff]  ;;  %v834_v58 = vld [vmem:[%s15586_s1 + $0x110] sm:$0xff]  ;;  %v837_v15 = vld [vmem:[%s15586_s1 + $0x128] sm:$0xff] }
  0x2f   :  { %10338 = vmatpush3.bf16.msra.mxu0 %v12094_v61  ;;  %10370 = vmatpush3.bf16.msra.mxu1 %v12094_v61  ;;  %v850_v59 = vadd.s32 20, %v834_v58  ;;  %v818_v60 = vld [vmem:[%s15585_s0 + $0x110] sm:$0xff]  ;;  %v819_v0 = vld [vmem:[%s15585_s0 + $0x118] sm:$0xff]  ;;  %v840_v58 = vld [vmem:[%s15586_s1 + $0x140] sm:$0xff] }
  0x30   :  { %10372 = vmatprep.subr.bf16.mxu0 %v11971_v20  ;;  %10404 = vmatprep.subr.bf16.mxu1 %v11971_v20  ;;  %v461_v22 = vld [vmem:[%s15586_s1 + $0xf0] sm:$0xff]  ;;  %v839_v40 = vld [vmem:[%s15586_s1 + $0x138] sm:$0xff] }
  0x31   :  { %v445_v29 = vld [vmem:[%s15585_s0 + $0xf0] sm:$0xff]  ;;  %v823_v47 = vld [vmem:[%s15585_s0 + $0x138] sm:$0xff] }
  0x32   :  { %550 = vperm.xlu1 %10776, %v465_v62   ;;  %486 = vperm.xlu0 %10775, %v433_v63   ;;  %v835_v62 = vld [vmem:[%s15586_s1 + $0x118] sm:$0xff] }
  0x33   :  { %v851_v63 = vadd.s32 20, %v835_v62 }
  0x36   :  { %553 = vperm.xlu1 %10776, %v466_v1   ;;  %489 = vperm.xlu0 %10775, %v434_v2   ;;  %v459_v1 = vld [vmem:[%s15586_s1 + $0xe0] sm:$0xff]  ;;  %v44_v2 = vlaneseq }
  0x37   :  { %v475_v3 = vadd.s32 20, %v459_v1  ;;  %v824_v1 = vld [vmem:[%s15585_s0 + $0x140] sm:$0xff] }
  0x3a   :  { %189 = vperm.xlu1 %10776, %v88_v4   ;;  %125 = vperm.xlu0 %10775, %v56_v5   ;;  %v443_v4 = vld [vmem:[%s15585_s0 + $0xe0] sm:$0xff]  ;;  %v460_v5 = vld [vmem:[%s15586_s1 + $0xe8] sm:$0xff] }
  0x3b   :  { %v476_v9 = vadd.s32 20, %v460_v5  ;;  %v1219_v5 = vld [vmem:[%s15586_s1 + $0x190] sm:$0xff] }
  0x3e   :  { %192 = vperm.xlu1 %10776, %v89_v7   ;;  %128 = vperm.xlu0 %10775, %v57_v8   ;;  %v12231_v8 = vand.u32 127, %v44_v2 }
  0x42   :  { %556 = vperm.xlu1 %10776, %v467_v10   ;;  %492 = vperm.xlu0 %10775, %v435_v11   ;;  %v444_v10 = vld [vmem:[%s15585_s0 + $0xe8] sm:$0xff]  ;;  %v836_v11 = vld [vmem:[%s15586_s1 + $0x120] sm:$0xff] }
  0x46   :  { %559 = vperm.xlu1 %10776, %v468_v13   ;;  %495 = vperm.xlu0 %10775, %v436_v14   ;;  %v852_v14 = vadd.s32 20, %v836_v11  ;;  %v1220_v11 = vld [vmem:[%s15586_s1 + $0x198] sm:$0xff] }
  0x4a   :  { %195 = vperm.xlu1 %10776, %v90_v16   ;;  %131 = vperm.xlu0 %10775, %v58_v17   ;;  %v820_v16 = vld [vmem:[%s15585_s0 + $0x120] sm:$0xff]  ;;  %v11890_v17 = vmov 1.0  }
  0x4e   :  { %198 = vperm.xlu1 %10776, %v91_v19   ;;  %134 = vperm.xlu0 %10775, %v59_v21   ;;  %v853_v21 = vadd.s32 20, %v837_v15  ;;  %v1236_v15 = vadd.s32 20, %v1220_v11 }
  0x52   :  { %562 = vperm.xlu1 %10776, %v469_v23   ;;  %498 = vperm.xlu0 %10775, %v437_v24   ;;  %v821_v23 = vld [vmem:[%s15585_s0 + $0x128] sm:$0xff] }
  0x56   :  { %565 = vperm.xlu1 %10776, %v470_v27   ;;  %501 = vperm.xlu0 %10775, %v438_v28   ;;  %v477_v27 = vadd.s32 20, %v461_v22  ;;  %v462_v28 = vld [vmem:[%s15586_s1 + $0xf8] sm:$0xff] }
  0x57   :  { %v478_v33 = vadd.s32 20, %v462_v28 }
  0x5a   :  { %201 = vperm.xlu1 %10776, %v92_v30   ;;  %137 = vperm.xlu0 %10775, %v60_v32  }
  0x5e   :  { %204 = vperm.xlu1 %10776, %v93_v34   ;;  %140 = vperm.xlu0 %10775, %v61_v35   ;;  %v838_v34 = vld [vmem:[%s15586_s1 + $0x130] sm:$0xff]  ;;  %v446_v35 = vld [vmem:[%s15585_s0 + $0xf8] sm:$0xff] }
  0x62   :  { %568 = vperm.xlu1 %10776, %v471_v38   ;;  %504 = vperm.xlu0 %10775, %v439_v39   ;;  %v854_v39 = vadd.s32 20, %v838_v34 }
  0x66   :  { %571 = vperm.xlu1 %10776, %v472_v41   ;;  %507 = vperm.xlu0 %10775, %v440_v42   ;;  %v822_v41 = vld [vmem:[%s15585_s0 + $0x130] sm:$0xff] }
  0x6a   :  { %929 = vperm.xlu1 %10776, %v848_v45   ;;  %865 = vperm.xlu0 %10775, %v816_v46   ;;  %v855_v45 = vadd.s32 20, %v839_v40  ;;  %v1217_v46 = vld [vmem:[%s15586_s1 + $0x180] sm:$0xff] }
  0x6b   :  { %v1233_v51 = vadd.s32 20, %v1217_v46 }
  0x6e   :  { %932 = vperm.xlu1 %10776, %v849_v48   ;;  %868 = vperm.xlu0 %10775, %v817_v50  }
  0x72   :  { %574 = vperm.xlu1 %10776, %v473_v52   ;;  %510 = vperm.xlu0 %10775, %v441_v53   ;;  %v1218_v52 = vld [vmem:[%s15586_s1 + $0x188] sm:$0xff]  ;;  %v1201_v53 = vld [vmem:[%s15585_s0 + $0x180] sm:$0xff] }
  0x76   :  { %577 = vperm.xlu1 %10776, %v474_v56   ;;  %513 = vperm.xlu0 %10775, %v442_v57   ;;  %v1234_v57 = vadd.s32 20, %v1218_v52 }
  0x7a   :  { %935 = vperm.xlu1 %10776, %v850_v59   ;;  %871 = vperm.xlu0 %10775, %v818_v60   ;;  %v1202_v59 = vld [vmem:[%s15585_s0 + $0x188] sm:$0xff] }
  0x7e   :  { %938 = vperm.xlu1 %10776, %v851_v63   ;;  %874 = vperm.xlu0 %10775, %v819_v0   ;;  %v856_v63 = vadd.s32 20, %v840_v58  ;;  %v841_v0 = vld [vmem:[%s15586_s1 + $0x148] sm:$0xff] }
  0x81   :  { %v99_v6 = vpop.permute.xlu1 %98  ;;  %v96_v7 = vpop.permute.xlu0 %95 }
  0x82   :  { %580 = vperm.xlu1 %10776, %v475_v3   ;;  %516 = vperm.xlu0 %10775, %v443_v4   ;;  %vm143_vm0 = vcmp.eq.s32.totalorder %v99_v6, %v12231_v8  ;;  %vm142_vm4 = vcmp.eq.s32.totalorder %v96_v7, %v12231_v8  ;;  %v857_v4 = vadd.s32 20, %v841_v0  ;;  %v825_v6 = vld [vmem:[%s15585_s0 + $0x148] sm:$0xff] }
  0x85   :  { %v163_v12 = vpop.permute.xlu1 %162  ;;  %v160_v13 = vpop.permute.xlu0 %159 }
  0x86   :  { %vm207_vm1 = vcmp.eq.s32.totalorder %v163_v12, %v12231_v8  ;;  %583 = vperm.xlu1 %10776, %v476_v9   ;;  %519 = vperm.xlu0 %10775, %v444_v10   ;;  %vm206_vm2 = vcmp.eq.s32.totalorder %v160_v13, %v12231_v8  ;;  %v1235_v10 = vadd.s32 20, %v1219_v5  ;;  %v1203_v12 = vld [vmem:[%s15585_s0 + $0x190] sm:$0xff] }
  0x87   :  { %vm223_vm3 = vmor %vm143_vm0, %vm207_vm1 }
  0x88   :  { %vm222_vm5 = vmor %vm142_vm4, %vm206_vm2 }
  0x89   :  { %9603 = vmatprep.mubr.msk.f32.mxu0 %vm222_vm5, %v11890_v17  ;;  %v166_v18 = vpop.permute.xlu1 %165  ;;  %v102_v19 = vpop.permute.xlu0 %101 }
  0x8a   :  { %vm208_vm6 = vcmp.eq.s32.totalorder %v166_v18, %v12231_v8  ;;  %vm144_vm7 = vcmp.eq.s32.totalorder %v102_v19, %v12231_v8  ;;  %9604 = vmatmul.mubr.msk.f32.vlgmr.msra.gmra.mrb[0].mxu0 %vm223_vm3, %v11890_v17  ;;  %941 = vperm.xlu1 %10776, %v852_v14   ;;  %v1204_v18 = vld [vmem:[%s15585_s0 + $0x198] sm:$0xff] }
  0x8b   :  { %vm224_vm8 = vmor %vm144_vm7, %vm208_vm6  ;;  %877 = vperm.xlu0 %10775, %v820_v16   ;;  %10374 = vmatpush3.bf16.msra.mxu0 %v11971_v20  ;;  %v842_v16 = vld [vmem:[%s15586_s1 + $0x150] sm:$0xff] }
  0x8c   :  { %9606 = vmatprep.mubr.msk.f32.mxu0 %vm224_vm8, %v11890_v17  ;;  %10376 = vmatprep.subr.bf16.mxu0 %v11986_v25  ;;  %v858_v22 = vadd.s32 20, %v842_v16 }
  0x8d   :  { %v169_v24 = vpop.permute.xlu1 %168  ;;  %v105_v26 = vpop.permute.xlu0 %104 }
  0x8e   :  { %vm209_vm9 = vcmp.eq.s32.totalorder %v169_v24, %v12231_v8  ;;  %vm145_vm10 = vcmp.eq.s32.totalorder %v105_v26, %v12231_v8  ;;  %944 = vperm.xlu1 %10776, %v853_v21   ;;  %v826_v24 = vld [vmem:[%s15585_s0 + $0x150] sm:$0xff] }
  0x8f   :  { %vm225_vm11 = vmor %vm145_vm10, %vm209_vm9  ;;  %880 = vperm.xlu0 %10775, %v821_v23   ;;  %10378 = vmatpush3.bf16.msra.mxu0 %v11986_v25  ;;  %v843_v23 = vld [vmem:[%s15586_s1 + $0x158] sm:$0xff] }
  0x90   :  { %9607 = vmatmul.mubr.msk.f32.gmra.mrb[2].mxu0 %vm225_vm11, %v11890_v17  ;;  %10380 = vmatprep.subr.bf16.mxu0 %v12004_v31  ;;  %v859_v28 = vadd.s32 20, %v843_v23 }
  0x91   :  { %v172_v30 = vpop.permute.xlu1 %171  ;;  %v108_v32 = vpop.permute.xlu0 %107 }
  0x92   :  { %vm210_vm12 = vcmp.eq.s32.totalorder %v172_v30, %v12231_v8  ;;  %vm146_vm13 = vcmp.eq.s32.totalorder %v108_v32, %v12231_v8  ;;  %586 = vperm.xlu1 %10776, %v477_v27   ;;  %v827_v30 = vld [vmem:[%s15585_s0 + $0x158] sm:$0xff] }
  0x93   :  { %vm226_vm14 = vmor %vm146_vm13, %vm210_vm12  ;;  %522 = vperm.xlu0 %10775, %v445_v29   ;;  %10382 = vmatpush3.bf16.msra.mxu0 %v12004_v31  ;;  %v1221_v29 = vld [vmem:[%s15586_s1 + $0x1a0] sm:$0xff] }
  0x94   :  { %9609 = vmatprep.mubr.msk.f32.mxu0 %vm226_vm14, %v11890_v17  ;;  %10384 = vmatprep.subr.bf16.mxu0 %v12022_v37  ;;  %v1237_v34 = vadd.s32 20, %v1221_v29 }
  0x95   :  { %v175_v36 = vpop.permute.xlu1 %174  ;;  %v111_v38 = vpop.permute.xlu0 %110 }
  0x96   :  { %vm211_vm15 = vcmp.eq.s32.totalorder %v175_v36, %v12231_v8  ;;  %vm147_vm0 = vcmp.eq.s32.totalorder %v111_v38, %v12231_v8  ;;  %589 = vperm.xlu1 %10776, %v478_v33   ;;  %v1205_v36 = vld [vmem:[%s15585_s0 + $0x1a0] sm:$0xff] }
  0x97   :  { %vm227_vm1 = vmor %vm147_vm0, %vm211_vm15  ;;  %525 = vperm.xlu0 %10775, %v446_v35   ;;  %10386 = vmatpush3.bf16.msra.mxu0 %v12022_v37  ;;  %v1222_v35 = vld [vmem:[%s15586_s1 + $0x1a8] sm:$0xff] }
  0x98   :  { %9610 = vmatmul.mubr.msk.f32.gmra.mrb[4].mxu0 %vm227_vm1, %v11890_v17  ;;  %10388 = vmatprep.subr.bf16.mxu0 %v12040_v43  ;;  %v1238_v40 = vadd.s32 20, %v1222_v35 }
  0x99   :  { %v178_v42 = vpop.permute.xlu1 %177  ;;  %v114_v44 = vpop.permute.xlu0 %113 }
  0x9a   :  { %vm212_vm2 = vcmp.eq.s32.totalorder %v178_v42, %v12231_v8  ;;  %vm148_vm3 = vcmp.eq.s32.totalorder %v114_v44, %v12231_v8  ;;  %947 = vperm.xlu1 %10776, %v854_v39   ;;  %v1206_v42 = vld [vmem:[%s15585_s0 + $0x1a8] sm:$0xff] }
  0x9b   :  { %vm228_vm4 = vmor %vm148_vm3, %vm212_vm2  ;;  %883 = vperm.xlu0 %10775, %v822_v41   ;;  %10390 = vmatpush3.bf16.msra.mxu0 %v12040_v43  ;;  %v844_v41 = vld [vmem:[%s15586_s1 + $0x160] sm:$0xff] }
  0x9c   :  { %9612 = vmatprep.mubr.msk.f32.mxu0 %vm228_vm4, %v11890_v17  ;;  %10392 = vmatprep.subr.bf16.mxu0 %v12058_v49  ;;  %v860_v46 = vadd.s32 20, %v844_v41 }
  0x9d   :  { %v181_v48 = vpop.permute.xlu1 %180  ;;  %v117_v50 = vpop.permute.xlu0 %116 }
  0x9e   :  { %vm213_vm5 = vcmp.eq.s32.totalorder %v181_v48, %v12231_v8  ;;  %vm149_vm6 = vcmp.eq.s32.totalorder %v117_v50, %v12231_v8  ;;  %950 = vperm.xlu1 %10776, %v855_v45   ;;  %v828_v48 = vld [vmem:[%s15585_s0 + $0x160] sm:$0xff] }
  0x9f   :  { %vm229_vm7 = vmor %vm149_vm6, %vm213_vm5  ;;  %886 = vperm.xlu0 %10775, %v823_v47   ;;  %10394 = vmatpush3.bf16.msra.mxu0 %v12058_v49  ;;  %v845_v47 = vld [vmem:[%s15586_s1 + $0x168] sm:$0xff] }
  0xa0   :  { %9613 = vmatmul.mubr.msk.f32.gmra.mrb[6].mxu0 %vm229_vm7, %v11890_v17  ;;  %10396 = vmatprep.subr.bf16.mxu0 %v12076_v55  ;;  %v861_v52 = vadd.s32 20, %v845_v47 }
  0xa1   :  { %v545_v54 = vpop.permute.xlu1 %544  ;;  %v481_v56 = vpop.permute.xlu0 %480 }
  0xa2   :  { %1314 = vperm.xlu1 %10776, %v1233_v51   ;;  %vm527_vm8 = vcmp.eq.s32.totalorder %v481_v56, %v12231_v8  ;;  %vm591_vm9 = vcmp.eq.s32.totalorder %v545_v54, %v12231_v8  ;;  %v829_v54 = vld [vmem:[%s15585_s0 + $0x168] sm:$0xff] }
  0xa3   :  { %1250 = vperm.xlu0 %10775, %v1201_v53   ;;  %vm607_vm10 = vmor %vm527_vm8, %vm591_vm9  ;;  %10398 = vmatpush3.bf16.msra.mxu0 %v12076_v55  ;;  %v1223_v53 = vld [vmem:[%s15586_s1 + $0x1b0] sm:$0xff] }
  0xa4   :  { %9659 = vmatprep.mubr.msk.f32.mxu1 %vm607_vm10, %v11890_v17  ;;  %10400 = vmatprep.subr.bf16.mxu0 %v12094_v61  ;;  %v1239_v58 = vadd.s32 20, %v1223_v53 }
  0xa5   :  { %v548_v60 = vpop.permute.xlu1 %547  ;;  %v484_v62 = vpop.permute.xlu0 %483 }
  0xa6   :  { %vm592_vm11 = vcmp.eq.s32.totalorder %v548_v60, %v12231_v8  ;;  %vm528_vm12 = vcmp.eq.s32.totalorder %v484_v62, %v12231_v8  ;;  %1317 = vperm.xlu1 %10776, %v1234_v57   ;;  %v1207_v60 = vld [vmem:[%s15585_s0 + $0x1b0] sm:$0xff] }
  0xa7   :  { %vm608_vm13 = vmor %vm528_vm12, %vm592_vm11  ;;  %1253 = vperm.xlu0 %10775, %v1202_v59   ;;  %10402 = vmatpush3.bf16.msra.mxu0 %v12094_v61  ;;  %v1224_v59 = vld [vmem:[%s15586_s1 + $0x1b8] sm:$0xff] }
  0xa8   :  { %9660 = vmatmul.mubr.msk.f32.vlgmr.msra.gmra.mrb[0].mxu1 %vm608_vm13, %v11890_v17  ;;  %10436 = vmatprep.subr.bf16.mxu0 %v11971_v20  ;;  %v1240_v0 = vadd.s32 20, %v1224_v59 }
  0xa9   :  { %v184_v2 = vpop.permute.xlu1 %183  ;;  %v120_v3 = vpop.permute.xlu0 %119  ;;  %10406 = vmatpush3.bf16.msra.mxu1 %v11971_v20 }
  0xaa   :  { %vm214_vm14 = vcmp.eq.s32.totalorder %v184_v2, %v12231_v8  ;;  %vm150_vm15 = vcmp.eq.s32.totalorder %v120_v3, %v12231_v8  ;;  %953 = vperm.xlu1 %10776, %v856_v63   ;;  %10408 = vmatprep.subr.bf16.mxu1 %v11986_v25  ;;  %v1208_v2 = vld [vmem:[%s15585_s0 + $0x1b8] sm:$0xff] }
  0xab   :  { %vm230_vm0 = vmor %vm150_vm15, %vm214_vm14  ;;  %889 = vperm.xlu0 %10775, %v824_v1   ;;  %v846_v1 = vld [vmem:[%s15586_s1 + $0x170] sm:$0xff] }
  0xac   :  { %9615 = vmatprep.mubr.msk.f32.mxu0 %vm230_vm0, %v11890_v17  ;;  %v862_v5 = vadd.s32 20, %v846_v1 }
  0xad   :  { %v187_v7 = vpop.permute.xlu1 %186  ;;  %v123_v9 = vpop.permute.xlu0 %122  ;;  %10410 = vmatpush3.bf16.msra.mxu1 %v11986_v25 }
  0xae   :  { %vm215_vm1 = vcmp.eq.s32.totalorder %v187_v7, %v12231_v8  ;;  %vm151_vm2 = vcmp.eq.s32.totalorder %v123_v9, %v12231_v8  ;;  %956 = vperm.xlu1 %10776, %v857_v4   ;;  %10412 = vmatprep.subr.bf16.mxu1 %v12004_v31  ;;  %v830_v7 = vld [vmem:[%s15585_s0 + $0x170] sm:$0xff] }
  0xaf   :  { %vm231_vm3 = vmor %vm151_vm2, %vm215_vm1  ;;  %892 = vperm.xlu0 %10775, %v825_v6   ;;  %v847_v6 = vld [vmem:[%s15586_s1 + $0x178] sm:$0xff] }
  0xb0   :  { %9616 = vmatmul.mubr.msk.f32.gmra.mrb[8].mxu0 %vm231_vm3, %v11890_v17  ;;  %v863_v11 = vadd.s32 20, %v847_v6 }
  0xb1   :  { %v551_v13 = vpop.permute.xlu1 %550  ;;  %v487_v14 = vpop.permute.xlu0 %486  ;;  %10414 = vmatpush3.bf16.msra.mxu1 %v12004_v31 }
  0xb2   :  { %vm593_vm4 = vcmp.eq.s32.totalorder %v551_v13, %v12231_v8  ;;  %vm529_vm5 = vcmp.eq.s32.totalorder %v487_v14, %v12231_v8  ;;  %1320 = vperm.xlu1 %10776, %v1235_v10   ;;  %10416 = vmatprep.subr.bf16.mxu1 %v12022_v37  ;;  %v831_v13 = vld [vmem:[%s15585_s0 + $0x178] sm:$0xff] }
  0xb3   :  { %vm609_vm6 = vmor %vm529_vm5, %vm593_vm4  ;;  %1256 = vperm.xlu0 %10775, %v1203_v12   ;;  %v1225_v12 = vld [vmem:[%s15586_s1 + $0x1c0] sm:$0xff] }
  0xb4   :  { %9662 = vmatprep.mubr.msk.f32.mxu1 %vm609_vm6, %v11890_v17  ;;  %v1241_v16 = vadd.s32 20, %v1225_v12 }
  0xb5   :  { %v554_v19 = vpop.permute.xlu1 %553  ;;  %v490_v21 = vpop.permute.xlu0 %489  ;;  %10418 = vmatpush3.bf16.msra.mxu1 %v12022_v37 }
  0xb6   :  { %vm594_vm7 = vcmp.eq.s32.totalorder %v554_v19, %v12231_v8  ;;  %vm530_vm8 = vcmp.eq.s32.totalorder %v490_v21, %v12231_v8  ;;  %1323 = vperm.xlu1 %10776, %v1236_v15   ;;  %10420 = vmatprep.subr.bf16.mxu1 %v12040_v43  ;;  %v1209_v19 = vld [vmem:[%s15585_s0 + $0x1c0] sm:$0xff] }
  0xb7   :  { %vm610_vm9 = vmor %vm530_vm8, %vm594_vm7  ;;  %1259 = vperm.xlu0 %10775, %v1204_v18   ;;  %v1226_v18 = vld [vmem:[%s15586_s1 + $0x1c8] sm:$0xff] }
  0xb8   :  { %9663 = vmatmul.mubr.msk.f32.gmra.mrb[2].mxu1 %vm610_vm9, %v11890_v17  ;;  %v1242_v23 = vadd.s32 20, %v1226_v18 }
  0xb9   :  { %v190_v26 = vpop.permute.xlu1 %189  ;;  %v126_v27 = vpop.permute.xlu0 %125  ;;  %10422 = vmatpush3.bf16.msra.mxu1 %v12040_v43 }
  0xba   :  { %vm216_vm10 = vcmp.eq.s32.totalorder %v190_v26, %v12231_v8  ;;  %vm152_vm11 = vcmp.eq.s32.totalorder %v126_v27, %v12231_v8  ;;  %959 = vperm.xlu1 %10776, %v858_v22   ;;  %10424 = vmatprep.subr.bf16.mxu1 %v12058_v49  ;;  %v1210_v26 = vld [vmem:[%s15585_s0 + $0x1c8] sm:$0xff] }
  0xbb   :  { %vm232_vm12 = vmor %vm152_vm11, %vm216_vm10  ;;  %895 = vperm.xlu0 %10775, %v826_v24   ;;  %v1602_v24 = vld [vmem:[%s15586_s1 + $0x200] sm:$0xff] }
  0xbc   :  { %9618 = vmatprep.mubr.msk.f32.mxu0 %vm232_vm12, %v11890_v17  ;;  %v1618_v29 = vadd.s32 20, %v1602_v24 }
  0xbd   :  { %v193_v32 = vpop.permute.xlu1 %192  ;;  %v129_v33 = vpop.permute.xlu0 %128  ;;  %10426 = vmatpush3.bf16.msra.mxu1 %v12058_v49 }
  0xbe   :  { %vm217_vm13 = vcmp.eq.s32.totalorder %v193_v32, %v12231_v8  ;;  %vm153_vm14 = vcmp.eq.s32.totalorder %v129_v33, %v12231_v8  ;;  %962 = vperm.xlu1 %10776, %v859_v28   ;;  %10428 = vmatprep.subr.bf16.mxu1 %v12076_v55  ;;  %v1586_v32 = vld [vmem:[%s15585_s0 + $0x200] sm:$0xff] }
  0xbf   :  { %vm233_vm15 = vmor %vm153_vm14, %vm217_vm13  ;;  %898 = vperm.xlu0 %10775, %v827_v30   ;;  %v1603_v30 = vld [vmem:[%s15586_s1 + $0x208] sm:$0xff] }
  0xc0   :  { %9619 = vmatmul.mubr.msk.f32.gmra.mrb[10].mxu0 %vm233_vm15, %v11890_v17  ;;  %v1619_v35 = vadd.s32 20, %v1603_v30 }
  0xc1   :  { %v557_v38 = vpop.permute.xlu1 %556  ;;  %v493_v39 = vpop.permute.xlu0 %492  ;;  %10430 = vmatpush3.bf16.msra.mxu1 %v12076_v55 }
  0xc2   :  { %vm595_vm0 = vcmp.eq.s32.totalorder %v557_v38, %v12231_v8  ;;  %vm531_vm1 = vcmp.eq.s32.totalorder %v493_v39, %v12231_v8  ;;  %1326 = vperm.xlu1 %10776, %v1237_v34   ;;  %10432 = vmatprep.subr.bf16.mxu1 %v12094_v61  ;;  %v1587_v38 = vld [vmem:[%s15585_s0 + $0x208] sm:$0xff] }
  0xc3   :  { %vm611_vm2 = vmor %vm531_vm1, %vm595_vm0  ;;  %1262 = vperm.xlu0 %10775, %v1205_v36   ;;  %v1227_v36 = vld [vmem:[%s15586_s1 + $0x1d0] sm:$0xff] }
  0xc4   :  { %9665 = vmatprep.mubr.msk.f32.mxu1 %vm611_vm2, %v11890_v17  ;;  %v1243_v41 = vadd.s32 20, %v1227_v36 }
  0xc5   :  { %v560_v44 = vpop.permute.xlu1 %559  ;;  %v496_v45 = vpop.permute.xlu0 %495  ;;  %10434 = vmatpush3.bf16.msra.mxu1 %v12094_v61 }
  0xc6   :  { %vm596_vm3 = vcmp.eq.s32.totalorder %v560_v44, %v12231_v8  ;;  %vm532_vm4 = vcmp.eq.s32.totalorder %v496_v45, %v12231_v8  ;;  %1329 = vperm.xlu1 %10776, %v1238_v40   ;;  %10468 = vmatprep.subr.bf16.mxu1 %v11971_v20  ;;  %v1211_v44 = vld [vmem:[%s15585_s0 + $0x1d0] sm:$0xff] }
  0xc7   :  { %vm612_vm5 = vmor %vm532_vm4, %vm596_vm3  ;;  %1265 = vperm.xlu0 %10775, %v1206_v42   ;;  %v1228_v42 = vld [vmem:[%s15586_s1 + $0x1d8] sm:$0xff] }
  0xc8   :  { %9666 = vmatmul.mubr.msk.f32.gmra.mrb[4].mxu1 %vm612_vm5, %v11890_v17  ;;  %v1244_v47 = vadd.s32 20, %v1228_v42 }
  0xc9   :  { %v196_v50 = vpop.permute.xlu1 %195  ;;  %v132_v51 = vpop.permute.xlu0 %131 }
  0xca   :  { %vm218_vm6 = vcmp.eq.s32.totalorder %v196_v50, %v12231_v8  ;;  %vm154_vm7 = vcmp.eq.s32.totalorder %v132_v51, %v12231_v8  ;;  %965 = vperm.xlu1 %10776, %v860_v46   ;;  %v1212_v50 = vld [vmem:[%s15585_s0 + $0x1d8] sm:$0xff] }
  0xcb   :  { %vm234_vm8 = vmor %vm154_vm7, %vm218_vm6  ;;  %901 = vperm.xlu0 %10775, %v828_v48   ;;  %v1604_v48 = vld [vmem:[%s15586_s1 + $0x210] sm:$0xff] }
  0xcc   :  { %9621 = vmatprep.mubr.msk.f32.mxu0 %vm234_vm8, %v11890_v17  ;;  %v1620_v53 = vadd.s32 20, %v1604_v48 }
  0xcd   :  { %v199_v56 = vpop.permute.xlu1 %198  ;;  %v135_v57 = vpop.permute.xlu0 %134 }
  0xce   :  { %vm219_vm9 = vcmp.eq.s32.totalorder %v199_v56, %v12231_v8  ;;  %vm155_vm10 = vcmp.eq.s32.totalorder %v135_v57, %v12231_v8  ;;  %968 = vperm.xlu1 %10776, %v861_v52   ;;  %v1588_v56 = vld [vmem:[%s15585_s0 + $0x210] sm:$0xff] }
  0xcf   :  { %vm235_vm11 = vmor %vm155_vm10, %vm219_vm9  ;;  %904 = vperm.xlu0 %10775, %v829_v54   ;;  %v1605_v54 = vld [vmem:[%s15586_s1 + $0x218] sm:$0xff] }
  0xd0   :  { %9622 = vmatmul.mubr.msk.f32.gmra.mrb[12].mxu0 %vm235_vm11, %v11890_v17  ;;  %v1621_v59 = vadd.s32 20, %v1605_v54 }
  0xd1   :  { %v563_v62 = vpop.permute.xlu1 %562  ;;  %v499_v63 = vpop.permute.xlu0 %498 }
  0xd2   :  { %vm597_vm12 = vcmp.eq.s32.totalorder %v563_v62, %v12231_v8  ;;  %vm533_vm13 = vcmp.eq.s32.totalorder %v499_v63, %v12231_v8  ;;  %1332 = vperm.xlu1 %10776, %v1239_v58   ;;  %v1589_v62 = vld [vmem:[%s15585_s0 + $0x218] sm:$0xff] }
  0xd3   :  { %vm613_vm14 = vmor %vm533_vm13, %vm597_vm12  ;;  %1268 = vperm.xlu0 %10775, %v1207_v60   ;;  %v1229_v60 = vld [vmem:[%s15586_s1 + $0x1e0] sm:$0xff] }
  0xd4   :  { %9668 = vmatprep.mubr.msk.f32.mxu1 %vm613_vm14, %v11890_v17  ;;  %v1245_v1 = vadd.s32 20, %v1229_v60 }
  0xd5   :  { %v566_v3 = vpop.permute.xlu1 %565  ;;  %v502_v4 = vpop.permute.xlu0 %501 }
  0xd6   :  { %vm598_vm15 = vcmp.eq.s32.totalorder %v566_v3, %v12231_v8  ;;  %vm534_vm0 = vcmp.eq.s32.totalorder %v502_v4, %v12231_v8  ;;  %1335 = vperm.xlu1 %10776, %v1240_v0   ;;  %v1213_v3 = vld [vmem:[%s15585_s0 + $0x1e0] sm:$0xff] }
  0xd7   :  { %vm614_vm1 = vmor %vm534_vm0, %vm598_vm15  ;;  %1271 = vperm.xlu0 %10775, %v1208_v2   ;;  %v1230_v2 = vld [vmem:[%s15586_s1 + $0x1e8] sm:$0xff] }
  0xd8   :  { %9669 = vmatmul.mubr.msk.f32.gmra.mrb[6].mxu1 %vm614_vm1, %v11890_v17  ;;  %v1246_v6 = vadd.s32 20, %v1230_v2 }
  0xd9   :  { %v202_v9 = vpop.permute.xlu1 %201  ;;  %v138_v10 = vpop.permute.xlu0 %137 }
  0xda   :  { %vm220_vm2 = vcmp.eq.s32.totalorder %v202_v9, %v12231_v8  ;;  %vm156_vm3 = vcmp.eq.s32.totalorder %v138_v10, %v12231_v8  ;;  %971 = vperm.xlu1 %10776, %v862_v5   ;;  %v1214_v9 = vld [vmem:[%s15585_s0 + $0x1e8] sm:$0xff] }
  0xdb   :  { %vm236_vm4 = vmor %vm156_vm3, %vm220_vm2  ;;  %907 = vperm.xlu0 %10775, %v830_v7   ;;  %v1606_v7 = vld [vmem:[%s15586_s1 + $0x220] sm:$0xff] }
  0xdc   :  { %9624 = vmatprep.mubr.msk.f32.mxu0 %vm236_vm4, %v11890_v17  ;;  %v1622_v12 = vadd.s32 20, %v1606_v7 }
  0xdd   :  { %v205_v14 = vpop.permute.xlu1 %204  ;;  %v141_v15 = vpop.permute.xlu0 %140 }
  0xde   :  { %vm221_vm5 = vcmp.eq.s32.totalorder %v205_v14, %v12231_v8  ;;  %vm157_vm6 = vcmp.eq.s32.totalorder %v141_v15, %v12231_v8  ;;  %974 = vperm.xlu1 %10776, %v863_v11   ;;  %v1590_v14 = vld [vmem:[%s15585_s0 + $0x220] sm:$0xff] }
  0xdf   :  { %vm237_vm7 = vmor %vm157_vm6, %vm221_vm5  ;;  %910 = vperm.xlu0 %10775, %v831_v13   ;;  %v1607_v13 = vld [vmem:[%s15586_s1 + $0x228] sm:$0xff] }
  0xe0   :  { %9625 = vmatmul.mubr.msk.f32.gmra.mrb[14].mxu0 %vm237_vm7, %v11890_v17  ;;  %v1623_v18 = vadd.s32 20, %v1607_v13 }
  0xe1   :  { %v569_v21 = vpop.permute.xlu1 %568  ;;  %v505_v22 = vpop.permute.xlu0 %504 }
  0xe2   :  { %vm599_vm8 = vcmp.eq.s32.totalorder %v569_v21, %v12231_v8  ;;  %vm535_vm9 = vcmp.eq.s32.totalorder %v505_v22, %v12231_v8  ;;  %1338 = vperm.xlu1 %10776, %v1241_v16   ;;  %v1591_v21 = vld [vmem:[%s15585_s0 + $0x228] sm:$0xff] }
  0xe3   :  { %vm615_vm10 = vmor %vm535_vm9, %vm599_vm8  ;;  %1274 = vperm.xlu0 %10775, %v1209_v19   ;;  %v1231_v19 = vld [vmem:[%s15586_s1 + $0x1f0] sm:$0xff] }
  0xe4   :  { %9671 = vmatprep.mubr.msk.f32.mxu1 %vm615_vm10, %v11890_v17  ;;  %v1247_v24 = vadd.s32 20, %v1231_v19 }
  0xe5   :  { %v572_v27 = vpop.permute.xlu1 %571  ;;  %v508_v28 = vpop.permute.xlu0 %507 }
  0xe6   :  { %vm600_vm11 = vcmp.eq.s32.totalorder %v572_v27, %v12231_v8  ;;  %vm536_vm12 = vcmp.eq.s32.totalorder %v508_v28, %v12231_v8  ;;  %1341 = vperm.xlu1 %10776, %v1242_v23   ;;  %v1215_v27 = vld [vmem:[%s15585_s0 + $0x1f0] sm:$0xff] }
  0xe7   :  { %vm616_vm13 = vmor %vm536_vm12, %vm600_vm11  ;;  %1277 = vperm.xlu0 %10775, %v1210_v26   ;;  %v1232_v26 = vld [vmem:[%s15586_s1 + $0x1f8] sm:$0xff] }
  0xe8   :  { %9672 = vmatmul.mubr.msk.f32.gmra.mrb[8].mxu1 %vm616_vm13, %v11890_v17  ;;  %v1248_v30 = vadd.s32 20, %v1232_v26 }
  0xe9   :  { %v930_v33 = vpop.permute.xlu1 %929  ;;  %v866_v34 = vpop.permute.xlu0 %865 }
  0xea   :  { %vm976_vm14 = vcmp.eq.s32.totalorder %v930_v33, %v12231_v8  ;;  %vm912_vm15 = vcmp.eq.s32.totalorder %v866_v34, %v12231_v8  ;;  %1699 = vperm.xlu1 %10776, %v1618_v29   ;;  %v1216_v33 = vld [vmem:[%s15585_s0 + $0x1f8] sm:$0xff] }
  0xeb   :  { %vm992_vm0 = vmor %vm912_vm15, %vm976_vm14  ;;  %1635 = vperm.xlu0 %10775, %v1586_v32   ;;  %v1608_v32 = vld [vmem:[%s15586_s1 + $0x230] sm:$0xff] }
  0xec   :  { %9715 = vmatprep.mubr.msk.f32.mxu0 %vm992_vm0, %v11890_v17  ;;  %v1624_v36 = vadd.s32 20, %v1608_v32 }
  0xed   :  { %v933_v39 = vpop.permute.xlu1 %932  ;;  %v869_v40 = vpop.permute.xlu0 %868 }
  0xee   :  { %vm977_vm1 = vcmp.eq.s32.totalorder %v933_v39, %v12231_v8  ;;  %vm913_vm2 = vcmp.eq.s32.totalorder %v869_v40, %v12231_v8  ;;  %1702 = vperm.xlu1 %10776, %v1619_v35   ;;  %v1592_v39 = vld [vmem:[%s15585_s0 + $0x230] sm:$0xff] }
  0xef   :  { %vm993_vm3 = vmor %vm913_vm2, %vm977_vm1  ;;  %1638 = vperm.xlu0 %10775, %v1587_v38   ;;  %v1609_v38 = vld [vmem:[%s15586_s1 + $0x238] sm:$0xff] }
  0xf0   :  { %9716 = vmatmul.mubr.msk.f32.vlgmr.msra.gmra.mrb[16].mxu0 %vm993_vm3, %v11890_v17  ;;  %v1625_v42 = vadd.s32 20, %v1609_v38 }
  0xf1   :  { %v575_v45 = vpop.permute.xlu1 %574  ;;  %v511_v46 = vpop.permute.xlu0 %510  ;;  %10438 = vmatpush3.bf16.msra.mxu0 %v11971_v20 }
  0xf2   :  { %vm601_vm4 = vcmp.eq.s32.totalorder %v575_v45, %v12231_v8  ;;  %vm537_vm5 = vcmp.eq.s32.totalorder %v511_v46, %v12231_v8  ;;  %1344 = vperm.xlu1 %10776, %v1243_v41   ;;  %10440 = vmatprep.subr.bf16.mxu0 %v11986_v25  ;;  %v1593_v45 = vld [vmem:[%s15585_s0 + $0x238] sm:$0xff] }
  0xf3   :  { %vm617_vm6 = vmor %vm537_vm5, %vm601_vm4  ;;  %1280 = vperm.xlu0 %10775, %v1211_v44   ;;  %v1987_v44 = vld [vmem:[%s15586_s1 + $0x280] sm:$0xff] }
  0xf4   :  { %9674 = vmatprep.mubr.msk.f32.mxu1 %vm617_vm6, %v11890_v17  ;;  %v2003_v48 = vadd.s32 20, %v1987_v44 }
  0xf5   :  { %v578_v51 = vpop.permute.xlu1 %577  ;;  %v514_v52 = vpop.permute.xlu0 %513  ;;  %10442 = vmatpush3.bf16.msra.mxu0 %v11986_v25 }
  0xf6   :  { %vm602_vm7 = vcmp.eq.s32.totalorder %v578_v51, %v12231_v8  ;;  %vm538_vm8 = vcmp.eq.s32.totalorder %v514_v52, %v12231_v8  ;;  %1347 = vperm.xlu1 %10776, %v1244_v47   ;;  %10444 = vmatprep.subr.bf16.mxu0 %v12004_v31  ;;  %v1971_v51 = vld [vmem:[%s15585_s0 + $0x280] sm:$0xff] }
  0xf7   :  { %vm618_vm9 = vmor %vm538_vm8, %vm602_vm7  ;;  %1283 = vperm.xlu0 %10775, %v1212_v50   ;;  %v1988_v50 = vld [vmem:[%s15586_s1 + $0x288] sm:$0xff] }
  0xf8   :  { %9675 = vmatmul.mubr.msk.f32.gmra.mrb[10].mxu1 %vm618_vm9, %v11890_v17  ;;  %v2004_v54 = vadd.s32 20, %v1988_v50 }
  0xf9   :  { %v936_v57 = vpop.permute.xlu1 %935  ;;  %v872_v58 = vpop.permute.xlu0 %871  ;;  %10446 = vmatpush3.bf16.msra.mxu0 %v12004_v31 }
  0xfa   :  { %vm978_vm10 = vcmp.eq.s32.totalorder %v936_v57, %v12231_v8  ;;  %vm914_vm11 = vcmp.eq.s32.totalorder %v872_v58, %v12231_v8  ;;  %1705 = vperm.xlu1 %10776, %v1620_v53   ;;  %10448 = vmatprep.subr.bf16.mxu0 %v12022_v37  ;;  %v1972_v57 = vld [vmem:[%s15585_s0 + $0x288] sm:$0xff] }
  0xfb   :  { %vm994_vm12 = vmor %vm914_vm11, %vm978_vm10  ;;  %1641 = vperm.xlu0 %10775, %v1588_v56   ;;  %v1610_v56 = vld [vmem:[%s15586_s1 + $0x240] sm:$0xff] }
  0xfc   :  { %9718 = vmatprep.mubr.msk.f32.mxu0 %vm994_vm12, %v11890_v17  ;;  %v1626_v60 = vadd.s32 20, %v1610_v56 }
  0xfd   :  { %v939_v63 = vpop.permute.xlu1 %938  ;;  %v875_v0 = vpop.permute.xlu0 %874  ;;  %10450 = vmatpush3.bf16.msra.mxu0 %v12022_v37 }
  0xfe   :  { %vm979_vm13 = vcmp.eq.s32.totalorder %v939_v63, %v12231_v8  ;;  %vm915_vm14 = vcmp.eq.s32.totalorder %v875_v0, %v12231_v8  ;;  %1708 = vperm.xlu1 %10776, %v1621_v59   ;;  %10452 = vmatprep.subr.bf16.mxu0 %v12040_v43  ;;  %v1594_v63 = vld [vmem:[%s15585_s0 + $0x240] sm:$0xff] }
  0xff   :  { %vm995_vm15 = vmor %vm915_vm14, %vm979_vm13  ;;  %1644 = vperm.xlu0 %10775, %v1589_v62   ;;  %v1611_v62 = vld [vmem:[%s15586_s1 + $0x248] sm:$0xff] }
 0x100   :  { %9719 = vmatmul.mubr.msk.f32.gmra.mrb[18].mxu0 %vm995_vm15, %v11890_v17  ;;  %v1627_v2 = vadd.s32 20, %v1611_v62 }
 0x101   :  { %v581_v4 = vpop.permute.xlu1 %580  ;;  %v517_v5 = vpop.permute.xlu0 %516  ;;  %10454 = vmatpush3.bf16.msra.mxu0 %v12040_v43 }
 0x102   :  { %vm603_vm0 = vcmp.eq.s32.totalorder %v581_v4, %v12231_v8  ;;  %vm539_vm1 = vcmp.eq.s32.totalorder %v517_v5, %v12231_v8  ;;  %1350 = vperm.xlu1 %10776, %v1245_v1   ;;  %10456 = vmatprep.subr.bf16.mxu0 %v12058_v49  ;;  %v1595_v4 = vld [vmem:[%s15585_s0 + $0x248] sm:$0xff] }
 0x103   :  { %vm619_vm2 = vmor %vm539_vm1, %vm603_vm0  ;;  %1286 = vperm.xlu0 %10775, %v1213_v3   ;;  %v1989_v3 = vld [vmem:[%s15586_s1 + $0x290] sm:$0xff] }
 0x104   :  { %9677 = vmatprep.mubr.msk.f32.mxu1 %vm619_vm2, %v11890_v17  ;;  %v2005_v7 = vadd.s32 20, %v1989_v3 }
 0x105   :  { %v584_v10 = vpop.permute.xlu1 %583  ;;  %v520_v11 = vpop.permute.xlu0 %519  ;;  %10458 = vmatpush3.bf16.msra.mxu0 %v12058_v49 }
 0x106   :  { %vm604_vm3 = vcmp.eq.s32.totalorder %v584_v10, %v12231_v8  ;;  %vm540_vm4 = vcmp.eq.s32.totalorder %v520_v11, %v12231_v8  ;;  %1353 = vperm.xlu1 %10776, %v1246_v6   ;;  %10460 = vmatprep.subr.bf16.mxu0 %v12076_v55  ;;  %v1973_v10 = vld [vmem:[%s15585_s0 + $0x290] sm:$0xff] }
 0x107   :  { %vm620_vm5 = vmor %vm540_vm4, %vm604_vm3  ;;  %1289 = vperm.xlu0 %10775, %v1214_v9   ;;  %v1990_v9 = vld [vmem:[%s15586_s1 + $0x298] sm:$0xff] }
 0x108   :  { %9678 = vmatmul.mubr.msk.f32.gmra.mrb[12].mxu1 %vm620_vm5, %v11890_v17  ;;  %v2006_v13 = vadd.s32 20, %v1990_v9 }
 0x109   :  { %v942_v15 = vpop.permute.xlu1 %941  ;;  %10462 = vmatpush3.bf16.msra.mxu0 %v12076_v55 }
 0x10a   :  { %vm980_vm6 = vcmp.eq.s32.totalorder %v942_v15, %v12231_v8  ;;  %v878_v16 = vpop.permute.xlu0 %877  ;;  %1711 = vperm.xlu1 %10776, %v1622_v12   ;;  %10464 = vmatprep.subr.bf16.mxu0 %v12094_v61  ;;  %v1974_v15 = vld [vmem:[%s15585_s0 + $0x298] sm:$0xff] }
 0x10b   :  { %vm916_vm7 = vcmp.eq.s32.totalorder %v878_v16, %v12231_v8  ;;  %1647 = vperm.xlu0 %10775, %v1590_v14   ;;  %v1612_v14 = vld [vmem:[%s15586_s1 + $0x250] sm:$0xff] }
 0x10c   :  { %vm996_vm8 = vmor %vm916_vm7, %vm980_vm6  ;;  %v1628_v19 = vadd.s32 20, %v1612_v14 }
 0x10d   :  { %9721 = vmatprep.mubr.msk.f32.mxu0 %vm996_vm8, %v11890_v17  ;;  %v945_v22 = vpop.permute.xlu1 %944  ;;  %10466 = vmatpush3.bf16.msra.mxu0 %v12094_v61 }
 0x10e   :  { %vm981_vm9 = vcmp.eq.s32.totalorder %v945_v22, %v12231_v8  ;;  %v881_v23 = vpop.permute.xlu0 %880  ;;  %1714 = vperm.xlu1 %10776, %v1623_v18   ;;  %10500 = vmatprep.subr.bf16.mxu0 %v11971_v20  ;;  %v1596_v22 = vld [vmem:[%s15585_s0 + $0x250] sm:$0xff] }
 0x10f   :  { %vm917_vm10 = vcmp.eq.s32.totalorder %v881_v23, %v12231_v8  ;;  %1650 = vperm.xlu0 %10775, %v1591_v21   ;;  %v1613_v21 = vld [vmem:[%s15586_s1 + $0x258] sm:$0xff] }
 0x110   :  { %vm997_vm11 = vmor %vm917_vm10, %vm981_vm9  ;;  %v1629_v26 = vadd.s32 20, %v1613_v21 }
 0x111   :  { %9722 = vmatmul.mubr.msk.f32.gmra.mrb[20].mxu0 %vm997_vm11, %v11890_v17  ;;  %v587_v28 = vpop.permute.xlu1 %586 }
 0x112   :  { %vm605_vm12 = vcmp.eq.s32.totalorder %v587_v28, %v12231_v8  ;;  %v523_v29 = vpop.permute.xlu0 %522  ;;  %1356 = vperm.xlu1 %10776, %v1247_v24   ;;  %v1597_v28 = vld [vmem:[%s15585_s0 + $0x258] sm:$0xff] }
 0x113   :  { %vm541_vm13 = vcmp.eq.s32.totalorder %v523_v29, %v12231_v8  ;;  %1292 = vperm.xlu0 %10775, %v1215_v27   ;;  %v1991_v27 = vld [vmem:[%s15586_s1 + $0x2a0] sm:$0xff] }
 0x114   :  { %vm621_vm14 = vmor %vm541_vm13, %vm605_vm12  ;;  %v2007_v32 = vadd.s32 20, %v1991_v27 }
 0x115   :  { %9680 = vmatprep.mubr.msk.f32.mxu1 %vm621_vm14, %v11890_v17  ;;  %v590_v34 = vpop.permute.xlu1 %589 }
 0x116   :  { %vm606_vm15 = vcmp.eq.s32.totalorder %v590_v34, %v12231_v8  ;;  %v526_v35 = vpop.permute.xlu0 %525  ;;  %1359 = vperm.xlu1 %10776, %v1248_v30   ;;  %v1975_v34 = vld [vmem:[%s15585_s0 + $0x2a0] sm:$0xff] }
 0x117   :  { %vm542_vm0 = vcmp.eq.s32.totalorder %v526_v35, %v12231_v8  ;;  %1295 = vperm.xlu0 %10775, %v1216_v33   ;;  %v1992_v33 = vld [vmem:[%s15586_s1 + $0x2a8] sm:$0xff] }
 0x118   :  { %vm622_vm1 = vmor %vm542_vm0, %vm606_vm15  ;;  %v2008_v38 = vadd.s32 20, %v1992_v33 }
 0x119   :  { %9681 = vmatmul.mubr.msk.f32.gmra.mrb[14].mxu1 %vm622_vm1, %v11890_v17  ;;  %v948_v40 = vpop.permute.xlu1 %947 }
 0x11a   :  { %vm982_vm2 = vcmp.eq.s32.totalorder %v948_v40, %v12231_v8  ;;  %v884_v41 = vpop.permute.xlu0 %883  ;;  %1717 = vperm.xlu1 %10776, %v1624_v36   ;;  %v1976_v40 = vld [vmem:[%s15585_s0 + $0x2a8] sm:$0xff] }
 0x11b   :  { %vm918_vm3 = vcmp.eq.s32.totalorder %v884_v41, %v12231_v8  ;;  %1653 = vperm.xlu0 %10775, %v1592_v39   ;;  %v1614_v39 = vld [vmem:[%s15586_s1 + $0x260] sm:$0xff] }
 0x11c   :  { %vm998_vm4 = vmor %vm918_vm3, %vm982_vm2  ;;  %v1630_v44 = vadd.s32 20, %v1614_v39 }
 0x11d   :  { %9724 = vmatprep.mubr.msk.f32.mxu0 %vm998_vm4, %v11890_v17  ;;  %v951_v46 = vpop.permute.xlu1 %950 }
 0x11e   :  { %vm983_vm5 = vcmp.eq.s32.totalorder %v951_v46, %v12231_v8  ;;  %v887_v47 = vpop.permute.xlu0 %886  ;;  %1720 = vperm.xlu1 %10776, %v1625_v42   ;;  %v1598_v46 = vld [vmem:[%s15585_s0 + $0x260] sm:$0xff] }
 0x11f   :  { %vm919_vm6 = vcmp.eq.s32.totalorder %v887_v47, %v12231_v8  ;;  %1656 = vperm.xlu0 %10775, %v1593_v45   ;;  %v1615_v45 = vld [vmem:[%s15586_s1 + $0x268] sm:$0xff] }
 0x120   :  { %vm999_vm7 = vmor %vm919_vm6, %vm983_vm5  ;;  %v1631_v50 = vadd.s32 20, %v1615_v45 }
 0x121   :  { %9725 = vmatmul.mubr.msk.f32.gmra.mrb[22].mxu0 %vm999_vm7, %v11890_v17  ;;  %v1315_v52 = vpop.permute.xlu1 %1314 }
 0x122   :  { %vm1361_vm8 = vcmp.eq.s32.totalorder %v1315_v52, %v12231_v8  ;;  %v1251_v53 = vpop.permute.xlu0 %1250  ;;  %2084 = vperm.xlu1 %10776, %v2003_v48   ;;  %v1599_v52 = vld [vmem:[%s15585_s0 + $0x268] sm:$0xff] }
 0x123   :  { %vm1297_vm9 = vcmp.eq.s32.totalorder %v1251_v53, %v12231_v8  ;;  %2020 = vperm.xlu0 %10775, %v1971_v51   ;;  %v1993_v51 = vld [vmem:[%s15586_s1 + $0x2b0] sm:$0xff] }
 0x124   :  { %vm1377_vm10 = vmor %vm1297_vm9, %vm1361_vm8  ;;  %v2009_v56 = vadd.s32 20, %v1993_v51 }
 0x125   :  { %9771 = vmatprep.mubr.msk.f32.mxu1 %vm1377_vm10, %v11890_v17  ;;  %v1318_v58 = vpop.permute.xlu1 %1317 }
 0x126   :  { %vm1362_vm11 = vcmp.eq.s32.totalorder %v1318_v58, %v12231_v8  ;;  %v1254_v59 = vpop.permute.xlu0 %1253  ;;  %2087 = vperm.xlu1 %10776, %v2004_v54   ;;  %v1977_v58 = vld [vmem:[%s15585_s0 + $0x2b0] sm:$0xff] }
 0x127   :  { %vm1298_vm12 = vcmp.eq.s32.totalorder %v1254_v59, %v12231_v8  ;;  %2023 = vperm.xlu0 %10775, %v1972_v57   ;;  %v1994_v57 = vld [vmem:[%s15586_s1 + $0x2b8] sm:$0xff] }
 0x128   :  { %vm1378_vm13 = vmor %vm1298_vm12, %vm1362_vm11  ;;  %v2010_v62 = vadd.s32 20, %v1994_v57 }
 0x129   :  { %9772 = vmatmul.mubr.msk.f32.vlgmr.msra.gmra.mrb[16].mxu1 %vm1378_vm13, %v11890_v17  ;;  %v954_v0 = vpop.permute.xlu1 %953 }
 0x12a   :  { %vm984_vm14 = vcmp.eq.s32.totalorder %v954_v0, %v12231_v8  ;;  %v890_v1 = vpop.permute.xlu0 %889  ;;  %1723 = vperm.xlu1 %10776, %v1626_v60   ;;  %10470 = vmatpush3.bf16.msra.mxu1 %v11971_v20  ;;  %v1978_v0 = vld [vmem:[%s15585_s0 + $0x2b8] sm:$0xff] }
 0x12b   :  { %vm920_vm15 = vcmp.eq.s32.totalorder %v890_v1, %v12231_v8  ;;  %1659 = vperm.xlu0 %10775, %v1594_v63   ;;  %10472 = vmatprep.subr.bf16.mxu1 %v11986_v25  ;;  %v1616_v63 = vld [vmem:[%s15586_s1 + $0x270] sm:$0xff] }
 0x12c   :  { %vm1000_vm0 = vmor %vm920_vm15, %vm984_vm14  ;;  %v1632_v3 = vadd.s32 20, %v1616_v63 }
 0x12d   :  { %9727 = vmatprep.mubr.msk.f32.mxu0 %vm1000_vm0, %v11890_v17  ;;  %v957_v5 = vpop.permute.xlu1 %956 }
 0x12e   :  { %vm985_vm1 = vcmp.eq.s32.totalorder %v957_v5, %v12231_v8  ;;  %v893_v6 = vpop.permute.xlu0 %892  ;;  %1726 = vperm.xlu1 %10776, %v1627_v2   ;;  %10474 = vmatpush3.bf16.msra.mxu1 %v11986_v25  ;;  %v1600_v5 = vld [vmem:[%s15585_s0 + $0x270] sm:$0xff] }
 0x12f   :  { %vm921_vm2 = vcmp.eq.s32.totalorder %v893_v6, %v12231_v8  ;;  %1662 = vperm.xlu0 %10775, %v1595_v4   ;;  %10476 = vmatprep.subr.bf16.mxu1 %v12004_v31  ;;  %v1617_v4 = vld [vmem:[%s15586_s1 + $0x278] sm:$0xff] }
 0x130   :  { %vm1001_vm3 = vmor %vm921_vm2, %vm985_vm1  ;;  %v1633_v9 = vadd.s32 20, %v1617_v4 }
 0x131   :  { %9728 = vmatmul.mubr.msk.f32.gmra.mrb[24].mxu0 %vm1001_vm3, %v11890_v17  ;;  %v1321_v11 = vpop.permute.xlu1 %1320 }
 0x132   :  { %vm1363_vm4 = vcmp.eq.s32.totalorder %v1321_v11, %v12231_v8  ;;  %v1257_v12 = vpop.permute.xlu0 %1256  ;;  %2090 = vperm.xlu1 %10776, %v2005_v7   ;;  %10478 = vmatpush3.bf16.msra.mxu1 %v12004_v31  ;;  %v1601_v11 = vld [vmem:[%s15585_s0 + $0x278] sm:$0xff] }
 0x133   :  { %vm1299_vm5 = vcmp.eq.s32.totalorder %v1257_v12, %v12231_v8  ;;  %2026 = vperm.xlu0 %10775, %v1973_v10   ;;  %10480 = vmatprep.subr.bf16.mxu1 %v12022_v37  ;;  %v1995_v10 = vld [vmem:[%s15586_s1 + $0x2c0] sm:$0xff] }
 0x134   :  { %vm1379_vm6 = vmor %vm1299_vm5, %vm1363_vm4  ;;  %v2011_v14 = vadd.s32 20, %v1995_v10 }
 0x135   :  { %9774 = vmatprep.mubr.msk.f32.mxu1 %vm1379_vm6, %v11890_v17  ;;  %v1324_v16 = vpop.permute.xlu1 %1323 }
 0x136   :  { %vm1364_vm7 = vcmp.eq.s32.totalorder %v1324_v16, %v12231_v8  ;;  %v1260_v18 = vpop.permute.xlu0 %1259  ;;  %2093 = vperm.xlu1 %10776, %v2006_v13   ;;  %10482 = vmatpush3.bf16.msra.mxu1 %v12022_v37  ;;  %v1979_v16 = vld [vmem:[%s15585_s0 + $0x2c0] sm:$0xff] }
 0x137   :  { %vm1300_vm8 = vcmp.eq.s32.totalorder %v1260_v18, %v12231_v8  ;;  %2029 = vperm.xlu0 %10775, %v1974_v15   ;;  %10484 = vmatprep.subr.bf16.mxu1 %v12040_v43  ;;  %v1996_v15 = vld [vmem:[%s15586_s1 + $0x2c8] sm:$0xff] }
 0x138   :  { %vm1380_vm9 = vmor %vm1300_vm8, %vm1364_vm7  ;;  %v2012_v21 = vadd.s32 20, %v1996_v15 }
 0x139   :  { %9775 = vmatmul.mubr.msk.f32.gmra.mrb[18].mxu1 %vm1380_vm9, %v11890_v17  ;;  %v960_v23 = vpop.permute.xlu1 %959 }
 0x13a   :  { %vm986_vm10 = vcmp.eq.s32.totalorder %v960_v23, %v12231_v8  ;;  %v896_v24 = vpop.permute.xlu0 %895  ;;  %1729 = vperm.xlu1 %10776, %v1628_v19   ;;  %10486 = vmatpush3.bf16.msra.mxu1 %v12040_v43  ;;  %v1980_v23 = vld [vmem:[%s15585_s0 + $0x2c8] sm:$0xff] }
 0x13b   :  { %vm922_vm11 = vcmp.eq.s32.totalorder %v896_v24, %v12231_v8  ;;  %1665 = vperm.xlu0 %10775, %v1596_v22   ;;  %10488 = vmatprep.subr.bf16.mxu1 %v12058_v49  ;;  %v2372_v22 = vld [vmem:[%s15586_s1 + $0x300] sm:$0xff] }
 0x13c   :  { %vm1002_vm12 = vmor %vm922_vm11, %vm986_vm10  ;;  %v2388_v27 = vadd.s32 20, %v2372_v22 }
 0x13d   :  { %9730 = vmatprep.mubr.msk.f32.mxu0 %vm1002_vm12, %v11890_v17  ;;  %v963_v29 = vpop.permute.xlu1 %962 }
 0x13e   :  { %vm987_vm13 = vcmp.eq.s32.totalorder %v963_v29, %v12231_v8  ;;  %v899_v30 = vpop.permute.xlu0 %898  ;;  %1732 = vperm.xlu1 %10776, %v1629_v26   ;;  %10490 = vmatpush3.bf16.msra.mxu1 %v12058_v49  ;;  %v2356_v29 = vld [vmem:[%s15585_s0 + $0x300] sm:$0xff] }
 0x13f   :  { %vm923_vm14 = vcmp.eq.s32.totalorder %v899_v30, %v12231_v8  ;;  %1668 = vperm.xlu0 %10775, %v1597_v28   ;;  %10492 = vmatprep.subr.bf16.mxu1 %v12076_v55  ;;  %v2373_v28 = vld [vmem:[%s15586_s1 + $0x308] sm:$0xff] }
 0x140   :  { %vm1003_vm15 = vmor %vm923_vm14, %vm987_vm13  ;;  %v2389_v33 = vadd.s32 20, %v2373_v28 }
 0x141   :  { %9731 = vmatmul.mubr.msk.f32.gmra.mrb[26].mxu0 %vm1003_vm15, %v11890_v17  ;;  %v1327_v35 = vpop.permute.xlu1 %1326 }
 0x142   :  { %vm1365_vm0 = vcmp.eq.s32.totalorder %v1327_v35, %v12231_v8  ;;  %v1263_v36 = vpop.permute.xlu0 %1262  ;;  %2096 = vperm.xlu1 %10776, %v2007_v32   ;;  %10494 = vmatpush3.bf16.msra.mxu1 %v12076_v55  ;;  %v2357_v35 = vld [vmem:[%s15585_s0 + $0x308] sm:$0xff] }
 0x143   :  { %vm1301_vm1 = vcmp.eq.s32.totalorder %v1263_v36, %v12231_v8  ;;  %2032 = vperm.xlu0 %10775, %v1975_v34   ;;  %10496 = vmatprep.subr.bf16.mxu1 %v12094_v61  ;;  %v1997_v34 = vld [vmem:[%s15586_s1 + $0x2d0] sm:$0xff] }
 0x144   :  { %vm1381_vm2 = vmor %vm1301_vm1, %vm1365_vm0  ;;  %v2013_v39 = vadd.s32 20, %v1997_v34 }
 0x145   :  { %9777 = vmatprep.mubr.msk.f32.mxu1 %vm1381_vm2, %v11890_v17  ;;  %v1330_v41 = vpop.permute.xlu1 %1329 }
 0x146   :  { %vm1366_vm3 = vcmp.eq.s32.totalorder %v1330_v41, %v12231_v8  ;;  %v1266_v42 = vpop.permute.xlu0 %1265  ;;  %2099 = vperm.xlu1 %10776, %v2008_v38   ;;  %10498 = vmatpush3.bf16.msra.mxu1 %v12094_v61  ;;  %v1981_v41 = vld [vmem:[%s15585_s0 + $0x2d0] sm:$0xff] }
 0x147   :  { %vm1302_vm4 = vcmp.eq.s32.totalorder %v1266_v42, %v12231_v8  ;;  %2035 = vperm.xlu0 %10775, %v1976_v40   ;;  %10532 = vmatprep.subr.bf16.mxu1 %v11971_v20  ;;  %v1998_v40 = vld [vmem:[%s15586_s1 + $0x2d8] sm:$0xff] }
 0x148   :  { %vm1382_vm5 = vmor %vm1302_vm4, %vm1366_vm3  ;;  %v2014_v45 = vadd.s32 20, %v1998_v40  ;;  %v2379_v40 = vld [vmem:[%s15586_s1 + $0x338] sm:$0xff] }
 0x149   :  { %9778 = vmatmul.mubr.msk.f32.gmra.mrb[20].mxu1 %vm1382_vm5, %v11890_v17  ;;  %v966_v47 = vpop.permute.xlu1 %965 }
 0x14a   :  { %vm988_vm6 = vcmp.eq.s32.totalorder %v966_v47, %v12231_v8  ;;  %v902_v48 = vpop.permute.xlu0 %901  ;;  %1735 = vperm.xlu1 %10776, %v1630_v44   ;;  %v1982_v47 = vld [vmem:[%s15585_s0 + $0x2d8] sm:$0xff] }
 0x14b   :  { %vm924_vm7 = vcmp.eq.s32.totalorder %v902_v48, %v12231_v8  ;;  %1671 = vperm.xlu0 %10775, %v1598_v46   ;;  %v2374_v46 = vld [vmem:[%s15586_s1 + $0x310] sm:$0xff] }
 0x14c   :  { %vm1004_vm8 = vmor %vm924_vm7, %vm988_vm6  ;;  %v2390_v51 = vadd.s32 20, %v2374_v46  ;;  %v2757_v46 = vld [vmem:[%s15586_s1 + $0x380] sm:$0xff] }
 0x14d   :  { %9733 = vmatprep.mubr.msk.f32.mxu0 %vm1004_vm8, %v11890_v17  ;;  %v969_v53 = vpop.permute.xlu1 %968 }
 0x14e   :  { %vm989_vm9 = vcmp.eq.s32.totalorder %v969_v53, %v12231_v8  ;;  %v905_v54 = vpop.permute.xlu0 %904  ;;  %1738 = vperm.xlu1 %10776, %v1631_v50   ;;  %v2358_v53 = vld [vmem:[%s15585_s0 + $0x310] sm:$0xff] }
 0x14f   :  { %vm925_vm10 = vcmp.eq.s32.totalorder %v905_v54, %v12231_v8  ;;  %1674 = vperm.xlu0 %10775, %v1599_v52   ;;  %v2375_v52 = vld [vmem:[%s15586_s1 + $0x318] sm:$0xff] }
 0x150   :  { %vm1005_vm11 = vmor %vm925_vm10, %vm989_vm9  ;;  %v2391_v57 = vadd.s32 20, %v2375_v52  ;;  %v2758_v52 = vld [vmem:[%s15586_s1 + $0x388] sm:$0xff] }
 0x151   :  { %9734 = vmatmul.mubr.msk.f32.gmra.mrb[28].mxu0 %vm1005_vm11, %v11890_v17  ;;  %v1333_v59 = vpop.permute.xlu1 %1332 }
 0x152   :  { %vm1367_vm12 = vcmp.eq.s32.totalorder %v1333_v59, %v12231_v8  ;;  %v1269_v60 = vpop.permute.xlu0 %1268  ;;  %2102 = vperm.xlu1 %10776, %v2009_v56   ;;  %v2359_v59 = vld [vmem:[%s15585_s0 + $0x318] sm:$0xff] }
 0x153   :  { %vm1303_vm13 = vcmp.eq.s32.totalorder %v1269_v60, %v12231_v8  ;;  %2038 = vperm.xlu0 %10775, %v1977_v58   ;;  %v1999_v58 = vld [vmem:[%s15586_s1 + $0x2e0] sm:$0xff] }
 0x154   :  { %vm1383_vm14 = vmor %vm1303_vm13, %vm1367_vm12  ;;  %v2015_v63 = vadd.s32 20, %v1999_v58 }
 0x155   :  { %9780 = vmatprep.mubr.msk.f32.mxu1 %vm1383_vm14, %v11890_v17  ;;  %v1336_v1 = vpop.permute.xlu1 %1335 }
 0x156   :  { %vm1368_vm15 = vcmp.eq.s32.totalorder %v1336_v1, %v12231_v8  ;;  %v1272_v2 = vpop.permute.xlu0 %1271  ;;  %2105 = vperm.xlu1 %10776, %v2010_v62   ;;  %v1983_v1 = vld [vmem:[%s15585_s0 + $0x2e0] sm:$0xff] }
 0x157   :  { %vm1304_vm0 = vcmp.eq.s32.totalorder %v1272_v2, %v12231_v8  ;;  %2041 = vperm.xlu0 %10775, %v1978_v0   ;;  %v2000_v0 = vld [vmem:[%s15586_s1 + $0x2e8] sm:$0xff] }
 0x158   :  { %vm1384_vm1 = vmor %vm1304_vm0, %vm1368_vm15  ;;  %v2016_v4 = vadd.s32 20, %v2000_v0 }
 0x159   :  { %9781 = vmatmul.mubr.msk.f32.gmra.mrb[22].mxu1 %vm1384_vm1, %v11890_v17  ;;  %v972_v6 = vpop.permute.xlu1 %971 }
 0x15a   :  { %vm990_vm2 = vcmp.eq.s32.totalorder %v972_v6, %v12231_v8  ;;  %v908_v7 = vpop.permute.xlu0 %907  ;;  %1741 = vperm.xlu1 %10776, %v1632_v3   ;;  %v2376_v6 = vld [vmem:[%s15586_s1 + $0x320] sm:$0xff] }
 0x15b   :  { %vm926_vm3 = vcmp.eq.s32.totalorder %v908_v7, %v12231_v8  ;;  %1677 = vperm.xlu0 %10775, %v1600_v5  }
 0x15c   :  { %vm1006_vm4 = vmor %vm926_vm3, %vm990_vm2 }
 0x15d   :  { %9736 = vmatprep.mubr.msk.f32.mxu0 %vm1006_vm4, %v11890_v17  ;;  %v975_v12 = vpop.permute.xlu1 %974 }
 0x15e   :  { %vm991_vm5 = vcmp.eq.s32.totalorder %v975_v12, %v12231_v8  ;;  %v911_v13 = vpop.permute.xlu0 %910  ;;  %1744 = vperm.xlu1 %10776, %v1633_v9   ;;  %v1984_v9 = vld [vmem:[%s15585_s0 + $0x2e8] sm:$0xff]  ;;  %v2392_v12 = vadd.s32 20, %v2376_v6 }
 0x15f   :  { %vm927_vm6 = vcmp.eq.s32.totalorder %v911_v13, %v12231_v8  ;;  %1680 = vperm.xlu0 %10775, %v1601_v11   ;;  %v2377_v13 = vld [vmem:[%s15586_s1 + $0x328] sm:$0xff] }
 0x160   :  { %vm1007_vm7 = vmor %vm927_vm6, %vm991_vm5 }
 0x161   :  { %9737 = vmatmul.mubr.msk.f32.gmra.mrb[30].mxu0 %vm1007_vm7, %v11890_v17  ;;  %v1339_v18 = vpop.permute.xlu1 %1338 }
 0x162   :  { %vm1369_vm8 = vcmp.eq.s32.totalorder %v1339_v18, %v12231_v8  ;;  %v1275_v19 = vpop.permute.xlu0 %1274  ;;  %2108 = vperm.xlu1 %10776, %v2011_v14   ;;  %v2360_v14 = vld [vmem:[%s15585_s0 + $0x320] sm:$0xff]  ;;  %v2393_v18 = vadd.s32 20, %v2377_v13 }
 0x163   :  { %vm1305_vm9 = vcmp.eq.s32.totalorder %v1275_v19, %v12231_v8  ;;  %2044 = vperm.xlu0 %10775, %v1979_v16   ;;  %v2001_v19 = vld [vmem:[%s15586_s1 + $0x2f0] sm:$0xff] }
 0x164   :  { %vm1385_vm10 = vmor %vm1305_vm9, %vm1369_vm8 }
 0x165   :  { %9783 = vmatprep.mubr.msk.f32.mxu1 %vm1385_vm10, %v11890_v17  ;;  %v1342_v24 = vpop.permute.xlu1 %1341 }
 0x166   :  { %vm1370_vm11 = vcmp.eq.s32.totalorder %v1342_v24, %v12231_v8  ;;  %v1278_v26 = vpop.permute.xlu0 %1277  ;;  %2111 = vperm.xlu1 %10776, %v2012_v21   ;;  %v2361_v21 = vld [vmem:[%s15585_s0 + $0x328] sm:$0xff]  ;;  %v2017_v24 = vadd.s32 20, %v2001_v19 }
 0x167   :  { %vm1306_vm12 = vcmp.eq.s32.totalorder %v1278_v26, %v12231_v8  ;;  %2047 = vperm.xlu0 %10775, %v1980_v23   ;;  %v2002_v26 = vld [vmem:[%s15586_s1 + $0x2f8] sm:$0xff] }
 0x168   :  { %vm1386_vm13 = vmor %vm1306_vm12, %vm1370_vm11 }
 0x169   :  { %9784 = vmatmul.mubr.msk.f32.gmra.mrb[24].mxu1 %vm1386_vm13, %v11890_v17  ;;  %v1700_v30 = vpop.permute.xlu1 %1699 }
 0x16a   :  { %vm1746_vm14 = vcmp.eq.s32.totalorder %v1700_v30, %v12231_v8  ;;  %v1636_v32 = vpop.permute.xlu0 %1635  ;;  %2469 = vperm.xlu1 %10776, %v2388_v27   ;;  %v1985_v27 = vld [vmem:[%s15585_s0 + $0x2f0] sm:$0xff]  ;;  %v2018_v30 = vadd.s32 20, %v2002_v26 }
 0x16b   :  { %vm1682_vm15 = vcmp.eq.s32.totalorder %v1636_v32, %v12231_v8  ;;  %2405 = vperm.xlu0 %10775, %v2356_v29  }
 0x16c   :  { %vm1762_vm0 = vmor %vm1682_vm15, %vm1746_vm14 }
 0x16d   :  { %9827 = vmatprep.mubr.msk.f32.mxu0 %vm1762_vm0, %v11890_v17  ;;  %v1703_v36 = vpop.permute.xlu1 %1702 }
 0x16e   :  { %vm1747_vm1 = vcmp.eq.s32.totalorder %v1703_v36, %v12231_v8  ;;  %v1639_v38 = vpop.permute.xlu0 %1638  ;;  %2472 = vperm.xlu1 %10776, %v2389_v33   ;;  %v2378_v33 = vld [vmem:[%s15586_s1 + $0x330] sm:$0xff] }
 0x16f   :  { %vm1683_vm2 = vcmp.eq.s32.totalorder %v1639_v38, %v12231_v8  ;;  %2408 = vperm.xlu0 %10775, %v2357_v35   ;;  %v1986_v35 = vld [vmem:[%s15585_s0 + $0x2f8] sm:$0xff] }
 0x170   :  { %vm1763_vm3 = vmor %vm1683_vm2, %vm1747_vm1 }
 0x171   :  { %9828 = vmatmul.mubr.msk.f32.vlgmr.msra.gmra.mrb[32].mxu0 %vm1763_vm3, %v11890_v17  ;;  %v1345_v42 = vpop.permute.xlu1 %1344 }
 0x172   :  { %vm1371_vm4 = vcmp.eq.s32.totalorder %v1345_v42, %v12231_v8  ;;  %v1281_v44 = vpop.permute.xlu0 %1280  ;;  %2114 = vperm.xlu1 %10776, %v2013_v39   ;;  %10502 = vmatpush3.bf16.msra.mxu0 %v11971_v20  ;;  %v2394_v39 = vadd.s32 20, %v2378_v33  ;;  %v2761_v33 = vld [vmem:[%s15586_s1 + $0x3a0] sm:$0xff] }
 0x173   :  { %vm1307_vm5 = vcmp.eq.s32.totalorder %v1281_v44, %v12231_v8  ;;  %2050 = vperm.xlu0 %10775, %v1981_v41   ;;  %10504 = vmatprep.subr.bf16.mxu0 %v11986_v25  ;;  %v2362_v41 = vld [vmem:[%s15585_s0 + $0x330] sm:$0xff] }
 0x174   :  { %vm1387_vm6 = vmor %vm1307_vm5, %vm1371_vm4 }
 0x175   :  { %9786 = vmatprep.mubr.msk.f32.mxu1 %vm1387_vm6, %v11890_v17  ;;  %v1348_v48 = vpop.permute.xlu1 %1347 }
 0x176   :  { %vm1372_vm7 = vcmp.eq.s32.totalorder %v1348_v48, %v12231_v8  ;;  %v1284_v50 = vpop.permute.xlu0 %1283  ;;  %2117 = vperm.xlu1 %10776, %v2014_v45   ;;  %10506 = vmatpush3.bf16.msra.mxu0 %v11986_v25  ;;  %v2395_v45 = vadd.s32 20, %v2379_v40  ;;  %v2745_v40 = vld [vmem:[%s15585_s0 + $0x3a0] sm:$0xff] }
 0x177   :  { %vm1308_vm8 = vcmp.eq.s32.totalorder %v1284_v50, %v12231_v8  ;;  %2053 = vperm.xlu0 %10775, %v1982_v47   ;;  %10508 = vmatprep.subr.bf16.mxu0 %v12004_v31  ;;  %v2363_v47 = vld [vmem:[%s15585_s0 + $0x338] sm:$0xff] }
 0x178   :  { %vm1388_vm9 = vmor %vm1308_vm8, %vm1372_vm7 }
 0x179   :  { %9787 = vmatmul.mubr.msk.f32.gmra.mrb[26].mxu1 %vm1388_vm9, %v11890_v17  ;;  %v1706_v54 = vpop.permute.xlu1 %1705 }
 0x17a   :  { %vm1748_vm10 = vcmp.eq.s32.totalorder %v1706_v54, %v12231_v8  ;;  %v1642_v56 = vpop.permute.xlu0 %1641  ;;  %2475 = vperm.xlu1 %10776, %v2390_v51   ;;  %10510 = vmatpush3.bf16.msra.mxu0 %v12004_v31  ;;  %v2773_v51 = vadd.s32 20, %v2757_v46 }
 0x17b   :  { %vm1684_vm11 = vcmp.eq.s32.totalorder %v1642_v56, %v12231_v8  ;;  %2411 = vperm.xlu0 %10775, %v2358_v53   ;;  %10512 = vmatprep.subr.bf16.mxu0 %v12022_v37  ;;  %v2741_v53 = vld [vmem:[%s15585_s0 + $0x380] sm:$0xff] }
 0x17c   :  { %vm1764_vm12 = vmor %vm1684_vm11, %vm1748_vm10 }
 0x17d   :  { %9830 = vmatprep.mubr.msk.f32.mxu0 %vm1764_vm12, %v11890_v17  ;;  %v1709_v60 = vpop.permute.xlu1 %1708 }
 0x17e   :  { %vm1749_vm13 = vcmp.eq.s32.totalorder %v1709_v60, %v12231_v8  ;;  %v1645_v62 = vpop.permute.xlu0 %1644  ;;  %2478 = vperm.xlu1 %10776, %v2391_v57   ;;  %10514 = vmatpush3.bf16.msra.mxu0 %v12022_v37  ;;  %v2774_v57 = vadd.s32 20, %v2758_v52 }
 0x17f   :  { %vm1685_vm14 = vcmp.eq.s32.totalorder %v1645_v62, %v12231_v8  ;;  %2414 = vperm.xlu0 %10775, %v2359_v59   ;;  %10516 = vmatprep.subr.bf16.mxu0 %v12040_v43  ;;  %v2380_v59 = vld [vmem:[%s15586_s1 + $0x340] sm:$0xff]  ;;  %v2742_v62 = vld [vmem:[%s15585_s0 + $0x388] sm:$0xff] }
 0x180   :  { %vm1765_vm15 = vmor %vm1685_vm14, %vm1749_vm13 }
 0x181   :  { %9831 = vmatmul.mubr.msk.f32.gmra.mrb[34].mxu0 %vm1765_vm15, %v11890_v17  ;;  %v1351_v2 = vpop.permute.xlu1 %1350 }
 0x182   :  { %vm1373_vm0 = vcmp.eq.s32.totalorder %v1351_v2, %v12231_v8  ;;  %v1287_v3 = vpop.permute.xlu0 %1286  ;;  %2120 = vperm.xlu1 %10776, %v2015_v63   ;;  %10518 = vmatpush3.bf16.msra.mxu0 %v12040_v43  ;;  %v2381_v2 = vld [vmem:[%s15586_s1 + $0x348] sm:$0xff] }
 0x183   :  { %vm1309_vm1 = vcmp.eq.s32.totalorder %v1287_v3, %v12231_v8  ;;  %2056 = vperm.xlu0 %10775, %v1983_v1   ;;  %v12884_v5 = vpop.f32.mrb[8].mxu0  ;;  %10520 = vmatprep.subr.bf16.mxu0 %v12058_v49  ;;  %v2396_v1 = vadd.s32 20, %v2380_v59  ;;  %v2364_v3 = vld [vmem:[%s15585_s0 + $0x340] sm:$0xff] }
 0x184   :  { %vm1389_vm2 = vmor %vm1309_vm1, %vm1373_vm0  ;;  %v12890_v7 = vpop.f32.mrb[9].mxu0 }
 0x185   :  { %9789 = vmatprep.mubr.msk.f32.mxu1 %vm1389_vm2, %v11890_v17  ;;  %v1354_v10 = vpop.permute.xlu1 %1353 }
 0x186   :  { %vm1374_vm3 = vcmp.eq.s32.totalorder %v1354_v10, %v12231_v8  ;;  %v1290_v11 = vpop.permute.xlu0 %1289  ;;  %2123 = vperm.xlu1 %10776, %v2016_v4   ;;  %10522 = vmatpush3.bf16.msra.mxu0 %v12058_v49  ;;  %v2759_v10 = vld [vmem:[%s15586_s1 + $0x390] sm:$0xff] }
 0x187   :  { %vm1310_vm4 = vcmp.eq.s32.totalorder %v1290_v11, %v12231_v8  ;;  %2059 = vperm.xlu0 %10775, %v1984_v9   ;;  %10524 = vmatprep.subr.bf16.mxu0 %v12076_v55  ;;  %v2397_v9 = vadd.s32 20, %v2381_v2  ;;  %v2365_v11 = vld [vmem:[%s15585_s0 + $0x348] sm:$0xff]  ;;  %v2775_v13 = vadd.s32 20, %v2759_v10 }
 0x188   :  { %vm1390_vm5 = vmor %vm1310_vm4, %vm1374_vm3 }
 0x189   :  { %9790 = vmatmul.mubr.msk.f32.gmra.mrb[28].mxu1 %vm1390_vm5, %v11890_v17  ;;  %v1712_v15 = vpop.permute.xlu1 %1711 }
 0x18a   :  { %vm1750_vm6 = vcmp.eq.s32.totalorder %v1712_v15, %v12231_v8  ;;  %v1648_v16 = vpop.permute.xlu0 %1647  ;;  %2481 = vperm.xlu1 %10776, %v2392_v12   ;;  %10526 = vmatpush3.bf16.msra.mxu0 %v12076_v55  ;;  %v2743_v15 = vld [vmem:[%s15585_s0 + $0x390] sm:$0xff] }
 0x18b   :  { %vm1686_vm7 = vcmp.eq.s32.totalorder %v1648_v16, %v12231_v8  ;;  %2417 = vperm.xlu0 %10775, %v2360_v14   ;;  %10528 = vmatprep.subr.bf16.mxu0 %v12094_v61  ;;  %v2760_v14 = vld [vmem:[%s15586_s1 + $0x398] sm:$0xff] }
 0x18c   :  { %vm1766_vm8 = vmor %vm1686_vm7, %vm1750_vm6 }
 0x18d   :  { %9833 = vmatprep.mubr.msk.f32.mxu0 %vm1766_vm8, %v11890_v17  ;;  %v1715_v22 = vpop.permute.xlu1 %1714 }
 0x18e   :  { %vm1751_vm9 = vcmp.eq.s32.totalorder %v1715_v22, %v12231_v8  ;;  %v1651_v23 = vpop.permute.xlu0 %1650  ;;  %2484 = vperm.xlu1 %10776, %v2393_v18   ;;  %10530 = vmatpush3.bf16.msra.mxu0 %v12094_v61  ;;  %v2776_v18 = vadd.s32 20, %v2760_v14  ;;  %v2370_v14 = vld [vmem:[%s15585_s0 + $0x370] sm:$0xff] }
 0x18f   :  { %vm1687_vm10 = vcmp.eq.s32.totalorder %v1651_v23, %v12231_v8  ;;  %2420 = vperm.xlu0 %10775, %v2361_v21   ;;  %v2382_v21 = vld [vmem:[%s15586_s1 + $0x350] sm:$0xff]  ;;  %v2744_v23 = vld [vmem:[%s15585_s0 + $0x398] sm:$0xff] }
 0x190   :  { %vm1767_vm11 = vmor %vm1687_vm10, %vm1751_vm9  ;;  %v2398_v26 = vadd.s32 20, %v2382_v21  ;;  %v2371_v21 = vld [vmem:[%s15585_s0 + $0x378] sm:$0xff] }
 0x191   :  { %9834 = vmatmul.mubr.msk.f32.gmra.mrb[36].mxu0 %vm1767_vm11, %v11890_v17  ;;  %v1357_v28 = vpop.permute.xlu1 %1356 }
 0x192   :  { %vm1375_vm12 = vcmp.eq.s32.totalorder %v1357_v28, %v12231_v8  ;;  %v1293_v29 = vpop.permute.xlu0 %1292  ;;  %2126 = vperm.xlu1 %10776, %v2017_v24   ;;  %v2366_v28 = vld [vmem:[%s15585_s0 + $0x350] sm:$0xff] }
 0x193   :  { %vm1311_vm13 = vcmp.eq.s32.totalorder %v1293_v29, %v12231_v8  ;;  %2062 = vperm.xlu0 %10775, %v1985_v27   ;;  %v12930_v32 = vpop.f32.mrb[10].mxu0  ;;  %v2383_v27 = vld [vmem:[%s15586_s1 + $0x358] sm:$0xff] }
 0x194   :  { %vm1391_vm14 = vmor %vm1311_vm13, %vm1375_vm12  ;;  %v12935_v34 = vpop.f32.mrb[11].mxu0 }
 0x195   :  { %9792 = vmatprep.mubr.msk.f32.mxu1 %vm1391_vm14, %v11890_v17  ;;  %v1360_v36 = vpop.permute.xlu1 %1359 }
 0x196   :  { %vm1376_vm15 = vcmp.eq.s32.totalorder %v1360_v36, %v12231_v8  ;;  %v1296_v38 = vpop.permute.xlu0 %1295  ;;  %2129 = vperm.xlu1 %10776, %v2018_v30   ;;  %v2399_v30 = vadd.s32 20, %v2383_v27  ;;  %v2749_v27 = vld [vmem:[%s15585_s0 + $0x3c0] sm:$0xff] }
 0x197   :  { %vm1312_vm0 = vcmp.eq.s32.totalorder %v1296_v38, %v12231_v8  ;;  %2065 = vperm.xlu0 %10775, %v1986_v35   ;;  %v2367_v35 = vld [vmem:[%s15585_s0 + $0x358] sm:$0xff]  ;;  %v2777_v38 = vadd.s32 20, %v2761_v33  ;;  %v2750_v33 = vld [vmem:[%s15585_s0 + $0x3c8] sm:$0xff] }
 0x198   :  { %vm1392_vm1 = vmor %vm1312_vm0, %vm1376_vm15 }
 0x199   :  { %9793 = vmatmul.mubr.msk.f32.gmra.mrb[30].mxu1 %vm1392_vm1, %v11890_v17  ;;  %v1718_v42 = vpop.permute.xlu1 %1717 }
 0x19a   :  { %vm1752_vm2 = vcmp.eq.s32.totalorder %v1718_v42, %v12231_v8  ;;  %v1654_v44 = vpop.permute.xlu0 %1653  ;;  %2487 = vperm.xlu1 %10776, %v2394_v39   ;;  %v2762_v39 = vld [vmem:[%s15586_s1 + $0x3a8] sm:$0xff] }
 0x19b   :  { %vm1688_vm3 = vcmp.eq.s32.totalorder %v1654_v44, %v12231_v8  ;;  %2423 = vperm.xlu0 %10775, %v2362_v41   ;;  %v2778_v42 = vadd.s32 20, %v2762_v39  ;;  %v2384_v44 = vld [vmem:[%s15586_s1 + $0x360] sm:$0xff]  ;;  %v2751_v39 = vld [vmem:[%s15585_s0 + $0x3d0] sm:$0xff] }
 0x19c   :  { %vm1768_vm4 = vmor %vm1688_vm3, %vm1752_vm2 }
 0x19d   :  { %9836 = vmatprep.mubr.msk.f32.mxu0 %vm1768_vm4, %v11890_v17  ;;  %v1721_v48 = vpop.permute.xlu1 %1720 }
 0x19e   :  { %vm1753_vm5 = vcmp.eq.s32.totalorder %v1721_v48, %v12231_v8  ;;  %v1657_v50 = vpop.permute.xlu0 %1656  ;;  %2490 = vperm.xlu1 %10776, %v2395_v45   ;;  %v2746_v45 = vld [vmem:[%s15585_s0 + $0x3a8] sm:$0xff] }
 0x19f   :  { %vm1689_vm6 = vcmp.eq.s32.totalorder %v1657_v50, %v12231_v8  ;;  %2426 = vperm.xlu0 %10775, %v2363_v47   ;;  %v2400_v47 = vadd.s32 20, %v2384_v44  ;;  %v2385_v48 = vld [vmem:[%s15586_s1 + $0x368] sm:$0xff]  ;;  %v2368_v50 = vld [vmem:[%s15585_s0 + $0x360] sm:$0xff] }
 0x1a0   :  { %vm1769_vm7 = vmor %vm1689_vm6, %vm1753_vm5  ;;  %v2769_v44 = vld [vmem:[%s15586_s1 + $0x3e0] sm:$0xff] }
 0x1a1   :  { %9837 = vmatmul.mubr.msk.f32.gmra.mrb[38].mxu0 %vm1769_vm7, %v11890_v17  ;;  %v2085_v54 = vpop.permute.xlu1 %2084 }
 0x1a2   :  { %vm2131_vm8 = vcmp.eq.s32.totalorder %v2085_v54, %v12231_v8  ;;  %v2021_v56 = vpop.permute.xlu0 %2020  ;;  %2854 = vperm.xlu1 %10776, %v2773_v51   ;;  %v2369_v54 = vld [vmem:[%s15585_s0 + $0x368] sm:$0xff] }
 0x1a3   :  { %vm2067_vm9 = vcmp.eq.s32.totalorder %v2021_v56, %v12231_v8  ;;  %2790 = vperm.xlu0 %10775, %v2741_v53   ;;  %v12970_v58 = vpop.f32.mrb[12].mxu0  ;;  %v2763_v53 = vld [vmem:[%s15586_s1 + $0x3b0] sm:$0xff] }
 0x1a4   :  { %vm2147_vm10 = vmor %vm2067_vm9, %vm2131_vm8  ;;  %v12975_v60 = vpop.f32.mrb[13].mxu0  ;;  %v2779_v59 = vadd.s32 20, %v2763_v53 }
 0x1a5   :  { %9883 = vmatprep.mubr.msk.f32.mxu1 %vm2147_vm10, %v11890_v17  ;;  %v2088_v63 = vpop.permute.xlu1 %2087 }
 0x1a6   :  { %vm2132_vm11 = vcmp.eq.s32.totalorder %v2088_v63, %v12231_v8  ;;  %v2024_v0 = vpop.permute.xlu0 %2023  ;;  %2857 = vperm.xlu1 %10776, %v2774_v57   ;;  %v2747_v63 = vld [vmem:[%s15585_s0 + $0x3b0] sm:$0xff] }
 0x1a7   :  { %vm2068_vm12 = vcmp.eq.s32.totalorder %v2024_v0, %v12231_v8  ;;  %2793 = vperm.xlu0 %10775, %v2742_v62   ;;  %v2764_v62 = vld [vmem:[%s15586_s1 + $0x3b8] sm:$0xff] }
 0x1a8   :  { %vm2148_vm13 = vmor %vm2068_vm12, %vm2132_vm11  ;;  %v2780_v2 = vadd.s32 20, %v2764_v62 }
 0x1a9   :  { %9884 = vmatmul.mubr.msk.f32.vlgmr.msra.gmra.mrb[32].mxu1 %vm2148_vm13, %v11890_v17  ;;  %v1724_v4 = vpop.permute.xlu1 %1723 }
 0x1aa   :  { %vm1754_vm14 = vcmp.eq.s32.totalorder %v1724_v4, %v12231_v8  ;;  %v1660_v6 = vpop.permute.xlu0 %1659  ;;  %2493 = vperm.xlu1 %10776, %v2396_v1   ;;  %10534 = vmatpush3.bf16.msra.mxu1 %v11971_v20  ;;  %v2386_v4 = vld [vmem:[%s15586_s1 + $0x370] sm:$0xff] }
 0x1ab   :  { %vm1690_vm15 = vcmp.eq.s32.totalorder %v1660_v6, %v12231_v8  ;;  %2429 = vperm.xlu0 %10775, %v2364_v3   ;;  %10536 = vmatprep.subr.bf16.mxu1 %v11986_v25  ;;  %v2748_v3 = vld [vmem:[%s15585_s0 + $0x3b8] sm:$0xff]  ;;  %v40_v6 = vld [vmem:[%s15588_s3] sm:$0xff] }
 0x1ac   :  { %vm1770_vm0 = vmor %vm1690_vm15, %vm1754_vm14 }
 0x1ad   :  { %9839 = vmatprep.mubr.msk.f32.mxu0 %vm1770_vm0, %v11890_v17  ;;  %v1727_v12 = vpop.permute.xlu1 %1726 }
 0x1ae   :  { %vm1755_vm1 = vcmp.eq.s32.totalorder %v1727_v12, %v12231_v8  ;;  %v1663_v20 = vpop.permute.xlu0 %1662  ;;  %2496 = vperm.xlu1 %10776, %v2397_v9   ;;  %10538 = vmatpush3.bf16.msra.mxu1 %v11986_v25  ;;  %v41_v9 = vld [vmem:[%s15588_s3 + $0x8] sm:$0xff] }
 0x1af   :  { %vm1691_vm2 = vcmp.eq.s32.totalorder %v1663_v20, %v12231_v8  ;;  %2432 = vperm.xlu0 %10775, %v2365_v11   ;;  %10540 = vmatprep.subr.bf16.mxu1 %v12004_v31  ;;  %v13114_v11 = vpack.c.bf16 %v41_v9, %v40_v6  ;;  %v2402_v20 = vadd.s32 20, %v2386_v4  ;;  %v2756_v6 = vld [vmem:[%s15585_s0 + $0x3f8] sm:$0xff] }
 0x1b0   :  { %vm1771_vm3 = vmor %vm1691_vm2, %vm1755_vm1 }
 0x1b1   :  { %9840 = vmatmul.mubr.msk.f32.gmra.mrb[40].mxu0 %vm1771_vm3, %v11890_v17  ;;  %v2091_v16 = vpop.permute.xlu1 %2090  ;;  %10564 = vmatprep.subr.bf16.mxu0 %v13114_v11 }
 0x1b2   :  { %vm2133_vm4 = vcmp.eq.s32.totalorder %v2091_v16, %v12231_v8  ;;  %v2027_v25 = vpop.permute.xlu0 %2026  ;;  %2860 = vperm.xlu1 %10776, %v2775_v13   ;;  %10542 = vmatpush3.bf16.msra.mxu1 %v12004_v31  ;;  %v2387_v13 = vld [vmem:[%s15586_s1 + $0x378] sm:$0xff] }
 0x1b3   :  { %vm2069_vm5 = vcmp.eq.s32.totalorder %v2027_v25, %v12231_v8  ;;  %2796 = vperm.xlu0 %10775, %v2743_v15   ;;  %v13015_v19 = vpop.f32.mrb[14].mxu0  ;;  %10544 = vmatprep.subr.bf16.mxu1 %v12022_v37  ;;  %v2403_v25 = vadd.s32 20, %v2387_v13 }
 0x1b4   :  { %vm2149_vm6 = vmor %vm2069_vm5, %vm2133_vm4  ;;  %v13021_v22 = vpop.f32.mrb[15].mxu0 }
 0x1b5   :  { %9886 = vmatprep.mubr.msk.f32.mxu1 %vm2149_vm6, %v11890_v17  ;;  %v2094_v31 = vpop.permute.xlu1 %2093 }
 0x1b6   :  { %vm2134_vm7 = vcmp.eq.s32.totalorder %v2094_v31, %v12231_v8  ;;  %v2030_v24 = vpop.permute.xlu0 %2029  ;;  %2863 = vperm.xlu1 %10776, %v2776_v18   ;;  %10546 = vmatpush3.bf16.msra.mxu1 %v12022_v37  ;;  %v2765_v18 = vld [vmem:[%s15586_s1 + $0x3c0] sm:$0xff] }
 0x1b7   :  { %vm2070_vm8 = vcmp.eq.s32.totalorder %v2030_v24, %v12231_v8  ;;  %2799 = vperm.xlu0 %10775, %v2744_v23   ;;  %10548 = vmatprep.subr.bf16.mxu1 %v12040_v43  ;;  %v2781_v24 = vadd.s32 20, %v2765_v18 }
 0x1b8   :  { %vm2150_vm9 = vmor %vm2070_vm8, %vm2134_vm7 }
 0x1b9   :  { %9887 = vmatmul.mubr.msk.f32.gmra.mrb[34].mxu1 %vm2150_vm9, %v11890_v17  ;;  %v1730_v29 = vpop.permute.xlu1 %1729 }
 0x1ba   :  { %vm1756_vm10 = vcmp.eq.s32.totalorder %v1730_v29, %v12231_v8  ;;  %v1666_v37 = vpop.permute.xlu0 %1665  ;;  %2499 = vperm.xlu1 %10776, %v2398_v26   ;;  %10550 = vmatpush3.bf16.msra.mxu1 %v12040_v43  ;;  %v2766_v26 = vld [vmem:[%s15586_s1 + $0x3c8] sm:$0xff] }
 0x1bb   :  { %vm1692_vm11 = vcmp.eq.s32.totalorder %v1666_v37, %v12231_v8  ;;  %2435 = vperm.xlu0 %10775, %v2366_v28   ;;  %10552 = vmatprep.subr.bf16.mxu1 %v12058_v49  ;;  %v2782_v37 = vadd.s32 20, %v2766_v26 }
 0x1bc   :  { %vm1772_vm12 = vmor %vm1692_vm11, %vm1756_vm10 }
 0x1bd   :  { %9842 = vmatprep.mubr.msk.f32.mxu0 %vm1772_vm12, %v11890_v17  ;;  %v1733_v36 = vpop.permute.xlu1 %1732 }
 0x1be   :  { %vm1757_vm13 = vcmp.eq.s32.totalorder %v1733_v36, %v12231_v8  ;;  %v1669_v43 = vpop.permute.xlu0 %1668  ;;  %2502 = vperm.xlu1 %10776, %v2399_v30   ;;  %10554 = vmatpush3.bf16.msra.mxu1 %v12058_v49  ;;  %v2767_v30 = vld [vmem:[%s15586_s1 + $0x3d0] sm:$0xff] }
 0x1bf   :  { %vm1693_vm14 = vcmp.eq.s32.totalorder %v1669_v43, %v12231_v8  ;;  %2438 = vperm.xlu0 %10775, %v2367_v35   ;;  %10556 = vmatprep.subr.bf16.mxu1 %v12076_v55  ;;  %v2783_v43 = vadd.s32 20, %v2767_v30 }
 0x1c0   :  { %vm1773_vm15 = vmor %vm1693_vm14, %vm1757_vm13 }
 0x1c1   :  { %9843 = vmatmul.mubr.msk.f32.gmra.mrb[42].mxu0 %vm1773_vm15, %v11890_v17  ;;  %v2097_v41 = vpop.permute.xlu1 %2096 }
 0x1c2   :  { %vm2135_vm0 = vcmp.eq.s32.totalorder %v2097_v41, %v12231_v8  ;;  %v2033_v49 = vpop.permute.xlu0 %2032  ;;  %2866 = vperm.xlu1 %10776, %v2777_v38   ;;  %10558 = vmatpush3.bf16.msra.mxu1 %v12076_v55  ;;  %v2768_v38 = vld [vmem:[%s15586_s1 + $0x3d8] sm:$0xff] }
 0x1c3   :  { %vm2071_vm1 = vcmp.eq.s32.totalorder %v2033_v49, %v12231_v8  ;;  %2802 = vperm.xlu0 %10775, %v2745_v40   ;;  %10560 = vmatprep.subr.bf16.mxu1 %v12094_v61  ;;  %v2784_v49 = vadd.s32 20, %v2768_v38 }
 0x1c4   :  { %vm2151_vm2 = vmor %vm2071_vm1, %vm2135_vm0 }
 0x1c5   :  { %9889 = vmatprep.mubr.msk.f32.mxu1 %vm2151_vm2, %v11890_v17  ;;  %v2100_v46 = vpop.permute.xlu1 %2099 }
 0x1c6   :  { %vm2136_vm3 = vcmp.eq.s32.totalorder %v2100_v46, %v12231_v8  ;;  %v2036_v55 = vpop.permute.xlu0 %2035  ;;  %2869 = vperm.xlu1 %10776, %v2778_v42   ;;  %10562 = vmatpush3.bf16.msra.mxu1 %v12094_v61  ;;  %v2401_v61 = vadd.s32 20, %v2385_v48  ;;  %v2752_v42 = vld [vmem:[%s15585_s0 + $0x3d8] sm:$0xff]  ;;  %v2785_v48 = vadd.s32 20, %v2769_v44 }
 0x1c7   :  { %vm2072_vm4 = vcmp.eq.s32.totalorder %v2036_v55, %v12231_v8  ;;  %2805 = vperm.xlu0 %10775, %v2746_v45   ;;  %10635 = vmatprep.subr.bf16.mxu1 %v13114_v11  ;;  %v42_v45 = vld [vmem:[%s15588_s3 + $0x10] sm:$0xff]  ;;  %v43_v46 = vld [vmem:[%s15588_s3 + $0x18] sm:$0xff] }
 0x1c8   :  { %vm2152_vm5 = vmor %vm2072_vm4, %vm2136_vm3 }
 0x1c9   :  { %9890 = vmatmul.mubr.msk.f32.gmra.mrb[36].mxu1 %vm2152_vm5, %v11890_v17  ;;  %v1736_v51 = vpop.permute.xlu1 %1735 }
 0x1ca   :  { %vm1758_vm6 = vcmp.eq.s32.totalorder %v1736_v51, %v12231_v8  ;;  %v1672_v52 = vpop.permute.xlu0 %1671  ;;  %2505 = vperm.xlu1 %10776, %v2400_v47   ;;  %v13183_v51 = vpack.c.bf16 %v43_v46, %v42_v45 }
 0x1cb   :  { %vm1694_vm7 = vcmp.eq.s32.totalorder %v1672_v52, %v12231_v8  ;;  %2441 = vperm.xlu0 %10775, %v2368_v50   ;;  %v2770_v50 = vld [vmem:[%s15586_s1 + $0x3e8] sm:$0xff]  ;;  %v2753_v52 = vld [vmem:[%s15585_s0 + $0x3e0] sm:$0xff] }
 0x1cc   :  { %vm1774_vm8 = vmor %vm1694_vm7, %vm1758_vm6 }
 0x1cd   :  { %9845 = vmatprep.mubr.msk.f32.mxu0 %vm1774_vm8, %v11890_v17  ;;  %v1739_v56 = vpop.permute.xlu1 %1738 }
 0x1ce   :  { %vm1759_vm9 = vcmp.eq.s32.totalorder %v1739_v56, %v12231_v8  ;;  %v1675_v57 = vpop.permute.xlu0 %1674  ;;  %2508 = vperm.xlu1 %10776, %v2401_v61   ;;  %v2771_v56 = vld [vmem:[%s15586_s1 + $0x3f0] sm:$0xff] }
 0x1cf   :  { %vm1695_vm10 = vcmp.eq.s32.totalorder %v1675_v57, %v12231_v8  ;;  %2444 = vperm.xlu0 %10775, %v2369_v54   ;;  %v2786_v54 = vadd.s32 20, %v2770_v50  ;;  %v2754_v57 = vld [vmem:[%s15585_s0 + $0x3e8] sm:$0xff] }
 0x1d0   :  { %vm1775_vm11 = vmor %vm1695_vm10, %vm1759_vm9 }
 0x1d1   :  { %9846 = vmatmul.mubr.msk.f32.gmra.mrb[44].mxu0 %vm1775_vm11, %v11890_v17  ;;  %v2103_v0 = vpop.permute.xlu1 %2102 }
 0x1d2   :  { %vm2137_vm12 = vcmp.eq.s32.totalorder %v2103_v0, %v12231_v8  ;;  %v2039_v1 = vpop.permute.xlu0 %2038  ;;  %2872 = vperm.xlu1 %10776, %v2779_v59   ;;  %v2772_v0 = vld [vmem:[%s15586_s1 + $0x3f8] sm:$0xff] }
 0x1d3   :  { %vm2073_vm13 = vcmp.eq.s32.totalorder %v2039_v1, %v12231_v8  ;;  %2808 = vperm.xlu0 %10775, %v2747_v63   ;;  %v2787_v63 = vadd.s32 20, %v2771_v56  ;;  %v2755_v1 = vld [vmem:[%s15585_s0 + $0x3f0] sm:$0xff]  ;;  %v2788_v4 = vadd.s32 20, %v2772_v0  ;;  %s11892_s0 = smov 32  }
 0x1d4   :  { %vm2153_vm14 = vmor %vm2073_vm13, %vm2137_vm12 }
 0x1d5   :  { %9892 = vmatprep.mubr.msk.f32.mxu1 %vm2153_vm14, %v11890_v17  ;;  %v2106_v10 = vpop.permute.xlu1 %2105 }
 0x1d6   :  { %vm2138_vm15 = vcmp.eq.s32.totalorder %v2106_v10, %v12231_v8  ;;  %v2042_v12 = vpop.permute.xlu0 %2041  ;;  %2875 = vperm.xlu1 %10776, %v2780_v2  }
 0x1d7   :  { %vm2074_vm0 = vcmp.eq.s32.totalorder %v2042_v12, %v12231_v8  ;;  %2811 = vperm.xlu0 %10775, %v2748_v3  }
 0x1d8   :  { %vm2154_vm1 = vmor %vm2074_vm0, %vm2138_vm15 }
 0x1d9   :  { %9893 = vmatmul.mubr.msk.f32.gmra.mrb[38].mxu1 %vm2154_vm1, %v11890_v17  ;;  %v1742_v15 = vpop.permute.xlu1 %1741 }
 0x1da   :  { %vm1760_vm2 = vcmp.eq.s32.totalorder %v1742_v15, %v12231_v8  ;;  %v1678_v16 = vpop.permute.xlu0 %1677  ;;  %2511 = vperm.xlu1 %10776, %v2402_v20  }
 0x1db   :  { %vm1696_vm3 = vcmp.eq.s32.totalorder %v1678_v16, %v12231_v8  ;;  %2447 = vperm.xlu0 %10775, %v2370_v14  }
 0x1dc   :  { %vm1776_vm4 = vmor %vm1696_vm3, %vm1760_vm2 }
 0x1dd   :  { %9848 = vmatprep.mubr.msk.f32.mxu0 %vm1776_vm4, %v11890_v17  ;;  %v1745_v23 = vpop.permute.xlu1 %1744 }
 0x1de   :  { %vm1761_vm5 = vcmp.eq.s32.totalorder %v1745_v23, %v12231_v8  ;;  %v1681_v31 = vpop.permute.xlu0 %1680  ;;  %2514 = vperm.xlu1 %10776, %v2403_v25  }
 0x1df   :  { %vm1697_vm6 = vcmp.eq.s32.totalorder %v1681_v31, %v12231_v8  ;;  %2450 = vperm.xlu0 %10775, %v2371_v21  }
 0x1e0   :  { %vm1777_vm7 = vmor %vm1697_vm6, %vm1761_vm5 }
 0x1e1   :  { %9849 = vmatmul.mubr.msk.f32.gmra.mrb[46].mxu0 %vm1777_vm7, %v11890_v17  ;;  %v2109_v28 = vpop.permute.xlu1 %2108 }
 0x1e2   :  { %vm2139_vm8 = vcmp.eq.s32.totalorder %v2109_v28, %v12231_v8  ;;  %v2045_v29 = vpop.permute.xlu0 %2044  ;;  %2878 = vperm.xlu1 %10776, %v2781_v24  }
 0x1e3   :  { %vm2075_vm9 = vcmp.eq.s32.totalorder %v2045_v29, %v12231_v8  ;;  %2814 = vperm.xlu0 %10775, %v2749_v27  }
 0x1e4   :  { %vm2155_vm10 = vmor %vm2075_vm9, %vm2139_vm8 }
 0x1e5   :  { %9895 = vmatprep.mubr.msk.f32.mxu1 %vm2155_vm10, %v11890_v17  ;;  %v2112_v35 = vpop.permute.xlu1 %2111 }
 0x1e6   :  { %vm2140_vm11 = vcmp.eq.s32.totalorder %v2112_v35, %v12231_v8  ;;  %v2048_v36 = vpop.permute.xlu0 %2047  ;;  %2881 = vperm.xlu1 %10776, %v2782_v37  }
 0x1e7   :  { %vm2076_vm12 = vcmp.eq.s32.totalorder %v2048_v36, %v12231_v8  ;;  %2817 = vperm.xlu0 %10775, %v2750_v33  }
 0x1e8   :  { %vm2156_vm13 = vmor %vm2076_vm12, %vm2140_vm11 }
 0x1e9   :  { %9896 = vmatmul.mubr.msk.f32.gmra.mrb[40].mxu1 %vm2156_vm13, %v11890_v17  ;;  %v2470_v40 = vpop.permute.xlu1 %2469 }
 0x1ea   :  { %vm2516_vm14 = vcmp.eq.s32.totalorder %v2470_v40, %v12231_v8  ;;  %v2406_v41 = vpop.permute.xlu0 %2405  ;;  %2884 = vperm.xlu1 %10776, %v2783_v43  }
 0x1eb   :  { %vm2452_vm15 = vcmp.eq.s32.totalorder %v2406_v41, %v12231_v8  ;;  %2820 = vperm.xlu0 %10775, %v2751_v39  }
 0x1ec   :  { %vm2532_vm0 = vmor %vm2452_vm15, %vm2516_vm14 }
 0x1ed   :  { %9939 = vmatprep.mubr.msk.f32.mxu0 %vm2532_vm0, %v11890_v17  ;;  %v2473_v55 = vpop.permute.xlu1 %2472 }
 0x1ee   :  { %vm2517_vm1 = vcmp.eq.s32.totalorder %v2473_v55, %v12231_v8  ;;  %v2409_v47 = vpop.permute.xlu0 %2408  ;;  %2887 = vperm.xlu1 %10776, %v2784_v49  }
 0x1ef   :  { %vm2453_vm2 = vcmp.eq.s32.totalorder %v2409_v47, %v12231_v8  ;;  %2823 = vperm.xlu0 %10775, %v2752_v42  }
 0x1f0   :  { %vm2533_vm3 = vmor %vm2453_vm2, %vm2517_vm1 }
 0x1f1   :  { %9940 = vmatmul.mubr.msk.f32.vlgmr.msra.gmra.mrb[48].mxu0 %vm2533_vm3, %v11890_v17  ;;  %v2115_v61 = vpop.permute.xlu1 %2114 }
 0x1f2   :  { %vm2141_vm4 = vcmp.eq.s32.totalorder %v2115_v61, %v12231_v8  ;;  %v2051_v53 = vpop.permute.xlu0 %2050  ;;  %2890 = vperm.xlu1 %10776, %v2785_v48   ;;  %10566 = vmatpush3.bf16.msra.mxu0 %v13114_v11 }
 0x1f3   :  { %vm2077_vm5 = vcmp.eq.s32.totalorder %v2051_v53, %v12231_v8  ;;  %2826 = vperm.xlu0 %10775, %v2753_v52   ;;  %10568 = vmatprep.subr.bf16.mxu0 %v13183_v51 }
 0x1f4   :  { %vm2157_vm6 = vmor %vm2077_vm5, %vm2141_vm4 }
 0x1f5   :  { %9898 = vmatprep.mubr.msk.f32.mxu1 %vm2157_vm6, %v11890_v17  ;;  %v2118_v59 = vpop.permute.xlu1 %2117 }
 0x1f6   :  { %vm2142_vm7 = vcmp.eq.s32.totalorder %v2118_v59, %v12231_v8  ;;  %v2054_v62 = vpop.permute.xlu0 %2053  ;;  %2893 = vperm.xlu1 %10776, %v2786_v54   ;;  %10570 = vmatpush3.bf16.msra.mxu0 %v13183_v51 }
 0x1f7   :  { %vm2078_vm8 = vcmp.eq.s32.totalorder %v2054_v62, %v12231_v8  ;;  %2829 = vperm.xlu0 %10775, %v2754_v57   ;;  %10580 = vmatprep.subr.bf16.mxu0 %v13114_v11 }
 0x1f8   :  { %vm2158_vm9 = vmor %vm2078_vm8, %vm2142_vm7 }
 0x1f9   :  { %9899 = vmatmul.mubr.msk.f32.gmra.mrb[42].mxu1 %vm2158_vm9, %v11890_v17  ;;  %v2476_v2 = vpop.permute.xlu1 %2475 }
 0x1fa   :  { %vm2518_vm10 = vcmp.eq.s32.totalorder %v2476_v2, %v12231_v8  ;;  %v2412_v3 = vpop.permute.xlu0 %2411  ;;  %2896 = vperm.xlu1 %10776, %v2787_v63  }
 0x1fb   :  { %vm2454_vm11 = vcmp.eq.s32.totalorder %v2412_v3, %v12231_v8  ;;  %2832 = vperm.xlu0 %10775, %v2755_v1  }
 0x1fc   :  { %vm2534_vm12 = vmor %vm2454_vm11, %vm2518_vm10 }
 0x1fd   :  { %9942 = vmatprep.mubr.msk.f32.mxu0 %vm2534_vm12, %v11890_v17  ;;  %v2479_v9 = vpop.permute.xlu1 %2478 }
 0x1fe   :  { %vm2519_vm13 = vcmp.eq.s32.totalorder %v2479_v9, %v12231_v8  ;;  %v2415_v10 = vpop.permute.xlu0 %2414  ;;  %2899 = vperm.xlu1 %10776, %v2788_v4   ;;  %v11891_v9 = vmov 0.0  }
 0x1ff   :  { %vm2455_vm14 = vcmp.eq.s32.totalorder %v2415_v10, %v12231_v8  ;;  %2835 = vperm.xlu0 %10775, %v2756_v6  }
 0x200   :  { %vm2535_vm15 = vmor %vm2455_vm14, %vm2519_vm13 }
 0x201   :  { %9943 = vmatmul.mubr.msk.f32.gmra.mrb[50].mxu0 %vm2535_vm15, %v11890_v17  ;;  %v2121_v12 = vpop.permute.xlu1 %2120 }
 0x202   :  { %vm2143_vm0 = vcmp.eq.s32.totalorder %v2121_v12, %v12231_v8  ;;  %v2057_v20 = vpop.permute.xlu0 %2056 }
 0x203   :  { %vm2079_vm1 = vcmp.eq.s32.totalorder %v2057_v20, %v12231_v8 }
 0x204   :  { %vm2159_vm2 = vmor %vm2079_vm1, %vm2143_vm0 }
 0x205   :  { %9901 = vmatprep.mubr.msk.f32.mxu1 %vm2159_vm2, %v11890_v17  ;;  %v2124_v13 = vpop.permute.xlu1 %2123 }
 0x206   :  { %vm2144_vm3 = vcmp.eq.s32.totalorder %v2124_v13, %v12231_v8  ;;  %v2060_v14 = vpop.permute.xlu0 %2059 }
 0x207   :  { %vm2080_vm4 = vcmp.eq.s32.totalorder %v2060_v14, %v12231_v8 }
 0x208   :  { %vm2160_vm5 = vmor %vm2080_vm4, %vm2144_vm3 }
 0x209   :  { %9902 = vmatmul.mubr.msk.f32.gmra.mrb[44].mxu1 %vm2160_vm5, %v11890_v17  ;;  %v2482_v15 = vpop.permute.xlu1 %2481 }
 0x20a   :  { %vm2520_vm6 = vcmp.eq.s32.totalorder %v2482_v15, %v12231_v8  ;;  %v2418_v16 = vpop.permute.xlu0 %2417 }
 0x20b   :  { %vm2456_vm7 = vcmp.eq.s32.totalorder %v2418_v16, %v12231_v8 }
 0x20c   :  { %vm2536_vm8 = vmor %vm2456_vm7, %vm2520_vm6 }
 0x20d   :  { %9945 = vmatprep.mubr.msk.f32.mxu0 %vm2536_vm8, %v11890_v17  ;;  %v2485_v25 = vpop.permute.xlu1 %2484 }
 0x20e   :  { %vm2521_vm9 = vcmp.eq.s32.totalorder %v2485_v25, %v12231_v8  ;;  %v2421_v18 = vpop.permute.xlu0 %2420 }
 0x20f   :  { %vm2457_vm10 = vcmp.eq.s32.totalorder %v2421_v18, %v12231_v8 }
 0x210   :  { %vm2537_vm11 = vmor %vm2457_vm10, %vm2521_vm9 }
 0x211   :  { %9946 = vmatmul.mubr.msk.f32.gmra.mrb[52].mxu0 %vm2537_vm11, %v11890_v17  ;;  %v2127_v21 = vpop.permute.xlu1 %2126 }
 0x212   :  { %vm2145_vm12 = vcmp.eq.s32.totalorder %v2127_v21, %v12231_v8  ;;  %v2063_v23 = vpop.permute.xlu0 %2062 }
 0x213   :  { %vm2081_vm13 = vcmp.eq.s32.totalorder %v2063_v23, %v12231_v8 }
 0x214   :  { %vm2161_vm14 = vmor %vm2081_vm13, %vm2145_vm12 }
 0x215   :  { %9904 = vmatprep.mubr.msk.f32.mxu1 %vm2161_vm14, %v11890_v17  ;;  %v2130_v31 = vpop.permute.xlu1 %2129 }
 0x216   :  { %vm2146_vm15 = vcmp.eq.s32.totalorder %v2130_v31, %v12231_v8  ;;  %v2066_v24 = vpop.permute.xlu0 %2065 }
 0x217   :  { %vm2082_vm0 = vcmp.eq.s32.totalorder %v2066_v24, %v12231_v8 }
 0x218   :  { %vm2162_vm1 = vmor %vm2082_vm0, %vm2146_vm15 }
 0x219   :  { %9905 = vmatmul.mubr.msk.f32.gmra.mrb[46].mxu1 %vm2162_vm1, %v11890_v17  ;;  %v2488_v26 = vpop.permute.xlu1 %2487 }
 0x21a   :  { %vm2522_vm2 = vcmp.eq.s32.totalorder %v2488_v26, %v12231_v8  ;;  %v2424_v27 = vpop.permute.xlu0 %2423 }
 0x21b   :  { %vm2458_vm3 = vcmp.eq.s32.totalorder %v2424_v27, %v12231_v8 }
 0x21c   :  { %vm2538_vm4 = vmor %vm2458_vm3, %vm2522_vm2 }
 0x21d   :  { %9948 = vmatprep.mubr.msk.f32.mxu0 %vm2538_vm4, %v11890_v17  ;;  %v2491_v28 = vpop.permute.xlu1 %2490 }
 0x21e   :  { %vm2523_vm5 = vcmp.eq.s32.totalorder %v2491_v28, %v12231_v8  ;;  %v2427_v29 = vpop.permute.xlu0 %2426 }
 0x21f   :  { %vm2459_vm6 = vcmp.eq.s32.totalorder %v2427_v29, %v12231_v8 }
 0x220   :  { %vm2539_vm7 = vmor %vm2459_vm6, %vm2523_vm5 }
 0x221   :  { %9949 = vmatmul.mubr.msk.f32.gmra.mrb[54].mxu0 %vm2539_vm7, %v11890_v17  ;;  %v2855_v37 = vpop.permute.xlu1 %2854 }
 0x222   :  { %vm2901_vm8 = vcmp.eq.s32.totalorder %v2855_v37, %v12231_v8  ;;  %v2791_v30 = vpop.permute.xlu0 %2790 }
 0x223   :  { %vm2837_vm9 = vcmp.eq.s32.totalorder %v2791_v30, %v12231_v8 }
 0x224   :  { %vm2917_vm10 = vmor %vm2837_vm9, %vm2901_vm8 }
 0x225   :  { %9995 = vmatprep.mubr.msk.f32.mxu1 %vm2917_vm10, %v11890_v17  ;;  %v2858_v33 = vpop.permute.xlu1 %2857 }
 0x226   :  { %vm2902_vm11 = vcmp.eq.s32.totalorder %v2858_v33, %v12231_v8  ;;  %v2794_v35 = vpop.permute.xlu0 %2793 }
 0x227   :  { %vm2838_vm12 = vcmp.eq.s32.totalorder %v2794_v35, %v12231_v8 }
 0x228   :  { %vm2918_vm13 = vmor %vm2838_vm12, %vm2902_vm11 }
 0x229   :  { %9996 = vmatmul.mubr.msk.f32.vlgmr.msra.gmra.mrb[48].mxu1 %vm2918_vm13, %v11890_v17  ;;  %v2494_v36 = vpop.permute.xlu1 %2493 }
 0x22a   :  { %vm2524_vm14 = vcmp.eq.s32.totalorder %v2494_v36, %v12231_v8  ;;  %v2430_v43 = vpop.permute.xlu0 %2429  ;;  %10637 = vmatpush3.bf16.msra.mxu1 %v13114_v11 }
 0x22b   :  { %vm2460_vm15 = vcmp.eq.s32.totalorder %v2430_v43, %v12231_v8  ;;  %10636 = vmatprep.subr.bf16.mxu1 %v13183_v51 }
 0x22c   :  { %vm2540_vm0 = vmor %vm2460_vm15, %vm2524_vm14 }
 0x22d   :  { %9951 = vmatprep.mubr.msk.f32.mxu0 %vm2540_vm0, %v11890_v17  ;;  %v2497_v38 = vpop.permute.xlu1 %2496 }
 0x22e   :  { %vm2525_vm1 = vcmp.eq.s32.totalorder %v2497_v38, %v12231_v8  ;;  %v2433_v39 = vpop.permute.xlu0 %2432  ;;  %10638 = vmatpush3.bf16.msra.mxu1 %v13183_v51 }
 0x22f   :  { %vm2461_vm2 = vcmp.eq.s32.totalorder %v2433_v39, %v12231_v8  ;;  %10572 = vmatprep.subr.bf16.mxu1 %v13114_v11 }
 0x230   :  { %vm2541_vm3 = vmor %vm2461_vm2, %vm2525_vm1 }
 0x231   :  { %9952 = vmatmul.mubr.msk.f32.gmra.mrb[56].mxu0 %vm2541_vm3, %v11890_v17  ;;  %v2861_v40 = vpop.permute.xlu1 %2860 }
 0x232   :  { %vm2903_vm4 = vcmp.eq.s32.totalorder %v2861_v40, %v12231_v8  ;;  %v2797_v41 = vpop.permute.xlu0 %2796 }
 0x233   :  { %vm2839_vm5 = vcmp.eq.s32.totalorder %v2797_v41, %v12231_v8 }
 0x234   :  { %vm2919_vm6 = vmor %vm2839_vm5, %vm2903_vm4 }
 0x235   :  { %9998 = vmatprep.mubr.msk.f32.mxu1 %vm2919_vm6, %v11890_v17  ;;  %v2864_v49 = vpop.permute.xlu1 %2863 }
 0x236   :  { %vm2904_vm7 = vcmp.eq.s32.totalorder %v2864_v49, %v12231_v8  ;;  %v2800_v42 = vpop.permute.xlu0 %2799 }
 0x237   :  { %vm2840_vm8 = vcmp.eq.s32.totalorder %v2800_v42, %v12231_v8 }
 0x238   :  { %vm2920_vm9 = vmor %vm2840_vm8, %vm2904_vm7 }
 0x239   :  { %9999 = vmatmul.mubr.msk.f32.gmra.mrb[50].mxu1 %vm2920_vm9, %v11890_v17  ;;  %v2500_v44 = vpop.permute.xlu1 %2499 }
 0x23a   :  { %vm2526_vm10 = vcmp.eq.s32.totalorder %v2500_v44, %v12231_v8  ;;  %v2436_v45 = vpop.permute.xlu0 %2435 }
 0x23b   :  { %vm2462_vm11 = vcmp.eq.s32.totalorder %v2436_v45, %v12231_v8 }
 0x23c   :  { %vm2542_vm12 = vmor %vm2462_vm11, %vm2526_vm10 }
 0x23d   :  { %9954 = vmatprep.mubr.msk.f32.mxu0 %vm2542_vm12, %v11890_v17  ;;  %v2503_v46 = vpop.permute.xlu1 %2502 }
 0x23e   :  { %vm2527_vm13 = vcmp.eq.s32.totalorder %v2503_v46, %v12231_v8  ;;  %v2439_v55 = vpop.permute.xlu0 %2438 }
 0x23f   :  { %vm2463_vm14 = vcmp.eq.s32.totalorder %v2439_v55, %v12231_v8 }
 0x240   :  { %vm2543_vm15 = vmor %vm2463_vm14, %vm2527_vm13 }
 0x241   :  { %9955 = vmatmul.mubr.msk.f32.gmra.mrb[58].mxu0 %vm2543_vm15, %v11890_v17  ;;  %v2867_v47 = vpop.permute.xlu1 %2866 }
 0x242   :  { %vm2905_vm0 = vcmp.eq.s32.totalorder %v2867_v47, %v12231_v8  ;;  %v2803_v48 = vpop.permute.xlu0 %2802 }
 0x243   :  { %vm2841_vm1 = vcmp.eq.s32.totalorder %v2803_v48, %v12231_v8 }
 0x244   :  { %vm2921_vm2 = vmor %vm2841_vm1, %vm2905_vm0 }
 0x245   :  { %10001 = vmatprep.mubr.msk.f32.mxu1 %vm2921_vm2, %v11890_v17  ;;  %v2870_v50 = vpop.permute.xlu1 %2869 }
 0x246   :  { %vm2906_vm3 = vcmp.eq.s32.totalorder %v2870_v50, %v12231_v8  ;;  %v2806_v52 = vpop.permute.xlu0 %2805 }
 0x247   :  { %vm2842_vm4 = vcmp.eq.s32.totalorder %v2806_v52, %v12231_v8 }
 0x248   :  { %vm2922_vm5 = vmor %vm2842_vm4, %vm2906_vm3 }
 0x249   :  { %10002 = vmatmul.mubr.msk.f32.gmra.mrb[52].mxu1 %vm2922_vm5, %v11890_v17  ;;  %v2506_v61 = vpop.permute.xlu1 %2505 }
 0x24a   :  { %vm2528_vm6 = vcmp.eq.s32.totalorder %v2506_v61, %v12231_v8  ;;  %v2442_v53 = vpop.permute.xlu0 %2441 }
 0x24b   :  { %vm2464_vm7 = vcmp.eq.s32.totalorder %v2442_v53, %v12231_v8 }
 0x24c   :  { %vm2544_vm8 = vmor %vm2464_vm7, %vm2528_vm6 }
 0x24d   :  { %9957 = vmatprep.mubr.msk.f32.mxu0 %vm2544_vm8, %v11890_v17  ;;  %v2509_v54 = vpop.permute.xlu1 %2508 }
 0x24e   :  { %vm2529_vm9 = vcmp.eq.s32.totalorder %v2509_v54, %v12231_v8  ;;  %v2445_v56 = vpop.permute.xlu0 %2444 }
 0x24f   :  { %vm2465_vm10 = vcmp.eq.s32.totalorder %v2445_v56, %v12231_v8 }
 0x250   :  { %vm2545_vm11 = vmor %vm2465_vm10, %vm2529_vm9 }
 0x251   :  { %9958 = vmatmul.mubr.msk.f32.gmra.mrb[60].mxu0 %vm2545_vm11, %v11890_v17  ;;  %v2873_v57 = vpop.permute.xlu1 %2872 }
 0x252   :  { %vm2907_vm12 = vcmp.eq.s32.totalorder %v2873_v57, %v12231_v8  ;;  %v2809_v59 = vpop.permute.xlu0 %2808 }
 0x253   :  { %vm2843_vm13 = vcmp.eq.s32.totalorder %v2809_v59, %v12231_v8 }
 0x254   :  { %vm2923_vm14 = vmor %vm2843_vm13, %vm2907_vm12 }
 0x255   :  { %10004 = vmatprep.mubr.msk.f32.mxu1 %vm2923_vm14, %v11890_v17  ;;  %v2876_v62 = vpop.permute.xlu1 %2875 }
 0x256   :  { %vm2908_vm15 = vcmp.eq.s32.totalorder %v2876_v62, %v12231_v8  ;;  %v2812_v63 = vpop.permute.xlu0 %2811 }
 0x257   :  { %vm2844_vm0 = vcmp.eq.s32.totalorder %v2812_v63, %v12231_v8 }
 0x258   :  { %vm2924_vm1 = vmor %vm2844_vm0, %vm2908_vm15 }
 0x259   :  { %10005 = vmatmul.mubr.msk.f32.gmra.mrb[54].mxu1 %vm2924_vm1, %v11890_v17  ;;  %v2512_v0 = vpop.permute.xlu1 %2511 }
 0x25a   :  { %vm2530_vm2 = vcmp.eq.s32.totalorder %v2512_v0, %v12231_v8  ;;  %v2448_v1 = vpop.permute.xlu0 %2447 }
 0x25b   :  { %vm2466_vm3 = vcmp.eq.s32.totalorder %v2448_v1, %v12231_v8 }
 0x25c   :  { %vm2546_vm4 = vmor %vm2466_vm3, %vm2530_vm2 }
 0x25d   :  { %9960 = vmatprep.mubr.msk.f32.mxu0 %vm2546_vm4, %v11890_v17  ;;  %v2515_v2 = vpop.permute.xlu1 %2514 }
 0x25e   :  { %vm2531_vm5 = vcmp.eq.s32.totalorder %v2515_v2, %v12231_v8  ;;  %v2451_v3 = vpop.permute.xlu0 %2450 }
 0x25f   :  { %vm2467_vm6 = vcmp.eq.s32.totalorder %v2451_v3, %v12231_v8 }
 0x260   :  { %vm2547_vm7 = vmor %vm2467_vm6, %vm2531_vm5 }
 0x261   :  { %9961 = vmatmul.mubr.msk.f32.gmra.mrb[62].mxu0 %vm2547_vm7, %v11890_v17  ;;  %v2879_v4 = vpop.permute.xlu1 %2878 }
 0x262   :  { %vm2909_vm8 = vcmp.eq.s32.totalorder %v2879_v4, %v12231_v8  ;;  %v2815_v6 = vpop.permute.xlu0 %2814  ;;  %10027 = vmatprep.mubr.f32.mxu0 %v11891_v9 }
 0x263   :  { %vm2845_vm9 = vcmp.eq.s32.totalorder %v2815_v6, %v12231_v8 }
 0x264   :  { %vm2925_vm10 = vmor %vm2845_vm9, %vm2909_vm8 }
 0x265   :  { %10007 = vmatprep.mubr.msk.f32.mxu1 %vm2925_vm10, %v11890_v17  ;;  %10028 = vmatmul.mubr.f32.vlgmr.msra.gmra.mrb[0].mxu0 %v11891_v9  ;;  %v2882_v10 = vpop.permute.xlu1 %2881 }
 0x266   :  { %vm2910_vm11 = vcmp.eq.s32.totalorder %v2882_v10, %v12231_v8  ;;  %v2818_v12 = vpop.permute.xlu0 %2817  ;;  %10030 = vmatprep.mubr.f32.mxu0 %v11891_v9  ;;  %10582 = vmatpush3.bf16.msra.mxu0 %v13114_v11 }
 0x267   :  { %vm2846_vm12 = vcmp.eq.s32.totalorder %v2818_v12, %v12231_v8  ;;  %10584 = vmatprep.subr.bf16.mxu0 %v13183_v51 }
 0x268   :  { %vm2926_vm13 = vmor %vm2846_vm12, %vm2910_vm11 }
 0x269   :  { %10008 = vmatmul.mubr.msk.f32.gmra.mrb[56].mxu1 %vm2926_vm13, %v11890_v17  ;;  %10031 = vmatmul.mubr.f32.gmra.mrb[2].mxu0 %v11891_v9  ;;  %v2885_v20 = vpop.permute.xlu1 %2884 }
 0x26a   :  { %vm2911_vm14 = vcmp.eq.s32.totalorder %v2885_v20, %v12231_v8  ;;  %v2821_v13 = vpop.permute.xlu0 %2820  ;;  %10033 = vmatprep.mubr.f32.mxu0 %v11891_v9  ;;  %10586 = vmatpush3.bf16.msra.mxu0 %v13183_v51 }
 0x26b   :  { %vm2847_vm15 = vcmp.eq.s32.totalorder %v2821_v13, %v12231_v8  ;;  %10596 = vmatprep.subr.bf16.mxu0 %v13114_v11 }
 0x26c   :  { %vm2927_vm0 = vmor %vm2847_vm15, %vm2911_vm14 }
 0x26d   :  { %10010 = vmatprep.mubr.msk.f32.mxu1 %vm2927_vm0, %v11890_v17  ;;  %10034 = vmatmul.mubr.f32.gmra.mrb[4].mxu0 %v11891_v9  ;;  %v2888_v14 = vpop.permute.xlu1 %2887  ;;  %vm3142_vm0 = vcmask 261120  }
 0x26e   :  { %vm2912_vm1 = vcmp.eq.s32.totalorder %v2888_v14, %v12231_v8  ;;  %v2824_v15 = vpop.permute.xlu0 %2823  ;;  %10036 = vmatprep.mubr.f32.mxu0 %v11891_v9 }
 0x26f   :  { %vm2848_vm2 = vcmp.eq.s32.totalorder %v2824_v15, %v12231_v8 }
 0x270   :  { %vm2928_vm3 = vmor %vm2848_vm2, %vm2912_vm1 }
 0x271   :  { %10011 = vmatmul.mubr.msk.f32.gmra.mrb[58].mxu1 %vm2928_vm3, %v11890_v17  ;;  %10037 = vmatmul.mubr.f32.gmra.mrb[6].mxu0 %v11891_v9  ;;  %v2891_v16 = vpop.permute.xlu1 %2890 }
 0x272   :  { %vm2913_vm4 = vcmp.eq.s32.totalorder %v2891_v16, %v12231_v8  ;;  %v2827_v25 = vpop.permute.xlu0 %2826 }
 0x273   :  { %vm2849_vm5 = vcmp.eq.s32.totalorder %v2827_v25, %v12231_v8 }
 0x274   :  { %vm2929_vm6 = vmor %vm2849_vm5, %vm2913_vm4 }
 0x275   :  { %10013 = vmatprep.mubr.msk.f32.mxu1 %vm2929_vm6, %v11890_v17  ;;  %v2894_v18 = vpop.permute.xlu1 %2893 }
 0x276   :  { %vm2914_vm7 = vcmp.eq.s32.totalorder %v2894_v18, %v12231_v8  ;;  %v2830_v21 = vpop.permute.xlu0 %2829 }
 0x277   :  { %vm2850_vm8 = vcmp.eq.s32.totalorder %v2830_v21, %v12231_v8 }
 0x278   :  { %vm2930_vm9 = vmor %vm2850_vm8, %vm2914_vm7 }
 0x279   :  { %10014 = vmatmul.mubr.msk.f32.gmra.mrb[60].mxu1 %vm2930_vm9, %v11890_v17  ;;  %v2897_v23 = vpop.permute.xlu1 %2896 }
 0x27a   :  { %vm2915_vm10 = vcmp.eq.s32.totalorder %v2897_v23, %v12231_v8  ;;  %v2833_v31 = vpop.permute.xlu0 %2832 }
 0x27b   :  { %vm2851_vm11 = vcmp.eq.s32.totalorder %v2833_v31, %v12231_v8 }
 0x27c   :  { %vm2931_vm12 = vmor %vm2851_vm11, %vm2915_vm10 }
 0x27d   :  { %10016 = vmatprep.mubr.msk.f32.mxu1 %vm2931_vm12, %v11890_v17  ;;  %v2900_v24 = vpop.permute.xlu1 %2899 }
 0x27e   :  { %vm2916_vm13 = vcmp.eq.s32.totalorder %v2900_v24, %v12231_v8  ;;  %v2836_v26 = vpop.permute.xlu0 %2835 }
 0x27f   :  { %vm2852_vm14 = vcmp.eq.s32.totalorder %v2836_v26, %v12231_v8 }
 0x280   :  { %vm2932_vm15 = vmor %vm2852_vm14, %vm2916_vm13 }
 0x281   :  { %10017 = vmatmul.mubr.msk.f32.gmra.mrb[62].mxu1 %vm2932_vm15, %v11890_v17 }
 0x282   :  { %10039 = vmatprep.mubr.f32.mxu1 %v11891_v9 }
 0x285   :  { %10040 = vmatmul.mubr.f32.vlgmr.msra.gmra.mrb[64].mxu1 %v11891_v9 }
 0x286   :  { %10042 = vmatprep.mubr.f32.mxu1 %v11891_v9  ;;  %10574 = vmatpush3.bf16.msra.mxu1 %v13114_v11 }
 0x287   :  { %10576 = vmatprep.subr.bf16.mxu1 %v13183_v51 }
 0x289   :  { %10043 = vmatmul.mubr.f32.gmra.mrb[66].mxu1 %v11891_v9 }
 0x28a   :  { %10045 = vmatprep.mubr.f32.mxu1 %v11891_v9  ;;  %10578 = vmatpush3.bf16.msra.mxu1 %v13183_v51 }
 0x28b   :  { %10588 = vmatprep.subr.bf16.mxu1 %v13114_v11 }
 0x28d   :  { %10046 = vmatmul.mubr.f32.gmra.mrb[68].mxu1 %v11891_v9 }
 0x28e   :  { %10048 = vmatprep.mubr.f32.mxu1 %v11891_v9 }
 0x291   :  { %10049 = vmatmul.mubr.f32.gmra.mrb[70].mxu1 %v11891_v9 }
 0x338   :  { %v13344_v8 = vpop.f32.mrb[0].mxu0 }
 0x339   :  { %10777 = vtanh.f32 %v13344_v8  ;;  %v13347_v17 = vpop.f32.mrb[1].mxu0  ;;  %v8879_v63 = vmul.f32 -1.442695, %v13344_v8 }
 0x33a   :  { %10779 = vtanh.f32 %v13347_v17  ;;  %v8878_v0 = vmul.f32 -1.442695, %v13347_v17 }
 0x33c   :  { %v13350_v27 = vpop.f32.mrb[2].mxu0 }
 0x33d   :  { %10781 = vtanh.f32 %v13350_v27  ;;  %v13353_v28 = vpop.f32.mrb[3].mxu0  ;;  %v8881_v1 = vmul.f32 -1.442695, %v13350_v27 }
 0x33e   :  { %10783 = vtanh.f32 %v13353_v28  ;;  %v8880_v2 = vmul.f32 -1.442695, %v13353_v28 }
 0x340   :  { %v13356_v29 = vpop.f32.mrb[4].mxu0 }
 0x341   :  { %10785 = vtanh.f32 %v13356_v29  ;;  %v13359_v37 = vpop.f32.mrb[5].mxu0  ;;  %v8883_v3 = vmul.f32 -1.442695, %v13356_v29 }
 0x342   :  { %10787 = vtanh.f32 %v13359_v37  ;;  %v8882_v4 = vmul.f32 -1.442695, %v13359_v37 }
 0x343   :  { %v10778_v30 = vpop.eup %10777 }
 0x344   :  { %v10780_v33 = vpop.eup %10779  ;;  %3453 = vrot.lane.b32.xlu1 %v10778_v30, %s11892_s0  ;;  %v13363_v35 = vpop.f32.mrb[6].mxu0 }
 0x345   :  { %10789 = vtanh.f32 %v13363_v35  ;;  %3451 = vrot.lane.b32.xlu0 %v10780_v33, %s11892_s0  ;;  %v13367_v36 = vpop.f32.mrb[7].mxu0  ;;  %v8885_v6 = vmul.f32 -1.442695, %v13363_v35 }
 0x346   :  { %10791 = vtanh.f32 %v13367_v36  ;;  %v8884_v9 = vmul.f32 -1.442695, %v13367_v36 }
 0x347   :  { %v10782_v43 = vpop.eup %10781 }
 0x348   :  { %v10784_v38 = vpop.eup %10783  ;;  %3457 = vrot.lane.b32.xlu1 %v10782_v43, %s11892_s0 }
 0x349   :  { %3455 = vrot.lane.b32.xlu0 %v10784_v38, %s11892_s0 }
 0x34b   :  { %v10786_v39 = vpop.eup %10785 }
 0x34c   :  { %v10788_v40 = vpop.eup %10787  ;;  %3461 = vrot.lane.b32.xlu1 %v10786_v39, %s11892_s0 }
 0x34d   :  { %3459 = vrot.lane.b32.xlu0 %v10788_v40, %s11892_s0 }
 0x34f   :  { %v10790_v41 = vpop.eup %10789 }
 0x350   :  { %v10792_v49 = vpop.eup %10791  ;;  %3465 = vrot.lane.b32.xlu1 %v10790_v41, %s11892_s0 }
 0x351   :  { %3463 = vrot.lane.b32.xlu0 %v10792_v49, %s11892_s0 }
 0x358   :  { %v10041_v42 = vpop.f32.mrb[64].mxu1 }
 0x359   :  { %v13377_v44 = vadd.f32 %v10041_v42, %v12884_v5  ;;  %v3252_v45 = vpop.f32.mrb[65].mxu1 }
 0x35a   :  { %v13380_v46 = vadd.f32 %v3252_v45, %v12890_v7 }
 0x35b   :  { %10793 = vtanh.f32 %v13377_v44  ;;  %v8887_v35 = vmul.f32 -1.442695, %v13377_v44 }
 0x35c   :  { %10795 = vtanh.f32 %v13380_v46  ;;  %v10044_v55 = vpop.f32.mrb[66].mxu1  ;;  %v8886_v43 = vmul.f32 -1.442695, %v13380_v46 }
 0x35d   :  { %v13385_v47 = vadd.f32 %v10044_v55, %v12930_v32  ;;  %v3262_v48 = vpop.f32.mrb[67].mxu1 }
 0x35e   :  { %v13388_v50 = vadd.f32 %v3262_v48, %v12935_v34 }
 0x35f   :  { %10797 = vtanh.f32 %v13385_v47  ;;  %v8889_v42 = vmul.f32 -1.442695, %v13385_v47 }
 0x360   :  { %10799 = vtanh.f32 %v13388_v50  ;;  %v10047_v5 = vpop.f32.mrb[68].mxu1  ;;  %v8888_v45 = vmul.f32 -1.442695, %v13388_v50 }
 0x361   :  { %v13393_v7 = vadd.f32 %v10047_v5, %v12970_v58  ;;  %v3272_v52 = vpop.f32.mrb[69].mxu1 }
 0x362   :  { %v13396_v61 = vadd.f32 %v3272_v52, %v12975_v60 }
 0x363   :  { %10801 = vtanh.f32 %v13393_v7  ;;  %v8891_v47 = vmul.f32 -1.442695, %v13393_v7 }
 0x364   :  { %10803 = vtanh.f32 %v13396_v61  ;;  %v10050_v32 = vpop.f32.mrb[70].mxu1  ;;  %v8890_v50 = vmul.f32 -1.442695, %v13396_v61 }
 0x365   :  { %v10794_v53 = vpop.eup %10793  ;;  %v13401_v34 = vadd.f32 %v10050_v32, %v13015_v19  ;;  %v3282_v54 = vpop.f32.mrb[71].mxu1 }
 0x366   :  { %v10796_v56 = vpop.eup %10795  ;;  %v13404_v57 = vadd.f32 %v3282_v54, %v13021_v22  ;;  %3469 = vrot.lane.b32.xlu1 %v10794_v53, %s11892_s0 }
 0x367   :  { %10805 = vtanh.f32 %v13401_v34  ;;  %3467 = vrot.lane.b32.xlu0 %v10796_v56, %s11892_s0  ;;  %v8893_v7 = vmul.f32 -1.442695, %v13401_v34 }
 0x368   :  { %10807 = vtanh.f32 %v13404_v57 }
 0x369   :  { %v10798_v58 = vpop.eup %10797  ;;  %10809 = vpow2.f32 %v8879_v63 }
 0x36a   :  { %v10800_v60 = vpop.eup %10799  ;;  %3473 = vrot.lane.b32.xlu1 %v10798_v58, %s11892_s0  ;;  %10811 = vpow2.f32 %v8878_v0 }
 0x36b   :  { %3471 = vrot.lane.b32.xlu0 %v10800_v60, %s11892_s0  ;;  %10813 = vpow2.f32 %v8881_v1 }
 0x36c   :  { %10815 = vpow2.f32 %v8880_v2 }
 0x36d   :  { %v10802_v19 = vpop.eup %10801  ;;  %10817 = vpow2.f32 %v8883_v3 }
 0x36e   :  { %v10804_v59 = vpop.eup %10803  ;;  %3477 = vrot.lane.b32.xlu1 %v10802_v19, %s11892_s0  ;;  %10819 = vpow2.f32 %v8882_v4  ;;  %v8892_v19 = vmul.f32 -1.442695, %v13404_v57 }
 0x36f   :  { %3475 = vrot.lane.b32.xlu0 %v10804_v59, %s11892_s0  ;;  %10821 = vpow2.f32 %v8885_v6 }
 0x370   :  { %10823 = vpow2.f32 %v8884_v9 }
 0x371   :  { %v10806_v22 = vpop.eup %10805 }
 0x372   :  { %v10808_v62 = vpop.eup %10807  ;;  %3481 = vrot.lane.b32.xlu1 %v10806_v22, %s11892_s0 }
 0x373   :  { %3479 = vrot.lane.b32.xlu0 %v10808_v62, %s11892_s0  ;;  %v10810_v10 = vpop.eup %10809 }
 0x374   :  { %v10812_v12 = vpop.eup %10811  ;;  %v3356_v20 = vadd.f32 1.0, %v10810_v10 }
 0x375   :  { %v10814_v13 = vpop.eup %10813  ;;  %v3355_v14 = vadd.f32 1.0, %v10812_v12 }
 0x376   :  { %v10816_v15 = vpop.eup %10815  ;;  %10825 = vrcp.f32 %v3356_v20  ;;  %v3358_v16 = vadd.f32 1.0, %v10814_v13 }
 0x377   :  { %v10818_v25 = vpop.eup %10817  ;;  %10827 = vrcp.f32 %v3355_v14  ;;  %v3357_v18 = vadd.f32 1.0, %v10816_v15 }
 0x378   :  { %v10820_v21 = vpop.eup %10819  ;;  %10829 = vrcp.f32 %v3358_v16  ;;  %v3360_v23 = vadd.f32 1.0, %v10818_v25 }
 0x379   :  { %v10822_v31 = vpop.eup %10821  ;;  %10831 = vrcp.f32 %v3357_v18  ;;  %v3359_v24 = vadd.f32 1.0, %v10820_v21 }
 0x37a   :  { %v10824_v26 = vpop.eup %10823  ;;  %10833 = vrcp.f32 %v3360_v23  ;;  %v3362_v8 = vadd.f32 1.0, %v10822_v31 }
 0x37b   :  { %10835 = vrcp.f32 %v3359_v24  ;;  %v3361_v17 = vadd.f32 1.0, %v10824_v26 }
 0x37c   :  { %10837 = vrcp.f32 %v3362_v8 }
 0x37d   :  { %10839 = vrcp.f32 %v3361_v17 }
 0x37e   :  { %10841 = vpow2.f32 %v8887_v35 }
 0x37f   :  { %10843 = vpow2.f32 %v8886_v43 }
 0x380   :  { %v13424_v27 = vpop.eup %10825  ;;  %10845 = vpow2.f32 %v8889_v42 }
 0x381   :  { %v13426_v29 = vpop.eup %10827  ;;  %10847 = vpow2.f32 %v8888_v45  ;;  %v3420_v42 = vmul.f32 0.0, %v13424_v27 }
 0x382   :  { %v13432_v36 = vpop.eup %10829  ;;  %10849 = vpow2.f32 %v8891_v47 }
 0x383   :  { %v13436_v39 = vpop.eup %10831  ;;  %10851 = vpow2.f32 %v8890_v50  ;;  %v3422_v47 = vmul.f32 0.0, %v13432_v36 }
 0x384   :  { %v13442_v44 = vpop.eup %10833  ;;  %10853 = vpow2.f32 %v8893_v7 }
 0x385   :  { %v13446_v55 = vpop.eup %10835  ;;  %10855 = vpow2.f32 %v8892_v19  ;;  %v3424_v7 = vmul.f32 0.0, %v13442_v44 }
 0x386   :  { %v13452_v32 = vpop.eup %10837 }
 0x387   :  { %v13456_v54 = vpop.eup %10839 }
 0x388   :  { %v10842_v61 = vpop.eup %10841 }
 0x389   :  { %v10844_v59 = vpop.eup %10843  ;;  %v3364_v22 = vadd.f32 1.0, %v10842_v61  ;;  %v3423_v61 = vmul.f32 0.0, %v13446_v55 }
 0x38a   :  { %v10846_v62 = vpop.eup %10845  ;;  %v3363_v63 = vadd.f32 1.0, %v10844_v59 }
 0x38b   :  { %v10848_v0 = vpop.eup %10847  ;;  %10857 = vrcp.f32 %v3364_v22  ;;  %v3366_v1 = vadd.f32 1.0, %v10846_v62 }
 0x38c   :  { %v10850_v2 = vpop.eup %10849  ;;  %10859 = vrcp.f32 %v3363_v63  ;;  %v3365_v34 = vadd.f32 1.0, %v10848_v0  ;;  %v3426_v63 = vmul.f32 0.0, %v13452_v32 }
 0x38d   :  { %v10852_v3 = vpop.eup %10851  ;;  %10861 = vrcp.f32 %v3366_v1  ;;  %v3368_v4 = vadd.f32 1.0, %v10850_v2  ;;  %v3425_v1 = vmul.f32 0.0, %v13456_v54 }
 0x38e   :  { %v10854_v6 = vpop.eup %10853  ;;  %10863 = vrcp.f32 %v3365_v34  ;;  %v3367_v57 = vadd.f32 1.0, %v10852_v3 }
 0x38f   :  { %v10856_v9 = vpop.eup %10855  ;;  %10865 = vrcp.f32 %v3368_v4  ;;  %v3370_v10 = vadd.f32 1.0, %v10854_v6 }
 0x390   :  { %10867 = vrcp.f32 %v3367_v57  ;;  %v3369_v12 = vadd.f32 1.0, %v10856_v9 }
 0x391   :  { %10869 = vrcp.f32 %v3370_v10 }
 0x392   :  { %10871 = vrcp.f32 %v3369_v12 }
 0x395   :  { %v13464_v20 = vpop.eup %10857 }
 0x396   :  { %v13466_v14 = vpop.eup %10859 }
 0x397   :  { %v13471_v18 = vpop.eup %10861 }
 0x398   :  { %v13474_v23 = vpop.eup %10863 }
 0x399   :  { %v13479_v8 = vpop.eup %10865 }
 0x3b6   :  { %v3454_v28 = vpop.permute.xlu1 %3453 }
 0x3b7   :  { %v3500_v37 = vmul.f32 %v13424_v27, %v3454_v28  ;;  %v3452_v30 = vpop.permute.xlu0 %3451  ;;  %v13482_v28 = vpop.eup %10867 }
 0x3b8   :  { %v3499_v33 = vmul.f32 %v13426_v29, %v3452_v30  ;;  %v13487_v35 = vpop.eup %10869 }
 0x3b9   :  { %3533 = vrot.lane.b32.xlu1 %v3500_v37, %s11892_s0 }
 0x3ba   :  { %v3458_v38 = vpop.permute.xlu1 %3457  ;;  %3531 = vrot.lane.b32.xlu0 %v3499_v33, %s11892_s0 }
 0x3bb   :  { %v3502_v40 = vmul.f32 %v13432_v36, %v3458_v38  ;;  %v3456_v41 = vpop.permute.xlu0 %3455  ;;  %v13490_v38 = vpop.eup %10871 }
 0x3bc   :  { %v3501_v49 = vmul.f32 %v13436_v39, %v3456_v41 }
 0x3bd   :  { %3537 = vrot.lane.b32.xlu1 %v3502_v40, %s11892_s0 }
 0x3be   :  { %v3462_v46 = vpop.permute.xlu1 %3461  ;;  %3535 = vrot.lane.b32.xlu0 %v3501_v49, %s11892_s0 }
 0x3bf   :  { %v3504_v48 = vmul.f32 %v13442_v44, %v3462_v46  ;;  %v3460_v5 = vpop.permute.xlu0 %3459  ;;  %v3419_v46 = vmul.f32 0.0, %v13426_v29 }
 0x3c0   :  { %v3503_v52 = vmul.f32 %v13446_v55, %v3460_v5 }
 0x3c1   :  { %3541 = vrot.lane.b32.xlu1 %v3504_v48, %s11892_s0 }
 0x3c2   :  { %v3466_v53 = vpop.permute.xlu1 %3465  ;;  %3539 = vrot.lane.b32.xlu0 %v3503_v52, %s11892_s0 }
 0x3c3   :  { %v3506_v56 = vmul.f32 %v13452_v32, %v3466_v53  ;;  %v3464_v58 = vpop.permute.xlu0 %3463  ;;  %v3421_v53 = vmul.f32 0.0, %v13436_v39 }
 0x3c4   :  { %v3505_v60 = vmul.f32 %v13456_v54, %v3464_v58 }
 0x3c5   :  { %3545 = vrot.lane.b32.xlu1 %v3506_v56, %s11892_s0 }
 0x3c6   :  { %3543 = vrot.lane.b32.xlu0 %v3505_v60, %s11892_s0 }
 0x3d8   :  { %v3470_v13 = vpop.permute.xlu1 %3469 }
 0x3d9   :  { %v3508_v15 = vmul.f32 %v13464_v20, %v3470_v13  ;;  %v3468_v16 = vpop.permute.xlu0 %3467 }
 0x3da   :  { %v3507_v25 = vmul.f32 %v13466_v14, %v3468_v16  ;;  %v3428_v16 = vmul.f32 0.0, %v13464_v20 }
 0x3db   :  { %3549 = vrot.lane.b32.xlu1 %v3508_v15, %s11892_s0 }
 0x3dc   :  { %v3474_v21 = vpop.permute.xlu1 %3473  ;;  %3547 = vrot.lane.b32.xlu0 %v3507_v25, %s11892_s0 }
 0x3dd   :  { %v3510_v31 = vmul.f32 %v13471_v18, %v3474_v21  ;;  %v3472_v24 = vpop.permute.xlu0 %3471  ;;  %v3427_v21 = vmul.f32 0.0, %v13466_v14 }
 0x3de   :  { %v3509_v26 = vmul.f32 %v13474_v23, %v3472_v24 }
 0x3df   :  { %3553 = vrot.lane.b32.xlu1 %v3510_v31, %s11892_s0 }
 0x3e0   :  { %v3478_v17 = vpop.permute.xlu1 %3477  ;;  %3551 = vrot.lane.b32.xlu0 %v3509_v26, %s11892_s0 }
 0x3e1   :  { %v3512_v37 = vmul.f32 %v13479_v8, %v3478_v17  ;;  %v3476_v30 = vpop.permute.xlu0 %3475  ;;  %v3430_v17 = vmul.f32 0.0, %v13471_v18 }
 0x3e2   :  { %v3511_v33 = vmul.f32 %v13482_v28, %v3476_v30  ;;  %v3429_v30 = vmul.f32 0.0, %v13474_v23 }
 0x3e3   :  { %3557 = vrot.lane.b32.xlu1 %v3512_v37, %s11892_s0 }
 0x3e4   :  { %v3482_v43 = vpop.permute.xlu1 %3481  ;;  %3555 = vrot.lane.b32.xlu0 %v3511_v33, %s11892_s0 }
 0x3e5   :  { %v3514_v40 = vmul.f32 %v13487_v35, %v3482_v43  ;;  %v3480_v41 = vpop.permute.xlu0 %3479 }
 0x3e6   :  { %v3513_v49 = vmul.f32 %v13490_v38, %v3480_v41  ;;  %v3432_v41 = vmul.f32 0.0, %v13479_v8 }
 0x3e7   :  { %3561 = vrot.lane.b32.xlu1 %v3514_v40, %s11892_s0 }
 0x3e8   :  { %3559 = vrot.lane.b32.xlu0 %v3513_v49, %s11892_s0 }
 0x42b   :  { %v3534_v45 = vpop.permute.xlu1 %3533 }
 0x42c   :  { %v13498_v48 = vadd.f32 %v3534_v45, %v3420_v42  ;;  %v3532_v5 = vpop.permute.xlu0 %3531  ;;  %v3431_v42 = vmul.f32 0.0, %v13482_v28 }
 0x42d   :  { %v13500_v52 = vadd.f32 %v3532_v5, %v3419_v46 }
 0x42e   :  { %10873 = vtanh.f32 %v13498_v48 }
 0x42f   :  { %10875 = vtanh.f32 %v13500_v52  ;;  %v3538_v50 = vpop.permute.xlu1 %3537 }
 0x430   :  { %v13506_v56 = vadd.f32 %v3538_v50, %v3422_v47  ;;  %v3536_v58 = vpop.permute.xlu0 %3535  ;;  %v3434_v47 = vmul.f32 0.0, %v13487_v35 }
 0x431   :  { %v13508_v60 = vadd.f32 %v3536_v58, %v3421_v53  ;;  %v3433_v53 = vmul.f32 0.0, %v13490_v38 }
 0x432   :  { %10877 = vtanh.f32 %v13506_v56 }
 0x433   :  { %10879 = vtanh.f32 %v13508_v60  ;;  %v3542_v19 = vpop.permute.xlu1 %3541 }
 0x434   :  { %v13514_v59 = vadd.f32 %v3542_v19, %v3424_v7  ;;  %v3540_v22 = vpop.permute.xlu0 %3539 }
 0x435   :  { %v13516_v62 = vadd.f32 %v3540_v22, %v3423_v61 }
 0x436   :  { %10881 = vtanh.f32 %v13514_v59 }
 0x437   :  { %10883 = vtanh.f32 %v13516_v62  ;;  %v3546_v0 = vpop.permute.xlu1 %3545 }
 0x438   :  { %v10874_v2 = vpop.eup %10873  ;;  %v13522_v34 = vadd.f32 %v3546_v0, %v3426_v63  ;;  %v3544_v3 = vpop.permute.xlu0 %3543 }
 0x439   :  { %v10876_v4 = vpop.eup %10875  ;;  %v13524_v6 = vadd.f32 %v3544_v3, %v3425_v1  ;;  %3629 = vrot.lane.b32.xlu1 %v10874_v2, %s11892_s0 }
 0x43a   :  { %10885 = vtanh.f32 %v13522_v34  ;;  %3627 = vrot.lane.b32.xlu0 %v10876_v4, %s11892_s0 }
 0x43b   :  { %10887 = vtanh.f32 %v13524_v6 }
 0x43c   :  { %v10878_v57 = vpop.eup %10877 }
 0x43d   :  { %v10880_v9 = vpop.eup %10879  ;;  %3633 = vrot.lane.b32.xlu1 %v10878_v57, %s11892_s0 }
 0x43e   :  { %3631 = vrot.lane.b32.xlu0 %v10880_v9, %s11892_s0 }
 0x440   :  { %v10882_v10 = vpop.eup %10881 }
 0x441   :  { %v10884_v12 = vpop.eup %10883  ;;  %3637 = vrot.lane.b32.xlu1 %v10882_v10, %s11892_s0 }
 0x442   :  { %3635 = vrot.lane.b32.xlu0 %v10884_v12, %s11892_s0 }
 0x444   :  { %v10886_v13 = vpop.eup %10885 }
 0x445   :  { %v10888_v15 = vpop.eup %10887  ;;  %3641 = vrot.lane.b32.xlu1 %v10886_v13, %s11892_s0 }
 0x446   :  { %3639 = vrot.lane.b32.xlu0 %v10888_v15, %s11892_s0 }
 0x44d   :  { %v3550_v25 = vpop.permute.xlu1 %3549 }
 0x44e   :  { %v13538_v31 = vadd.f32 %v3550_v25, %v3428_v16  ;;  %v3548_v24 = vpop.permute.xlu0 %3547 }
 0x44f   :  { %v13540_v26 = vadd.f32 %v3548_v24, %v3427_v21 }
 0x450   :  { %10889 = vtanh.f32 %v13538_v31 }
 0x451   :  { %10891 = vtanh.f32 %v13540_v26  ;;  %v3554_v37 = vpop.permute.xlu1 %3553 }
 0x452   :  { %v13546_v33 = vadd.f32 %v3554_v37, %v3430_v17  ;;  %v3552_v43 = vpop.permute.xlu0 %3551 }
 0x453   :  { %v13548_v40 = vadd.f32 %v3552_v43, %v3429_v30 }
 0x454   :  { %10893 = vtanh.f32 %v13546_v33 }
 0x455   :  { %10895 = vtanh.f32 %v13548_v40  ;;  %v3558_v49 = vpop.permute.xlu1 %3557 }
 0x456   :  { %v13554_v45 = vadd.f32 %v3558_v49, %v3432_v41  ;;  %v3556_v46 = vpop.permute.xlu0 %3555 }
 0x457   :  { %v13556_v5 = vadd.f32 %v3556_v46, %v3431_v42 }
 0x458   :  { %10897 = vtanh.f32 %v13554_v45 }
 0x459   :  { %10899 = vtanh.f32 %v13556_v5  ;;  %v3562_v50 = vpop.permute.xlu1 %3561 }
 0x45a   :  { %v10890_v58 = vpop.eup %10889  ;;  %v13562_v7 = vadd.f32 %v3562_v50, %v3434_v47  ;;  %v3560_v19 = vpop.permute.xlu0 %3559 }
 0x45b   :  { %v10892_v61 = vpop.eup %10891  ;;  %v13564_v22 = vadd.f32 %v3560_v19, %v3433_v53  ;;  %3645 = vrot.lane.b32.xlu1 %v10890_v58, %s11892_s0 }
 0x45c   :  { %10901 = vtanh.f32 %v13562_v7  ;;  %3643 = vrot.lane.b32.xlu0 %v10892_v61, %s11892_s0 }
 0x45d   :  { %10903 = vtanh.f32 %v13564_v22 }
 0x45e   :  { %v10894_v63 = vpop.eup %10893 }
 0x45f   :  { %v10896_v0 = vpop.eup %10895  ;;  %3649 = vrot.lane.b32.xlu1 %v10894_v63, %s11892_s0 }
 0x460   :  { %3647 = vrot.lane.b32.xlu0 %v10896_v0, %s11892_s0 }
 0x462   :  { %v10898_v1 = vpop.eup %10897 }
 0x463   :  { %v10900_v2 = vpop.eup %10899  ;;  %3653 = vrot.lane.b32.xlu1 %v10898_v1, %s11892_s0 }
 0x464   :  { %3651 = vrot.lane.b32.xlu0 %v10900_v2, %s11892_s0 }
 0x466   :  { %v10902_v3 = vpop.eup %10901 }
 0x467   :  { %v10904_v4 = vpop.eup %10903  ;;  %3657 = vrot.lane.b32.xlu1 %v10902_v3, %s11892_s0 }
 0x468   :  { %3655 = vrot.lane.b32.xlu0 %v10904_v4, %s11892_s0 }
 0x4ab   :  { %v3630_v57 = vpop.permute.xlu1 %3629 }
 0x4ac   :  { %v3676_v9 = vmul.f32 %v13424_v27, %v3630_v57  ;;  %v3628_v10 = vpop.permute.xlu0 %3627 }
 0x4ad   :  { %v3675_v12 = vmul.f32 %v13426_v29, %v3628_v10 }
 0x4ae   :  { %3725 = vrot.lane.b32.xlu1 %v3676_v9, %s11893_s24 }
 0x4af   :  { %v3634_v13 = vpop.permute.xlu1 %3633  ;;  %3723 = vrot.lane.b32.xlu0 %v3675_v12, %s11893_s24 }
 0x4b0   :  { %v3678_v15 = vmul.f32 %v13432_v36, %v3634_v13  ;;  %v3632_v16 = vpop.permute.xlu0 %3631 }
 0x4b1   :  { %v3677_v25 = vmul.f32 %v13436_v39, %v3632_v16 }
 0x4b2   :  { %3729 = vrot.lane.b32.xlu1 %v3678_v15, %s11893_s24 }
 0x4b3   :  { %v3638_v21 = vpop.permute.xlu1 %3637  ;;  %3727 = vrot.lane.b32.xlu0 %v3677_v25, %s11893_s24 }
 0x4b4   :  { %v3680_v27 = vmul.f32 %v13442_v44, %v3638_v21  ;;  %v3636_v24 = vpop.permute.xlu0 %3635 }
 0x4b5   :  { %v3679_v29 = vmul.f32 %v13446_v55, %v3636_v24 }
 0x4b6   :  { %3733 = vrot.lane.b32.xlu1 %v3680_v27, %s11893_s24 }
 0x4b7   :  { %v3642_v17 = vpop.permute.xlu1 %3641  ;;  %3731 = vrot.lane.b32.xlu0 %v3679_v29, %s11893_s24 }
 0x4b8   :  { %v3682_v36 = vmul.f32 %v13452_v32, %v3642_v17  ;;  %v3640_v37 = vpop.permute.xlu0 %3639 }
 0x4b9   :  { %v3681_v39 = vmul.f32 %v13456_v54, %v3640_v37 }
 0x4ba   :  { %3737 = vrot.lane.b32.xlu1 %v3682_v36, %s11893_s24 }
 0x4bb   :  { %3735 = vrot.lane.b32.xlu0 %v3681_v39, %s11893_s24 }
 0x4cd   :  { %v3646_v30 = vpop.permute.xlu1 %3645 }
 0x4ce   :  { %v3684_v44 = vmul.f32 %v13464_v20, %v3646_v30  ;;  %v3644_v43 = vpop.permute.xlu0 %3643 }
 0x4cf   :  { %v3683_v55 = vmul.f32 %v13466_v14, %v3644_v43 }
 0x4d0   :  { %3741 = vrot.lane.b32.xlu1 %v3684_v44, %s11893_s24 }
 0x4d1   :  { %v3650_v41 = vpop.permute.xlu1 %3649  ;;  %3739 = vrot.lane.b32.xlu0 %v3683_v55, %s11893_s24 }
 0x4d2   :  { %v3686_v32 = vmul.f32 %v13471_v18, %v3650_v41  ;;  %v3648_v49 = vpop.permute.xlu0 %3647 }
 0x4d3   :  { %v3685_v54 = vmul.f32 %v13474_v23, %v3648_v49 }
 0x4d4   :  { %3745 = vrot.lane.b32.xlu1 %v3686_v32, %s11893_s24 }
 0x4d5   :  { %v3654_v42 = vpop.permute.xlu1 %3653  ;;  %3743 = vrot.lane.b32.xlu0 %v3685_v54, %s11893_s24 }
 0x4d6   :  { %v3688_v20 = vmul.f32 %v13479_v8, %v3654_v42  ;;  %v3652_v46 = vpop.permute.xlu0 %3651 }
 0x4d7   :  { %v3687_v14 = vmul.f32 %v13482_v28, %v3652_v46 }
 0x4d8   :  { %3749 = vrot.lane.b32.xlu1 %v3688_v20, %s11893_s24 }
 0x4d9   :  { %v3658_v47 = vpop.permute.xlu1 %3657  ;;  %3747 = vrot.lane.b32.xlu0 %v3687_v14, %s11893_s24 }
 0x4da   :  { %v3690_v18 = vmul.f32 %v13487_v35, %v3658_v47  ;;  %v3656_v50 = vpop.permute.xlu0 %3655 }
 0x4db   :  { %v3689_v23 = vmul.f32 %v13490_v38, %v3656_v50 }
 0x4dc   :  { %3753 = vrot.lane.b32.xlu1 %v3690_v18, %s11893_s24 }
 0x4dd   :  { %3751 = vrot.lane.b32.xlu0 %v3689_v23, %s11893_s24 }
 0x520   :  { %v3726_v53 = vpop.permute.xlu1 %3725 }
 0x521   :  { %v3724_v8 = vpop.permute.xlu0 %3723 }
 0x522   :  { %10059 = vmatprep.mubr.msk.f32.mxu1 %vm3142_vm0, %v3724_v8 }
 0x523   :  { %10060 = vmatmul.mubr.msk.f32.vlgmr.msra.gmra.mrb[0].mxu1 %vm3142_vm0, %v3726_v53 }
 0x524   :  { %v3730_v28 = vpop.permute.xlu1 %3729  ;;  %10590 = vmatpush3.bf16.msra.mxu1 %v13114_v11 }
 0x525   :  { %v3728_v58 = vpop.permute.xlu0 %3727  ;;  %10592 = vmatprep.subr.bf16.mxu1 %v13183_v51 }
 0x526   :  { %10062 = vmatprep.mubr.msk.f32.mxu1 %vm3142_vm0, %v3728_v58 }
 0x527   :  { %10063 = vmatmul.mubr.msk.f32.gmra.mrb[2].mxu1 %vm3142_vm0, %v3730_v28 }
 0x528   :  { %v3734_v35 = vpop.permute.xlu1 %3733  ;;  %10594 = vmatpush3.bf16.msra.mxu1 %v13183_v51 }
 0x529   :  { %v3732_v38 = vpop.permute.xlu0 %3731  ;;  %10604 = vmatprep.subr.bf16.mxu1 %v13114_v11 }
 0x52a   :  { %10065 = vmatprep.mubr.msk.f32.mxu1 %vm3142_vm0, %v3732_v38 }
 0x52b   :  { %10066 = vmatmul.mubr.msk.f32.gmra.mrb[4].mxu1 %vm3142_vm0, %v3734_v35 }
 0x52c   :  { %v3738_v61 = vpop.permute.xlu1 %3737 }
 0x52d   :  { %v3736_v19 = vpop.permute.xlu0 %3735 }
 0x52e   :  { %10068 = vmatprep.mubr.msk.f32.mxu1 %vm3142_vm0, %v3736_v19 }
 0x52f   :  { %10069 = vmatmul.mubr.msk.f32.gmra.mrb[6].mxu1 %vm3142_vm0, %v3738_v61 }
 0x542   :  { %v3742_v63 = vpop.permute.xlu1 %3741 }
 0x543   :  { %v3740_v0 = vpop.permute.xlu0 %3739 }
 0x544   :  { %10071 = vmatprep.mubr.msk.f32.mxu1 %vm3142_vm0, %v3740_v0 }
 0x545   :  { %10072 = vmatmul.mubr.msk.f32.gmra.mrb[8].mxu1 %vm3142_vm0, %v3742_v63 }
 0x546   :  { %v3746_v1 = vpop.permute.xlu1 %3745 }
 0x547   :  { %v3744_v2 = vpop.permute.xlu0 %3743 }
 0x548   :  { %10074 = vmatprep.mubr.msk.f32.mxu1 %vm3142_vm0, %v3744_v2 }
 0x549   :  { %10075 = vmatmul.mubr.msk.f32.gmra.mrb[10].mxu1 %vm3142_vm0, %v3746_v1 }
 0x54a   :  { %v3750_v3 = vpop.permute.xlu1 %3749 }
 0x54b   :  { %v3748_v4 = vpop.permute.xlu0 %3747 }
 0x54c   :  { %10077 = vmatprep.mubr.msk.f32.mxu1 %vm3142_vm0, %v3748_v4 }
 0x54d   :  { %10078 = vmatmul.mubr.msk.f32.gmra.mrb[12].mxu1 %vm3142_vm0, %v3750_v3 }
 0x54e   :  { %v3754_v9 = vpop.permute.xlu1 %3753 }
 0x54f   :  { %v3752_v57 = vpop.permute.xlu0 %3751 }
 0x550   :  { %10080 = vmatprep.mubr.msk.f32.mxu1 %vm3142_vm0, %v3752_v57 }
 0x551   :  { %10081 = vmatmul.mubr.msk.f32.gmra.mrb[14].mxu1 %vm3142_vm0, %v3754_v9 }
 0x5f6   :  { %v13628_v10 = vpop.f32.mrb[0].mxu1 }
 0x5f7   :  { %10905 = vtanh.f32 %v13628_v10  ;;  %v3853_v12 = vpop.f32.mrb[1].mxu1  ;;  %v8911_v28 = vmul.f32 -1.442695, %v13628_v10 }
 0x5f8   :  { %10907 = vtanh.f32 %v3853_v12  ;;  %v8910_v58 = vmul.f32 -1.442695, %v3853_v12 }
 0x5fa   :  { %v10064_v13 = vpop.f32.mrb[2].mxu1 }
 0x5fb   :  { %10909 = vtanh.f32 %v10064_v13  ;;  %v3863_v15 = vpop.f32.mrb[3].mxu1  ;;  %v8913_v35 = vmul.f32 -1.442695, %v10064_v13 }
 0x5fc   :  { %10911 = vtanh.f32 %v3863_v15  ;;  %v8912_v38 = vmul.f32 -1.442695, %v3863_v15 }
 0x5fe   :  { %v10067_v16 = vpop.f32.mrb[4].mxu1 }
 0x5ff   :  { %10913 = vtanh.f32 %v10067_v16  ;;  %v3873_v25 = vpop.f32.mrb[5].mxu1  ;;  %v8915_v19 = vmul.f32 -1.442695, %v10067_v16 }
 0x600   :  { %10915 = vtanh.f32 %v3873_v25  ;;  %v8914_v61 = vmul.f32 -1.442695, %v3873_v25 }
 0x601   :  { %v10906_v21 = vpop.eup %10905 }
 0x602   :  { %v10908_v27 = vpop.eup %10907  ;;  %4094 = vrot.lane.b32.xlu1 %v10906_v21, %s11892_s0  ;;  %v10070_v24 = vpop.f32.mrb[6].mxu1 }
 0x603   :  { %10917 = vtanh.f32 %v10070_v24  ;;  %4092 = vrot.lane.b32.xlu0 %v10908_v27, %s11892_s0  ;;  %v3883_v29 = vpop.f32.mrb[7].mxu1  ;;  %v8917_v63 = vmul.f32 -1.442695, %v10070_v24 }
 0x604   :  { %10919 = vtanh.f32 %v3883_v29  ;;  %v8916_v0 = vmul.f32 -1.442695, %v3883_v29 }
 0x605   :  { %v10910_v17 = vpop.eup %10909 }
 0x606   :  { %v10912_v36 = vpop.eup %10911  ;;  %4098 = vrot.lane.b32.xlu1 %v10910_v17, %s11892_s0 }
 0x607   :  { %4096 = vrot.lane.b32.xlu0 %v10912_v36, %s11892_s0 }
 0x609   :  { %v10914_v37 = vpop.eup %10913 }
 0x60a   :  { %v10916_v39 = vpop.eup %10915  ;;  %4102 = vrot.lane.b32.xlu1 %v10914_v37, %s11892_s0 }
 0x60b   :  { %4100 = vrot.lane.b32.xlu0 %v10916_v39, %s11892_s0 }
 0x60d   :  { %v10918_v30 = vpop.eup %10917 }
 0x60e   :  { %v10920_v44 = vpop.eup %10919  ;;  %4106 = vrot.lane.b32.xlu1 %v10918_v30, %s11892_s0 }
 0x60f   :  { %4104 = vrot.lane.b32.xlu0 %v10920_v44, %s11892_s0 }
 0x618   :  { %v13639_v43 = vpop.f32.mrb[8].mxu1 }
 0x619   :  { %10921 = vtanh.f32 %v13639_v43  ;;  %v13642_v55 = vpop.f32.mrb[9].mxu1 }
 0x61a   :  { %10923 = vtanh.f32 %v13642_v55 }
 0x61c   :  { %v13645_v41 = vpop.f32.mrb[10].mxu1 }
 0x61d   :  { %10925 = vtanh.f32 %v13645_v41  ;;  %v13648_v32 = vpop.f32.mrb[11].mxu1 }
 0x61e   :  { %10927 = vtanh.f32 %v13648_v32 }
 0x620   :  { %v13651_v49 = vpop.f32.mrb[12].mxu1 }
 0x621   :  { %10929 = vtanh.f32 %v13651_v49  ;;  %v13654_v54 = vpop.f32.mrb[13].mxu1 }
 0x622   :  { %10931 = vtanh.f32 %v13654_v54 }
 0x623   :  { %v10922_v42 = vpop.eup %10921 }
 0x624   :  { %v10924_v20 = vpop.eup %10923  ;;  %4110 = vrot.lane.b32.xlu1 %v10922_v42, %s11892_s0  ;;  %v13658_v46 = vpop.f32.mrb[14].mxu1  ;;  %v8919_v42 = vmul.f32 -1.442695, %v13639_v43 }
 0x625   :  { %10933 = vtanh.f32 %v13658_v46  ;;  %4108 = vrot.lane.b32.xlu0 %v10924_v20, %s11892_s0  ;;  %v13662_v14 = vpop.f32.mrb[15].mxu1 }
 0x626   :  { %10935 = vtanh.f32 %v13662_v14 }
 0x627   :  { %v10926_v47 = vpop.eup %10925  ;;  %10937 = vpow2.f32 %v8911_v28  ;;  %v8921_v28 = vmul.f32 -1.442695, %v13645_v41  ;;  %v8923_v41 = vmul.f32 -1.442695, %v13651_v49  ;;  %v8925_v49 = vmul.f32 -1.442695, %v13658_v46 }
 0x628   :  { %v10928_v18 = vpop.eup %10927  ;;  %4114 = vrot.lane.b32.xlu1 %v10926_v47, %s11892_s0  ;;  %10939 = vpow2.f32 %v8910_v58  ;;  %v8918_v47 = vmul.f32 -1.442695, %v13642_v55  ;;  %v8920_v55 = vmul.f32 -1.442695, %v13648_v32  ;;  %v8922_v32 = vmul.f32 -1.442695, %v13654_v54 }
 0x629   :  { %4112 = vrot.lane.b32.xlu0 %v10928_v18, %s11892_s0  ;;  %10941 = vpow2.f32 %v8913_v35 }
 0x62a   :  { %10943 = vpow2.f32 %v8912_v38 }
 0x62b   :  { %v10930_v50 = vpop.eup %10929  ;;  %10945 = vpow2.f32 %v8915_v19 }
 0x62c   :  { %v10932_v23 = vpop.eup %10931  ;;  %4118 = vrot.lane.b32.xlu1 %v10930_v50, %s11892_s0  ;;  %10947 = vpow2.f32 %v8914_v61 }
 0x62d   :  { %4116 = vrot.lane.b32.xlu0 %v10932_v23, %s11892_s0  ;;  %10949 = vpow2.f32 %v8917_v63 }
 0x62e   :  { %10951 = vpow2.f32 %v8916_v0 }
 0x62f   :  { %v10934_v53 = vpop.eup %10933 }
 0x630   :  { %v10936_v8 = vpop.eup %10935  ;;  %4122 = vrot.lane.b32.xlu1 %v10934_v53, %s11892_s0 }
 0x631   :  { %4120 = vrot.lane.b32.xlu0 %v10936_v8, %s11892_s0  ;;  %v10938_v1 = vpop.eup %10937 }
 0x632   :  { %v10940_v2 = vpop.eup %10939  ;;  %v3997_v3 = vadd.f32 1.0, %v10938_v1 }
 0x633   :  { %v10942_v4 = vpop.eup %10941  ;;  %v3996_v57 = vadd.f32 1.0, %v10940_v2 }
 0x634   :  { %v10944_v9 = vpop.eup %10943  ;;  %10953 = vrcp.f32 %v3997_v3  ;;  %v3999_v10 = vadd.f32 1.0, %v10942_v4 }
 0x635   :  { %v10946_v12 = vpop.eup %10945  ;;  %10955 = vrcp.f32 %v3996_v57  ;;  %v3998_v13 = vadd.f32 1.0, %v10944_v9  ;;  %v8924_v57 = vmul.f32 -1.442695, %v13662_v14 }
 0x636   :  { %v10948_v15 = vpop.eup %10947  ;;  %10957 = vrcp.f32 %v3999_v10  ;;  %v4001_v16 = vadd.f32 1.0, %v10946_v12 }
 0x637   :  { %v10950_v25 = vpop.eup %10949  ;;  %10959 = vrcp.f32 %v3998_v13  ;;  %v4000_v21 = vadd.f32 1.0, %v10948_v15 }
 0x638   :  { %v10952_v27 = vpop.eup %10951  ;;  %10961 = vrcp.f32 %v4001_v16  ;;  %v4003_v24 = vadd.f32 1.0, %v10950_v25 }
 0x639   :  { %10963 = vrcp.f32 %v4000_v21  ;;  %v4002_v29 = vadd.f32 1.0, %v10952_v27 }
 0x63a   :  { %10965 = vrcp.f32 %v4003_v24 }
 0x63b   :  { %10967 = vrcp.f32 %v4002_v29 }
 0x63c   :  { %10969 = vpow2.f32 %v8919_v42 }
 0x63d   :  { %10971 = vpow2.f32 %v8918_v47 }
 0x63e   :  { %v13672_v17 = vpop.eup %10953  ;;  %10973 = vpow2.f32 %v8921_v28 }
 0x63f   :  { %v13674_v37 = vpop.eup %10955  ;;  %10975 = vpow2.f32 %v8920_v55 }
 0x640   :  { %v13680_v20 = vpop.eup %10957  ;;  %10977 = vpow2.f32 %v8923_v41 }
 0x641   :  { %v13684_v50 = vpop.eup %10959  ;;  %10979 = vpow2.f32 %v8922_v32 }
 0x642   :  { %v13690_v43 = vpop.eup %10961  ;;  %10981 = vpow2.f32 %v8925_v49 }
 0x643   :  { %v13694_v35 = vpop.eup %10963  ;;  %10983 = vpow2.f32 %v8924_v57 }
 0x644   :  { %v13700_v63 = vpop.eup %10965 }
 0x645   :  { %v13704_v1 = vpop.eup %10967 }
 0x646   :  { %v10970_v54 = vpop.eup %10969 }
 0x647   :  { %v10972_v9 = vpop.eup %10971  ;;  %v4005_v10 = vadd.f32 1.0, %v10970_v54 }
 0x648   :  { %v10974_v12 = vpop.eup %10973  ;;  %v4004_v13 = vadd.f32 1.0, %v10972_v9 }
 0x649   :  { %v10976_v15 = vpop.eup %10975  ;;  %10985 = vrcp.f32 %v4005_v10  ;;  %v4007_v16 = vadd.f32 1.0, %v10974_v12  ;;  %v4061_v10 = vmul.f32 %v13672_v17, %v13498_v48  ;;  %v4062_v48 = vmul.f32 %v13684_v50, %v13508_v60 }
 0x64a   :  { %v10978_v25 = vpop.eup %10977  ;;  %10987 = vrcp.f32 %v4004_v13  ;;  %v4006_v46 = vadd.f32 1.0, %v10976_v15  ;;  %v4060_v13 = vmul.f32 %v13674_v37, %v13500_v52 }
 0x64b   :  { %v10980_v21 = vpop.eup %10979  ;;  %10989 = vrcp.f32 %v4007_v16  ;;  %v4009_v27 = vadd.f32 1.0, %v10978_v25 }
 0x64c   :  { %v10982_v24 = vpop.eup %10981  ;;  %10991 = vrcp.f32 %v4006_v46  ;;  %v4008_v14 = vadd.f32 1.0, %v10980_v21  ;;  %v4063_v46 = vmul.f32 %v13680_v20, %v13506_v56  ;;  %v4064_v56 = vmul.f32 %v13694_v35, %v13516_v62 }
 0x64d   :  { %v10984_v29 = vpop.eup %10983  ;;  %10993 = vrcp.f32 %v4009_v27 }
 0x64e   :  { %10995 = vrcp.f32 %v4008_v14  ;;  %v4065_v14 = vmul.f32 %v13690_v43, %v13514_v59  ;;  %v4066_v59 = vmul.f32 %v13704_v1, %v13524_v6 }
 0x674   :  { %v4095_v36 = vpop.permute.xlu1 %4094 }
 0x675   :  { %v4141_v39 = vmul.f32 %v13672_v17, %v4095_v36  ;;  %v4093_v30 = vpop.permute.xlu0 %4092  ;;  %v4011_v36 = vadd.f32 1.0, %v10982_v24 }
 0x676   :  { %v4140_v44 = vmul.f32 %v13674_v37, %v4093_v30  ;;  %v13712_v30 = vpop.eup %10985 }
 0x677   :  { %4174 = vrot.lane.b32.xlu1 %v4141_v39, %s11892_s0  ;;  %v4010_v39 = vadd.f32 1.0, %v10984_v29  ;;  %v13714_v42 = vpop.eup %10987  ;;  %10997 = vrcp.f32 %v4011_v36 }
 0x678   :  { %v4099_v18 = vpop.permute.xlu1 %4098  ;;  %4172 = vrot.lane.b32.xlu0 %v4140_v44, %s11892_s0 }
 0x679   :  { %v4143_v23 = vmul.f32 %v13680_v20, %v4099_v18  ;;  %v4097_v53 = vpop.permute.xlu0 %4096  ;;  %10999 = vrcp.f32 %v4010_v39 }
 0x67a   :  { %v4142_v8 = vmul.f32 %v13684_v50, %v4097_v53  ;;  %v13719_v53 = vpop.eup %10989 }
 0x67b   :  { %4178 = vrot.lane.b32.xlu1 %v4143_v23, %s11892_s0  ;;  %v13722_v28 = vpop.eup %10991 }
 0x67c   :  { %v4103_v58 = vpop.permute.xlu1 %4102  ;;  %4176 = vrot.lane.b32.xlu0 %v4142_v8, %s11892_s0 }
 0x67d   :  { %v4145_v38 = vmul.f32 %v13690_v43, %v4103_v58  ;;  %v4101_v19 = vpop.permute.xlu0 %4100 }
 0x67e   :  { %v4144_v61 = vmul.f32 %v13694_v35, %v4101_v19  ;;  %v13727_v19 = vpop.eup %10993 }
 0x67f   :  { %4182 = vrot.lane.b32.xlu1 %v4145_v38, %s11892_s0  ;;  %v13730_v41 = vpop.eup %10995 }
 0x680   :  { %v4107_v0 = vpop.permute.xlu1 %4106  ;;  %4180 = vrot.lane.b32.xlu0 %v4144_v61, %s11892_s0 }
 0x681   :  { %v4147_v2 = vmul.f32 %v13700_v63, %v4107_v0  ;;  %v4105_v3 = vpop.permute.xlu0 %4104 }
 0x682   :  { %v4146_v4 = vmul.f32 %v13704_v1, %v4105_v3  ;;  %v13735_v3 = vpop.eup %10997 }
 0x683   :  { %4186 = vrot.lane.b32.xlu1 %v4147_v2, %s11892_s0  ;;  %v13738_v49 = vpop.eup %10999 }
 0x684   :  { %4184 = vrot.lane.b32.xlu0 %v4146_v4, %s11892_s0 }
 0x696   :  { %v4111_v44 = vpop.permute.xlu1 %4110 }
 0x697   :  { %v4149_v47 = vmul.f32 %v13712_v30, %v4111_v44  ;;  %v4109_v18 = vpop.permute.xlu0 %4108  ;;  %v4067_v44 = vmul.f32 %v13700_v63, %v13522_v34 }
 0x698   :  { %v4148_v23 = vmul.f32 %v13714_v42, %v4109_v18 }
 0x699   :  { %4190 = vrot.lane.b32.xlu1 %v4149_v47, %s11892_s0 }
 0x69a   :  { %v4115_v8 = vpop.permute.xlu1 %4114  ;;  %4188 = vrot.lane.b32.xlu0 %v4148_v23, %s11892_s0 }
 0x69b   :  { %v4151_v55 = vmul.f32 %v13719_v53, %v4115_v8  ;;  %v4113_v58 = vpop.permute.xlu0 %4112 }
 0x69c   :  { %v4150_v38 = vmul.f32 %v13722_v28, %v4113_v58 }
 0x69d   :  { %4194 = vrot.lane.b32.xlu1 %v4151_v55, %s11892_s0 }
 0x69e   :  { %v4119_v61 = vpop.permute.xlu1 %4118  ;;  %4192 = vrot.lane.b32.xlu0 %v4150_v38, %s11892_s0 }
 0x69f   :  { %v4153_v32 = vmul.f32 %v13727_v19, %v4119_v61  ;;  %v4117_v0 = vpop.permute.xlu0 %4116 }
 0x6a0   :  { %v4152_v2 = vmul.f32 %v13730_v41, %v4117_v0  ;;  %v4069_v0 = vmul.f32 %v13712_v30, %v13538_v31  ;;  %v4070_v31 = vmul.f32 %v13722_v28, %v13548_v40 }
 0x6a1   :  { %4198 = vrot.lane.b32.xlu1 %v4153_v32, %s11892_s0 }
 0x6a2   :  { %v4123_v4 = vpop.permute.xlu1 %4122  ;;  %4196 = vrot.lane.b32.xlu0 %v4152_v2, %s11892_s0 }
 0x6a3   :  { %v4155_v57 = vmul.f32 %v13735_v3, %v4123_v4  ;;  %v4121_v54 = vpop.permute.xlu0 %4120  ;;  %v4068_v4 = vmul.f32 %v13714_v42, %v13540_v26 }
 0x6a4   :  { %v4154_v9 = vmul.f32 %v13738_v49, %v4121_v54 }
 0x6a5   :  { %4202 = vrot.lane.b32.xlu1 %v4155_v57, %s11892_s0 }
 0x6a6   :  { %4200 = vrot.lane.b32.xlu0 %v4154_v9, %s11892_s0 }
 0x6e9   :  { %v4175_v12 = vpop.permute.xlu1 %4174 }
 0x6ea   :  { %v13748_v15 = vadd.f32 %v4175_v12, %v4061_v10  ;;  %v4173_v16 = vpop.permute.xlu0 %4172  ;;  %v4071_v10 = vmul.f32 %v13719_v53, %v13546_v33  ;;  %v4072_v33 = vmul.f32 %v13730_v41, %v13556_v5 }
 0x6eb   :  { %v13750_v25 = vadd.f32 %v4173_v16, %v4060_v13 }
 0x6ec   :  { %11001 = vtanh.f32 %v13748_v15 }
 0x6ed   :  { %11003 = vtanh.f32 %v13750_v25  ;;  %v4179_v21 = vpop.permute.xlu1 %4178 }
 0x6ee   :  { %v13758_v27 = vadd.f32 %v4179_v21, %v4063_v46  ;;  %v4177_v24 = vpop.permute.xlu0 %4176  ;;  %v4073_v46 = vmul.f32 %v13727_v19, %v13554_v45  ;;  %v4074_v45 = vmul.f32 %v13738_v49, %v13564_v22 }
 0x6ef   :  { %v13760_v52 = vadd.f32 %v4177_v24, %v4062_v48 }
 0x6f0   :  { %11005 = vtanh.f32 %v13758_v27 }
 0x6f1   :  { %11007 = vtanh.f32 %v13760_v52  ;;  %v4183_v29 = vpop.permute.xlu1 %4182 }
 0x6f2   :  { %v13768_v36 = vadd.f32 %v4183_v29, %v4065_v14  ;;  %v4181_v39 = vpop.permute.xlu0 %4180  ;;  %v4075_v14 = vmul.f32 %v13735_v3, %v13562_v7 }
 0x6f3   :  { %v13770_v60 = vadd.f32 %v4181_v39, %v4064_v56 }
 0x6f4   :  { %11009 = vtanh.f32 %v13768_v36 }
 0x6f5   :  { %11011 = vtanh.f32 %v13770_v60  ;;  %v4187_v47 = vpop.permute.xlu1 %4186 }
 0x6f6   :  { %v11002_v18 = vpop.eup %11001  ;;  %v13778_v23 = vadd.f32 %v4187_v47, %v4067_v44  ;;  %v4185_v62 = vpop.permute.xlu0 %4184 }
 0x6f7   :  { %v11004_v8 = vpop.eup %11003  ;;  %v13780_v55 = vadd.f32 %v4185_v62, %v4066_v59  ;;  %4270 = vrot.lane.b32.xlu1 %v11002_v18, %s11892_s0 }
 0x6f8   :  { %11013 = vtanh.f32 %v13778_v23  ;;  %4268 = vrot.lane.b32.xlu0 %v11004_v8, %s11892_s0 }
 0x6f9   :  { %11015 = vtanh.f32 %v13780_v55 }
 0x6fa   :  { %v11006_v34 = vpop.eup %11005 }
 0x6fb   :  { %v11008_v58 = vpop.eup %11007  ;;  %4274 = vrot.lane.b32.xlu1 %v11006_v34, %s11892_s0 }
 0x6fc   :  { %4272 = vrot.lane.b32.xlu0 %v11008_v58, %s11892_s0 }
 0x6fe   :  { %v11010_v6 = vpop.eup %11009 }
 0x6ff   :  { %v11012_v38 = vpop.eup %11011  ;;  %4278 = vrot.lane.b32.xlu1 %v11010_v6, %s11892_s0 }
 0x700   :  { %4276 = vrot.lane.b32.xlu0 %v11012_v38, %s11892_s0 }
 0x702   :  { %v11014_v61 = vpop.eup %11013 }
 0x703   :  { %v11016_v32 = vpop.eup %11015  ;;  %4282 = vrot.lane.b32.xlu1 %v11014_v61, %s11892_s0 }
 0x704   :  { %4280 = vrot.lane.b32.xlu0 %v11016_v32, %s11892_s0 }
 0x70b   :  { %v4191_v2 = vpop.permute.xlu1 %4190 }
 0x70c   :  { %v13796_v57 = vadd.f32 %v4191_v2, %v4069_v0  ;;  %v4189_v54 = vpop.permute.xlu0 %4188 }
 0x70d   :  { %v13798_v9 = vadd.f32 %v4189_v54, %v4068_v4 }
 0x70e   :  { %11017 = vtanh.f32 %v13796_v57 }
 0x70f   :  { %11019 = vtanh.f32 %v13798_v9  ;;  %v4195_v12 = vpop.permute.xlu1 %4194 }
 0x710   :  { %v13806_v13 = vadd.f32 %v4195_v12, %v4071_v10  ;;  %v4193_v16 = vpop.permute.xlu0 %4192 }
 0x711   :  { %v13808_v26 = vadd.f32 %v4193_v16, %v4070_v31 }
 0x712   :  { %11021 = vtanh.f32 %v13806_v13 }
 0x713   :  { %11023 = vtanh.f32 %v13808_v26  ;;  %v4199_v21 = vpop.permute.xlu1 %4198 }
 0x714   :  { %v13816_v48 = vadd.f32 %v4199_v21, %v4073_v46  ;;  %v4197_v24 = vpop.permute.xlu0 %4196 }
 0x715   :  { %v13818_v40 = vadd.f32 %v4197_v24, %v4072_v33 }
 0x716   :  { %11025 = vtanh.f32 %v13816_v48 }
 0x717   :  { %11027 = vtanh.f32 %v13818_v40  ;;  %v4203_v29 = vpop.permute.xlu1 %4202 }
 0x718   :  { %v11018_v56 = vpop.eup %11017  ;;  %v13826_v39 = vadd.f32 %v4203_v29, %v4075_v14  ;;  %v4201_v5 = vpop.permute.xlu0 %4200 }
 0x719   :  { %v11020_v44 = vpop.eup %11019  ;;  %v13828_v47 = vadd.f32 %v4201_v5, %v4074_v45  ;;  %4286 = vrot.lane.b32.xlu1 %v11018_v56, %s11892_s0 }
 0x71a   :  { %11029 = vtanh.f32 %v13826_v39  ;;  %4284 = vrot.lane.b32.xlu0 %v11020_v44, %s11892_s0 }
 0x71b   :  { %11031 = vtanh.f32 %v13828_v47 }
 0x71c   :  { %v11022_v7 = vpop.eup %11021 }
 0x71d   :  { %v11024_v59 = vpop.eup %11023  ;;  %4290 = vrot.lane.b32.xlu1 %v11022_v7, %s11892_s0 }
 0x71e   :  { %4288 = vrot.lane.b32.xlu0 %v11024_v59, %s11892_s0 }
 0x720   :  { %v11026_v22 = vpop.eup %11025 }
 0x721   :  { %v11028_v18 = vpop.eup %11027  ;;  %4294 = vrot.lane.b32.xlu1 %v11026_v22, %s11892_s0 }
 0x722   :  { %4292 = vrot.lane.b32.xlu0 %v11028_v18, %s11892_s0 }
 0x724   :  { %v11030_v62 = vpop.eup %11029 }
 0x725   :  { %v11032_v8 = vpop.eup %11031  ;;  %4298 = vrot.lane.b32.xlu1 %v11030_v62, %s11892_s0 }
 0x726   :  { %4296 = vrot.lane.b32.xlu0 %v11032_v8, %s11892_s0 }
 0x769   :  { %v4271_v34 = vpop.permute.xlu1 %4270 }
 0x76a   :  { %v4317_v58 = vmul.f32 %v13672_v17, %v4271_v34  ;;  %v4269_v6 = vpop.permute.xlu0 %4268 }
 0x76b   :  { %v4316_v38 = vmul.f32 %v13674_v37, %v4269_v6 }
 0x76c   :  { %4366 = vrot.lane.b32.xlu1 %v4317_v58, %s11893_s24 }
 0x76d   :  { %v4275_v61 = vpop.permute.xlu1 %4274  ;;  %4364 = vrot.lane.b32.xlu0 %v4316_v38, %s11893_s24 }
 0x76e   :  { %v4319_v32 = vmul.f32 %v13680_v20, %v4275_v61  ;;  %v4273_v0 = vpop.permute.xlu0 %4272 }
 0x76f   :  { %v4318_v2 = vmul.f32 %v13684_v50, %v4273_v0 }
 0x770   :  { %4370 = vrot.lane.b32.xlu1 %v4319_v32, %s11893_s24 }
 0x771   :  { %v4279_v4 = vpop.permute.xlu1 %4278  ;;  %4368 = vrot.lane.b32.xlu0 %v4318_v2, %s11893_s24 }
 0x772   :  { %v4321_v17 = vmul.f32 %v13690_v43, %v4279_v4  ;;  %v4277_v54 = vpop.permute.xlu0 %4276 }
 0x773   :  { %v4320_v37 = vmul.f32 %v13694_v35, %v4277_v54 }
 0x774   :  { %4374 = vrot.lane.b32.xlu1 %v4321_v17, %s11893_s24 }
 0x775   :  { %v4283_v10 = vpop.permute.xlu1 %4282  ;;  %4372 = vrot.lane.b32.xlu0 %v4320_v37, %s11893_s24 }
 0x776   :  { %v4323_v20 = vmul.f32 %v13700_v63, %v4283_v10  ;;  %v4281_v12 = vpop.permute.xlu0 %4280 }
 0x777   :  { %v4322_v50 = vmul.f32 %v13704_v1, %v4281_v12 }
 0x778   :  { %4378 = vrot.lane.b32.xlu1 %v4323_v20, %s11893_s24 }
 0x779   :  { %4376 = vrot.lane.b32.xlu0 %v4322_v50, %s11893_s24 }
 0x78b   :  { %v4287_v31 = vpop.permute.xlu1 %4286 }
 0x78c   :  { %v4325_v43 = vmul.f32 %v13712_v30, %v4287_v31  ;;  %v4285_v16 = vpop.permute.xlu0 %4284 }
 0x78d   :  { %v4324_v35 = vmul.f32 %v13714_v42, %v4285_v16 }
 0x78e   :  { %4382 = vrot.lane.b32.xlu1 %v4325_v43, %s11893_s24 }
 0x78f   :  { %v4291_v46 = vpop.permute.xlu1 %4290  ;;  %4380 = vrot.lane.b32.xlu0 %v4324_v35, %s11893_s24 }
 0x790   :  { %v4327_v63 = vmul.f32 %v13719_v53, %v4291_v46  ;;  %v4289_v21 = vpop.permute.xlu0 %4288 }
 0x791   :  { %v4326_v1 = vmul.f32 %v13722_v28, %v4289_v21 }
 0x792   :  { %4386 = vrot.lane.b32.xlu1 %v4327_v63, %s11893_s24 }
 0x793   :  { %v4295_v33 = vpop.permute.xlu1 %4294  ;;  %4384 = vrot.lane.b32.xlu0 %v4326_v1, %s11893_s24 }
 0x794   :  { %v4329_v30 = vmul.f32 %v13727_v19, %v4295_v33  ;;  %v4293_v24 = vpop.permute.xlu0 %4292 }
 0x795   :  { %v4328_v42 = vmul.f32 %v13730_v41, %v4293_v24 }
 0x796   :  { %4390 = vrot.lane.b32.xlu1 %v4329_v30, %s11893_s24 }
 0x797   :  { %v4299_v14 = vpop.permute.xlu1 %4298  ;;  %4388 = vrot.lane.b32.xlu0 %v4328_v42, %s11893_s24 }
 0x798   :  { %v4331_v53 = vmul.f32 %v13735_v3, %v4299_v14  ;;  %v4297_v29 = vpop.permute.xlu0 %4296 }
 0x799   :  { %v4330_v28 = vmul.f32 %v13738_v49, %v4297_v29 }
 0x79a   :  { %4394 = vrot.lane.b32.xlu1 %v4331_v53, %s11893_s24 }
 0x79b   :  { %4392 = vrot.lane.b32.xlu0 %v4330_v28, %s11893_s24 }
 0x7de   :  { %v4367_v45 = vpop.permute.xlu1 %4366 }
 0x7df   :  { %v4365_v56 = vpop.permute.xlu0 %4364 }
 0x7e0   :  { %10091 = vmatprep.mubr.msk.f32.mxu0 %vm3142_vm0, %v4365_v56 }
 0x7e1   :  { %10092 = vmatmul.mubr.msk.f32.vlgmr.msra.gmra.mrb[16].mxu0 %vm3142_vm0, %v4367_v45 }
 0x7e2   :  { %v4371_v19 = vpop.permute.xlu1 %4370  ;;  %10598 = vmatpush3.bf16.msra.mxu0 %v13114_v11 }
 0x7e3   :  { %v4369_v41 = vpop.permute.xlu0 %4368  ;;  %10600 = vmatprep.subr.bf16.mxu0 %v13183_v51 }
 0x7e4   :  { %10094 = vmatprep.mubr.msk.f32.mxu0 %vm3142_vm0, %v4369_v41 }
 0x7e5   :  { %10095 = vmatmul.mubr.msk.f32.gmra.mrb[18].mxu0 %vm3142_vm0, %v4371_v19 }
 0x7e6   :  { %v4375_v3 = vpop.permute.xlu1 %4374  ;;  %10602 = vmatpush3.bf16.msra.mxu0 %v13183_v51 }
 0x7e7   :  { %v4373_v49 = vpop.permute.xlu0 %4372  ;;  %10612 = vmatprep.subr.bf16.mxu0 %v13114_v11 }
 0x7e8   :  { %10097 = vmatprep.mubr.msk.f32.mxu0 %vm3142_vm0, %v4373_v49 }
 0x7e9   :  { %10098 = vmatmul.mubr.msk.f32.gmra.mrb[20].mxu0 %vm3142_vm0, %v4375_v3 }
 0x7ea   :  { %v4379_v44 = vpop.permute.xlu1 %4378 }
 0x7eb   :  { %v4377_v5 = vpop.permute.xlu0 %4376 }
 0x7ec   :  { %10100 = vmatprep.mubr.msk.f32.mxu0 %vm3142_vm0, %v4377_v5 }
 0x7ed   :  { %10101 = vmatmul.mubr.msk.f32.gmra.mrb[22].mxu0 %vm3142_vm0, %v4379_v44 }
 0x800   :  { %v4383_v7 = vpop.permute.xlu1 %4382 }
 0x801   :  { %v4381_v59 = vpop.permute.xlu0 %4380 }
 0x802   :  { %10103 = vmatprep.mubr.msk.f32.mxu0 %vm3142_vm0, %v4381_v59 }
 0x803   :  { %10104 = vmatmul.mubr.msk.f32.gmra.mrb[24].mxu0 %vm3142_vm0, %v4383_v7 }
 0x804   :  { %v4387_v22 = vpop.permute.xlu1 %4386 }
 0x805   :  { %v4385_v18 = vpop.permute.xlu0 %4384 }
 0x806   :  { %10106 = vmatprep.mubr.msk.f32.mxu0 %vm3142_vm0, %v4385_v18 }
 0x807   :  { %10107 = vmatmul.mubr.msk.f32.gmra.mrb[26].mxu0 %vm3142_vm0, %v4387_v22 }
 0x808   :  { %v4391_v62 = vpop.permute.xlu1 %4390 }
 0x809   :  { %v4389_v8 = vpop.permute.xlu0 %4388 }
 0x80a   :  { %10109 = vmatprep.mubr.msk.f32.mxu0 %vm3142_vm0, %v4389_v8 }
 0x80b   :  { %10110 = vmatmul.mubr.msk.f32.gmra.mrb[28].mxu0 %vm3142_vm0, %v4391_v62 }
 0x80c   :  { %v4395_v58 = vpop.permute.xlu1 %4394 }
 0x80d   :  { %v4393_v34 = vpop.permute.xlu0 %4392 }
 0x80e   :  { %10112 = vmatprep.mubr.msk.f32.mxu0 %vm3142_vm0, %v4393_v34 }
 0x80f   :  { %10113 = vmatmul.mubr.msk.f32.gmra.mrb[30].mxu0 %vm3142_vm0, %v4395_v58 }
 0x8b4   :  { %v13892_v6 = vpop.f32.mrb[16].mxu0 }
 0x8b5   :  { %11033 = vtanh.f32 %v13892_v6  ;;  %v4494_v38 = vpop.f32.mrb[17].mxu0  ;;  %v8943_v19 = vmul.f32 -1.442695, %v13892_v6 }
 0x8b6   :  { %11035 = vtanh.f32 %v4494_v38  ;;  %v8942_v41 = vmul.f32 -1.442695, %v4494_v38 }
 0x8b8   :  { %v10096_v61 = vpop.f32.mrb[18].mxu0 }
 0x8b9   :  { %11037 = vtanh.f32 %v10096_v61  ;;  %v4504_v32 = vpop.f32.mrb[19].mxu0  ;;  %v8945_v3 = vmul.f32 -1.442695, %v10096_v61 }
 0x8ba   :  { %11039 = vtanh.f32 %v4504_v32  ;;  %v8944_v49 = vmul.f32 -1.442695, %v4504_v32 }
 0x8bc   :  { %v10099_v0 = vpop.f32.mrb[20].mxu0 }
 0x8bd   :  { %11041 = vtanh.f32 %v10099_v0  ;;  %v4514_v2 = vpop.f32.mrb[21].mxu0  ;;  %v8947_v5 = vmul.f32 -1.442695, %v10099_v0 }
 0x8be   :  { %11043 = vtanh.f32 %v4514_v2  ;;  %v8946_v44 = vmul.f32 -1.442695, %v4514_v2 }
 0x8bf   :  { %v11034_v4 = vpop.eup %11033 }
 0x8c0   :  { %v11036_v17 = vpop.eup %11035  ;;  %4735 = vrot.lane.b32.xlu1 %v11034_v4, %s11892_s0  ;;  %v10102_v54 = vpop.f32.mrb[22].mxu0 }
 0x8c1   :  { %11045 = vtanh.f32 %v10102_v54  ;;  %4733 = vrot.lane.b32.xlu0 %v11036_v17, %s11892_s0  ;;  %v4524_v37 = vpop.f32.mrb[23].mxu0  ;;  %v8949_v7 = vmul.f32 -1.442695, %v10102_v54 }
 0x8c2   :  { %11047 = vtanh.f32 %v4524_v37  ;;  %v8948_v59 = vmul.f32 -1.442695, %v4524_v37 }
 0x8c3   :  { %v11038_v10 = vpop.eup %11037 }
 0x8c4   :  { %v11040_v20 = vpop.eup %11039  ;;  %4739 = vrot.lane.b32.xlu1 %v11038_v10, %s11892_s0 }
 0x8c5   :  { %4737 = vrot.lane.b32.xlu0 %v11040_v20, %s11892_s0 }
 0x8c7   :  { %v11042_v12 = vpop.eup %11041 }
 0x8c8   :  { %v11044_v50 = vpop.eup %11043  ;;  %4743 = vrot.lane.b32.xlu1 %v11042_v12, %s11892_s0 }
 0x8c9   :  { %4741 = vrot.lane.b32.xlu0 %v11044_v50, %s11892_s0 }
 0x8cb   :  { %v11046_v31 = vpop.eup %11045 }
 0x8cc   :  { %v11048_v43 = vpop.eup %11047  ;;  %4747 = vrot.lane.b32.xlu1 %v11046_v31, %s11892_s0 }
 0x8cd   :  { %4745 = vrot.lane.b32.xlu0 %v11048_v43, %s11892_s0 }
 0x8d6   :  { %v13903_v16 = vpop.f32.mrb[24].mxu0 }
 0x8d7   :  { %11049 = vtanh.f32 %v13903_v16  ;;  %v13906_v35 = vpop.f32.mrb[25].mxu0 }
 0x8d8   :  { %11051 = vtanh.f32 %v13906_v35 }
 0x8da   :  { %v13909_v46 = vpop.f32.mrb[26].mxu0 }
 0x8db   :  { %11053 = vtanh.f32 %v13909_v46  ;;  %v13912_v63 = vpop.f32.mrb[27].mxu0 }
 0x8dc   :  { %11055 = vtanh.f32 %v13912_v63 }
 0x8de   :  { %v13915_v21 = vpop.f32.mrb[28].mxu0 }
 0x8df   :  { %11057 = vtanh.f32 %v13915_v21  ;;  %v13918_v1 = vpop.f32.mrb[29].mxu0 }
 0x8e0   :  { %11059 = vtanh.f32 %v13918_v1 }
 0x8e1   :  { %v11050_v33 = vpop.eup %11049 }
 0x8e2   :  { %v11052_v30 = vpop.eup %11051  ;;  %4751 = vrot.lane.b32.xlu1 %v11050_v33, %s11892_s0  ;;  %v13922_v24 = vpop.f32.mrb[30].mxu0  ;;  %v8951_v33 = vmul.f32 -1.442695, %v13903_v16 }
 0x8e3   :  { %11061 = vtanh.f32 %v13922_v24  ;;  %4749 = vrot.lane.b32.xlu0 %v11052_v30, %s11892_s0  ;;  %v13926_v42 = vpop.f32.mrb[31].mxu0 }
 0x8e4   :  { %11063 = vtanh.f32 %v13926_v42 }
 0x8e5   :  { %v11054_v14 = vpop.eup %11053  ;;  %11065 = vpow2.f32 %v8943_v19  ;;  %v8953_v19 = vmul.f32 -1.442695, %v13909_v46  ;;  %v8955_v46 = vmul.f32 -1.442695, %v13915_v21  ;;  %v8957_v21 = vmul.f32 -1.442695, %v13922_v24 }
 0x8e6   :  { %v11056_v53 = vpop.eup %11055  ;;  %4755 = vrot.lane.b32.xlu1 %v11054_v14, %s11892_s0  ;;  %11067 = vpow2.f32 %v8942_v41  ;;  %v8950_v14 = vmul.f32 -1.442695, %v13906_v35  ;;  %v8952_v35 = vmul.f32 -1.442695, %v13912_v63  ;;  %v8954_v63 = vmul.f32 -1.442695, %v13918_v1 }
 0x8e7   :  { %4753 = vrot.lane.b32.xlu0 %v11056_v53, %s11892_s0  ;;  %11069 = vpow2.f32 %v8945_v3 }
 0x8e8   :  { %11071 = vpow2.f32 %v8944_v49 }
 0x8e9   :  { %v11058_v29 = vpop.eup %11057  ;;  %11073 = vpow2.f32 %v8947_v5 }
 0x8ea   :  { %v11060_v28 = vpop.eup %11059  ;;  %4759 = vrot.lane.b32.xlu1 %v11058_v29, %s11892_s0  ;;  %11075 = vpow2.f32 %v8946_v44 }
 0x8eb   :  { %4757 = vrot.lane.b32.xlu0 %v11060_v28, %s11892_s0  ;;  %11077 = vpow2.f32 %v8949_v7 }
 0x8ec   :  { %11079 = vpow2.f32 %v8948_v59 }
 0x8ed   :  { %v11062_v45 = vpop.eup %11061 }
 0x8ee   :  { %v11064_v56 = vpop.eup %11063  ;;  %4763 = vrot.lane.b32.xlu1 %v11062_v45, %s11892_s0 }
 0x8ef   :  { %4761 = vrot.lane.b32.xlu0 %v11064_v56, %s11892_s0  ;;  %v11066_v22 = vpop.eup %11065 }
 0x8f0   :  { %v11068_v18 = vpop.eup %11067  ;;  %v4638_v62 = vadd.f32 1.0, %v11066_v22 }
 0x8f1   :  { %v11070_v8 = vpop.eup %11069  ;;  %v4637_v34 = vadd.f32 1.0, %v11068_v18 }
 0x8f2   :  { %v11072_v58 = vpop.eup %11071  ;;  %11081 = vrcp.f32 %v4638_v62  ;;  %v4640_v6 = vadd.f32 1.0, %v11070_v8 }
 0x8f3   :  { %v11074_v38 = vpop.eup %11073  ;;  %11083 = vrcp.f32 %v4637_v34  ;;  %v4639_v61 = vadd.f32 1.0, %v11072_v58  ;;  %v8956_v34 = vmul.f32 -1.442695, %v13926_v42 }
 0x8f4   :  { %v11076_v32 = vpop.eup %11075  ;;  %11085 = vrcp.f32 %v4640_v6  ;;  %v4642_v0 = vadd.f32 1.0, %v11074_v38 }
 0x8f5   :  { %v11078_v2 = vpop.eup %11077  ;;  %11087 = vrcp.f32 %v4639_v61  ;;  %v4641_v4 = vadd.f32 1.0, %v11076_v32 }
 0x8f6   :  { %v11080_v17 = vpop.eup %11079  ;;  %11089 = vrcp.f32 %v4642_v0  ;;  %v4644_v54 = vadd.f32 1.0, %v11078_v2 }
 0x8f7   :  { %11091 = vrcp.f32 %v4641_v4  ;;  %v4643_v37 = vadd.f32 1.0, %v11080_v17 }
 0x8f8   :  { %11093 = vrcp.f32 %v4644_v54 }
 0x8f9   :  { %11095 = vrcp.f32 %v4643_v37 }
 0x8fa   :  { %11097 = vpow2.f32 %v8951_v33 }
 0x8fb   :  { %11099 = vpow2.f32 %v8950_v14 }
 0x8fc   :  { %v13936_v10 = vpop.eup %11081  ;;  %11101 = vpow2.f32 %v8953_v19 }
 0x8fd   :  { %v13938_v12 = vpop.eup %11083  ;;  %11103 = vpow2.f32 %v8952_v35 }
 0x8fe   :  { %v13944_v30 = vpop.eup %11085  ;;  %11105 = vpow2.f32 %v8955_v46 }
 0x8ff   :  { %v13948_v29 = vpop.eup %11087  ;;  %11107 = vpow2.f32 %v8954_v63 }
 0x900   :  { %v13954_v16 = vpop.eup %11089  ;;  %11109 = vpow2.f32 %v8957_v21 }
 0x901   :  { %v13958_v3 = vpop.eup %11091  ;;  %11111 = vpow2.f32 %v8956_v34 }
 0x902   :  { %v13964_v7 = vpop.eup %11093 }
 0x903   :  { %v13968_v22 = vpop.eup %11095 }
 0x904   :  { %v11098_v1 = vpop.eup %11097 }
 0x905   :  { %v11100_v58 = vpop.eup %11099  ;;  %v4646_v6 = vadd.f32 1.0, %v11098_v1 }
 0x906   :  { %v11102_v38 = vpop.eup %11101  ;;  %v4645_v61 = vadd.f32 1.0, %v11100_v58 }
 0x907   :  { %v11104_v32 = vpop.eup %11103  ;;  %11113 = vrcp.f32 %v4646_v6  ;;  %v4648_v0 = vadd.f32 1.0, %v11102_v38  ;;  %v4702_v6 = vmul.f32 %v13936_v10, %v13748_v15  ;;  %v4703_v15 = vmul.f32 %v13948_v29, %v13760_v52 }
 0x908   :  { %v11106_v2 = vpop.eup %11105  ;;  %11115 = vrcp.f32 %v4645_v61  ;;  %v4647_v24 = vadd.f32 1.0, %v11104_v32  ;;  %v4701_v61 = vmul.f32 %v13938_v12, %v13750_v25 }
 0x909   :  { %v11108_v4 = vpop.eup %11107  ;;  %11117 = vrcp.f32 %v4648_v0  ;;  %v4650_v17 = vadd.f32 1.0, %v11106_v2 }
 0x90a   :  { %v11110_v54 = vpop.eup %11109  ;;  %11119 = vrcp.f32 %v4647_v24  ;;  %v4649_v42 = vadd.f32 1.0, %v11108_v4  ;;  %v4704_v24 = vmul.f32 %v13944_v30, %v13758_v27  ;;  %v4705_v27 = vmul.f32 %v13958_v3, %v13770_v60 }
 0x90b   :  { %v11112_v37 = vpop.eup %11111  ;;  %11121 = vrcp.f32 %v4650_v17 }
 0x90c   :  { %11123 = vrcp.f32 %v4649_v42  ;;  %v4706_v42 = vmul.f32 %v13954_v16, %v13768_v36  ;;  %v4707_v36 = vmul.f32 %v13968_v22, %v13780_v55 }
 0x932   :  { %v4736_v20 = vpop.permute.xlu1 %4735 }
 0x933   :  { %v4782_v50 = vmul.f32 %v13936_v10, %v4736_v20  ;;  %v4734_v31 = vpop.permute.xlu0 %4733  ;;  %v4652_v20 = vadd.f32 1.0, %v11110_v54 }
 0x934   :  { %v4781_v43 = vmul.f32 %v13938_v12, %v4734_v31  ;;  %v13976_v31 = vpop.eup %11113 }
 0x935   :  { %4815 = vrot.lane.b32.xlu1 %v4782_v50, %s11892_s0  ;;  %v4651_v50 = vadd.f32 1.0, %v11112_v37  ;;  %v13978_v33 = vpop.eup %11115  ;;  %11125 = vrcp.f32 %v4652_v20 }
 0x936   :  { %v4740_v53 = vpop.permute.xlu1 %4739  ;;  %4813 = vrot.lane.b32.xlu0 %v4781_v43, %s11892_s0 }
 0x937   :  { %v4784_v28 = vmul.f32 %v13944_v30, %v4740_v53  ;;  %v4738_v45 = vpop.permute.xlu0 %4737  ;;  %11127 = vrcp.f32 %v4651_v50 }
 0x938   :  { %v4783_v56 = vmul.f32 %v13948_v29, %v4738_v45  ;;  %v13983_v45 = vpop.eup %11117 }
 0x939   :  { %4819 = vrot.lane.b32.xlu1 %v4784_v28, %s11892_s0  ;;  %v13986_v19 = vpop.eup %11119 }
 0x93a   :  { %v4744_v41 = vpop.permute.xlu1 %4743  ;;  %4817 = vrot.lane.b32.xlu0 %v4783_v56, %s11892_s0 }
 0x93b   :  { %v4786_v49 = vmul.f32 %v13954_v16, %v4744_v41  ;;  %v4742_v5 = vpop.permute.xlu0 %4741 }
 0x93c   :  { %v4785_v44 = vmul.f32 %v13958_v3, %v4742_v5  ;;  %v13991_v5 = vpop.eup %11121 }
 0x93d   :  { %4823 = vrot.lane.b32.xlu1 %v4786_v49, %s11892_s0  ;;  %v13994_v46 = vpop.eup %11123 }
 0x93e   :  { %v4748_v59 = vpop.permute.xlu1 %4747  ;;  %4821 = vrot.lane.b32.xlu0 %v4785_v44, %s11892_s0 }
 0x93f   :  { %v4788_v18 = vmul.f32 %v13964_v7, %v4748_v59  ;;  %v4746_v62 = vpop.permute.xlu0 %4745 }
 0x940   :  { %v4787_v8 = vmul.f32 %v13968_v22, %v4746_v62  ;;  %v13999_v62 = vpop.eup %11125 }
 0x941   :  { %4827 = vrot.lane.b32.xlu1 %v4788_v18, %s11892_s0  ;;  %v14002_v21 = vpop.eup %11127 }
 0x942   :  { %4825 = vrot.lane.b32.xlu0 %v4787_v8, %s11892_s0 }
 0x954   :  { %v4752_v43 = vpop.permute.xlu1 %4751 }
 0x955   :  { %v4790_v14 = vmul.f32 %v13976_v31, %v4752_v43  ;;  %v4750_v53 = vpop.permute.xlu0 %4749  ;;  %v4708_v43 = vmul.f32 %v13964_v7, %v13778_v23 }
 0x956   :  { %v4789_v28 = vmul.f32 %v13978_v33, %v4750_v53 }
 0x957   :  { %4831 = vrot.lane.b32.xlu1 %v4790_v14, %s11892_s0 }
 0x958   :  { %v4756_v56 = vpop.permute.xlu1 %4755  ;;  %4829 = vrot.lane.b32.xlu0 %v4789_v28, %s11892_s0 }
 0x959   :  { %v4792_v35 = vmul.f32 %v13983_v45, %v4756_v56  ;;  %v4754_v41 = vpop.permute.xlu0 %4753 }
 0x95a   :  { %v4791_v49 = vmul.f32 %v13986_v19, %v4754_v41 }
 0x95b   :  { %4835 = vrot.lane.b32.xlu1 %v4792_v35, %s11892_s0 }
 0x95c   :  { %v4760_v44 = vpop.permute.xlu1 %4759  ;;  %4833 = vrot.lane.b32.xlu0 %v4791_v49, %s11892_s0 }
 0x95d   :  { %v4794_v63 = vmul.f32 %v13991_v5, %v4760_v44  ;;  %v4758_v59 = vpop.permute.xlu0 %4757 }
 0x95e   :  { %v4793_v18 = vmul.f32 %v13994_v46, %v4758_v59  ;;  %v4710_v59 = vmul.f32 %v13976_v31, %v13796_v57  ;;  %v4711_v57 = vmul.f32 %v13986_v19, %v13808_v26 }
 0x95f   :  { %4839 = vrot.lane.b32.xlu1 %v4794_v63, %s11892_s0 }
 0x960   :  { %v4764_v8 = vpop.permute.xlu1 %4763  ;;  %4837 = vrot.lane.b32.xlu0 %v4793_v18, %s11892_s0 }
 0x961   :  { %v4796_v34 = vmul.f32 %v13999_v62, %v4764_v8  ;;  %v4762_v1 = vpop.permute.xlu0 %4761  ;;  %v4709_v8 = vmul.f32 %v13978_v33, %v13798_v9 }
 0x962   :  { %v4795_v58 = vmul.f32 %v14002_v21, %v4762_v1 }
 0x963   :  { %4843 = vrot.lane.b32.xlu1 %v4796_v34, %s11892_s0 }
 0x964   :  { %4841 = vrot.lane.b32.xlu0 %v4795_v58, %s11892_s0 }
 0x9a7   :  { %v4816_v38 = vpop.permute.xlu1 %4815 }
 0x9a8   :  { %v14012_v32 = vadd.f32 %v4816_v38, %v4702_v6  ;;  %v4814_v0 = vpop.permute.xlu0 %4813  ;;  %v4712_v6 = vmul.f32 %v13983_v45, %v13806_v13  ;;  %v4713_v13 = vmul.f32 %v13994_v46, %v13818_v40 }
 0x9a9   :  { %v14014_v2 = vadd.f32 %v4814_v0, %v4701_v61 }
 0x9aa   :  { %11129 = vtanh.f32 %v14012_v32 }
 0x9ab   :  { %11131 = vtanh.f32 %v14014_v2  ;;  %v4820_v4 = vpop.permute.xlu1 %4819 }
 0x9ac   :  { %v14022_v17 = vadd.f32 %v4820_v4, %v4704_v24  ;;  %v4818_v54 = vpop.permute.xlu0 %4817  ;;  %v4714_v24 = vmul.f32 %v13991_v5, %v13816_v48  ;;  %v4715_v48 = vmul.f32 %v14002_v21, %v13828_v47 }
 0x9ad   :  { %v14024_v25 = vadd.f32 %v4818_v54, %v4703_v15 }
 0x9ae   :  { %11133 = vtanh.f32 %v14022_v17 }
 0x9af   :  { %11135 = vtanh.f32 %v14024_v25  ;;  %v4824_v37 = vpop.permute.xlu1 %4823 }
 0x9b0   :  { %v14032_v20 = vadd.f32 %v4824_v37, %v4706_v42  ;;  %v4822_v50 = vpop.permute.xlu0 %4821  ;;  %v4716_v42 = vmul.f32 %v13999_v62, %v13826_v39 }
 0x9b1   :  { %v14034_v52 = vadd.f32 %v4822_v50, %v4705_v27 }
 0x9b2   :  { %11137 = vtanh.f32 %v14032_v20 }
 0x9b3   :  { %11139 = vtanh.f32 %v14034_v52  ;;  %v4828_v14 = vpop.permute.xlu1 %4827 }
 0x9b4   :  { %v11130_v53 = vpop.eup %11129  ;;  %v14042_v28 = vadd.f32 %v4828_v14, %v4708_v43  ;;  %v4826_v60 = vpop.permute.xlu0 %4825 }
 0x9b5   :  { %v11132_v56 = vpop.eup %11131  ;;  %v14044_v35 = vadd.f32 %v4826_v60, %v4707_v36  ;;  %4911 = vrot.lane.b32.xlu1 %v11130_v53, %s11892_s0 }
 0x9b6   :  { %11141 = vtanh.f32 %v14042_v28  ;;  %4909 = vrot.lane.b32.xlu0 %v11132_v56, %s11892_s0 }
 0x9b7   :  { %11143 = vtanh.f32 %v14044_v35 }
 0x9b8   :  { %v11134_v23 = vpop.eup %11133 }
 0x9b9   :  { %v11136_v41 = vpop.eup %11135  ;;  %4915 = vrot.lane.b32.xlu1 %v11134_v23, %s11892_s0 }
 0x9ba   :  { %4913 = vrot.lane.b32.xlu0 %v11136_v41, %s11892_s0 }
 0x9bc   :  { %v11138_v55 = vpop.eup %11137 }
 0x9bd   :  { %v11140_v49 = vpop.eup %11139  ;;  %4919 = vrot.lane.b32.xlu1 %v11138_v55, %s11892_s0 }
 0x9be   :  { %4917 = vrot.lane.b32.xlu0 %v11140_v49, %s11892_s0 }
 0x9c0   :  { %v11142_v44 = vpop.eup %11141 }
 0x9c1   :  { %v11144_v63 = vpop.eup %11143  ;;  %4923 = vrot.lane.b32.xlu1 %v11142_v44, %s11892_s0 }
 0x9c2   :  { %4921 = vrot.lane.b32.xlu0 %v11144_v63, %s11892_s0 }
 0x9c9   :  { %v4832_v18 = vpop.permute.xlu1 %4831 }
 0x9ca   :  { %v14060_v34 = vadd.f32 %v4832_v18, %v4710_v59  ;;  %v4830_v1 = vpop.permute.xlu0 %4829 }
 0x9cb   :  { %v14062_v58 = vadd.f32 %v4830_v1, %v4709_v8 }
 0x9cc   :  { %11145 = vtanh.f32 %v14060_v34 }
 0x9cd   :  { %11147 = vtanh.f32 %v14062_v58  ;;  %v4836_v38 = vpop.permute.xlu1 %4835 }
 0x9ce   :  { %v14070_v61 = vadd.f32 %v4836_v38, %v4712_v6  ;;  %v4834_v0 = vpop.permute.xlu0 %4833 }
 0x9cf   :  { %v14072_v9 = vadd.f32 %v4834_v0, %v4711_v57 }
 0x9d0   :  { %11149 = vtanh.f32 %v14070_v61 }
 0x9d1   :  { %11151 = vtanh.f32 %v14072_v9  ;;  %v4840_v4 = vpop.permute.xlu1 %4839 }
 0x9d2   :  { %v14080_v15 = vadd.f32 %v4840_v4, %v4714_v24  ;;  %v4838_v54 = vpop.permute.xlu0 %4837 }
 0x9d3   :  { %v14082_v26 = vadd.f32 %v4838_v54, %v4713_v13 }
 0x9d4   :  { %11153 = vtanh.f32 %v14080_v15 }
 0x9d5   :  { %11155 = vtanh.f32 %v14082_v26  ;;  %v4844_v37 = vpop.permute.xlu1 %4843 }
 0x9d6   :  { %v11146_v27 = vpop.eup %11145  ;;  %v14090_v50 = vadd.f32 %v4844_v37, %v4716_v42  ;;  %v4842_v40 = vpop.permute.xlu0 %4841 }
 0x9d7   :  { %v11148_v43 = vpop.eup %11147  ;;  %v14092_v14 = vadd.f32 %v4842_v40, %v4715_v48  ;;  %4927 = vrot.lane.b32.xlu1 %v11146_v27, %s11892_s0 }
 0x9d8   :  { %11157 = vtanh.f32 %v14090_v50  ;;  %4925 = vrot.lane.b32.xlu0 %v11148_v43, %s11892_s0 }
 0x9d9   :  { %11159 = vtanh.f32 %v14092_v14 }
 0x9da   :  { %v11150_v39 = vpop.eup %11149 }
 0x9db   :  { %v11152_v36 = vpop.eup %11151  ;;  %4931 = vrot.lane.b32.xlu1 %v11150_v39, %s11892_s0 }
 0x9dc   :  { %4929 = vrot.lane.b32.xlu0 %v11152_v36, %s11892_s0 }
 0x9de   :  { %v11154_v47 = vpop.eup %11153 }
 0x9df   :  { %v11156_v53 = vpop.eup %11155  ;;  %4935 = vrot.lane.b32.xlu1 %v11154_v47, %s11892_s0 }
 0x9e0   :  { %4933 = vrot.lane.b32.xlu0 %v11156_v53, %s11892_s0 }
 0x9e2   :  { %v11158_v60 = vpop.eup %11157 }
 0x9e3   :  { %v11160_v56 = vpop.eup %11159  ;;  %4939 = vrot.lane.b32.xlu1 %v11158_v60, %s11892_s0 }
 0x9e4   :  { %4937 = vrot.lane.b32.xlu0 %v11160_v56, %s11892_s0 }
 0xa27   :  { %v4912_v23 = vpop.permute.xlu1 %4911 }
 0xa28   :  { %v4958_v41 = vmul.f32 %v13936_v10, %v4912_v23  ;;  %v4910_v55 = vpop.permute.xlu0 %4909 }
 0xa29   :  { %v4957_v49 = vmul.f32 %v13938_v12, %v4910_v55 }
 0xa2a   :  { %5007 = vrot.lane.b32.xlu1 %v4958_v41, %s11893_s24 }
 0xa2b   :  { %v4916_v44 = vpop.permute.xlu1 %4915  ;;  %5005 = vrot.lane.b32.xlu0 %v4957_v49, %s11893_s24 }
 0xa2c   :  { %v4960_v63 = vmul.f32 %v13944_v30, %v4916_v44  ;;  %v4914_v59 = vpop.permute.xlu0 %4913 }
 0xa2d   :  { %v4959_v18 = vmul.f32 %v13948_v29, %v4914_v59 }
 0xa2e   :  { %5011 = vrot.lane.b32.xlu1 %v4960_v63, %s11893_s24 }
 0xa2f   :  { %v4920_v8 = vpop.permute.xlu1 %4919  ;;  %5009 = vrot.lane.b32.xlu0 %v4959_v18, %s11893_s24 }
 0xa30   :  { %v4962_v10 = vmul.f32 %v13954_v16, %v4920_v8  ;;  %v4918_v1 = vpop.permute.xlu0 %4917 }
 0xa31   :  { %v4961_v12 = vmul.f32 %v13958_v3, %v4918_v1 }
 0xa32   :  { %5015 = vrot.lane.b32.xlu1 %v4962_v10, %s11893_s24 }
 0xa33   :  { %v4924_v6 = vpop.permute.xlu1 %4923  ;;  %5013 = vrot.lane.b32.xlu0 %v4961_v12, %s11893_s24 }
 0xa34   :  { %v4964_v30 = vmul.f32 %v13964_v7, %v4924_v6  ;;  %v4922_v38 = vpop.permute.xlu0 %4921 }
 0xa35   :  { %v4963_v29 = vmul.f32 %v13968_v22, %v4922_v38 }
 0xa36   :  { %5019 = vrot.lane.b32.xlu1 %v4964_v30, %s11893_s24 }
 0xa37   :  { %5017 = vrot.lane.b32.xlu0 %v4963_v29, %s11893_s24 }
 0xa49   :  { %v4928_v57 = vpop.permute.xlu1 %4927 }
 0xa4a   :  { %v4966_v16 = vmul.f32 %v13976_v31, %v4928_v57  ;;  %v4926_v0 = vpop.permute.xlu0 %4925 }
 0xa4b   :  { %v4965_v3 = vmul.f32 %v13978_v33, %v4926_v0 }
 0xa4c   :  { %5023 = vrot.lane.b32.xlu1 %v4966_v16, %s11893_s24 }
 0xa4d   :  { %v4932_v24 = vpop.permute.xlu1 %4931  ;;  %5021 = vrot.lane.b32.xlu0 %v4965_v3, %s11893_s24 }
 0xa4e   :  { %v4968_v7 = vmul.f32 %v13983_v45, %v4932_v24  ;;  %v4930_v4 = vpop.permute.xlu0 %4929 }
 0xa4f   :  { %v4967_v22 = vmul.f32 %v13986_v19, %v4930_v4 }
 0xa50   :  { %5027 = vrot.lane.b32.xlu1 %v4968_v7, %s11893_s24 }
 0xa51   :  { %v4936_v13 = vpop.permute.xlu1 %4935  ;;  %5025 = vrot.lane.b32.xlu0 %v4967_v22, %s11893_s24 }
 0xa52   :  { %v4970_v31 = vmul.f32 %v13991_v5, %v4936_v13  ;;  %v4934_v54 = vpop.permute.xlu0 %4933 }
 0xa53   :  { %v4969_v33 = vmul.f32 %v13994_v46, %v4934_v54 }
 0xa54   :  { %5031 = vrot.lane.b32.xlu1 %v4970_v31, %s11893_s24 }
 0xa55   :  { %v4940_v42 = vpop.permute.xlu1 %4939  ;;  %5029 = vrot.lane.b32.xlu0 %v4969_v33, %s11893_s24 }
 0xa56   :  { %v4972_v45 = vmul.f32 %v13999_v62, %v4940_v42  ;;  %v4938_v37 = vpop.permute.xlu0 %4937 }
 0xa57   :  { %v4971_v19 = vmul.f32 %v14002_v21, %v4938_v37 }
 0xa58   :  { %5035 = vrot.lane.b32.xlu1 %v4972_v45, %s11893_s24 }
 0xa59   :  { %5033 = vrot.lane.b32.xlu0 %v4971_v19, %s11893_s24 }
 0xa9c   :  { %v5008_v48 = vpop.permute.xlu1 %5007 }
 0xa9d   :  { %v5006_v27 = vpop.permute.xlu0 %5005 }
 0xa9e   :  { %10123 = vmatprep.mubr.msk.f32.mxu1 %vm3142_vm0, %v5006_v27 }
 0xa9f   :  { %10124 = vmatmul.mubr.msk.f32.vlgmr.msra.gmra.mrb[16].mxu1 %vm3142_vm0, %v5008_v48 }
 0xaa0   :  { %v5012_v5 = vpop.permute.xlu1 %5011  ;;  %10606 = vmatpush3.bf16.msra.mxu1 %v13114_v11 }
 0xaa1   :  { %v5010_v46 = vpop.permute.xlu0 %5009  ;;  %10608 = vmatprep.subr.bf16.mxu1 %v13183_v51 }
 0xaa2   :  { %10126 = vmatprep.mubr.msk.f32.mxu1 %vm3142_vm0, %v5010_v46 }
 0xaa3   :  { %10127 = vmatmul.mubr.msk.f32.gmra.mrb[18].mxu1 %vm3142_vm0, %v5012_v5 }
 0xaa4   :  { %v5016_v62 = vpop.permute.xlu1 %5015  ;;  %10610 = vmatpush3.bf16.msra.mxu1 %v13183_v51 }
 0xaa5   :  { %v5014_v21 = vpop.permute.xlu0 %5013  ;;  %10620 = vmatprep.subr.bf16.mxu1 %v13114_v11 }
 0xaa6   :  { %10129 = vmatprep.mubr.msk.f32.mxu1 %vm3142_vm0, %v5014_v21 }
 0xaa7   :  { %10130 = vmatmul.mubr.msk.f32.gmra.mrb[20].mxu1 %vm3142_vm0, %v5016_v62 }
 0xaa8   :  { %v5020_v43 = vpop.permute.xlu1 %5019 }
 0xaa9   :  { %v5018_v40 = vpop.permute.xlu0 %5017 }
 0xaaa   :  { %10132 = vmatprep.mubr.msk.f32.mxu1 %vm3142_vm0, %v5018_v40 }
 0xaab   :  { %10133 = vmatmul.mubr.msk.f32.gmra.mrb[22].mxu1 %vm3142_vm0, %v5020_v43 }
 0xabe   :  { %v5024_v39 = vpop.permute.xlu1 %5023 }
 0xabf   :  { %v5022_v36 = vpop.permute.xlu0 %5021 }
 0xac0   :  { %10135 = vmatprep.mubr.msk.f32.mxu1 %vm3142_vm0, %v5022_v36 }
 0xac1   :  { %10136 = vmatmul.mubr.msk.f32.gmra.mrb[24].mxu1 %vm3142_vm0, %v5024_v39 }
 0xac2   :  { %v5028_v47 = vpop.permute.xlu1 %5027 }
 0xac3   :  { %v5026_v53 = vpop.permute.xlu0 %5025 }
 0xac4   :  { %10138 = vmatprep.mubr.msk.f32.mxu1 %vm3142_vm0, %v5026_v53 }
 0xac5   :  { %10139 = vmatmul.mubr.msk.f32.gmra.mrb[26].mxu1 %vm3142_vm0, %v5028_v47 }
 0xac6   :  { %v5032_v60 = vpop.permute.xlu1 %5031 }
 0xac7   :  { %v5030_v56 = vpop.permute.xlu0 %5029 }
 0xac8   :  { %10141 = vmatprep.mubr.msk.f32.mxu1 %vm3142_vm0, %v5030_v56 }
 0xac9   :  { %10142 = vmatmul.mubr.msk.f32.gmra.mrb[28].mxu1 %vm3142_vm0, %v5032_v60 }
 0xaca   :  { %v5036_v41 = vpop.permute.xlu1 %5035 }
 0xacb   :  { %v5034_v23 = vpop.permute.xlu0 %5033 }
 0xacc   :  { %10144 = vmatprep.mubr.msk.f32.mxu1 %vm3142_vm0, %v5034_v23 }
 0xacd   :  { %10145 = vmatmul.mubr.msk.f32.gmra.mrb[30].mxu1 %vm3142_vm0, %v5036_v41 }
 0xb72   :  { %v14156_v55 = vpop.f32.mrb[16].mxu1 }
 0xb73   :  { %11161 = vtanh.f32 %v14156_v55  ;;  %v5135_v49 = vpop.f32.mrb[17].mxu1  ;;  %v8975_v5 = vmul.f32 -1.442695, %v14156_v55 }
 0xb74   :  { %11163 = vtanh.f32 %v5135_v49  ;;  %v8974_v46 = vmul.f32 -1.442695, %v5135_v49 }
 0xb76   :  { %v10128_v44 = vpop.f32.mrb[18].mxu1 }
 0xb77   :  { %11165 = vtanh.f32 %v10128_v44  ;;  %v5145_v63 = vpop.f32.mrb[19].mxu1  ;;  %v8977_v62 = vmul.f32 -1.442695, %v10128_v44 }
 0xb78   :  { %11167 = vtanh.f32 %v5145_v63  ;;  %v8976_v21 = vmul.f32 -1.442695, %v5145_v63 }
 0xb7a   :  { %v10131_v59 = vpop.f32.mrb[20].mxu1 }
 0xb7b   :  { %11169 = vtanh.f32 %v10131_v59  ;;  %v5155_v18 = vpop.f32.mrb[21].mxu1  ;;  %v8979_v40 = vmul.f32 -1.442695, %v10131_v59 }
 0xb7c   :  { %11171 = vtanh.f32 %v5155_v18  ;;  %v8978_v43 = vmul.f32 -1.442695, %v5155_v18 }
 0xb7d   :  { %v11162_v8 = vpop.eup %11161 }
 0xb7e   :  { %v11164_v10 = vpop.eup %11163  ;;  %5376 = vrot.lane.b32.xlu1 %v11162_v8, %s11892_s0  ;;  %v10134_v1 = vpop.f32.mrb[22].mxu1 }
 0xb7f   :  { %11173 = vtanh.f32 %v10134_v1  ;;  %5374 = vrot.lane.b32.xlu0 %v11164_v10, %s11892_s0  ;;  %v5165_v12 = vpop.f32.mrb[23].mxu1  ;;  %v8981_v39 = vmul.f32 -1.442695, %v10134_v1 }
 0xb80   :  { %11175 = vtanh.f32 %v5165_v12  ;;  %v8980_v36 = vmul.f32 -1.442695, %v5165_v12 }
 0xb81   :  { %v11166_v6 = vpop.eup %11165 }
 0xb82   :  { %v11168_v30 = vpop.eup %11167  ;;  %5380 = vrot.lane.b32.xlu1 %v11166_v6, %s11892_s0 }
 0xb83   :  { %5378 = vrot.lane.b32.xlu0 %v11168_v30, %s11892_s0 }
 0xb85   :  { %v11170_v38 = vpop.eup %11169 }
 0xb86   :  { %v11172_v29 = vpop.eup %11171  ;;  %5384 = vrot.lane.b32.xlu1 %v11170_v38, %s11892_s0 }
 0xb87   :  { %5382 = vrot.lane.b32.xlu0 %v11172_v29, %s11892_s0 }
 0xb89   :  { %v11174_v57 = vpop.eup %11173 }
 0xb8a   :  { %v11176_v16 = vpop.eup %11175  ;;  %5388 = vrot.lane.b32.xlu1 %v11174_v57, %s11892_s0 }
 0xb8b   :  { %5386 = vrot.lane.b32.xlu0 %v11176_v16, %s11892_s0 }
 0xb94   :  { %v14167_v0 = vpop.f32.mrb[24].mxu1 }
 0xb95   :  { %11177 = vtanh.f32 %v14167_v0  ;;  %v14170_v3 = vpop.f32.mrb[25].mxu1 }
 0xb96   :  { %11179 = vtanh.f32 %v14170_v3 }
 0xb98   :  { %v14173_v24 = vpop.f32.mrb[26].mxu1 }
 0xb99   :  { %11181 = vtanh.f32 %v14173_v24  ;;  %v14176_v7 = vpop.f32.mrb[27].mxu1 }
 0xb9a   :  { %11183 = vtanh.f32 %v14176_v7 }
 0xb9c   :  { %v14179_v4 = vpop.f32.mrb[28].mxu1 }
 0xb9d   :  { %11185 = vtanh.f32 %v14179_v4  ;;  %v14182_v22 = vpop.f32.mrb[29].mxu1 }
 0xb9e   :  { %11187 = vtanh.f32 %v14182_v22 }
 0xb9f   :  { %v11178_v13 = vpop.eup %11177 }
 0xba0   :  { %v11180_v31 = vpop.eup %11179  ;;  %5392 = vrot.lane.b32.xlu1 %v11178_v13, %s11892_s0  ;;  %v14186_v54 = vpop.f32.mrb[30].mxu1  ;;  %v8983_v13 = vmul.f32 -1.442695, %v14167_v0 }
 0xba1   :  { %11189 = vtanh.f32 %v14186_v54  ;;  %5390 = vrot.lane.b32.xlu0 %v11180_v31, %s11892_s0  ;;  %v14190_v33 = vpop.f32.mrb[31].mxu1 }
 0xba2   :  { %11191 = vtanh.f32 %v14190_v33 }
 0xba3   :  { %v11182_v42 = vpop.eup %11181  ;;  %11193 = vpow2.f32 %v8975_v5  ;;  %v8985_v5 = vmul.f32 -1.442695, %v14173_v24  ;;  %v8987_v24 = vmul.f32 -1.442695, %v14179_v4  ;;  %v8989_v4 = vmul.f32 -1.442695, %v14186_v54 }
 0xba4   :  { %v11184_v45 = vpop.eup %11183  ;;  %5396 = vrot.lane.b32.xlu1 %v11182_v42, %s11892_s0  ;;  %11195 = vpow2.f32 %v8974_v46  ;;  %v8982_v42 = vmul.f32 -1.442695, %v14170_v3  ;;  %v8984_v3 = vmul.f32 -1.442695, %v14176_v7  ;;  %v8986_v7 = vmul.f32 -1.442695, %v14182_v22 }
 0xba5   :  { %5394 = vrot.lane.b32.xlu0 %v11184_v45, %s11892_s0  ;;  %11197 = vpow2.f32 %v8977_v62 }
 0xba6   :  { %11199 = vpow2.f32 %v8976_v21 }
 0xba7   :  { %v11186_v37 = vpop.eup %11185  ;;  %11201 = vpow2.f32 %v8979_v40 }
 0xba8   :  { %v11188_v19 = vpop.eup %11187  ;;  %5400 = vrot.lane.b32.xlu1 %v11186_v37, %s11892_s0  ;;  %11203 = vpow2.f32 %v8978_v43 }
 0xba9   :  { %5398 = vrot.lane.b32.xlu0 %v11188_v19, %s11892_s0  ;;  %11205 = vpow2.f32 %v8981_v39 }
 0xbaa   :  { %11207 = vpow2.f32 %v8980_v36 }
 0xbab   :  { %v11190_v48 = vpop.eup %11189 }
 0xbac   :  { %v11192_v27 = vpop.eup %11191  ;;  %5404 = vrot.lane.b32.xlu1 %v11190_v48, %s11892_s0 }
 0xbad   :  { %5402 = vrot.lane.b32.xlu0 %v11192_v27, %s11892_s0  ;;  %v11194_v47 = vpop.eup %11193 }
 0xbae   :  { %v11196_v53 = vpop.eup %11195  ;;  %v5279_v60 = vadd.f32 1.0, %v11194_v47 }
 0xbaf   :  { %v11198_v56 = vpop.eup %11197  ;;  %v5278_v23 = vadd.f32 1.0, %v11196_v53 }
 0xbb0   :  { %v11200_v41 = vpop.eup %11199  ;;  %11209 = vrcp.f32 %v5279_v60  ;;  %v5281_v55 = vadd.f32 1.0, %v11198_v56 }
 0xbb1   :  { %v11202_v49 = vpop.eup %11201  ;;  %11211 = vrcp.f32 %v5278_v23  ;;  %v5280_v44 = vadd.f32 1.0, %v11200_v41  ;;  %v8988_v23 = vmul.f32 -1.442695, %v14190_v33 }
 0xbb2   :  { %v11204_v63 = vpop.eup %11203  ;;  %11213 = vrcp.f32 %v5281_v55  ;;  %v5283_v59 = vadd.f32 1.0, %v11202_v49 }
 0xbb3   :  { %v11206_v18 = vpop.eup %11205  ;;  %11215 = vrcp.f32 %v5280_v44  ;;  %v5282_v8 = vadd.f32 1.0, %v11204_v63 }
 0xbb4   :  { %v11208_v10 = vpop.eup %11207  ;;  %11217 = vrcp.f32 %v5283_v59  ;;  %v5285_v1 = vadd.f32 1.0, %v11206_v18 }
 0xbb5   :  { %11219 = vrcp.f32 %v5282_v8  ;;  %v5284_v12 = vadd.f32 1.0, %v11208_v10 }
 0xbb6   :  { %11221 = vrcp.f32 %v5285_v1 }
 0xbb7   :  { %11223 = vrcp.f32 %v5284_v12 }
 0xbb8   :  { %11225 = vpow2.f32 %v8983_v13 }
 0xbb9   :  { %11227 = vpow2.f32 %v8982_v42 }
 0xbba   :  { %v14200_v6 = vpop.eup %11209  ;;  %11229 = vpow2.f32 %v8985_v5 }
 0xbbb   :  { %v14202_v38 = vpop.eup %11211  ;;  %11231 = vpow2.f32 %v8984_v3 }
 0xbbc   :  { %v14208_v31 = vpop.eup %11213  ;;  %11233 = vpow2.f32 %v8987_v24 }
 0xbbd   :  { %v14212_v37 = vpop.eup %11215  ;;  %11235 = vpow2.f32 %v8986_v7 }
 0xbbe   :  { %v14218_v0 = vpop.eup %11217  ;;  %11237 = vpow2.f32 %v8989_v4 }
 0xbbf   :  { %v14222_v62 = vpop.eup %11219  ;;  %11239 = vpow2.f32 %v8988_v23 }
 0xbc0   :  { %v14228_v39 = vpop.eup %11221 }
 0xbc1   :  { %v14232_v47 = vpop.eup %11223 }
 0xbc2   :  { %v11226_v22 = vpop.eup %11225 }
 0xbc3   :  { %v11228_v41 = vpop.eup %11227  ;;  %v5287_v55 = vadd.f32 1.0, %v11226_v22 }
 0xbc4   :  { %v11230_v49 = vpop.eup %11229  ;;  %v5286_v44 = vadd.f32 1.0, %v11228_v41 }
 0xbc5   :  { %v11232_v63 = vpop.eup %11231  ;;  %11241 = vrcp.f32 %v5287_v55  ;;  %v5289_v59 = vadd.f32 1.0, %v11230_v49  ;;  %v5343_v55 = vmul.f32 %v14200_v6, %v14012_v32  ;;  %v5344_v32 = vmul.f32 %v14212_v37, %v14024_v25 }
 0xbc6   :  { %v11234_v18 = vpop.eup %11233  ;;  %11243 = vrcp.f32 %v5286_v44  ;;  %v5288_v54 = vadd.f32 1.0, %v11232_v63  ;;  %v5342_v44 = vmul.f32 %v14202_v38, %v14014_v2 }
 0xbc7   :  { %v11236_v8 = vpop.eup %11235  ;;  %11245 = vrcp.f32 %v5289_v59  ;;  %v5291_v10 = vadd.f32 1.0, %v11234_v18 }
 0xbc8   :  { %v11238_v1 = vpop.eup %11237  ;;  %11247 = vrcp.f32 %v5288_v54  ;;  %v5290_v33 = vadd.f32 1.0, %v11236_v8  ;;  %v5345_v54 = vmul.f32 %v14208_v31, %v14022_v17  ;;  %v5346_v17 = vmul.f32 %v14222_v62, %v14034_v52 }
 0xbc9   :  { %v11240_v12 = vpop.eup %11239  ;;  %11249 = vrcp.f32 %v5291_v10 }
 0xbca   :  { %11251 = vrcp.f32 %v5290_v33  ;;  %v5347_v33 = vmul.f32 %v14218_v0, %v14032_v20  ;;  %v5348_v20 = vmul.f32 %v14232_v47, %v14044_v35 }
 0xbf0   :  { %v5377_v30 = vpop.permute.xlu1 %5376 }
 0xbf1   :  { %v5423_v29 = vmul.f32 %v14200_v6, %v5377_v30  ;;  %v5375_v57 = vpop.permute.xlu0 %5374  ;;  %v5293_v30 = vadd.f32 1.0, %v11238_v1 }
 0xbf2   :  { %v5422_v16 = vmul.f32 %v14202_v38, %v5375_v57  ;;  %v14240_v57 = vpop.eup %11241 }
 0xbf3   :  { %5456 = vrot.lane.b32.xlu1 %v5423_v29, %s11892_s0  ;;  %v5292_v29 = vadd.f32 1.0, %v11240_v12  ;;  %v14242_v13 = vpop.eup %11243  ;;  %11253 = vrcp.f32 %v5293_v30 }
 0xbf4   :  { %v5381_v45 = vpop.permute.xlu1 %5380  ;;  %5454 = vrot.lane.b32.xlu0 %v5422_v16, %s11892_s0 }
 0xbf5   :  { %v5425_v19 = vmul.f32 %v14208_v31, %v5381_v45  ;;  %v5379_v48 = vpop.permute.xlu0 %5378  ;;  %11255 = vrcp.f32 %v5292_v29 }
 0xbf6   :  { %v5424_v27 = vmul.f32 %v14212_v37, %v5379_v48  ;;  %v14247_v48 = vpop.eup %11245 }
 0xbf7   :  { %5460 = vrot.lane.b32.xlu1 %v5425_v19, %s11892_s0  ;;  %v14250_v5 = vpop.eup %11247 }
 0xbf8   :  { %v5385_v46 = vpop.permute.xlu1 %5384  ;;  %5458 = vrot.lane.b32.xlu0 %v5424_v27, %s11892_s0 }
 0xbf9   :  { %v5427_v21 = vmul.f32 %v14218_v0, %v5385_v46  ;;  %v5383_v40 = vpop.permute.xlu0 %5382 }
 0xbfa   :  { %v5426_v43 = vmul.f32 %v14222_v62, %v5383_v40  ;;  %v14255_v40 = vpop.eup %11249 }
 0xbfb   :  { %5464 = vrot.lane.b32.xlu1 %v5427_v21, %s11892_s0  ;;  %v14258_v24 = vpop.eup %11251 }
 0xbfc   :  { %v5389_v36 = vpop.permute.xlu1 %5388  ;;  %5462 = vrot.lane.b32.xlu0 %v5426_v43, %s11892_s0 }
 0xbfd   :  { %v5429_v53 = vmul.f32 %v14228_v39, %v5389_v36  ;;  %v5387_v60 = vpop.permute.xlu0 %5386 }
 0xbfe   :  { %v5428_v56 = vmul.f32 %v14232_v47, %v5387_v60  ;;  %v14263_v60 = vpop.eup %11253 }
 0xbff   :  { %5468 = vrot.lane.b32.xlu1 %v5429_v53, %s11892_s0  ;;  %v14266_v4 = vpop.eup %11255 }
 0xc00   :  { %5466 = vrot.lane.b32.xlu0 %v5428_v56, %s11892_s0 }
 0xc12   :  { %v5393_v16 = vpop.permute.xlu1 %5392 }
 0xc13   :  { %v5431_v42 = vmul.f32 %v14240_v57, %v5393_v16  ;;  %v5391_v45 = vpop.permute.xlu0 %5390  ;;  %v5349_v16 = vmul.f32 %v14228_v39, %v14042_v28 }
 0xc14   :  { %v5430_v19 = vmul.f32 %v14242_v13, %v5391_v45 }
 0xc15   :  { %5472 = vrot.lane.b32.xlu1 %v5431_v42, %s11892_s0 }
 0xc16   :  { %v5397_v27 = vpop.permute.xlu1 %5396  ;;  %5470 = vrot.lane.b32.xlu0 %v5430_v19, %s11892_s0 }
 0xc17   :  { %v5433_v3 = vmul.f32 %v14247_v48, %v5397_v27  ;;  %v5395_v46 = vpop.permute.xlu0 %5394 }
 0xc18   :  { %v5432_v21 = vmul.f32 %v14250_v5, %v5395_v46 }
 0xc19   :  { %5476 = vrot.lane.b32.xlu1 %v5433_v3, %s11892_s0 }
 0xc1a   :  { %v5401_v43 = vpop.permute.xlu1 %5400  ;;  %5474 = vrot.lane.b32.xlu0 %v5432_v21, %s11892_s0 }
 0xc1b   :  { %v5435_v7 = vmul.f32 %v14255_v40, %v5401_v43  ;;  %v5399_v36 = vpop.permute.xlu0 %5398 }
 0xc1c   :  { %v5434_v53 = vmul.f32 %v14258_v24, %v5399_v36  ;;  %v5351_v36 = vmul.f32 %v14240_v57, %v14060_v34  ;;  %v5352_v34 = vmul.f32 %v14250_v5, %v14072_v9 }
 0xc1d   :  { %5480 = vrot.lane.b32.xlu1 %v5435_v7, %s11892_s0 }
 0xc1e   :  { %v5405_v56 = vpop.permute.xlu1 %5404  ;;  %5478 = vrot.lane.b32.xlu0 %v5434_v53, %s11892_s0 }
 0xc1f   :  { %v5437_v23 = vmul.f32 %v14263_v60, %v5405_v56  ;;  %v5403_v22 = vpop.permute.xlu0 %5402  ;;  %v5350_v56 = vmul.f32 %v14242_v13, %v14062_v58 }
 0xc20   :  { %v5436_v41 = vmul.f32 %v14266_v4, %v5403_v22 }
 0xc21   :  { %5484 = vrot.lane.b32.xlu1 %v5437_v23, %s11892_s0 }
 0xc22   :  { %5482 = vrot.lane.b32.xlu0 %v5436_v41, %s11892_s0 }
 0xc65   :  { %v5457_v49 = vpop.permute.xlu1 %5456 }
 0xc66   :  { %v14276_v63 = vadd.f32 %v5457_v49, %v5343_v55  ;;  %v5455_v59 = vpop.permute.xlu0 %5454  ;;  %v5353_v55 = vmul.f32 %v14247_v48, %v14070_v61  ;;  %v5354_v61 = vmul.f32 %v14258_v24, %v14082_v26 }
 0xc67   :  { %v14278_v18 = vadd.f32 %v5455_v59, %v5342_v44 }
 0xc68   :  { %11257 = vtanh.f32 %v14276_v63 }
 0xc69   :  { %11259 = vtanh.f32 %v14278_v18  ;;  %v5461_v8 = vpop.permute.xlu1 %5460 }
 0xc6a   :  { %v14286_v10 = vadd.f32 %v5461_v8, %v5345_v54  ;;  %v5459_v1 = vpop.permute.xlu0 %5458  ;;  %v5355_v54 = vmul.f32 %v14255_v40, %v14080_v15  ;;  %v5356_v15 = vmul.f32 %v14266_v4, %v14092_v14 }
 0xc6b   :  { %v14288_v2 = vadd.f32 %v5459_v1, %v5344_v32 }
 0xc6c   :  { %11261 = vtanh.f32 %v14286_v10 }
 0xc6d   :  { %11263 = vtanh.f32 %v14288_v2  ;;  %v5465_v12 = vpop.permute.xlu1 %5464 }
 0xc6e   :  { %v14296_v30 = vadd.f32 %v5465_v12, %v5347_v33  ;;  %v5463_v29 = vpop.permute.xlu0 %5462  ;;  %v5357_v33 = vmul.f32 %v14263_v60, %v14090_v50 }
 0xc6f   :  { %v14298_v25 = vadd.f32 %v5463_v29, %v5346_v17 }
 0xc70   :  { %11265 = vtanh.f32 %v14296_v30 }
 0xc71   :  { %11267 = vtanh.f32 %v14298_v25  ;;  %v5469_v42 = vpop.permute.xlu1 %5468 }
 0xc72   :  { %v11258_v45 = vpop.eup %11257  ;;  %v14306_v19 = vadd.f32 %v5469_v42, %v5349_v16  ;;  %v5467_v52 = vpop.permute.xlu0 %5466 }
 0xc73   :  { %v11260_v27 = vpop.eup %11259  ;;  %v14308_v3 = vadd.f32 %v5467_v52, %v5348_v20  ;;  %5552 = vrot.lane.b32.xlu1 %v11258_v45, %s11892_s0 }
 0xc74   :  { %11269 = vtanh.f32 %v14306_v19  ;;  %5550 = vrot.lane.b32.xlu0 %v11260_v27, %s11892_s0 }
 0xc75   :  { %11271 = vtanh.f32 %v14308_v3 }
 0xc76   :  { %v11262_v28 = vpop.eup %11261 }
 0xc77   :  { %v11264_v46 = vpop.eup %11263  ;;  %5556 = vrot.lane.b32.xlu1 %v11262_v28, %s11892_s0 }
 0xc78   :  { %5554 = vrot.lane.b32.xlu0 %v11264_v46, %s11892_s0 }
 0xc7a   :  { %v11266_v35 = vpop.eup %11265 }
 0xc7b   :  { %v11268_v21 = vpop.eup %11267  ;;  %5560 = vrot.lane.b32.xlu1 %v11266_v35, %s11892_s0 }
 0xc7c   :  { %5558 = vrot.lane.b32.xlu0 %v11268_v21, %s11892_s0 }
 0xc7e   :  { %v11270_v43 = vpop.eup %11269 }
 0xc7f   :  { %v11272_v7 = vpop.eup %11271  ;;  %5564 = vrot.lane.b32.xlu1 %v11270_v43, %s11892_s0 }
 0xc80   :  { %5562 = vrot.lane.b32.xlu0 %v11272_v7, %s11892_s0 }
 0xc87   :  { %v5473_v53 = vpop.permute.xlu1 %5472 }
 0xc88   :  { %v14324_v23 = vadd.f32 %v5473_v53, %v5351_v36  ;;  %v5471_v22 = vpop.permute.xlu0 %5470 }
 0xc89   :  { %v14326_v41 = vadd.f32 %v5471_v22, %v5350_v56 }
 0xc8a   :  { %11273 = vtanh.f32 %v14324_v23 }
 0xc8b   :  { %11275 = vtanh.f32 %v14326_v41  ;;  %v5477_v49 = vpop.permute.xlu1 %5476 }
 0xc8c   :  { %v14334_v44 = vadd.f32 %v5477_v49, %v5353_v55  ;;  %v5475_v59 = vpop.permute.xlu0 %5474 }
 0xc8d   :  { %v14336_v58 = vadd.f32 %v5475_v59, %v5352_v34 }
 0xc8e   :  { %11277 = vtanh.f32 %v14334_v44 }
 0xc8f   :  { %11279 = vtanh.f32 %v14336_v58  ;;  %v5481_v8 = vpop.permute.xlu1 %5480 }
 0xc90   :  { %v14344_v32 = vadd.f32 %v5481_v8, %v5355_v54  ;;  %v5479_v1 = vpop.permute.xlu0 %5478 }
 0xc91   :  { %v14346_v9 = vadd.f32 %v5479_v1, %v5354_v61 }
 0xc92   :  { %11281 = vtanh.f32 %v14344_v32 }
 0xc93   :  { %11283 = vtanh.f32 %v14346_v9  ;;  %v5485_v12 = vpop.permute.xlu1 %5484 }
 0xc94   :  { %v11274_v17 = vpop.eup %11273  ;;  %v14354_v29 = vadd.f32 %v5485_v12, %v5357_v33  ;;  %v5483_v26 = vpop.permute.xlu0 %5482 }
 0xc95   :  { %v11276_v16 = vpop.eup %11275  ;;  %v14356_v42 = vadd.f32 %v5483_v26, %v5356_v15  ;;  %5568 = vrot.lane.b32.xlu1 %v11274_v17, %s11892_s0 }
 0xc96   :  { %11285 = vtanh.f32 %v14354_v29  ;;  %5566 = vrot.lane.b32.xlu0 %v11276_v16, %s11892_s0 }
 0xc97   :  { %11287 = vtanh.f32 %v14356_v42 }
 0xc98   :  { %v11278_v50 = vpop.eup %11277 }
 0xc99   :  { %v11280_v20 = vpop.eup %11279  ;;  %5572 = vrot.lane.b32.xlu1 %v11278_v50, %s11892_s0 }
 0xc9a   :  { %5570 = vrot.lane.b32.xlu0 %v11280_v20, %s11892_s0 }
 0xc9c   :  { %v11282_v14 = vpop.eup %11281 }
 0xc9d   :  { %v11284_v45 = vpop.eup %11283  ;;  %5576 = vrot.lane.b32.xlu1 %v11282_v14, %s11892_s0 }
 0xc9e   :  { %5574 = vrot.lane.b32.xlu0 %v11284_v45, %s11892_s0 }
 0xca0   :  { %v11286_v52 = vpop.eup %11285 }
 0xca1   :  { %v11288_v27 = vpop.eup %11287  ;;  %5580 = vrot.lane.b32.xlu1 %v11286_v52, %s11892_s0 }
 0xca2   :  { %5578 = vrot.lane.b32.xlu0 %v11288_v27, %s11892_s0 }
 0xce5   :  { %v5553_v28 = vpop.permute.xlu1 %5552 }
 0xce6   :  { %v5599_v46 = vmul.f32 %v14200_v6, %v5553_v28  ;;  %v5551_v35 = vpop.permute.xlu0 %5550 }
 0xce7   :  { %v5598_v21 = vmul.f32 %v14202_v38, %v5551_v35 }
 0xce8   :  { %5648 = vrot.lane.b32.xlu1 %v5599_v46, %s11893_s24 }
 0xce9   :  { %v5557_v43 = vpop.permute.xlu1 %5556  ;;  %5646 = vrot.lane.b32.xlu0 %v5598_v21, %s11893_s24 }
 0xcea   :  { %v5601_v7 = vmul.f32 %v14208_v31, %v5557_v43  ;;  %v5555_v36 = vpop.permute.xlu0 %5554 }
 0xceb   :  { %v5600_v53 = vmul.f32 %v14212_v37, %v5555_v36 }
 0xcec   :  { %5652 = vrot.lane.b32.xlu1 %v5601_v7, %s11893_s24 }
 0xced   :  { %v5561_v56 = vpop.permute.xlu1 %5560  ;;  %5650 = vrot.lane.b32.xlu0 %v5600_v53, %s11893_s24 }
 0xcee   :  { %v5603_v6 = vmul.f32 %v14218_v0, %v5561_v56  ;;  %v5559_v22 = vpop.permute.xlu0 %5558 }
 0xcef   :  { %v5602_v38 = vmul.f32 %v14222_v62, %v5559_v22 }
 0xcf0   :  { %5656 = vrot.lane.b32.xlu1 %v5603_v6, %s11893_s24 }
 0xcf1   :  { %v5565_v55 = vpop.permute.xlu1 %5564  ;;  %5654 = vrot.lane.b32.xlu0 %v5602_v38, %s11893_s24 }
 0xcf2   :  { %v5605_v31 = vmul.f32 %v14228_v39, %v5565_v55  ;;  %v5563_v49 = vpop.permute.xlu0 %5562 }
 0xcf3   :  { %v5604_v37 = vmul.f32 %v14232_v47, %v5563_v49 }
 0xcf4   :  { %5660 = vrot.lane.b32.xlu1 %v5605_v31, %s11893_s24 }
 0xcf5   :  { %5658 = vrot.lane.b32.xlu0 %v5604_v37, %s11893_s24 }
 0xd07   :  { %v5569_v34 = vpop.permute.xlu1 %5568 }
 0xd08   :  { %v5607_v0 = vmul.f32 %v14240_v57, %v5569_v34  ;;  %v5567_v59 = vpop.permute.xlu0 %5566 }
 0xd09   :  { %v5606_v62 = vmul.f32 %v14242_v13, %v5567_v59 }
 0xd0a   :  { %5664 = vrot.lane.b32.xlu1 %v5607_v0, %s11893_s24 }
 0xd0b   :  { %v5573_v54 = vpop.permute.xlu1 %5572  ;;  %5662 = vrot.lane.b32.xlu0 %v5606_v62, %s11893_s24 }
 0xd0c   :  { %v5609_v39 = vmul.f32 %v14247_v48, %v5573_v54  ;;  %v5571_v8 = vpop.permute.xlu0 %5570 }
 0xd0d   :  { %v5608_v47 = vmul.f32 %v14250_v5, %v5571_v8 }
 0xd0e   :  { %5668 = vrot.lane.b32.xlu1 %v5609_v39, %s11893_s24 }
 0xd0f   :  { %v5577_v61 = vpop.permute.xlu1 %5576  ;;  %5666 = vrot.lane.b32.xlu0 %v5608_v47, %s11893_s24 }
 0xd10   :  { %v5611_v57 = vmul.f32 %v14255_v40, %v5577_v61  ;;  %v5575_v1 = vpop.permute.xlu0 %5574 }
 0xd11   :  { %v5610_v13 = vmul.f32 %v14258_v24, %v5575_v1 }
 0xd12   :  { %5672 = vrot.lane.b32.xlu1 %v5611_v57, %s11893_s24 }
 0xd13   :  { %v5581_v33 = vpop.permute.xlu1 %5580  ;;  %5670 = vrot.lane.b32.xlu0 %v5610_v13, %s11893_s24 }
 0xd14   :  { %v5613_v48 = vmul.f32 %v14263_v60, %v5581_v33  ;;  %v5579_v12 = vpop.permute.xlu0 %5578 }
 0xd15   :  { %v5612_v5 = vmul.f32 %v14266_v4, %v5579_v12 }
 0xd16   :  { %5676 = vrot.lane.b32.xlu1 %v5613_v48, %s11893_s24 }
 0xd17   :  { %5674 = vrot.lane.b32.xlu0 %v5612_v5, %s11893_s24 }
 0xd5a   :  { %v5649_v15 = vpop.permute.xlu1 %5648 }
 0xd5b   :  { %v5647_v17 = vpop.permute.xlu0 %5646 }
 0xd5c   :  { %10155 = vmatprep.mubr.msk.f32.mxu0 %vm3142_vm0, %v5647_v17 }
 0xd5d   :  { %10156 = vmatmul.mubr.msk.f32.vlgmr.msra.gmra.mrb[32].mxu0 %vm3142_vm0, %v5649_v15 }
 0xd5e   :  { %v5653_v40 = vpop.permute.xlu1 %5652  ;;  %10614 = vmatpush3.bf16.msra.mxu0 %v13114_v11 }
 0xd5f   :  { %v5651_v24 = vpop.permute.xlu0 %5650  ;;  %10616 = vmatprep.subr.bf16.mxu0 %v13183_v51 }
 0xd60   :  { %10158 = vmatprep.mubr.msk.f32.mxu0 %vm3142_vm0, %v5651_v24 }
 0xd61   :  { %10159 = vmatmul.mubr.msk.f32.gmra.mrb[34].mxu0 %vm3142_vm0, %v5653_v40 }
 0xd62   :  { %v5657_v60 = vpop.permute.xlu1 %5656  ;;  %10618 = vmatpush3.bf16.msra.mxu0 %v13183_v51 }
 0xd63   :  { %v5655_v4 = vpop.permute.xlu0 %5654 }
 0xd64   :  { %10161 = vmatprep.mubr.msk.f32.mxu0 %vm3142_vm0, %v5655_v4 }
 0xd65   :  { %10162 = vmatmul.mubr.msk.f32.gmra.mrb[36].mxu0 %vm3142_vm0, %v5657_v60 }
 0xd66   :  { %v5661_v16 = vpop.permute.xlu1 %5660 }
 0xd67   :  { %v5659_v26 = vpop.permute.xlu0 %5658 }
 0xd68   :  { %10164 = vmatprep.mubr.msk.f32.mxu0 %vm3142_vm0, %v5659_v26 }
 0xd69   :  { %10165 = vmatmul.mubr.msk.f32.gmra.mrb[38].mxu0 %vm3142_vm0, %v5661_v16 }
 0xd7c   :  { %v5665_v50 = vpop.permute.xlu1 %5664 }
 0xd7d   :  { %v5663_v20 = vpop.permute.xlu0 %5662 }
 0xd7e   :  { %10167 = vmatprep.mubr.msk.f32.mxu0 %vm3142_vm0, %v5663_v20 }
 0xd7f   :  { %10168 = vmatmul.mubr.msk.f32.gmra.mrb[40].mxu0 %vm3142_vm0, %v5665_v50 }
 0xd80   :  { %v5669_v14 = vpop.permute.xlu1 %5668 }
 0xd81   :  { %v5667_v45 = vpop.permute.xlu0 %5666 }
 0xd82   :  { %10170 = vmatprep.mubr.msk.f32.mxu0 %vm3142_vm0, %v5667_v45 }
 0xd83   :  { %10171 = vmatmul.mubr.msk.f32.gmra.mrb[42].mxu0 %vm3142_vm0, %v5669_v14 }
 0xd84   :  { %v5673_v52 = vpop.permute.xlu1 %5672 }
 0xd85   :  { %v5671_v27 = vpop.permute.xlu0 %5670 }
 0xd86   :  { %10173 = vmatprep.mubr.msk.f32.mxu0 %vm3142_vm0, %v5671_v27 }
 0xd87   :  { %10174 = vmatmul.mubr.msk.f32.gmra.mrb[44].mxu0 %vm3142_vm0, %v5673_v52 }
 0xd88   :  { %v5677_v46 = vpop.permute.xlu1 %5676 }
 0xd89   :  { %v5675_v28 = vpop.permute.xlu0 %5674 }
 0xd8a   :  { %10176 = vmatprep.mubr.msk.f32.mxu0 %vm3142_vm0, %v5675_v28 }
 0xd8b   :  { %10177 = vmatmul.mubr.msk.f32.gmra.mrb[46].mxu0 %vm3142_vm0, %v5677_v46 }
 0xe30   :  { %v14419_v35 = vpop.f32.mrb[32].mxu0 }
 0xe31   :  { %11289 = vtanh.f32 %v14419_v35  ;;  %v5776_v21 = vpop.f32.mrb[33].mxu0  ;;  %v9007_v40 = vmul.f32 -1.442695, %v14419_v35 }
 0xe32   :  { %11291 = vtanh.f32 %v5776_v21  ;;  %v9006_v24 = vmul.f32 -1.442695, %v5776_v21 }
 0xe34   :  { %v10160_v43 = vpop.f32.mrb[34].mxu0 }
 0xe35   :  { %11293 = vtanh.f32 %v10160_v43  ;;  %v5786_v7 = vpop.f32.mrb[35].mxu0  ;;  %v9009_v60 = vmul.f32 -1.442695, %v10160_v43 }
 0xe36   :  { %11295 = vtanh.f32 %v5786_v7  ;;  %v9008_v4 = vmul.f32 -1.442695, %v5786_v7 }
 0xe38   :  { %v10163_v36 = vpop.f32.mrb[36].mxu0 }
 0xe39   :  { %11297 = vtanh.f32 %v10163_v36  ;;  %v5796_v53 = vpop.f32.mrb[37].mxu0  ;;  %v9011_v26 = vmul.f32 -1.442695, %v10163_v36 }
 0xe3a   :  { %11299 = vtanh.f32 %v5796_v53  ;;  %v9010_v16 = vmul.f32 -1.442695, %v5796_v53 }
 0xe3b   :  { %v11290_v56 = vpop.eup %11289 }
 0xe3c   :  { %v11292_v6 = vpop.eup %11291  ;;  %6017 = vrot.lane.b32.xlu1 %v11290_v56, %s11892_s0  ;;  %v10166_v22 = vpop.f32.mrb[38].mxu0 }
 0xe3d   :  { %11301 = vtanh.f32 %v10166_v22  ;;  %6015 = vrot.lane.b32.xlu0 %v11292_v6, %s11892_s0  ;;  %v5806_v38 = vpop.f32.mrb[39].mxu0  ;;  %v9013_v50 = vmul.f32 -1.442695, %v10166_v22 }
 0xe3e   :  { %11303 = vtanh.f32 %v5806_v38  ;;  %v9012_v20 = vmul.f32 -1.442695, %v5806_v38 }
 0xe3f   :  { %v11294_v55 = vpop.eup %11293 }
 0xe40   :  { %v11296_v31 = vpop.eup %11295  ;;  %6021 = vrot.lane.b32.xlu1 %v11294_v55, %s11892_s0 }
 0xe41   :  { %6019 = vrot.lane.b32.xlu0 %v11296_v31, %s11892_s0 }
 0xe43   :  { %v11298_v49 = vpop.eup %11297 }
 0xe44   :  { %v11300_v37 = vpop.eup %11299  ;;  %6025 = vrot.lane.b32.xlu1 %v11298_v49, %s11892_s0 }
 0xe45   :  { %6023 = vrot.lane.b32.xlu0 %v11300_v37, %s11892_s0 }
 0xe47   :  { %v11302_v34 = vpop.eup %11301 }
 0xe48   :  { %v11304_v0 = vpop.eup %11303  ;;  %6029 = vrot.lane.b32.xlu1 %v11302_v34, %s11892_s0 }
 0xe49   :  { %6027 = vrot.lane.b32.xlu0 %v11304_v0, %s11892_s0 }
 0xe52   :  { %v14430_v59 = vpop.f32.mrb[40].mxu0 }
 0xe53   :  { %11305 = vtanh.f32 %v14430_v59  ;;  %v14433_v62 = vpop.f32.mrb[41].mxu0 }
 0xe54   :  { %11307 = vtanh.f32 %v14433_v62 }
 0xe56   :  { %v14436_v54 = vpop.f32.mrb[42].mxu0 }
 0xe57   :  { %11309 = vtanh.f32 %v14436_v54  ;;  %v14439_v39 = vpop.f32.mrb[43].mxu0 }
 0xe58   :  { %11311 = vtanh.f32 %v14439_v39 }
 0xe5a   :  { %v14442_v8 = vpop.f32.mrb[44].mxu0 }
 0xe5b   :  { %11313 = vtanh.f32 %v14442_v8  ;;  %v14445_v47 = vpop.f32.mrb[45].mxu0 }
 0xe5c   :  { %11315 = vtanh.f32 %v14445_v47 }
 0xe5d   :  { %v11306_v61 = vpop.eup %11305 }
 0xe5e   :  { %v11308_v57 = vpop.eup %11307  ;;  %6033 = vrot.lane.b32.xlu1 %v11306_v61, %s11892_s0  ;;  %v14449_v1 = vpop.f32.mrb[46].mxu0  ;;  %v9015_v61 = vmul.f32 -1.442695, %v14430_v59 }
 0xe5f   :  { %11317 = vtanh.f32 %v14449_v1  ;;  %6031 = vrot.lane.b32.xlu0 %v11308_v57, %s11892_s0  ;;  %v14453_v13 = vpop.f32.mrb[47].mxu0 }
 0xe60   :  { %11319 = vtanh.f32 %v14453_v13 }
 0xe61   :  { %v11310_v33 = vpop.eup %11309  ;;  %11321 = vpow2.f32 %v9007_v40  ;;  %v9017_v40 = vmul.f32 -1.442695, %v14436_v54  ;;  %v9019_v54 = vmul.f32 -1.442695, %v14442_v8  ;;  %v9021_v8 = vmul.f32 -1.442695, %v14449_v1 }
 0xe62   :  { %v11312_v48 = vpop.eup %11311  ;;  %6037 = vrot.lane.b32.xlu1 %v11310_v33, %s11892_s0  ;;  %11323 = vpow2.f32 %v9006_v24  ;;  %v9014_v33 = vmul.f32 -1.442695, %v14433_v62  ;;  %v9016_v62 = vmul.f32 -1.442695, %v14439_v39  ;;  %v9018_v39 = vmul.f32 -1.442695, %v14445_v47 }
 0xe63   :  { %6035 = vrot.lane.b32.xlu0 %v11312_v48, %s11892_s0  ;;  %11325 = vpow2.f32 %v9009_v60 }
 0xe64   :  { %11327 = vpow2.f32 %v9008_v4 }
 0xe65   :  { %v11314_v12 = vpop.eup %11313  ;;  %11329 = vpow2.f32 %v9011_v26 }
 0xe66   :  { %v11316_v5 = vpop.eup %11315  ;;  %6041 = vrot.lane.b32.xlu1 %v11314_v12, %s11892_s0  ;;  %11331 = vpow2.f32 %v9010_v16 }
 0xe67   :  { %6039 = vrot.lane.b32.xlu0 %v11316_v5, %s11892_s0  ;;  %11333 = vpow2.f32 %v9013_v50 }
 0xe68   :  { %11335 = vpow2.f32 %v9012_v20 }
 0xe69   :  { %v11318_v15 = vpop.eup %11317 }
 0xe6a   :  { %v11320_v17 = vpop.eup %11319  ;;  %6045 = vrot.lane.b32.xlu1 %v11318_v15, %s11892_s0 }
 0xe6b   :  { %6043 = vrot.lane.b32.xlu0 %v11320_v17, %s11892_s0  ;;  %v11322_v14 = vpop.eup %11321 }
 0xe6c   :  { %v11324_v45 = vpop.eup %11323  ;;  %v5920_v52 = vadd.f32 1.0, %v11322_v14 }
 0xe6d   :  { %v11326_v27 = vpop.eup %11325  ;;  %v5919_v28 = vadd.f32 1.0, %v11324_v45 }
 0xe6e   :  { %v11328_v46 = vpop.eup %11327  ;;  %11337 = vrcp.f32 %v5920_v52  ;;  %v5922_v35 = vadd.f32 1.0, %v11326_v27 }
 0xe6f   :  { %v11330_v21 = vpop.eup %11329  ;;  %11339 = vrcp.f32 %v5919_v28  ;;  %v5921_v43 = vadd.f32 1.0, %v11328_v46  ;;  %v9020_v28 = vmul.f32 -1.442695, %v14453_v13 }
 0xe70   :  { %v11332_v7 = vpop.eup %11331  ;;  %11341 = vrcp.f32 %v5922_v35  ;;  %v5924_v36 = vadd.f32 1.0, %v11330_v21 }
 0xe71   :  { %v11334_v53 = vpop.eup %11333  ;;  %11343 = vrcp.f32 %v5921_v43  ;;  %v5923_v56 = vadd.f32 1.0, %v11332_v7 }
 0xe72   :  { %v11336_v6 = vpop.eup %11335  ;;  %11345 = vrcp.f32 %v5924_v36  ;;  %v5926_v22 = vadd.f32 1.0, %v11334_v53 }
 0xe73   :  { %11347 = vrcp.f32 %v5923_v56  ;;  %v5925_v38 = vadd.f32 1.0, %v11336_v6 }
 0xe74   :  { %11349 = vrcp.f32 %v5926_v22 }
 0xe75   :  { %11351 = vrcp.f32 %v5925_v38 }
 0xe76   :  { %11353 = vpow2.f32 %v9015_v61 }
 0xe77   :  { %11355 = vpow2.f32 %v9014_v33 }
 0xe78   :  { %v14463_v55 = vpop.eup %11337  ;;  %11357 = vpow2.f32 %v9017_v40 }
 0xe79   :  { %v14465_v49 = vpop.eup %11339  ;;  %11359 = vpow2.f32 %v9016_v62 }
 0xe7a   :  { %v14471_v57 = vpop.eup %11341  ;;  %11361 = vpow2.f32 %v9019_v54 }
 0xe7b   :  { %v14475_v12 = vpop.eup %11343  ;;  %11363 = vpow2.f32 %v9018_v39 }
 0xe7c   :  { %v14481_v59 = vpop.eup %11345  ;;  %11365 = vpow2.f32 %v9021_v8 }
 0xe7d   :  { %v14485_v60 = vpop.eup %11347  ;;  %11367 = vpow2.f32 %v9020_v28 }
 0xe7e   :  { %v14491_v50 = vpop.eup %11349 }
 0xe7f   :  { %v14495_v14 = vpop.eup %11351 }
 0xe80   :  { %v11354_v47 = vpop.eup %11353 }
 0xe81   :  { %v11356_v46 = vpop.eup %11355  ;;  %v5928_v35 = vadd.f32 1.0, %v11354_v47 }
 0xe82   :  { %v11358_v21 = vpop.eup %11357  ;;  %v5927_v43 = vadd.f32 1.0, %v11356_v46 }
 0xe83   :  { %v11360_v7 = vpop.eup %11359  ;;  %11369 = vrcp.f32 %v5928_v35  ;;  %v5930_v36 = vadd.f32 1.0, %v11358_v21  ;;  %v5984_v35 = vmul.f32 %v14463_v55, %v14276_v63  ;;  %v5985_v63 = vmul.f32 %v14475_v12, %v14288_v2 }
 0xe84   :  { %v11362_v53 = vpop.eup %11361  ;;  %11371 = vrcp.f32 %v5927_v43  ;;  %v5929_v1 = vadd.f32 1.0, %v11360_v7  ;;  %v5983_v43 = vmul.f32 %v14465_v49, %v14278_v18 }
 0xe85   :  { %v11364_v56 = vpop.eup %11363  ;;  %11373 = vrcp.f32 %v5930_v36  ;;  %v5932_v6 = vadd.f32 1.0, %v11362_v53 }
 0xe86   :  { %v11366_v22 = vpop.eup %11365  ;;  %11375 = vrcp.f32 %v5929_v1  ;;  %v5931_v13 = vadd.f32 1.0, %v11364_v56  ;;  %v5986_v1 = vmul.f32 %v14471_v57, %v14286_v10  ;;  %v5987_v10 = vmul.f32 %v14485_v60, %v14298_v25 }
 0xe87   :  { %v11368_v38 = vpop.eup %11367  ;;  %11377 = vrcp.f32 %v5932_v6 }
 0xe88   :  { %11379 = vrcp.f32 %v5931_v13  ;;  %v5988_v13 = vmul.f32 %v14481_v59, %v14296_v30  ;;  %v5989_v30 = vmul.f32 %v14495_v14, %v14308_v3 }
 0xeae   :  { %v6018_v31 = vpop.permute.xlu1 %6017 }
 0xeaf   :  { %v6064_v37 = vmul.f32 %v14463_v55, %v6018_v31  ;;  %v6016_v34 = vpop.permute.xlu0 %6015  ;;  %v5934_v31 = vadd.f32 1.0, %v11366_v22 }
 0xeb0   :  { %v6063_v0 = vmul.f32 %v14465_v49, %v6016_v34  ;;  %v14503_v34 = vpop.eup %11369 }
 0xeb1   :  { %6097 = vrot.lane.b32.xlu1 %v6064_v37, %s11892_s0  ;;  %v5933_v37 = vadd.f32 1.0, %v11368_v38  ;;  %v14505_v61 = vpop.eup %11371  ;;  %11381 = vrcp.f32 %v5934_v31 }
 0xeb2   :  { %v6022_v48 = vpop.permute.xlu1 %6021  ;;  %6095 = vrot.lane.b32.xlu0 %v6063_v0, %s11892_s0 }
 0xeb3   :  { %v6066_v5 = vmul.f32 %v14471_v57, %v6022_v48  ;;  %v6020_v15 = vpop.permute.xlu0 %6019  ;;  %11383 = vrcp.f32 %v5933_v37 }
 0xeb4   :  { %v6065_v17 = vmul.f32 %v14475_v12, %v6020_v15  ;;  %v14510_v15 = vpop.eup %11373 }
 0xeb5   :  { %6101 = vrot.lane.b32.xlu1 %v6066_v5, %s11892_s0  ;;  %v14513_v40 = vpop.eup %11375 }
 0xeb6   :  { %v6026_v24 = vpop.permute.xlu1 %6025  ;;  %6099 = vrot.lane.b32.xlu0 %v6065_v17, %s11892_s0 }
 0xeb7   :  { %v6068_v4 = vmul.f32 %v14481_v59, %v6026_v24  ;;  %v6024_v26 = vpop.permute.xlu0 %6023 }
 0xeb8   :  { %v6067_v16 = vmul.f32 %v14485_v60, %v6024_v26  ;;  %v14518_v26 = vpop.eup %11377 }
 0xeb9   :  { %6105 = vrot.lane.b32.xlu1 %v6068_v4, %s11892_s0  ;;  %v14521_v54 = vpop.eup %11379 }
 0xeba   :  { %v6030_v20 = vpop.permute.xlu1 %6029  ;;  %6103 = vrot.lane.b32.xlu0 %v6067_v16, %s11892_s0 }
 0xebb   :  { %v6070_v45 = vmul.f32 %v14491_v50, %v6030_v20  ;;  %v6028_v52 = vpop.permute.xlu0 %6027 }
 0xebc   :  { %v6069_v27 = vmul.f32 %v14495_v14, %v6028_v52  ;;  %v14526_v52 = vpop.eup %11381 }
 0xebd   :  { %6109 = vrot.lane.b32.xlu1 %v6070_v45, %s11892_s0  ;;  %v14529_v8 = vpop.eup %11383 }
 0xebe   :  { %6107 = vrot.lane.b32.xlu0 %v6069_v27, %s11892_s0 }
 0xed0   :  { %v6034_v0 = vpop.permute.xlu1 %6033 }
 0xed1   :  { %v6072_v33 = vmul.f32 %v14503_v34, %v6034_v0  ;;  %v6032_v48 = vpop.permute.xlu0 %6031  ;;  %v5990_v0 = vmul.f32 %v14491_v50, %v14306_v19 }
 0xed2   :  { %v6071_v5 = vmul.f32 %v14505_v61, %v6032_v48 }
 0xed3   :  { %6113 = vrot.lane.b32.xlu1 %v6072_v33, %s11892_s0 }
 0xed4   :  { %v6038_v17 = vpop.permute.xlu1 %6037  ;;  %6111 = vrot.lane.b32.xlu0 %v6071_v5, %s11892_s0 }
 0xed5   :  { %v6074_v62 = vmul.f32 %v14510_v15, %v6038_v17  ;;  %v6036_v24 = vpop.permute.xlu0 %6035 }
 0xed6   :  { %v6073_v4 = vmul.f32 %v14513_v40, %v6036_v24 }
 0xed7   :  { %6117 = vrot.lane.b32.xlu1 %v6074_v62, %s11892_s0 }
 0xed8   :  { %v6042_v16 = vpop.permute.xlu1 %6041  ;;  %6115 = vrot.lane.b32.xlu0 %v6073_v4, %s11892_s0 }
 0xed9   :  { %v6076_v39 = vmul.f32 %v14518_v26, %v6042_v16  ;;  %v6040_v20 = vpop.permute.xlu0 %6039 }
 0xeda   :  { %v6075_v45 = vmul.f32 %v14521_v54, %v6040_v20  ;;  %v5992_v20 = vmul.f32 %v14503_v34, %v14324_v23  ;;  %v5993_v23 = vmul.f32 %v14513_v40, %v14336_v58 }
 0xedb   :  { %6121 = vrot.lane.b32.xlu1 %v6076_v39, %s11892_s0 }
 0xedc   :  { %v6046_v27 = vpop.permute.xlu1 %6045  ;;  %6119 = vrot.lane.b32.xlu0 %v6075_v45, %s11892_s0 }
 0xedd   :  { %v6078_v28 = vmul.f32 %v14526_v52, %v6046_v27  ;;  %v6044_v47 = vpop.permute.xlu0 %6043  ;;  %v5991_v27 = vmul.f32 %v14505_v61, %v14326_v41 }
 0xede   :  { %v6077_v46 = vmul.f32 %v14529_v8, %v6044_v47 }
 0xedf   :  { %6125 = vrot.lane.b32.xlu1 %v6078_v28, %s11892_s0 }
 0xee0   :  { %6123 = vrot.lane.b32.xlu0 %v6077_v46, %s11892_s0 }
 0xf23   :  { %v6098_v21 = vpop.permute.xlu1 %6097 }
 0xf24   :  { %v14539_v7 = vadd.f32 %v6098_v21, %v5984_v35  ;;  %v6096_v36 = vpop.permute.xlu0 %6095  ;;  %v5994_v35 = vmul.f32 %v14510_v15, %v14334_v44  ;;  %v5995_v44 = vmul.f32 %v14521_v54, %v14346_v9 }
 0xf25   :  { %v14541_v53 = vadd.f32 %v6096_v36, %v5983_v43 }
 0xf26   :  { %11385 = vtanh.f32 %v14539_v7 }
 0xf27   :  { %11387 = vtanh.f32 %v14541_v53  ;;  %v6102_v56 = vpop.permute.xlu1 %6101 }
 0xf28   :  { %v14549_v6 = vadd.f32 %v6102_v56, %v5986_v1  ;;  %v6100_v22 = vpop.permute.xlu0 %6099  ;;  %v5996_v1 = vmul.f32 %v14518_v26, %v14344_v32  ;;  %v5997_v32 = vmul.f32 %v14529_v8, %v14356_v42 }
 0xf29   :  { %v14551_v18 = vadd.f32 %v6100_v22, %v5985_v63 }
 0xf2a   :  { %11389 = vtanh.f32 %v14549_v6 }
 0xf2b   :  { %11391 = vtanh.f32 %v14551_v18  ;;  %v6106_v38 = vpop.permute.xlu1 %6105 }
 0xf2c   :  { %v14559_v31 = vadd.f32 %v6106_v38, %v5988_v13  ;;  %v6104_v37 = vpop.permute.xlu0 %6103  ;;  %v5998_v13 = vmul.f32 %v14526_v52, %v14354_v29 }
 0xf2d   :  { %v14561_v2 = vadd.f32 %v6104_v37, %v5987_v10 }
 0xf2e   :  { %11393 = vtanh.f32 %v14559_v31 }
 0xf2f   :  { %11395 = vtanh.f32 %v14561_v2  ;;  %v6110_v33 = vpop.permute.xlu1 %6109 }
 0xf30   :  { %v11386_v48 = vpop.eup %11385  ;;  %v14569_v5 = vadd.f32 %v6110_v33, %v5990_v0  ;;  %v6108_v25 = vpop.permute.xlu0 %6107 }
 0xf31   :  { %v11388_v17 = vpop.eup %11387  ;;  %v14571_v62 = vadd.f32 %v6108_v25, %v5989_v30  ;;  %6193 = vrot.lane.b32.xlu1 %v11386_v48, %s11892_s0 }
 0xf32   :  { %11397 = vtanh.f32 %v14569_v5  ;;  %6191 = vrot.lane.b32.xlu0 %v11388_v17, %s11892_s0 }
 0xf33   :  { %11399 = vtanh.f32 %v14571_v62 }
 0xf34   :  { %v11390_v19 = vpop.eup %11389 }
 0xf35   :  { %v11392_v24 = vpop.eup %11391  ;;  %6197 = vrot.lane.b32.xlu1 %v11390_v19, %s11892_s0 }
 0xf36   :  { %6195 = vrot.lane.b32.xlu0 %v11392_v24, %s11892_s0 }
 0xf38   :  { %v11394_v3 = vpop.eup %11393 }
 0xf39   :  { %v11396_v4 = vpop.eup %11395  ;;  %6201 = vrot.lane.b32.xlu1 %v11394_v3, %s11892_s0 }
 0xf3a   :  { %6199 = vrot.lane.b32.xlu0 %v11396_v4, %s11892_s0 }
 0xf3c   :  { %v11398_v16 = vpop.eup %11397 }
 0xf3d   :  { %v11400_v39 = vpop.eup %11399  ;;  %6205 = vrot.lane.b32.xlu1 %v11398_v16, %s11892_s0 }
 0xf3e   :  { %6203 = vrot.lane.b32.xlu0 %v11400_v39, %s11892_s0 }
 0xf45   :  { %v6114_v45 = vpop.permute.xlu1 %6113 }
 0xf46   :  { %v14587_v28 = vadd.f32 %v6114_v45, %v5992_v20  ;;  %v6112_v47 = vpop.permute.xlu0 %6111 }
 0xf47   :  { %v14589_v46 = vadd.f32 %v6112_v47, %v5991_v27 }
 0xf48   :  { %11401 = vtanh.f32 %v14587_v28 }
 0xf49   :  { %11403 = vtanh.f32 %v14589_v46  ;;  %v6118_v21 = vpop.permute.xlu1 %6117 }
 0xf4a   :  { %v14597_v43 = vadd.f32 %v6118_v21, %v5994_v35  ;;  %v6116_v36 = vpop.permute.xlu0 %6115 }
 0xf4b   :  { %v14599_v41 = vadd.f32 %v6116_v36, %v5993_v23 }
 0xf4c   :  { %11405 = vtanh.f32 %v14597_v43 }
 0xf4d   :  { %11407 = vtanh.f32 %v14599_v41  ;;  %v6122_v56 = vpop.permute.xlu1 %6121 }
 0xf4e   :  { %v14607_v63 = vadd.f32 %v6122_v56, %v5996_v1  ;;  %v6120_v22 = vpop.permute.xlu0 %6119 }
 0xf4f   :  { %v14609_v58 = vadd.f32 %v6120_v22, %v5995_v44 }
 0xf50   :  { %11409 = vtanh.f32 %v14607_v63 }
 0xf51   :  { %11411 = vtanh.f32 %v14609_v58  ;;  %v6126_v38 = vpop.permute.xlu1 %6125 }
 0xf52   :  { %v11402_v10 = vpop.eup %11401  ;;  %v14617_v37 = vadd.f32 %v6126_v38, %v5998_v13  ;;  %v6124_v9 = vpop.permute.xlu0 %6123 }
 0xf53   :  { %v11404_v0 = vpop.eup %11403  ;;  %v14619_v33 = vadd.f32 %v6124_v9, %v5997_v32  ;;  %6209 = vrot.lane.b32.xlu1 %v11402_v10, %s11892_s0 }
 0xf54   :  { %11413 = vtanh.f32 %v14617_v37  ;;  %6207 = vrot.lane.b32.xlu0 %v11404_v0, %s11892_s0 }
 0xf55   :  { %11415 = vtanh.f32 %v14619_v33 }
 0xf56   :  { %v11406_v29 = vpop.eup %11405 }
 0xf57   :  { %v11408_v30 = vpop.eup %11407  ;;  %6213 = vrot.lane.b32.xlu1 %v11406_v29, %s11892_s0 }
 0xf58   :  { %6211 = vrot.lane.b32.xlu0 %v11408_v30, %s11892_s0 }
 0xf5a   :  { %v11410_v42 = vpop.eup %11409 }
 0xf5b   :  { %v11412_v48 = vpop.eup %11411  ;;  %6217 = vrot.lane.b32.xlu1 %v11410_v42, %s11892_s0 }
 0xf5c   :  { %6215 = vrot.lane.b32.xlu0 %v11412_v48, %s11892_s0 }
 0xf5e   :  { %v11414_v25 = vpop.eup %11413 }
 0xf5f   :  { %v11416_v17 = vpop.eup %11415  ;;  %6221 = vrot.lane.b32.xlu1 %v11414_v25, %s11892_s0 }
 0xf60   :  { %6219 = vrot.lane.b32.xlu0 %v11416_v17, %s11892_s0 }
 0xfa3   :  { %v6194_v19 = vpop.permute.xlu1 %6193 }
 0xfa4   :  { %v6240_v24 = vmul.f32 %v14463_v55, %v6194_v19  ;;  %v6192_v3 = vpop.permute.xlu0 %6191 }
 0xfa5   :  { %v6239_v4 = vmul.f32 %v14465_v49, %v6192_v3 }
 0xfa6   :  { %6289 = vrot.lane.b32.xlu1 %v6240_v24, %s11893_s24 }
 0xfa7   :  { %v6198_v16 = vpop.permute.xlu1 %6197  ;;  %6287 = vrot.lane.b32.xlu0 %v6239_v4, %s11893_s24 }
 0xfa8   :  { %v6242_v39 = vmul.f32 %v14471_v57, %v6198_v16  ;;  %v6196_v20 = vpop.permute.xlu0 %6195 }
 0xfa9   :  { %v6241_v45 = vmul.f32 %v14475_v12, %v6196_v20 }
 0xfaa   :  { %6293 = vrot.lane.b32.xlu1 %v6242_v39, %s11893_s24 }
 0xfab   :  { %v6202_v27 = vpop.permute.xlu1 %6201  ;;  %6291 = vrot.lane.b32.xlu0 %v6241_v45, %s11893_s24 }
 0xfac   :  { %v6244_v55 = vmul.f32 %v14481_v59, %v6202_v27  ;;  %v6200_v47 = vpop.permute.xlu0 %6199 }
 0xfad   :  { %v6243_v49 = vmul.f32 %v14485_v60, %v6200_v47 }
 0xfae   :  { %6297 = vrot.lane.b32.xlu1 %v6244_v55, %s11893_s24 }
 0xfaf   :  { %v6206_v35 = vpop.permute.xlu1 %6205  ;;  %6295 = vrot.lane.b32.xlu0 %v6243_v49, %s11893_s24 }
 0xfb0   :  { %v6246_v57 = vmul.f32 %v14491_v50, %v6206_v35  ;;  %v6204_v21 = vpop.permute.xlu0 %6203 }
 0xfb1   :  { %v6245_v12 = vmul.f32 %v14495_v14, %v6204_v21 }
 0xfb2   :  { %6301 = vrot.lane.b32.xlu1 %v6246_v57, %s11893_s24 }
 0xfb3   :  { %6299 = vrot.lane.b32.xlu0 %v6245_v12, %s11893_s24 }
 0xfc5   :  { %v6210_v23 = vpop.permute.xlu1 %6209 }
 0xfc6   :  { %v6248_v59 = vmul.f32 %v14503_v34, %v6210_v23  ;;  %v6208_v36 = vpop.permute.xlu0 %6207 }
 0xfc7   :  { %v6247_v60 = vmul.f32 %v14505_v61, %v6208_v36 }
 0xfc8   :  { %6305 = vrot.lane.b32.xlu1 %v6248_v59, %s11893_s24 }
 0xfc9   :  { %v6214_v1 = vpop.permute.xlu1 %6213  ;;  %6303 = vrot.lane.b32.xlu0 %v6247_v60, %s11893_s24 }
 0xfca   :  { %v6250_v50 = vmul.f32 %v14510_v15, %v6214_v1  ;;  %v6212_v56 = vpop.permute.xlu0 %6211 }
 0xfcb   :  { %v6249_v14 = vmul.f32 %v14513_v40, %v6212_v56 }
 0xfcc   :  { %6309 = vrot.lane.b32.xlu1 %v6250_v50, %s11893_s24 }
 0xfcd   :  { %v6218_v44 = vpop.permute.xlu1 %6217  ;;  %6307 = vrot.lane.b32.xlu0 %v6249_v14, %s11893_s24 }
 0xfce   :  { %v6252_v34 = vmul.f32 %v14518_v26, %v6218_v44  ;;  %v6216_v22 = vpop.permute.xlu0 %6215 }
 0xfcf   :  { %v6251_v61 = vmul.f32 %v14521_v54, %v6216_v22 }
 0xfd0   :  { %6313 = vrot.lane.b32.xlu1 %v6252_v34, %s11893_s24 }
 0xfd1   :  { %v6222_v13 = vpop.permute.xlu1 %6221  ;;  %6311 = vrot.lane.b32.xlu0 %v6251_v61, %s11893_s24 }
 0xfd2   :  { %v6254_v15 = vmul.f32 %v14526_v52, %v6222_v13  ;;  %v6220_v38 = vpop.permute.xlu0 %6219 }
 0xfd3   :  { %v6253_v40 = vmul.f32 %v14529_v8, %v6220_v38 }
 0xfd4   :  { %6317 = vrot.lane.b32.xlu1 %v6254_v15, %s11893_s24 }
 0xfd5   :  { %6315 = vrot.lane.b32.xlu0 %v6253_v40, %s11893_s24 }
0x1018   :  { %v6290_v32 = vpop.permute.xlu1 %6289 }
0x1019   :  { %v6288_v10 = vpop.permute.xlu0 %6287 }
0x101a   :  { %10187 = vmatprep.mubr.msk.f32.mxu1 %vm3142_vm0, %v6288_v10 }
0x101b   :  { %10188 = vmatmul.mubr.msk.f32.vlgmr.msra.gmra.mrb[32].mxu1 %vm3142_vm0, %v6290_v32 }
0x101c   :  { %v6294_v26 = vpop.permute.xlu1 %6293  ;;  %10622 = vmatpush3.bf16.msra.mxu1 %v13114_v11 }
0x101d   :  { %v6292_v54 = vpop.permute.xlu0 %6291  ;;  %10624 = vmatprep.subr.bf16.mxu1 %v13183_v51 }
0x101e   :  { %10190 = vmatprep.mubr.msk.f32.mxu1 %vm3142_vm0, %v6292_v54 }
0x101f   :  { %10191 = vmatmul.mubr.msk.f32.gmra.mrb[34].mxu1 %vm3142_vm0, %v6294_v26 }
0x1020   :  { %v6298_v52 = vpop.permute.xlu1 %6297  ;;  %10626 = vmatpush3.bf16.msra.mxu1 %v13183_v51 }
0x1021   :  { %v6296_v8 = vpop.permute.xlu0 %6295 }
0x1022   :  { %10193 = vmatprep.mubr.msk.f32.mxu1 %vm3142_vm0, %v6296_v8 }
0x1023   :  { %10194 = vmatmul.mubr.msk.f32.gmra.mrb[36].mxu1 %vm3142_vm0, %v6298_v52 }
0x1024   :  { %v6302_v0 = vpop.permute.xlu1 %6301 }
0x1025   :  { %v6300_v9 = vpop.permute.xlu0 %6299 }
0x1026   :  { %10196 = vmatprep.mubr.msk.f32.mxu1 %vm3142_vm0, %v6300_v9 }
0x1027   :  { %10197 = vmatmul.mubr.msk.f32.gmra.mrb[38].mxu1 %vm3142_vm0, %v6302_v0 }
0x103a   :  { %v6306_v11 = vpop.permute.xlu1 %6305 }
0x103b   :  { %v6304_v29 = vpop.permute.xlu0 %6303 }
0x103c   :  { %10199 = vmatprep.mubr.msk.f32.mxu1 %vm3142_vm0, %v6304_v29 }
0x103d   :  { %10200 = vmatmul.mubr.msk.f32.gmra.mrb[40].mxu1 %vm3142_vm0, %v6306_v11 }
0x103e   :  { %v6310_v30 = vpop.permute.xlu1 %6309 }
0x103f   :  { %v6308_v42 = vpop.permute.xlu0 %6307 }
0x1040   :  { %10202 = vmatprep.mubr.msk.f32.mxu1 %vm3142_vm0, %v6308_v42 }
0x1041   :  { %10203 = vmatmul.mubr.msk.f32.gmra.mrb[42].mxu1 %vm3142_vm0, %v6310_v30 }
0x1042   :  { %v6314_v51 = vpop.permute.xlu1 %6313 }
0x1043   :  { %v6312_v48 = vpop.permute.xlu0 %6311 }
0x1044   :  { %10205 = vmatprep.mubr.msk.f32.mxu1 %vm3142_vm0, %v6312_v48 }
0x1045   :  { %10206 = vmatmul.mubr.msk.f32.gmra.mrb[44].mxu1 %vm3142_vm0, %v6314_v51 }
0x1046   :  { %v6318_v17 = vpop.permute.xlu1 %6317 }
0x1047   :  { %v6316_v25 = vpop.permute.xlu0 %6315 }
0x1048   :  { %10208 = vmatprep.mubr.msk.f32.mxu1 %vm3142_vm0, %v6316_v25 }
0x1049   :  { %10209 = vmatmul.mubr.msk.f32.gmra.mrb[46].mxu1 %vm3142_vm0, %v6318_v17 }
0x10ee   :  { %v14682_v19 = vpop.f32.mrb[32].mxu1 }
0x10ef   :  { %11417 = vtanh.f32 %v14682_v19  ;;  %v6417_v24 = vpop.f32.mrb[33].mxu1  ;;  %v9039_v32 = vmul.f32 -1.442695, %v14682_v19 }
0x10f0   :  { %11419 = vtanh.f32 %v6417_v24  ;;  %v9038_v10 = vmul.f32 -1.442695, %v6417_v24 }
0x10f2   :  { %v10192_v3 = vpop.f32.mrb[34].mxu1 }
0x10f3   :  { %11421 = vtanh.f32 %v10192_v3  ;;  %v6427_v4 = vpop.f32.mrb[35].mxu1  ;;  %v9041_v26 = vmul.f32 -1.442695, %v10192_v3 }
0x10f4   :  { %11423 = vtanh.f32 %v6427_v4  ;;  %v9040_v54 = vmul.f32 -1.442695, %v6427_v4 }
0x10f6   :  { %v10195_v16 = vpop.f32.mrb[36].mxu1 }
0x10f7   :  { %11425 = vtanh.f32 %v10195_v16  ;;  %v6437_v39 = vpop.f32.mrb[37].mxu1  ;;  %v9043_v52 = vmul.f32 -1.442695, %v10195_v16 }
0x10f8   :  { %11427 = vtanh.f32 %v6437_v39  ;;  %v9042_v8 = vmul.f32 -1.442695, %v6437_v39 }
0x10f9   :  { %v11418_v20 = vpop.eup %11417 }
0x10fa   :  { %v11420_v45 = vpop.eup %11419  ;;  %6658 = vrot.lane.b32.xlu1 %v11418_v20, %s11892_s0  ;;  %v10198_v27 = vpop.f32.mrb[38].mxu1 }
0x10fb   :  { %11429 = vtanh.f32 %v10198_v27  ;;  %6656 = vrot.lane.b32.xlu0 %v11420_v45, %s11892_s0  ;;  %v6447_v55 = vpop.f32.mrb[39].mxu1  ;;  %v9045_v9 = vmul.f32 -1.442695, %v10198_v27 }
0x10fc   :  { %11431 = vtanh.f32 %v6447_v55  ;;  %v9044_v0 = vmul.f32 -1.442695, %v6447_v55 }
0x10fd   :  { %v11422_v47 = vpop.eup %11421 }
0x10fe   :  { %v11424_v49 = vpop.eup %11423  ;;  %6662 = vrot.lane.b32.xlu1 %v11422_v47, %s11892_s0 }
0x10ff   :  { %6660 = vrot.lane.b32.xlu0 %v11424_v49, %s11892_s0 }
0x1101   :  { %v11426_v35 = vpop.eup %11425 }
0x1102   :  { %v11428_v57 = vpop.eup %11427  ;;  %6666 = vrot.lane.b32.xlu1 %v11426_v35, %s11892_s0 }
0x1103   :  { %6664 = vrot.lane.b32.xlu0 %v11428_v57, %s11892_s0 }
0x1105   :  { %v11430_v21 = vpop.eup %11429 }
0x1106   :  { %v11432_v12 = vpop.eup %11431  ;;  %6670 = vrot.lane.b32.xlu1 %v11430_v21, %s11892_s0 }
0x1107   :  { %6668 = vrot.lane.b32.xlu0 %v11432_v12, %s11892_s0 }
0x1110   :  { %v14693_v23 = vpop.f32.mrb[40].mxu1 }
0x1111   :  { %11433 = vtanh.f32 %v14693_v23  ;;  %v14696_v59 = vpop.f32.mrb[41].mxu1  ;;  %v9047_v21 = vmul.f32 -1.442695, %v14693_v23 }
0x1112   :  { %11435 = vtanh.f32 %v14696_v59 }
0x1114   :  { %v14699_v36 = vpop.f32.mrb[42].mxu1 }
0x1115   :  { %11437 = vtanh.f32 %v14699_v36  ;;  %v14702_v60 = vpop.f32.mrb[43].mxu1 }
0x1116   :  { %11439 = vtanh.f32 %v14702_v60 }
0x1118   :  { %v14705_v1 = vpop.f32.mrb[44].mxu1 }
0x1119   :  { %11441 = vtanh.f32 %v14705_v1  ;;  %v14708_v50 = vpop.f32.mrb[45].mxu1 }
0x111a   :  { %11443 = vtanh.f32 %v14708_v50 }
0x111b   :  { %v11434_v56 = vpop.eup %11433 }
0x111c   :  { %v11436_v14 = vpop.eup %11435  ;;  %6674 = vrot.lane.b32.xlu1 %v11434_v56, %s11892_s0  ;;  %v14712_v44 = vpop.f32.mrb[46].mxu1  ;;  %v9046_v56 = vmul.f32 -1.442695, %v14696_v59  ;;  %v9048_v59 = vmul.f32 -1.442695, %v14702_v60 }
0x111d   :  { %11445 = vtanh.f32 %v14712_v44  ;;  %6672 = vrot.lane.b32.xlu0 %v11436_v14, %s11892_s0  ;;  %v14716_v34 = vpop.f32.mrb[47].mxu1  ;;  %v9050_v60 = vmul.f32 -1.442695, %v14708_v50 }
0x111e   :  { %11447 = vtanh.f32 %v14716_v34 }
0x111f   :  { %v11438_v22 = vpop.eup %11437  ;;  %11449 = vpow2.f32 %v9039_v32 }
0x1120   :  { %v11440_v61 = vpop.eup %11439  ;;  %6678 = vrot.lane.b32.xlu1 %v11438_v22, %s11892_s0  ;;  %11451 = vpow2.f32 %v9038_v10 }
0x1121   :  { %6676 = vrot.lane.b32.xlu0 %v11440_v61, %s11892_s0  ;;  %11453 = vpow2.f32 %v9041_v26 }
0x1122   :  { %11455 = vpow2.f32 %v9040_v54 }
0x1123   :  { %v11442_v13 = vpop.eup %11441  ;;  %11457 = vpow2.f32 %v9043_v52 }
0x1124   :  { %v11444_v15 = vpop.eup %11443  ;;  %6682 = vrot.lane.b32.xlu1 %v11442_v13, %s11892_s0  ;;  %11459 = vpow2.f32 %v9042_v8 }
0x1125   :  { %6680 = vrot.lane.b32.xlu0 %v11444_v15, %s11892_s0  ;;  %11461 = vpow2.f32 %v9045_v9 }
0x1126   :  { %11463 = vpow2.f32 %v9044_v0 }
0x1127   :  { %v11446_v38 = vpop.eup %11445 }
0x1128   :  { %v11448_v40 = vpop.eup %11447  ;;  %6686 = vrot.lane.b32.xlu1 %v11446_v38, %s11892_s0  ;;  %v9049_v38 = vmul.f32 -1.442695, %v14699_v36  ;;  %v9051_v36 = vmul.f32 -1.442695, %v14705_v1  ;;  %v9053_v1 = vmul.f32 -1.442695, %v14712_v44 }
0x1129   :  { %6684 = vrot.lane.b32.xlu0 %v11448_v40, %s11892_s0  ;;  %v11450_v11 = vpop.eup %11449 }
0x112a   :  { %v11452_v29 = vpop.eup %11451  ;;  %v6561_v30 = vadd.f32 1.0, %v11450_v11 }
0x112b   :  { %v11454_v42 = vpop.eup %11453  ;;  %v6560_v51 = vadd.f32 1.0, %v11452_v29 }
0x112c   :  { %v11456_v48 = vpop.eup %11455  ;;  %11465 = vrcp.f32 %v6561_v30  ;;  %v6563_v25 = vadd.f32 1.0, %v11454_v42  ;;  %v9052_v30 = vmul.f32 -1.442695, %v14716_v34 }
0x112d   :  { %v11458_v17 = vpop.eup %11457  ;;  %11467 = vrcp.f32 %v6560_v51  ;;  %v6562_v19 = vadd.f32 1.0, %v11456_v48 }
0x112e   :  { %v11460_v24 = vpop.eup %11459  ;;  %11469 = vrcp.f32 %v6563_v25  ;;  %v6565_v3 = vadd.f32 1.0, %v11458_v17 }
0x112f   :  { %v11462_v4 = vpop.eup %11461  ;;  %11471 = vrcp.f32 %v6562_v19  ;;  %v6564_v16 = vadd.f32 1.0, %v11460_v24 }
0x1130   :  { %v11464_v39 = vpop.eup %11463  ;;  %11473 = vrcp.f32 %v6565_v3  ;;  %v6567_v20 = vadd.f32 1.0, %v11462_v4 }
0x1131   :  { %11475 = vrcp.f32 %v6564_v16  ;;  %v6566_v45 = vadd.f32 1.0, %v11464_v39 }
0x1132   :  { %11477 = vrcp.f32 %v6567_v20 }
0x1133   :  { %11479 = vrcp.f32 %v6566_v45 }
0x1134   :  { %11481 = vpow2.f32 %v9047_v21 }
0x1135   :  { %11483 = vpow2.f32 %v9046_v56 }
0x1136   :  { %v14726_v27 = vpop.eup %11465  ;;  %11485 = vpow2.f32 %v9049_v38 }
0x1137   :  { %v14728_v47 = vpop.eup %11467  ;;  %11487 = vpow2.f32 %v9048_v59 }
0x1138   :  { %v14734_v12 = vpop.eup %11469  ;;  %11489 = vpow2.f32 %v9051_v36 }
0x1139   :  { %v14738_v22 = vpop.eup %11471  ;;  %11491 = vpow2.f32 %v9050_v60 }
0x113a   :  { %v14744_v23 = vpop.eup %11473  ;;  %11493 = vpow2.f32 %v9053_v1 }
0x113b   :  { %v14748_v32 = vpop.eup %11475  ;;  %11495 = vpow2.f32 %v9052_v30 }
0x113c   :  { %v14754_v52 = vpop.eup %11477 }
0x113d   :  { %v14758_v9 = vpop.eup %11479 }
0x113e   :  { %v11482_v50 = vpop.eup %11481 }
0x113f   :  { %v11484_v42 = vpop.eup %11483  ;;  %v6569_v51 = vadd.f32 1.0, %v11482_v50  ;;  %v6625_v50 = vmul.f32 %v14726_v27, %v14539_v7  ;;  %v6626_v7 = vmul.f32 %v14738_v22, %v14551_v18 }
0x1140   :  { %v11486_v48 = vpop.eup %11485  ;;  %v6568_v25 = vadd.f32 1.0, %v11484_v42 }
0x1141   :  { %v11488_v17 = vpop.eup %11487  ;;  %11497 = vrcp.f32 %v6569_v51  ;;  %v6571_v19 = vadd.f32 1.0, %v11486_v48  ;;  %v6624_v51 = vmul.f32 %v14728_v47, %v14541_v53 }
0x1142   :  { %v11490_v24 = vpop.eup %11489  ;;  %11499 = vrcp.f32 %v6568_v25  ;;  %v6570_v44 = vadd.f32 1.0, %v11488_v17 }
0x1143   :  { %v11492_v3 = vpop.eup %11491  ;;  %11501 = vrcp.f32 %v6571_v19  ;;  %v6573_v4 = vadd.f32 1.0, %v11490_v24  ;;  %v6627_v19 = vmul.f32 %v14734_v12, %v14549_v6  ;;  %v6628_v6 = vmul.f32 %v14748_v32, %v14561_v2 }
0x1144   :  { %v11494_v16 = vpop.eup %11493  ;;  %11503 = vrcp.f32 %v6570_v44  ;;  %v6572_v34 = vadd.f32 1.0, %v11492_v3 }
0x1145   :  { %v11496_v39 = vpop.eup %11495  ;;  %11505 = vrcp.f32 %v6573_v4  ;;  %v6575_v20 = vadd.f32 1.0, %v11494_v16  ;;  %v6629_v4 = vmul.f32 %v14744_v23, %v14559_v31  ;;  %v6630_v31 = vmul.f32 %v14758_v9, %v14571_v62 }
0x1146   :  { %11507 = vrcp.f32 %v6572_v34  ;;  %v6574_v45 = vadd.f32 1.0, %v11496_v39 }
0x1147   :  { %11509 = vrcp.f32 %v6575_v20  ;;  %v6631_v20 = vmul.f32 %v14754_v52, %v14569_v5 }
0x1148   :  { %11511 = vrcp.f32 %v6574_v45 }
0x116c   :  { %v6659_v55 = vpop.permute.xlu1 %6658 }
0x116d   :  { %v6705_v49 = vmul.f32 %v14726_v27, %v6659_v55  ;;  %v6657_v35 = vpop.permute.xlu0 %6656  ;;  %v14766_v55 = vpop.eup %11497 }
0x116e   :  { %v6704_v57 = vmul.f32 %v14728_v47, %v6657_v35  ;;  %v14768_v35 = vpop.eup %11499 }
0x116f   :  { %6738 = vrot.lane.b32.xlu1 %v6705_v49, %s11892_s0 }
0x1170   :  { %v6663_v14 = vpop.permute.xlu1 %6662  ;;  %6736 = vrot.lane.b32.xlu0 %v6704_v57, %s11892_s0 }
0x1171   :  { %v6707_v61 = vmul.f32 %v14734_v12, %v6663_v14  ;;  %v6661_v13 = vpop.permute.xlu0 %6660  ;;  %v14773_v14 = vpop.eup %11501 }
0x1172   :  { %v6706_v15 = vmul.f32 %v14738_v22, %v6661_v13  ;;  %v14776_v13 = vpop.eup %11503 }
0x1173   :  { %6742 = vrot.lane.b32.xlu1 %v6707_v61, %s11892_s0 }
0x1174   :  { %v6667_v40 = vpop.permute.xlu1 %6666  ;;  %6740 = vrot.lane.b32.xlu0 %v6706_v15, %s11892_s0 }
0x1175   :  { %v6709_v10 = vmul.f32 %v14744_v23, %v6667_v40  ;;  %v6665_v26 = vpop.permute.xlu0 %6664  ;;  %v14781_v40 = vpop.eup %11505 }
0x1176   :  { %v6708_v54 = vmul.f32 %v14748_v32, %v6665_v26  ;;  %v14784_v26 = vpop.eup %11507 }
0x1177   :  { %6746 = vrot.lane.b32.xlu1 %v6709_v10, %s11892_s0 }
0x1178   :  { %v6671_v8 = vpop.permute.xlu1 %6670  ;;  %6744 = vrot.lane.b32.xlu0 %v6708_v54, %s11892_s0 }
0x1179   :  { %v6711_v0 = vmul.f32 %v14754_v52, %v6671_v8  ;;  %v6669_v11 = vpop.permute.xlu0 %6668  ;;  %v14789_v8 = vpop.eup %11509 }
0x117a   :  { %v6710_v29 = vmul.f32 %v14758_v9, %v6669_v11  ;;  %v14792_v11 = vpop.eup %11511 }
0x117b   :  { %6750 = vrot.lane.b32.xlu1 %v6711_v0, %s11892_s0 }
0x117c   :  { %6748 = vrot.lane.b32.xlu0 %v6710_v29, %s11892_s0 }
0x118e   :  { %v6675_v49 = vpop.permute.xlu1 %6674 }
0x118f   :  { %v6713_v57 = vmul.f32 %v14766_v55, %v6675_v49  ;;  %v6673_v21 = vpop.permute.xlu0 %6672 }
0x1190   :  { %v6712_v56 = vmul.f32 %v14768_v35, %v6673_v21 }
0x1191   :  { %6754 = vrot.lane.b32.xlu1 %v6713_v57, %s11892_s0 }
0x1192   :  { %v6679_v61 = vpop.permute.xlu1 %6678  ;;  %6752 = vrot.lane.b32.xlu0 %v6712_v56, %s11892_s0 }
0x1193   :  { %v6715_v15 = vmul.f32 %v14773_v14, %v6679_v61  ;;  %v6677_v38 = vpop.permute.xlu0 %6676 }
0x1194   :  { %v6714_v59 = vmul.f32 %v14776_v13, %v6677_v38 }
0x1195   :  { %6758 = vrot.lane.b32.xlu1 %v6715_v15, %s11892_s0 }
0x1196   :  { %v6683_v10 = vpop.permute.xlu1 %6682  ;;  %6756 = vrot.lane.b32.xlu0 %v6714_v59, %s11892_s0 }
0x1197   :  { %v6717_v54 = vmul.f32 %v14781_v40, %v6683_v10  ;;  %v6681_v36 = vpop.permute.xlu0 %6680  ;;  %v6633_v10 = vmul.f32 %v14766_v55, %v14587_v28  ;;  %v6634_v28 = vmul.f32 %v14776_v13, %v14599_v41 }
0x1198   :  { %v6716_v60 = vmul.f32 %v14784_v26, %v6681_v36  ;;  %v6632_v36 = vmul.f32 %v14768_v35, %v14589_v46 }
0x1199   :  { %6762 = vrot.lane.b32.xlu1 %v6717_v54, %s11892_s0 }
0x119a   :  { %v6687_v0 = vpop.permute.xlu1 %6686  ;;  %6760 = vrot.lane.b32.xlu0 %v6716_v60, %s11892_s0 }
0x119b   :  { %v6719_v29 = vmul.f32 %v14789_v8, %v6687_v0  ;;  %v6685_v1 = vpop.permute.xlu0 %6684 }
0x119c   :  { %v6718_v30 = vmul.f32 %v14792_v11, %v6685_v1  ;;  %v6635_v1 = vmul.f32 %v14773_v14, %v14597_v43  ;;  %v6636_v43 = vmul.f32 %v14784_v26, %v14609_v58 }
0x119d   :  { %6766 = vrot.lane.b32.xlu1 %v6719_v29, %s11892_s0 }
0x119e   :  { %6764 = vrot.lane.b32.xlu0 %v6718_v30, %s11892_s0 }
0x11e1   :  { %v6739_v42 = vpop.permute.xlu1 %6738 }
0x11e2   :  { %v14802_v48 = vadd.f32 %v6739_v42, %v6625_v50  ;;  %v6737_v25 = vpop.permute.xlu0 %6736 }
0x11e3   :  { %v14804_v17 = vadd.f32 %v6737_v25, %v6624_v51  ;;  %v6637_v51 = vmul.f32 %v14781_v40, %v14607_v63  ;;  %v6638_v63 = vmul.f32 %v14792_v11, %v14619_v33 }
0x11e4   :  { %11513 = vtanh.f32 %v14802_v48 }
0x11e5   :  { %11515 = vtanh.f32 %v14804_v17  ;;  %v6743_v24 = vpop.permute.xlu1 %6742 }
0x11e6   :  { %v14812_v44 = vadd.f32 %v6743_v24, %v6627_v19  ;;  %v6741_v3 = vpop.permute.xlu0 %6740 }
0x11e7   :  { %v14814_v53 = vadd.f32 %v6741_v3, %v6626_v7  ;;  %v6639_v7 = vmul.f32 %v14789_v8, %v14617_v37 }
0x11e8   :  { %11517 = vtanh.f32 %v14812_v44 }
0x11e9   :  { %11519 = vtanh.f32 %v14814_v53  ;;  %v6747_v16 = vpop.permute.xlu1 %6746 }
0x11ea   :  { %v14822_v34 = vadd.f32 %v6747_v16, %v6629_v4  ;;  %v6745_v39 = vpop.permute.xlu0 %6744 }
0x11eb   :  { %v14824_v18 = vadd.f32 %v6745_v39, %v6628_v6 }
0x11ec   :  { %11521 = vtanh.f32 %v14822_v34 }
0x11ed   :  { %11523 = vtanh.f32 %v14824_v18  ;;  %v6751_v45 = vpop.permute.xlu1 %6750 }
0x11ee   :  { %v11514_v49 = vpop.eup %11513  ;;  %v14832_v57 = vadd.f32 %v6751_v45, %v6631_v20  ;;  %v6749_v2 = vpop.permute.xlu0 %6748 }
0x11ef   :  { %v11516_v21 = vpop.eup %11515  ;;  %v14834_v56 = vadd.f32 %v6749_v2, %v6630_v31  ;;  %6834 = vrot.lane.b32.xlu1 %v11514_v49, %s11892_s0 }
0x11f0   :  { %11525 = vtanh.f32 %v14832_v57  ;;  %6832 = vrot.lane.b32.xlu0 %v11516_v21, %s11892_s0 }
0x11f1   :  { %11527 = vtanh.f32 %v14834_v56 }
0x11f2   :  { %v11518_v5 = vpop.eup %11517 }
0x11f3   :  { %v11520_v61 = vpop.eup %11519  ;;  %6838 = vrot.lane.b32.xlu1 %v11518_v5, %s11892_s0 }
0x11f4   :  { %6836 = vrot.lane.b32.xlu0 %v11520_v61, %s11892_s0 }
0x11f6   :  { %v11522_v62 = vpop.eup %11521 }
0x11f7   :  { %v11524_v15 = vpop.eup %11523  ;;  %6842 = vrot.lane.b32.xlu1 %v11522_v62, %s11892_s0 }
0x11f8   :  { %6840 = vrot.lane.b32.xlu0 %v11524_v15, %s11892_s0 }
0x11fa   :  { %v11526_v38 = vpop.eup %11525 }
0x11fb   :  { %v11528_v59 = vpop.eup %11527  ;;  %6846 = vrot.lane.b32.xlu1 %v11526_v38, %s11892_s0 }
0x11fc   :  { %6844 = vrot.lane.b32.xlu0 %v11528_v59, %s11892_s0 }
0x1203   :  { %v6755_v54 = vpop.permute.xlu1 %6754 }
0x1204   :  { %v14850_v60 = vadd.f32 %v6755_v54, %v6633_v10  ;;  %v6753_v0 = vpop.permute.xlu0 %6752 }
0x1205   :  { %v14852_v29 = vadd.f32 %v6753_v0, %v6632_v36 }
0x1206   :  { %11529 = vtanh.f32 %v14850_v60 }
0x1207   :  { %11531 = vtanh.f32 %v14852_v29  ;;  %v6759_v30 = vpop.permute.xlu1 %6758 }
0x1208   :  { %v14860_v50 = vadd.f32 %v6759_v30, %v6635_v1  ;;  %v6757_v42 = vpop.permute.xlu0 %6756 }
0x1209   :  { %v14862_v46 = vadd.f32 %v6757_v42, %v6634_v28 }
0x120a   :  { %11533 = vtanh.f32 %v14860_v50 }
0x120b   :  { %11535 = vtanh.f32 %v14862_v46  ;;  %v6763_v25 = vpop.permute.xlu1 %6762 }
0x120c   :  { %v14870_v19 = vadd.f32 %v6763_v25, %v6637_v51  ;;  %v6761_v24 = vpop.permute.xlu0 %6760 }
0x120d   :  { %v14872_v41 = vadd.f32 %v6761_v24, %v6636_v43 }
0x120e   :  { %11537 = vtanh.f32 %v14870_v19 }
0x120f   :  { %11539 = vtanh.f32 %v14872_v41  ;;  %v6767_v3 = vpop.permute.xlu1 %6766 }
0x1210   :  { %v11530_v4 = vpop.eup %11529  ;;  %v14880_v16 = vadd.f32 %v6767_v3, %v6639_v7  ;;  %v6765_v58 = vpop.permute.xlu0 %6764 }
0x1211   :  { %v11532_v6 = vpop.eup %11531  ;;  %v14882_v39 = vadd.f32 %v6765_v58, %v6638_v63  ;;  %6850 = vrot.lane.b32.xlu1 %v11530_v4, %s11892_s0 }
0x1212   :  { %11541 = vtanh.f32 %v14880_v16  ;;  %6848 = vrot.lane.b32.xlu0 %v11532_v6, %s11892_s0 }
0x1213   :  { %11543 = vtanh.f32 %v14882_v39 }
0x1214   :  { %v11534_v37 = vpop.eup %11533 }
0x1215   :  { %v11536_v20 = vpop.eup %11535  ;;  %6854 = vrot.lane.b32.xlu1 %v11534_v37, %s11892_s0 }
0x1216   :  { %6852 = vrot.lane.b32.xlu0 %v11536_v20, %s11892_s0 }
0x1218   :  { %v11538_v33 = vpop.eup %11537 }
0x1219   :  { %v11540_v45 = vpop.eup %11539  ;;  %6858 = vrot.lane.b32.xlu1 %v11538_v33, %s11892_s0 }
0x121a   :  { %6856 = vrot.lane.b32.xlu0 %v11540_v45, %s11892_s0 }
0x121c   :  { %v11542_v31 = vpop.eup %11541 }
0x121d   :  { %v11544_v49 = vpop.eup %11543  ;;  %6862 = vrot.lane.b32.xlu1 %v11542_v31, %s11892_s0 }
0x121e   :  { %6860 = vrot.lane.b32.xlu0 %v11544_v49, %s11892_s0 }
0x1261   :  { %v6835_v2 = vpop.permute.xlu1 %6834 }
0x1262   :  { %v6881_v21 = vmul.f32 %v14726_v27, %v6835_v2  ;;  %v6833_v5 = vpop.permute.xlu0 %6832 }
0x1263   :  { %v6880_v61 = vmul.f32 %v14728_v47, %v6833_v5 }
0x1264   :  { %6930 = vrot.lane.b32.xlu1 %v6881_v21, %s11893_s24 }
0x1265   :  { %v6839_v62 = vpop.permute.xlu1 %6838  ;;  %6928 = vrot.lane.b32.xlu0 %v6880_v61, %s11893_s24 }
0x1266   :  { %v6883_v15 = vmul.f32 %v14734_v12, %v6839_v62  ;;  %v6837_v38 = vpop.permute.xlu0 %6836 }
0x1267   :  { %v6882_v59 = vmul.f32 %v14738_v22, %v6837_v38 }
0x1268   :  { %6934 = vrot.lane.b32.xlu1 %v6883_v15, %s11893_s24 }
0x1269   :  { %v6843_v10 = vpop.permute.xlu1 %6842  ;;  %6932 = vrot.lane.b32.xlu0 %v6882_v59, %s11893_s24 }
0x126a   :  { %v6885_v27 = vmul.f32 %v14744_v23, %v6843_v10  ;;  %v6841_v54 = vpop.permute.xlu0 %6840 }
0x126b   :  { %v6884_v47 = vmul.f32 %v14748_v32, %v6841_v54 }
0x126c   :  { %6938 = vrot.lane.b32.xlu1 %v6885_v27, %s11893_s24 }
0x126d   :  { %v6847_v36 = vpop.permute.xlu1 %6846  ;;  %6936 = vrot.lane.b32.xlu0 %v6884_v47, %s11893_s24 }
0x126e   :  { %v6887_v12 = vmul.f32 %v14754_v52, %v6847_v36  ;;  %v6845_v0 = vpop.permute.xlu0 %6844 }
0x126f   :  { %v6886_v22 = vmul.f32 %v14758_v9, %v6845_v0 }
0x1270   :  { %6942 = vrot.lane.b32.xlu1 %v6887_v12, %s11893_s24 }
0x1271   :  { %6940 = vrot.lane.b32.xlu0 %v6886_v22, %s11893_s24 }
0x1283   :  { %v6851_v1 = vpop.permute.xlu1 %6850 }
0x1284   :  { %v6889_v23 = vmul.f32 %v14766_v55, %v6851_v1  ;;  %v6849_v30 = vpop.permute.xlu0 %6848 }
0x1285   :  { %v6888_v32 = vmul.f32 %v14768_v35, %v6849_v30 }
0x1286   :  { %6946 = vrot.lane.b32.xlu1 %v6889_v23, %s11893_s24 }
0x1287   :  { %v6855_v28 = vpop.permute.xlu1 %6854  ;;  %6944 = vrot.lane.b32.xlu0 %v6888_v32, %s11893_s24 }
0x1288   :  { %v6891_v52 = vmul.f32 %v14773_v14, %v6855_v28  ;;  %v6853_v42 = vpop.permute.xlu0 %6852 }
0x1289   :  { %v6890_v9 = vmul.f32 %v14776_v13, %v6853_v42 }
0x128a   :  { %6950 = vrot.lane.b32.xlu1 %v6891_v52, %s11893_s24 }
0x128b   :  { %v6859_v51 = vpop.permute.xlu1 %6858  ;;  %6948 = vrot.lane.b32.xlu0 %v6890_v9, %s11893_s24 }
0x128c   :  { %v6893_v55 = vmul.f32 %v14781_v40, %v6859_v51  ;;  %v6857_v25 = vpop.permute.xlu0 %6856 }
0x128d   :  { %v6892_v35 = vmul.f32 %v14784_v26, %v6857_v25 }
0x128e   :  { %6954 = vrot.lane.b32.xlu1 %v6893_v55, %s11893_s24 }
0x128f   :  { %v6863_v43 = vpop.permute.xlu1 %6862  ;;  %6952 = vrot.lane.b32.xlu0 %v6892_v35, %s11893_s24 }
0x1290   :  { %v6895_v14 = vmul.f32 %v14789_v8, %v6863_v43  ;;  %v6861_v24 = vpop.permute.xlu0 %6860 }
0x1291   :  { %v6894_v13 = vmul.f32 %v14792_v11, %v6861_v24 }
0x1292   :  { %6958 = vrot.lane.b32.xlu1 %v6895_v14, %s11893_s24 }
0x1293   :  { %6956 = vrot.lane.b32.xlu0 %v6894_v13, %s11893_s24 }
0x12d6   :  { %v6931_v7 = vpop.permute.xlu1 %6930 }
0x12d7   :  { %v6929_v3 = vpop.permute.xlu0 %6928 }
0x12d8   :  { %10219 = vmatprep.mubr.msk.f32.mxu0 %vm3142_vm0, %v6929_v3 }
0x12d9   :  { %10220 = vmatmul.mubr.msk.f32.vlgmr.msra.gmra.mrb[48].mxu0 %vm3142_vm0, %v6931_v7 }
0x12da   :  { %v6935_v40 = vpop.permute.xlu1 %6934 }
0x12db   :  { %v6933_v26 = vpop.permute.xlu0 %6932 }
0x12dc   :  { %10222 = vmatprep.mubr.msk.f32.mxu0 %vm3142_vm0, %v6933_v26 }
0x12dd   :  { %10223 = vmatmul.mubr.msk.f32.gmra.mrb[50].mxu0 %vm3142_vm0, %v6935_v40 }
0x12de   :  { %v6939_v8 = vpop.permute.xlu1 %6938 }
0x12df   :  { %v6937_v63 = vpop.permute.xlu0 %6936 }
0x12e0   :  { %10225 = vmatprep.mubr.msk.f32.mxu0 %vm3142_vm0, %v6937_v63 }
0x12e1   :  { %10226 = vmatmul.mubr.msk.f32.gmra.mrb[52].mxu0 %vm3142_vm0, %v6939_v8 }
0x12e2   :  { %v6943_v4 = vpop.permute.xlu1 %6942 }
0x12e3   :  { %v6941_v11 = vpop.permute.xlu0 %6940 }
0x12e4   :  { %10228 = vmatprep.mubr.msk.f32.mxu0 %vm3142_vm0, %v6941_v11 }
0x12e5   :  { %10229 = vmatmul.mubr.msk.f32.gmra.mrb[54].mxu0 %vm3142_vm0, %v6943_v4 }
0x12f8   :  { %v6947_v58 = vpop.permute.xlu1 %6946 }
0x12f9   :  { %v6945_v6 = vpop.permute.xlu0 %6944 }
0x12fa   :  { %10231 = vmatprep.mubr.msk.f32.mxu0 %vm3142_vm0, %v6945_v6 }
0x12fb   :  { %10232 = vmatmul.mubr.msk.f32.gmra.mrb[56].mxu0 %vm3142_vm0, %v6947_v58 }
0x12fc   :  { %v6951_v37 = vpop.permute.xlu1 %6950 }
0x12fd   :  { %v6949_v20 = vpop.permute.xlu0 %6948 }
0x12fe   :  { %10234 = vmatprep.mubr.msk.f32.mxu0 %vm3142_vm0, %v6949_v20 }
0x12ff   :  { %10235 = vmatmul.mubr.msk.f32.gmra.mrb[58].mxu0 %vm3142_vm0, %v6951_v37 }
0x1300   :  { %v6955_v33 = vpop.permute.xlu1 %6954 }
0x1301   :  { %v6953_v45 = vpop.permute.xlu0 %6952 }
0x1302   :  { %10237 = vmatprep.mubr.msk.f32.mxu0 %vm3142_vm0, %v6953_v45 }
0x1303   :  { %10238 = vmatmul.mubr.msk.f32.gmra.mrb[60].mxu0 %vm3142_vm0, %v6955_v33 }
0x1304   :  { %v6959_v49 = vpop.permute.xlu1 %6958 }
0x1305   :  { %v6957_v31 = vpop.permute.xlu0 %6956 }
0x1306   :  { %10240 = vmatprep.mubr.msk.f32.mxu0 %vm3142_vm0, %v6957_v31 }
0x1307   :  { %10241 = vmatmul.mubr.msk.f32.gmra.mrb[62].mxu0 %vm3142_vm0, %v6959_v49 }
0x13ac   :  { %v14942_v2 = vpop.f32.mrb[48].mxu0 }
0x13ad   :  { %11545 = vtanh.f32 %v14942_v2  ;;  %v7058_v21 = vpop.f32.mrb[49].mxu0  ;;  %v9071_v7 = vmul.f32 -1.442695, %v14942_v2 }
0x13ae   :  { %11547 = vtanh.f32 %v7058_v21  ;;  %v9070_v3 = vmul.f32 -1.442695, %v7058_v21 }
0x13b0   :  { %v10224_v5 = vpop.f32.mrb[50].mxu0 }
0x13b1   :  { %11549 = vtanh.f32 %v10224_v5  ;;  %v7068_v61 = vpop.f32.mrb[51].mxu0  ;;  %v9073_v40 = vmul.f32 -1.442695, %v10224_v5 }
0x13b2   :  { %11551 = vtanh.f32 %v7068_v61  ;;  %v9072_v26 = vmul.f32 -1.442695, %v7068_v61 }
0x13b4   :  { %v10227_v62 = vpop.f32.mrb[52].mxu0 }
0x13b5   :  { %11553 = vtanh.f32 %v10227_v62  ;;  %v7078_v15 = vpop.f32.mrb[53].mxu0  ;;  %v9075_v8 = vmul.f32 -1.442695, %v10227_v62 }
0x13b6   :  { %11555 = vtanh.f32 %v7078_v15  ;;  %v9074_v63 = vmul.f32 -1.442695, %v7078_v15 }
0x13b7   :  { %v11546_v38 = vpop.eup %11545 }
0x13b8   :  { %v11548_v59 = vpop.eup %11547  ;;  %7299 = vrot.lane.b32.xlu1 %v11546_v38, %s11892_s0  ;;  %v10230_v10 = vpop.f32.mrb[54].mxu0 }
0x13b9   :  { %11557 = vtanh.f32 %v10230_v10  ;;  %7297 = vrot.lane.b32.xlu0 %v11548_v59, %s11892_s0  ;;  %v7088_v27 = vpop.f32.mrb[55].mxu0  ;;  %v9077_v11 = vmul.f32 -1.442695, %v10230_v10 }
0x13ba   :  { %11559 = vtanh.f32 %v7088_v27  ;;  %v9076_v4 = vmul.f32 -1.442695, %v7088_v27 }
0x13bb   :  { %v11550_v54 = vpop.eup %11549 }
0x13bc   :  { %v11552_v47 = vpop.eup %11551  ;;  %7303 = vrot.lane.b32.xlu1 %v11550_v54, %s11892_s0 }
0x13bd   :  { %7301 = vrot.lane.b32.xlu0 %v11552_v47, %s11892_s0 }
0x13bf   :  { %v11554_v36 = vpop.eup %11553 }
0x13c0   :  { %v11556_v12 = vpop.eup %11555  ;;  %7307 = vrot.lane.b32.xlu1 %v11554_v36, %s11892_s0 }
0x13c1   :  { %7305 = vrot.lane.b32.xlu0 %v11556_v12, %s11892_s0 }
0x13c3   :  { %v11558_v0 = vpop.eup %11557 }
0x13c4   :  { %v11560_v22 = vpop.eup %11559  ;;  %7311 = vrot.lane.b32.xlu1 %v11558_v0, %s11892_s0 }
0x13c5   :  { %7309 = vrot.lane.b32.xlu0 %v11560_v22, %s11892_s0 }
0x13ce   :  { %v14953_v1 = vpop.f32.mrb[56].mxu0 }
0x13cf   :  { %11561 = vtanh.f32 %v14953_v1  ;;  %v14956_v23 = vpop.f32.mrb[57].mxu0  ;;  %v9079_v0 = vmul.f32 -1.442695, %v14953_v1 }
0x13d0   :  { %11563 = vtanh.f32 %v14956_v23 }
0x13d2   :  { %v14959_v30 = vpop.f32.mrb[58].mxu0 }
0x13d3   :  { %11565 = vtanh.f32 %v14959_v30  ;;  %v14962_v32 = vpop.f32.mrb[59].mxu0 }
0x13d4   :  { %11567 = vtanh.f32 %v14962_v32 }
0x13d6   :  { %v14965_v28 = vpop.f32.mrb[60].mxu0 }
0x13d7   :  { %11569 = vtanh.f32 %v14965_v28  ;;  %v14968_v52 = vpop.f32.mrb[61].mxu0 }
0x13d8   :  { %11571 = vtanh.f32 %v14968_v52 }
0x13d9   :  { %v11562_v42 = vpop.eup %11561 }
0x13da   :  { %v11564_v9 = vpop.eup %11563  ;;  %7315 = vrot.lane.b32.xlu1 %v11562_v42, %s11892_s0  ;;  %v14972_v51 = vpop.f32.mrb[62].mxu0  ;;  %v9078_v42 = vmul.f32 -1.442695, %v14956_v23  ;;  %v9080_v23 = vmul.f32 -1.442695, %v14962_v32 }
0x13db   :  { %11573 = vtanh.f32 %v14972_v51  ;;  %7313 = vrot.lane.b32.xlu0 %v11564_v9, %s11892_s0  ;;  %v14976_v55 = vpop.f32.mrb[63].mxu0  ;;  %v9082_v32 = vmul.f32 -1.442695, %v14968_v52 }
0x13dc   :  { %11575 = vtanh.f32 %v14976_v55 }
0x13dd   :  { %v11566_v25 = vpop.eup %11565  ;;  %11577 = vpow2.f32 %v9071_v7 }
0x13de   :  { %v11568_v35 = vpop.eup %11567  ;;  %7319 = vrot.lane.b32.xlu1 %v11566_v25, %s11892_s0  ;;  %11579 = vpow2.f32 %v9070_v3 }
0x13df   :  { %7317 = vrot.lane.b32.xlu0 %v11568_v35, %s11892_s0  ;;  %11581 = vpow2.f32 %v9073_v40 }
0x13e0   :  { %11583 = vpow2.f32 %v9072_v26 }
0x13e1   :  { %v11570_v43 = vpop.eup %11569  ;;  %11585 = vpow2.f32 %v9075_v8 }
0x13e2   :  { %v11572_v14 = vpop.eup %11571  ;;  %7323 = vrot.lane.b32.xlu1 %v11570_v43, %s11892_s0  ;;  %11587 = vpow2.f32 %v9074_v63 }
0x13e3   :  { %7321 = vrot.lane.b32.xlu0 %v11572_v14, %s11892_s0  ;;  %11589 = vpow2.f32 %v9077_v11 }
0x13e4   :  { %11591 = vpow2.f32 %v9076_v4 }
0x13e5   :  { %v11574_v24 = vpop.eup %11573 }
0x13e6   :  { %v11576_v13 = vpop.eup %11575  ;;  %7327 = vrot.lane.b32.xlu1 %v11574_v24, %s11892_s0  ;;  %v9081_v24 = vmul.f32 -1.442695, %v14959_v30  ;;  %v9083_v30 = vmul.f32 -1.442695, %v14965_v28  ;;  %v9085_v28 = vmul.f32 -1.442695, %v14972_v51 }
0x13e7   :  { %7325 = vrot.lane.b32.xlu0 %v11576_v13, %s11892_s0  ;;  %v11578_v58 = vpop.eup %11577 }
0x13e8   :  { %v11580_v6 = vpop.eup %11579  ;;  %v7202_v37 = vadd.f32 1.0, %v11578_v58 }
0x13e9   :  { %v11582_v20 = vpop.eup %11581  ;;  %v7201_v33 = vadd.f32 1.0, %v11580_v6 }
0x13ea   :  { %v11584_v45 = vpop.eup %11583  ;;  %11593 = vrcp.f32 %v7202_v37  ;;  %v7204_v31 = vadd.f32 1.0, %v11582_v20  ;;  %v9084_v37 = vmul.f32 -1.442695, %v14976_v55 }
0x13eb   :  { %v11586_v49 = vpop.eup %11585  ;;  %11595 = vrcp.f32 %v7201_v33  ;;  %v7203_v2 = vadd.f32 1.0, %v11584_v45 }
0x13ec   :  { %v11588_v21 = vpop.eup %11587  ;;  %11597 = vrcp.f32 %v7204_v31  ;;  %v7206_v5 = vadd.f32 1.0, %v11586_v49 }
0x13ed   :  { %v11590_v61 = vpop.eup %11589  ;;  %11599 = vrcp.f32 %v7203_v2  ;;  %v7205_v62 = vadd.f32 1.0, %v11588_v21 }
0x13ee   :  { %v11592_v15 = vpop.eup %11591  ;;  %11601 = vrcp.f32 %v7206_v5  ;;  %v7208_v38 = vadd.f32 1.0, %v11590_v61 }
0x13ef   :  { %11603 = vrcp.f32 %v7205_v62  ;;  %v7207_v59 = vadd.f32 1.0, %v11592_v15 }
0x13f0   :  { %11605 = vrcp.f32 %v7208_v38 }
0x13f1   :  { %11607 = vrcp.f32 %v7207_v59 }
0x13f2   :  { %11609 = vpow2.f32 %v9079_v0 }
0x13f3   :  { %11611 = vpow2.f32 %v9078_v42 }
0x13f4   :  { %v14986_v10 = vpop.eup %11593  ;;  %11613 = vpow2.f32 %v9081_v24 }
0x13f5   :  { %v14988_v54 = vpop.eup %11595  ;;  %11615 = vpow2.f32 %v9080_v23 }
0x13f6   :  { %v14994_v22 = vpop.eup %11597  ;;  %11617 = vpow2.f32 %v9083_v30 }
0x13f7   :  { %v14998_v25 = vpop.eup %11599  ;;  %11619 = vpow2.f32 %v9082_v32 }
0x13f8   :  { %v15004_v1 = vpop.eup %11601  ;;  %11621 = vpow2.f32 %v9085_v28 }
0x13f9   :  { %v15008_v7 = vpop.eup %11603  ;;  %11623 = vpow2.f32 %v9084_v37 }
0x13fa   :  { %v15014_v8 = vpop.eup %11605 }
0x13fb   :  { %v15018_v11 = vpop.eup %11607 }
0x13fc   :  { %v11610_v52 = vpop.eup %11609 }
0x13fd   :  { %v11612_v20 = vpop.eup %11611  ;;  %v7210_v33 = vadd.f32 1.0, %v11610_v52  ;;  %v7266_v52 = vmul.f32 %v14986_v10, %v14802_v48  ;;  %v7267_v48 = vmul.f32 %v14998_v25, %v14814_v53 }
0x13fe   :  { %v11614_v45 = vpop.eup %11613  ;;  %v7209_v31 = vadd.f32 1.0, %v11612_v20 }
0x13ff   :  { %v11616_v49 = vpop.eup %11615  ;;  %11625 = vrcp.f32 %v7210_v33  ;;  %v7212_v2 = vadd.f32 1.0, %v11614_v45  ;;  %v7265_v33 = vmul.f32 %v14988_v54, %v14804_v17 }
0x1400   :  { %v11618_v21 = vpop.eup %11617  ;;  %11627 = vrcp.f32 %v7209_v31  ;;  %v7211_v51 = vadd.f32 1.0, %v11616_v49 }
0x1401   :  { %v11620_v5 = vpop.eup %11619  ;;  %11629 = vrcp.f32 %v7212_v2  ;;  %v7214_v61 = vadd.f32 1.0, %v11618_v21  ;;  %v7268_v2 = vmul.f32 %v14994_v22, %v14812_v44  ;;  %v7269_v44 = vmul.f32 %v15008_v7, %v14824_v18 }
0x1402   :  { %v11622_v62 = vpop.eup %11621  ;;  %11631 = vrcp.f32 %v7211_v51  ;;  %v7213_v55 = vadd.f32 1.0, %v11620_v5 }
0x1403   :  { %v11624_v15 = vpop.eup %11623  ;;  %11633 = vrcp.f32 %v7214_v61  ;;  %v7216_v38 = vadd.f32 1.0, %v11622_v62  ;;  %v7270_v61 = vmul.f32 %v15004_v1, %v14822_v34  ;;  %v7271_v34 = vmul.f32 %v15018_v11, %v14834_v56 }
0x1404   :  { %11635 = vrcp.f32 %v7213_v55  ;;  %v7215_v59 = vadd.f32 1.0, %v11624_v15 }
0x1405   :  { %11637 = vrcp.f32 %v7216_v38  ;;  %v7272_v38 = vmul.f32 %v15014_v8, %v14832_v57 }
0x1406   :  { %11639 = vrcp.f32 %v7215_v59 }
0x142a   :  { %v7300_v27 = vpop.permute.xlu1 %7299 }
0x142b   :  { %v7346_v47 = vmul.f32 %v14986_v10, %v7300_v27  ;;  %v7298_v36 = vpop.permute.xlu0 %7297  ;;  %v15026_v27 = vpop.eup %11625 }
0x142c   :  { %v7345_v12 = vmul.f32 %v14988_v54, %v7298_v36  ;;  %v15028_v36 = vpop.eup %11627 }
0x142d   :  { %7379 = vrot.lane.b32.xlu1 %v7346_v47, %s11892_s0 }
0x142e   :  { %v7304_v9 = vpop.permute.xlu1 %7303  ;;  %7377 = vrot.lane.b32.xlu0 %v7345_v12, %s11892_s0 }
0x142f   :  { %v7348_v35 = vmul.f32 %v14994_v22, %v7304_v9  ;;  %v7302_v43 = vpop.permute.xlu0 %7301  ;;  %v15033_v9 = vpop.eup %11629 }
0x1430   :  { %v7347_v14 = vmul.f32 %v14998_v25, %v7302_v43  ;;  %v15036_v43 = vpop.eup %11631 }
0x1431   :  { %7383 = vrot.lane.b32.xlu1 %v7348_v35, %s11892_s0 }
0x1432   :  { %v7308_v13 = vpop.permute.xlu1 %7307  ;;  %7381 = vrot.lane.b32.xlu0 %v7347_v14, %s11892_s0 }
0x1433   :  { %v7350_v3 = vmul.f32 %v15004_v1, %v7308_v13  ;;  %v7306_v40 = vpop.permute.xlu0 %7305  ;;  %v15041_v13 = vpop.eup %11633 }
0x1434   :  { %v7349_v26 = vmul.f32 %v15008_v7, %v7306_v40  ;;  %v15044_v40 = vpop.eup %11635 }
0x1435   :  { %7387 = vrot.lane.b32.xlu1 %v7350_v3, %s11892_s0 }
0x1436   :  { %v7312_v63 = vpop.permute.xlu1 %7311  ;;  %7385 = vrot.lane.b32.xlu0 %v7349_v26, %s11892_s0 }
0x1437   :  { %v7352_v4 = vmul.f32 %v15014_v8, %v7312_v63  ;;  %v7310_v58 = vpop.permute.xlu0 %7309  ;;  %v15049_v63 = vpop.eup %11637 }
0x1438   :  { %v7351_v6 = vmul.f32 %v15018_v11, %v7310_v58  ;;  %v15052_v58 = vpop.eup %11639 }
0x1439   :  { %7391 = vrot.lane.b32.xlu1 %v7352_v4, %s11892_s0 }
0x143a   :  { %7389 = vrot.lane.b32.xlu0 %v7351_v6, %s11892_s0 }
0x144c   :  { %v7316_v47 = vpop.permute.xlu1 %7315 }
0x144d   :  { %v7354_v12 = vmul.f32 %v15026_v27, %v7316_v47  ;;  %v7314_v0 = vpop.permute.xlu0 %7313 }
0x144e   :  { %v7353_v42 = vmul.f32 %v15028_v36, %v7314_v0 }
0x144f   :  { %7395 = vrot.lane.b32.xlu1 %v7354_v12, %s11892_s0 }
0x1450   :  { %v7320_v35 = vpop.permute.xlu1 %7319  ;;  %7393 = vrot.lane.b32.xlu0 %v7353_v42, %s11892_s0 }
0x1451   :  { %v7356_v14 = vmul.f32 %v15033_v9, %v7320_v35  ;;  %v7318_v24 = vpop.permute.xlu0 %7317 }
0x1452   :  { %v7355_v23 = vmul.f32 %v15036_v43, %v7318_v24 }
0x1453   :  { %7399 = vrot.lane.b32.xlu1 %v7356_v14, %s11892_s0 }
0x1454   :  { %v7324_v3 = vpop.permute.xlu1 %7323  ;;  %7397 = vrot.lane.b32.xlu0 %v7355_v23, %s11892_s0 }
0x1455   :  { %v7358_v26 = vmul.f32 %v15041_v13, %v7324_v3  ;;  %v7322_v30 = vpop.permute.xlu0 %7321  ;;  %v7274_v3 = vmul.f32 %v15026_v27, %v14850_v60  ;;  %v7275_v60 = vmul.f32 %v15036_v43, %v14862_v46 }
0x1456   :  { %v7357_v32 = vmul.f32 %v15044_v40, %v7322_v30  ;;  %v7273_v30 = vmul.f32 %v15028_v36, %v14852_v29 }
0x1457   :  { %7403 = vrot.lane.b32.xlu1 %v7358_v26, %s11892_s0 }
0x1458   :  { %v7328_v4 = vpop.permute.xlu1 %7327  ;;  %7401 = vrot.lane.b32.xlu0 %v7357_v32, %s11892_s0 }
0x1459   :  { %v7360_v6 = vmul.f32 %v15049_v63, %v7328_v4  ;;  %v7326_v28 = vpop.permute.xlu0 %7325 }
0x145a   :  { %v7359_v37 = vmul.f32 %v15052_v58, %v7326_v28  ;;  %v7276_v28 = vmul.f32 %v15033_v9, %v14860_v50  ;;  %v7277_v50 = vmul.f32 %v15044_v40, %v14872_v41 }
0x145b   :  { %7407 = vrot.lane.b32.xlu1 %v7360_v6, %s11892_s0 }
0x145c   :  { %7405 = vrot.lane.b32.xlu0 %v7359_v37, %s11892_s0 }
0x149f   :  { %v7380_v20 = vpop.permute.xlu1 %7379 }
0x14a0   :  { %v15062_v45 = vadd.f32 %v7380_v20, %v7266_v52  ;;  %v7378_v31 = vpop.permute.xlu0 %7377 }
0x14a1   :  { %v15064_v49 = vadd.f32 %v7378_v31, %v7265_v33  ;;  %v7278_v33 = vmul.f32 %v15041_v13, %v14870_v19  ;;  %v7279_v19 = vmul.f32 %v15052_v58, %v14882_v39 }
0x14a2   :  { %11641 = vtanh.f32 %v15062_v45 }
0x14a3   :  { %11643 = vtanh.f32 %v15064_v49  ;;  %v7384_v21 = vpop.permute.xlu1 %7383 }
0x14a4   :  { %v15072_v51 = vadd.f32 %v7384_v21, %v7268_v2  ;;  %v7382_v5 = vpop.permute.xlu0 %7381 }
0x14a5   :  { %v15074_v17 = vadd.f32 %v7382_v5, %v7267_v48  ;;  %v7280_v48 = vmul.f32 %v15049_v63, %v14880_v16 }
0x14a6   :  { %11645 = vtanh.f32 %v15072_v51 }
0x14a7   :  { %11647 = vtanh.f32 %v15074_v17  ;;  %v7388_v62 = vpop.permute.xlu1 %7387 }
0x14a8   :  { %v15082_v55 = vadd.f32 %v7388_v62, %v7270_v61  ;;  %v7386_v15 = vpop.permute.xlu0 %7385 }
0x14a9   :  { %v15084_v53 = vadd.f32 %v7386_v15, %v7269_v44 }
0x14aa   :  { %11649 = vtanh.f32 %v15082_v55 }
0x14ab   :  { %11651 = vtanh.f32 %v15084_v53  ;;  %v7392_v59 = vpop.permute.xlu1 %7391 }
0x14ac   :  { %v11642_v47 = vpop.eup %11641  ;;  %v15092_v12 = vadd.f32 %v7392_v59, %v7272_v38  ;;  %v7390_v18 = vpop.permute.xlu0 %7389 }
0x14ad   :  { %v11644_v0 = vpop.eup %11643  ;;  %v15094_v42 = vadd.f32 %v7390_v18, %v7271_v34  ;;  %7475 = vrot.lane.b32.xlu1 %v11642_v47, %s11892_s0 }
0x14ae   :  { %11653 = vtanh.f32 %v15092_v12  ;;  %7473 = vrot.lane.b32.xlu0 %v11644_v0, %s11892_s0 }
0x14af   :  { %11655 = vtanh.f32 %v15094_v42 }
0x14b0   :  { %v11646_v57 = vpop.eup %11645 }
0x14b1   :  { %v11648_v35 = vpop.eup %11647  ;;  %7479 = vrot.lane.b32.xlu1 %v11646_v57, %s11892_s0 }
0x14b2   :  { %7477 = vrot.lane.b32.xlu0 %v11648_v35, %s11892_s0 }
0x14b4   :  { %v11650_v56 = vpop.eup %11649 }
0x14b5   :  { %v11652_v14 = vpop.eup %11651  ;;  %7483 = vrot.lane.b32.xlu1 %v11650_v56, %s11892_s0 }
0x14b6   :  { %7481 = vrot.lane.b32.xlu0 %v11652_v14, %s11892_s0 }
0x14b8   :  { %v11654_v24 = vpop.eup %11653 }
0x14b9   :  { %v11656_v23 = vpop.eup %11655  ;;  %7487 = vrot.lane.b32.xlu1 %v11654_v24, %s11892_s0 }
0x14ba   :  { %7485 = vrot.lane.b32.xlu0 %v11656_v23, %s11892_s0 }
0x14c1   :  { %v7396_v26 = vpop.permute.xlu1 %7395 }
0x14c2   :  { %v15110_v32 = vadd.f32 %v7396_v26, %v7274_v3  ;;  %v7394_v4 = vpop.permute.xlu0 %7393 }
0x14c3   :  { %v15112_v6 = vadd.f32 %v7394_v4, %v7273_v30 }
0x14c4   :  { %11657 = vtanh.f32 %v15110_v32 }
0x14c5   :  { %11659 = vtanh.f32 %v15112_v6  ;;  %v7400_v37 = vpop.permute.xlu1 %7399 }
0x14c6   :  { %v15120_v52 = vadd.f32 %v7400_v37, %v7276_v28  ;;  %v7398_v20 = vpop.permute.xlu0 %7397 }
0x14c7   :  { %v15122_v29 = vadd.f32 %v7398_v20, %v7275_v60 }
0x14c8   :  { %11661 = vtanh.f32 %v15120_v52 }
0x14c9   :  { %11663 = vtanh.f32 %v15122_v29  ;;  %v7404_v31 = vpop.permute.xlu1 %7403 }
0x14ca   :  { %v15130_v2 = vadd.f32 %v7404_v31, %v7278_v33  ;;  %v7402_v21 = vpop.permute.xlu0 %7401 }
0x14cb   :  { %v15132_v46 = vadd.f32 %v7402_v21, %v7277_v50 }
0x14cc   :  { %11665 = vtanh.f32 %v15130_v2 }
0x14cd   :  { %11667 = vtanh.f32 %v15132_v46  ;;  %v7408_v5 = vpop.permute.xlu1 %7407 }
0x14ce   :  { %v11658_v61 = vpop.eup %11657  ;;  %v15140_v62 = vadd.f32 %v7408_v5, %v7280_v48  ;;  %v7406_v41 = vpop.permute.xlu0 %7405 }
0x14cf   :  { %v11660_v44 = vpop.eup %11659  ;;  %v15142_v15 = vadd.f32 %v7406_v41, %v7279_v19  ;;  %7491 = vrot.lane.b32.xlu1 %v11658_v61, %s11892_s0 }
0x14d0   :  { %11669 = vtanh.f32 %v15140_v62  ;;  %7489 = vrot.lane.b32.xlu0 %v11660_v44, %s11892_s0 }
0x14d1   :  { %11671 = vtanh.f32 %v15142_v15 }
0x14d2   :  { %v11662_v16 = vpop.eup %11661 }
0x14d3   :  { %v11664_v38 = vpop.eup %11663  ;;  %7495 = vrot.lane.b32.xlu1 %v11662_v16, %s11892_s0 }
0x14d4   :  { %7493 = vrot.lane.b32.xlu0 %v11664_v38, %s11892_s0 }
0x14d6   :  { %v11666_v39 = vpop.eup %11665 }
0x14d7   :  { %v11668_v59 = vpop.eup %11667  ;;  %7499 = vrot.lane.b32.xlu1 %v11666_v39, %s11892_s0 }
0x14d8   :  { %7497 = vrot.lane.b32.xlu0 %v11668_v59, %s11892_s0 }
0x14da   :  { %v11670_v34 = vpop.eup %11669 }
0x14db   :  { %v11672_v47 = vpop.eup %11671  ;;  %7503 = vrot.lane.b32.xlu1 %v11670_v34, %s11892_s0 }
0x14dc   :  { %7501 = vrot.lane.b32.xlu0 %v11672_v47, %s11892_s0 }
0x151f   :  { %v7476_v18 = vpop.permute.xlu1 %7475 }
0x1520   :  { %v7522_v0 = vmul.f32 %v14986_v10, %v7476_v18  ;;  %v7474_v57 = vpop.permute.xlu0 %7473 }
0x1521   :  { %v7521_v35 = vmul.f32 %v14988_v54, %v7474_v57 }
0x1522   :  { %7571 = vrot.lane.b32.xlu1 %v7522_v0, %s11893_s24 }
0x1523   :  { %v7480_v56 = vpop.permute.xlu1 %7479  ;;  %7569 = vrot.lane.b32.xlu0 %v7521_v35, %s11893_s24 }
0x1524   :  { %v7524_v14 = vmul.f32 %v14994_v22, %v7480_v56  ;;  %v7478_v24 = vpop.permute.xlu0 %7477 }
0x1525   :  { %v7523_v23 = vmul.f32 %v14998_v25, %v7478_v24 }
0x1526   :  { %7575 = vrot.lane.b32.xlu1 %v7524_v14, %s11893_s24 }
0x1527   :  { %v7484_v3 = vpop.permute.xlu1 %7483  ;;  %7573 = vrot.lane.b32.xlu0 %v7523_v23, %s11893_s24 }
0x1528   :  { %v7526_v10 = vmul.f32 %v15004_v1, %v7484_v3  ;;  %v7482_v26 = vpop.permute.xlu0 %7481 }
0x1529   :  { %v7525_v54 = vmul.f32 %v15008_v7, %v7482_v26 }
0x152a   :  { %7579 = vrot.lane.b32.xlu1 %v7526_v10, %s11893_s24 }
0x152b   :  { %v7488_v30 = vpop.permute.xlu1 %7487  ;;  %7577 = vrot.lane.b32.xlu0 %v7525_v54, %s11893_s24 }
0x152c   :  { %v7528_v22 = vmul.f32 %v15014_v8, %v7488_v30  ;;  %v7486_v4 = vpop.permute.xlu0 %7485 }
0x152d   :  { %v7527_v25 = vmul.f32 %v15018_v11, %v7486_v4 }
0x152e   :  { %7583 = vrot.lane.b32.xlu1 %v7528_v22, %s11893_s24 }
0x152f   :  { %7581 = vrot.lane.b32.xlu0 %v7527_v25, %s11893_s24 }
0x1541   :  { %v7492_v28 = vpop.permute.xlu1 %7491 }
0x1542   :  { %v7530_v1 = vmul.f32 %v15026_v27, %v7492_v28  ;;  %v7490_v37 = vpop.permute.xlu0 %7489 }
0x1543   :  { %v7529_v7 = vmul.f32 %v15028_v36, %v7490_v37 }
0x1544   :  { %7587 = vrot.lane.b32.xlu1 %v7530_v1, %s11893_s24 }
0x1545   :  { %v7496_v60 = vpop.permute.xlu1 %7495  ;;  %7585 = vrot.lane.b32.xlu0 %v7529_v7, %s11893_s24 }
0x1546   :  { %v7532_v8 = vmul.f32 %v15033_v9, %v7496_v60  ;;  %v7494_v20 = vpop.permute.xlu0 %7493 }
0x1547   :  { %v7531_v11 = vmul.f32 %v15036_v43, %v7494_v20 }
0x1548   :  { %7591 = vrot.lane.b32.xlu1 %v7532_v8, %s11893_s24 }
0x1549   :  { %v7500_v33 = vpop.permute.xlu1 %7499  ;;  %7589 = vrot.lane.b32.xlu0 %v7531_v11, %s11893_s24 }
0x154a   :  { %v7534_v27 = vmul.f32 %v15041_v13, %v7500_v33  ;;  %v7498_v31 = vpop.permute.xlu0 %7497 }
0x154b   :  { %v7533_v36 = vmul.f32 %v15044_v40, %v7498_v31 }
0x154c   :  { %7595 = vrot.lane.b32.xlu1 %v7534_v27, %s11893_s24 }
0x154d   :  { %v7504_v50 = vpop.permute.xlu1 %7503  ;;  %7593 = vrot.lane.b32.xlu0 %v7533_v36, %s11893_s24 }
0x154e   :  { %v7536_v9 = vmul.f32 %v15049_v63, %v7504_v50  ;;  %v7502_v21 = vpop.permute.xlu0 %7501 }
0x154f   :  { %v7535_v43 = vmul.f32 %v15052_v58, %v7502_v21 }
0x1550   :  { %7599 = vrot.lane.b32.xlu1 %v7536_v9, %s11893_s24 }
0x1551   :  { %7597 = vrot.lane.b32.xlu0 %v7535_v43, %s11893_s24 }
0x1594   :  { %v7572_v48 = vpop.permute.xlu1 %7571 }
0x1595   :  { %v7570_v5 = vpop.permute.xlu0 %7569 }
0x1596   :  { %10251 = vmatprep.mubr.msk.f32.mxu1 %vm3142_vm0, %v7570_v5 }
0x1597   :  { %10252 = vmatmul.mubr.msk.f32.vlgmr.msra.gmra.mrb[48].mxu1 %vm3142_vm0, %v7572_v48 }
0x1598   :  { %v7576_v13 = vpop.permute.xlu1 %7575 }
0x1599   :  { %v7574_v40 = vpop.permute.xlu0 %7573 }
0x159a   :  { %10254 = vmatprep.mubr.msk.f32.mxu1 %vm3142_vm0, %v7574_v40 }
0x159b   :  { %10255 = vmatmul.mubr.msk.f32.gmra.mrb[50].mxu1 %vm3142_vm0, %v7576_v13 }
0x159c   :  { %v7580_v63 = vpop.permute.xlu1 %7579 }
0x159d   :  { %v7578_v19 = vpop.permute.xlu0 %7577 }
0x159e   :  { %10257 = vmatprep.mubr.msk.f32.mxu1 %vm3142_vm0, %v7578_v19 }
0x159f   :  { %10258 = vmatmul.mubr.msk.f32.gmra.mrb[52].mxu1 %vm3142_vm0, %v7580_v63 }
0x15a0   :  { %v7584_v61 = vpop.permute.xlu1 %7583 }
0x15a1   :  { %v7582_v58 = vpop.permute.xlu0 %7581 }
0x15a2   :  { %10260 = vmatprep.mubr.msk.f32.mxu1 %vm3142_vm0, %v7582_v58 }
0x15a3   :  { %10261 = vmatmul.mubr.msk.f32.gmra.mrb[54].mxu1 %vm3142_vm0, %v7584_v61 }
0x15b6   :  { %v7588_v41 = vpop.permute.xlu1 %7587 }
0x15b7   :  { %v7586_v44 = vpop.permute.xlu0 %7585 }
0x15b8   :  { %10263 = vmatprep.mubr.msk.f32.mxu1 %vm3142_vm0, %v7586_v44 }
0x15b9   :  { %10264 = vmatmul.mubr.msk.f32.gmra.mrb[56].mxu1 %vm3142_vm0, %v7588_v41 }
0x15ba   :  { %v7592_v16 = vpop.permute.xlu1 %7591 }
0x15bb   :  { %v7590_v38 = vpop.permute.xlu0 %7589 }
0x15bc   :  { %10266 = vmatprep.mubr.msk.f32.mxu1 %vm3142_vm0, %v7590_v38 }
0x15bd   :  { %10267 = vmatmul.mubr.msk.f32.gmra.mrb[58].mxu1 %vm3142_vm0, %v7592_v16 }
0x15be   :  { %v7596_v39 = vpop.permute.xlu1 %7595 }
0x15bf   :  { %v7594_v59 = vpop.permute.xlu0 %7593 }
0x15c0   :  { %10269 = vmatprep.mubr.msk.f32.mxu1 %vm3142_vm0, %v7594_v59 }
0x15c1   :  { %10270 = vmatmul.mubr.msk.f32.gmra.mrb[60].mxu1 %vm3142_vm0, %v7596_v39 }
0x15c2   :  { %v7600_v47 = vpop.permute.xlu1 %7599 }
0x15c3   :  { %v7598_v34 = vpop.permute.xlu0 %7597 }
0x15c4   :  { %10272 = vmatprep.mubr.msk.f32.mxu1 %vm3142_vm0, %v7598_v34 }
0x15c5   :  { %10273 = vmatmul.mubr.msk.f32.gmra.mrb[62].mxu1 %vm3142_vm0, %v7600_v47 }
0x166a   :  { %v15202_v18 = vpop.f32.mrb[48].mxu1 }
0x166b   :  { %11673 = vtanh.f32 %v15202_v18  ;;  %v7699_v0 = vpop.f32.mrb[49].mxu1  ;;  %v9103_v48 = vmul.f32 -1.442695, %v15202_v18 }
0x166c   :  { %11675 = vtanh.f32 %v7699_v0  ;;  %v9102_v5 = vmul.f32 -1.442695, %v7699_v0 }
0x166e   :  { %v10256_v57 = vpop.f32.mrb[50].mxu1 }
0x166f   :  { %11677 = vtanh.f32 %v10256_v57  ;;  %v7709_v35 = vpop.f32.mrb[51].mxu1  ;;  %v9105_v13 = vmul.f32 -1.442695, %v10256_v57 }
0x1670   :  { %11679 = vtanh.f32 %v7709_v35  ;;  %v9104_v40 = vmul.f32 -1.442695, %v7709_v35 }
0x1672   :  { %v10259_v56 = vpop.f32.mrb[52].mxu1 }
0x1673   :  { %11681 = vtanh.f32 %v10259_v56  ;;  %v7719_v14 = vpop.f32.mrb[53].mxu1  ;;  %v9107_v63 = vmul.f32 -1.442695, %v10259_v56 }
0x1674   :  { %11683 = vtanh.f32 %v7719_v14  ;;  %v9106_v19 = vmul.f32 -1.442695, %v7719_v14 }
0x1675   :  { %v11674_v24 = vpop.eup %11673 }
0x1676   :  { %v11676_v23 = vpop.eup %11675  ;;  %7940 = vrot.lane.b32.xlu1 %v11674_v24, %s11892_s0  ;;  %v10262_v3 = vpop.f32.mrb[54].mxu1 }
0x1677   :  { %11685 = vtanh.f32 %v10262_v3  ;;  %7938 = vrot.lane.b32.xlu0 %v11676_v23, %s11892_s0  ;;  %v7729_v10 = vpop.f32.mrb[55].mxu1  ;;  %v9109_v58 = vmul.f32 -1.442695, %v10262_v3 }
0x1678   :  { %11687 = vtanh.f32 %v7729_v10  ;;  %v9108_v61 = vmul.f32 -1.442695, %v7729_v10 }
0x1679   :  { %v11678_v26 = vpop.eup %11677 }
0x167a   :  { %v11680_v54 = vpop.eup %11679  ;;  %7944 = vrot.lane.b32.xlu1 %v11678_v26, %s11892_s0 }
0x167b   :  { %7942 = vrot.lane.b32.xlu0 %v11680_v54, %s11892_s0 }
0x167d   :  { %v11682_v30 = vpop.eup %11681 }
0x167e   :  { %v11684_v22 = vpop.eup %11683  ;;  %7948 = vrot.lane.b32.xlu1 %v11682_v30, %s11892_s0 }
0x167f   :  { %7946 = vrot.lane.b32.xlu0 %v11684_v22, %s11892_s0 }
0x1681   :  { %v11686_v4 = vpop.eup %11685 }
0x1682   :  { %v11688_v25 = vpop.eup %11687  ;;  %7952 = vrot.lane.b32.xlu1 %v11686_v4, %s11892_s0 }
0x1683   :  { %7950 = vrot.lane.b32.xlu0 %v11688_v25, %s11892_s0 }
0x168c   :  { %v15213_v28 = vpop.f32.mrb[56].mxu1 }
0x168d   :  { %11689 = vtanh.f32 %v15213_v28  ;;  %v15216_v1 = vpop.f32.mrb[57].mxu1  ;;  %v9111_v4 = vmul.f32 -1.442695, %v15213_v28 }
0x168e   :  { %11691 = vtanh.f32 %v15216_v1 }
0x1690   :  { %v15219_v37 = vpop.f32.mrb[58].mxu1 }
0x1691   :  { %11693 = vtanh.f32 %v15219_v37  ;;  %v15222_v7 = vpop.f32.mrb[59].mxu1 }
0x1692   :  { %11695 = vtanh.f32 %v15222_v7 }
0x1694   :  { %v15225_v60 = vpop.f32.mrb[60].mxu1 }
0x1695   :  { %11697 = vtanh.f32 %v15225_v60  ;;  %v15228_v8 = vpop.f32.mrb[61].mxu1 }
0x1696   :  { %11699 = vtanh.f32 %v15228_v8 }
0x1697   :  { %v11690_v20 = vpop.eup %11689 }
0x1698   :  { %v11692_v11 = vpop.eup %11691  ;;  %7956 = vrot.lane.b32.xlu1 %v11690_v20, %s11892_s0  ;;  %v15232_v33 = vpop.f32.mrb[62].mxu1  ;;  %v9110_v20 = vmul.f32 -1.442695, %v15216_v1  ;;  %v9112_v1 = vmul.f32 -1.442695, %v15222_v7 }
0x1699   :  { %11701 = vtanh.f32 %v15232_v33  ;;  %7954 = vrot.lane.b32.xlu0 %v11692_v11, %s11892_s0  ;;  %v15236_v27 = vpop.f32.mrb[63].mxu1  ;;  %v9114_v7 = vmul.f32 -1.442695, %v15228_v8 }
0x169a   :  { %11703 = vtanh.f32 %v15236_v27 }
0x169b   :  { %v11694_v31 = vpop.eup %11693  ;;  %11705 = vpow2.f32 %v9103_v48 }
0x169c   :  { %v11696_v36 = vpop.eup %11695  ;;  %7960 = vrot.lane.b32.xlu1 %v11694_v31, %s11892_s0  ;;  %11707 = vpow2.f32 %v9102_v5 }
0x169d   :  { %7958 = vrot.lane.b32.xlu0 %v11696_v36, %s11892_s0  ;;  %11709 = vpow2.f32 %v9105_v13 }
0x169e   :  { %11711 = vpow2.f32 %v9104_v40 }
0x169f   :  { %v11698_v50 = vpop.eup %11697  ;;  %11713 = vpow2.f32 %v9107_v63 }
0x16a0   :  { %v11700_v9 = vpop.eup %11699  ;;  %7964 = vrot.lane.b32.xlu1 %v11698_v50, %s11892_s0  ;;  %11715 = vpow2.f32 %v9106_v19 }
0x16a1   :  { %7962 = vrot.lane.b32.xlu0 %v11700_v9, %s11892_s0  ;;  %11717 = vpow2.f32 %v9109_v58 }
0x16a2   :  { %11719 = vpow2.f32 %v9108_v61 }
0x16a3   :  { %v11702_v21 = vpop.eup %11701 }
0x16a4   :  { %v11704_v43 = vpop.eup %11703  ;;  %7968 = vrot.lane.b32.xlu1 %v11702_v21, %s11892_s0  ;;  %v9113_v21 = vmul.f32 -1.442695, %v15219_v37  ;;  %v9115_v37 = vmul.f32 -1.442695, %v15225_v60  ;;  %v9117_v60 = vmul.f32 -1.442695, %v15232_v33 }
0x16a5   :  { %7966 = vrot.lane.b32.xlu0 %v11704_v43, %s11892_s0  ;;  %v11706_v41 = vpop.eup %11705 }
0x16a6   :  { %v11708_v44 = vpop.eup %11707  ;;  %v7843_v16 = vadd.f32 1.0, %v11706_v41 }
0x16a7   :  { %v11710_v38 = vpop.eup %11709  ;;  %v7842_v39 = vadd.f32 1.0, %v11708_v44 }
0x16a8   :  { %v11712_v59 = vpop.eup %11711  ;;  %11721 = vrcp.f32 %v7843_v16  ;;  %v7845_v34 = vadd.f32 1.0, %v11710_v38  ;;  %v9116_v16 = vmul.f32 -1.442695, %v15236_v27 }
0x16a9   :  { %v11714_v47 = vpop.eup %11713  ;;  %11723 = vrcp.f32 %v7842_v39  ;;  %v7844_v18 = vadd.f32 1.0, %v11712_v59 }
0x16aa   :  { %v11716_v0 = vpop.eup %11715  ;;  %11725 = vrcp.f32 %v7845_v34  ;;  %v7847_v57 = vadd.f32 1.0, %v11714_v47 }
0x16ab   :  { %v11718_v35 = vpop.eup %11717  ;;  %11727 = vrcp.f32 %v7844_v18  ;;  %v7846_v56 = vadd.f32 1.0, %v11716_v0 }
0x16ac   :  { %v11720_v14 = vpop.eup %11719  ;;  %11729 = vrcp.f32 %v7847_v57  ;;  %v7849_v24 = vadd.f32 1.0, %v11718_v35 }
0x16ad   :  { %11731 = vrcp.f32 %v7846_v56  ;;  %v7848_v23 = vadd.f32 1.0, %v11720_v14 }
0x16ae   :  { %11733 = vrcp.f32 %v7849_v24 }
0x16af   :  { %11735 = vrcp.f32 %v7848_v23 }
0x16b0   :  { %11737 = vpow2.f32 %v9111_v4 }
0x16b1   :  { %11739 = vpow2.f32 %v9110_v20 }
0x16b2   :  { %v15246_v3 = vpop.eup %11721  ;;  %11741 = vpow2.f32 %v9113_v21 }
0x16b3   :  { %v15248_v26 = vpop.eup %11723  ;;  %11743 = vpow2.f32 %v9112_v1 }
0x16b4   :  { %v15254_v25 = vpop.eup %11725  ;;  %11745 = vpow2.f32 %v9115_v37 }
0x16b5   :  { %v15258_v31 = vpop.eup %11727  ;;  %11747 = vpow2.f32 %v9114_v7 }
0x16b6   :  { %v15264_v28 = vpop.eup %11729  ;;  %11749 = vpow2.f32 %v9117_v60 }
0x16b7   :  { %v15268_v48 = vpop.eup %11731  ;;  %11751 = vpow2.f32 %v9116_v16 }
0x16b8   :  { %v15274_v63 = vpop.eup %11733 }
0x16b9   :  { %v15278_v58 = vpop.eup %11735 }
0x16ba   :  { %v11738_v8 = vpop.eup %11737 }
0x16bb   :  { %v11740_v38 = vpop.eup %11739  ;;  %v7851_v39 = vadd.f32 1.0, %v11738_v8  ;;  %v7907_v8 = vmul.f32 %v15246_v3, %v15062_v45  ;;  %v7911_v45 = vmul.f32 %v15264_v28, %v15082_v55 }
0x16bc   :  { %v11742_v59 = vpop.eup %11741  ;;  %v7850_v34 = vadd.f32 1.0, %v11740_v38 }
0x16bd   :  { %v11744_v47 = vpop.eup %11743  ;;  %11753 = vrcp.f32 %v7851_v39  ;;  %v7853_v18 = vadd.f32 1.0, %v11742_v59  ;;  %v7906_v39 = vmul.f32 %v15248_v26, %v15064_v49 }
0x16be   :  { %v11746_v0 = vpop.eup %11745  ;;  %11755 = vrcp.f32 %v7850_v34  ;;  %v7852_v33 = vadd.f32 1.0, %v11744_v47 }
0x16bf   :  { %v11748_v57 = vpop.eup %11747  ;;  %11757 = vrcp.f32 %v7853_v18  ;;  %v7855_v35 = vadd.f32 1.0, %v11746_v0  ;;  %v7909_v18 = vmul.f32 %v15254_v25, %v15072_v51 }
0x16c0   :  { %v11750_v56 = vpop.eup %11749  ;;  %11759 = vrcp.f32 %v7852_v33  ;;  %v7854_v27 = vadd.f32 1.0, %v11748_v57  ;;  %v7908_v33 = vmul.f32 %v15258_v31, %v15074_v17 }
0x16c1   :  { %v11752_v14 = vpop.eup %11751  ;;  %11761 = vrcp.f32 %v7855_v35  ;;  %v7857_v24 = vadd.f32 1.0, %v11750_v56 }
0x16c2   :  { %11763 = vrcp.f32 %v7854_v27  ;;  %v7856_v23 = vadd.f32 1.0, %v11752_v14  ;;  %v7910_v27 = vmul.f32 %v15268_v48, %v15084_v53 }
0x16c3   :  { %11765 = vrcp.f32 %v7857_v24 }
0x16c4   :  { %11767 = vrcp.f32 %v7856_v23  ;;  %v7913_v23 = vmul.f32 %v15274_v63, %v15092_v12 }
0x16e8   :  { %v7941_v10 = vpop.permute.xlu1 %7940 }
0x16e9   :  { %v7987_v54 = vmul.f32 %v15246_v3, %v7941_v10  ;;  %v7939_v30 = vpop.permute.xlu0 %7938  ;;  %v15286_v10 = vpop.eup %11753 }
0x16ea   :  { %v7986_v22 = vmul.f32 %v15248_v26, %v7939_v30  ;;  %v15288_v30 = vpop.eup %11755 }
0x16eb   :  { %8020 = vrot.lane.b32.xlu1 %v7987_v54, %s11892_s0 }
0x16ec   :  { %v7945_v11 = vpop.permute.xlu1 %7944  ;;  %8018 = vrot.lane.b32.xlu0 %v7986_v22, %s11892_s0 }
0x16ed   :  { %v7989_v36 = vmul.f32 %v15254_v25, %v7945_v11  ;;  %v7943_v50 = vpop.permute.xlu0 %7942  ;;  %v15293_v11 = vpop.eup %11757 }
0x16ee   :  { %v7988_v9 = vmul.f32 %v15258_v31, %v7943_v50  ;;  %v15296_v50 = vpop.eup %11759 }
0x16ef   :  { %8024 = vrot.lane.b32.xlu1 %v7989_v36, %s11892_s0 }
0x16f0   :  { %v7949_v43 = vpop.permute.xlu1 %7948  ;;  %8022 = vrot.lane.b32.xlu0 %v7988_v9, %s11892_s0 }
0x16f1   :  { %v7991_v5 = vmul.f32 %v15264_v28, %v7949_v43  ;;  %v7947_v13 = vpop.permute.xlu0 %7946  ;;  %v15301_v43 = vpop.eup %11761 }
0x16f2   :  { %v7990_v40 = vmul.f32 %v15268_v48, %v7947_v13  ;;  %v15304_v13 = vpop.eup %11763 }
0x16f3   :  { %8028 = vrot.lane.b32.xlu1 %v7991_v5, %s11892_s0 }
0x16f4   :  { %v7953_v19 = vpop.permute.xlu1 %7952  ;;  %8026 = vrot.lane.b32.xlu0 %v7990_v40, %s11892_s0 }
0x16f5   :  { %v7993_v61 = vmul.f32 %v15274_v63, %v7953_v19  ;;  %v7951_v41 = vpop.permute.xlu0 %7950  ;;  %v15309_v19 = vpop.eup %11765 }
0x16f6   :  { %v7992_v44 = vmul.f32 %v15278_v58, %v7951_v41  ;;  %v15312_v41 = vpop.eup %11767 }
0x16f7   :  { %8032 = vrot.lane.b32.xlu1 %v7993_v61, %s11892_s0 }
0x16f8   :  { %8030 = vrot.lane.b32.xlu0 %v7992_v44, %s11892_s0 }
0x170a   :  { %v7957_v54 = vpop.permute.xlu1 %7956 }
0x170b   :  { %v7995_v22 = vmul.f32 %v15286_v10, %v7957_v54  ;;  %v7955_v4 = vpop.permute.xlu0 %7954  ;;  %v7912_v54 = vmul.f32 %v15278_v58, %v15094_v42 }
0x170c   :  { %v7994_v20 = vmul.f32 %v15288_v30, %v7955_v4 }
0x170d   :  { %8036 = vrot.lane.b32.xlu1 %v7995_v22, %s11892_s0 }
0x170e   :  { %v7961_v36 = vpop.permute.xlu1 %7960  ;;  %8034 = vrot.lane.b32.xlu0 %v7994_v20, %s11892_s0 }
0x170f   :  { %v7997_v9 = vmul.f32 %v15293_v11, %v7961_v36  ;;  %v7959_v21 = vpop.permute.xlu0 %7958 }
0x1710   :  { %v7996_v1 = vmul.f32 %v15296_v50, %v7959_v21 }
0x1711   :  { %8040 = vrot.lane.b32.xlu1 %v7997_v9, %s11892_s0 }
0x1712   :  { %v7965_v5 = vpop.permute.xlu1 %7964  ;;  %8038 = vrot.lane.b32.xlu0 %v7996_v1, %s11892_s0 }
0x1713   :  { %v7999_v40 = vmul.f32 %v15301_v43, %v7965_v5  ;;  %v7963_v37 = vpop.permute.xlu0 %7962  ;;  %v7915_v5 = vmul.f32 %v15286_v10, %v15110_v32  ;;  %v7919_v32 = vmul.f32 %v15301_v43, %v15130_v2 }
0x1714   :  { %v7998_v7 = vmul.f32 %v15304_v13, %v7963_v37  ;;  %v7914_v37 = vmul.f32 %v15288_v30, %v15112_v6 }
0x1715   :  { %8044 = vrot.lane.b32.xlu1 %v7999_v40, %s11892_s0 }
0x1716   :  { %v7969_v61 = vpop.permute.xlu1 %7968  ;;  %8042 = vrot.lane.b32.xlu0 %v7998_v7, %s11892_s0 }
0x1717   :  { %v8001_v44 = vmul.f32 %v15309_v19, %v7969_v61  ;;  %v7967_v60 = vpop.permute.xlu0 %7966 }
0x1718   :  { %v8000_v16 = vmul.f32 %v15312_v41, %v7967_v60  ;;  %v7917_v60 = vmul.f32 %v15293_v11, %v15120_v52 }
0x1719   :  { %8048 = vrot.lane.b32.xlu1 %v8001_v44, %s11892_s0 }
0x171a   :  { %8046 = vrot.lane.b32.xlu0 %v8000_v16, %s11892_s0 }
0x175d   :  { %v8021_v38 = vpop.permute.xlu1 %8020 }
0x175e   :  { %v8067_v59 = vadd.f32 %v8021_v38, %v7907_v8  ;;  %v8019_v34 = vpop.permute.xlu0 %8018  ;;  %v7916_v8 = vmul.f32 %v15296_v50, %v15122_v29 }
0x175f   :  { %v8066_v47 = vadd.f32 %v8019_v34, %v7906_v39  ;;  %v7918_v34 = vmul.f32 %v15304_v13, %v15132_v46  ;;  %v8178_v46 = vld [vmem:[%s15589_s4] sm:$0xff] }
0x1760   :  { %11769 = vtanh.f32 %v8067_v59 }
0x1761   :  { %11771 = vtanh.f32 %v8066_v47  ;;  %v8025_v0 = vpop.permute.xlu1 %8024 }
0x1762   :  { %v8069_v57 = vadd.f32 %v8025_v0, %v7909_v18  ;;  %v8023_v35 = vpop.permute.xlu0 %8022  ;;  %v7921_v0 = vmul.f32 %v15309_v19, %v15140_v62  ;;  %v8179_v62 = vld [vmem:[%s15589_s4 + $0x8] sm:$0xff] }
0x1763   :  { %v8068_v56 = vadd.f32 %v8023_v35, %v7908_v33  ;;  %v7920_v33 = vmul.f32 %v15312_v41, %v15142_v15  ;;  %v8180_v15 = vld [vmem:[%s15589_s4 + $0x10] sm:$0xff] }
0x1764   :  { %11773 = vtanh.f32 %v8069_v57 }
0x1765   :  { %11775 = vtanh.f32 %v8068_v56  ;;  %v8029_v49 = vpop.permute.xlu1 %8028 }
0x1766   :  { %v8071_v14 = vadd.f32 %v8029_v49, %v7911_v45  ;;  %v8027_v24 = vpop.permute.xlu0 %8026 }
0x1767   :  { %v8070_v51 = vadd.f32 %v8027_v24, %v7910_v27  ;;  %v10627_v27 = vpack.c.bf16 %v8179_v62, %v8178_v46 }
0x1768   :  { %11777 = vtanh.f32 %v8071_v14  ;;  %v8181_v14 = vld [vmem:[%s15589_s4 + $0x18] sm:$0xff] }
0x1769   :  { %11779 = vtanh.f32 %v8070_v51  ;;  %v8033_v17 = vpop.permute.xlu1 %8032  ;;  %v10631_v51 = vpack.c.bf16 %v8181_v14, %v8180_v15  ;;  %10628 = vmatprep.subr.bf16.mxu0 %v10627_v27 }
0x176a   :  { %v11770_v22 = vpop.eup %11769  ;;  %v8073_v4 = vadd.f32 %v8033_v17, %v7913_v23  ;;  %v8031_v55 = vpop.permute.xlu0 %8030  ;;  %10630 = vmatpush3.bf16.msra.mxu0 %v10627_v27 }
0x176b   :  { %v11772_v20 = vpop.eup %11771  ;;  %v8072_v36 = vadd.f32 %v8031_v55, %v7912_v54  ;;  %8116 = vrot.lane.b32.xlu1 %v11770_v22, %s11892_s0  ;;  %10632 = vmatprep.subr.bf16.mxu0 %v10631_v51 }
0x176c   :  { %11781 = vtanh.f32 %v8073_v4  ;;  %8114 = vrot.lane.b32.xlu0 %v11772_v20, %s11892_s0 }
0x176d   :  { %11783 = vtanh.f32 %v8072_v36 }
0x176e   :  { %v11774_v53 = vpop.eup %11773  ;;  %10634 = vmatpush3.bf16.msra.mxu0 %v10631_v51 }
0x176f   :  { %v11776_v9 = vpop.eup %11775  ;;  %8120 = vrot.lane.b32.xlu1 %v11774_v53, %s11892_s0 }
0x1770   :  { %8118 = vrot.lane.b32.xlu0 %v11776_v9, %s11892_s0 }
0x1772   :  { %v11778_v12 = vpop.eup %11777 }
0x1773   :  { %v11780_v21 = vpop.eup %11779  ;;  %8124 = vrot.lane.b32.xlu1 %v11778_v12, %s11892_s0 }
0x1774   :  { %8122 = vrot.lane.b32.xlu0 %v11780_v21, %s11892_s0 }
0x1776   :  { %v11782_v42 = vpop.eup %11781 }
0x1777   :  { %v11784_v1 = vpop.eup %11783  ;;  %8128 = vrot.lane.b32.xlu1 %v11782_v42, %s11892_s0 }
0x1778   :  { %8126 = vrot.lane.b32.xlu0 %v11784_v1, %s11892_s0 }
0x177f   :  { %v8037_v40 = vpop.permute.xlu1 %8036 }
0x1780   :  { %v8075_v7 = vadd.f32 %v8037_v40, %v7915_v5  ;;  %v8035_v61 = vpop.permute.xlu0 %8034 }
0x1781   :  { %v8074_v44 = vadd.f32 %v8035_v61, %v7914_v37 }
0x1782   :  { %11785 = vtanh.f32 %v8075_v7 }
0x1783   :  { %11787 = vtanh.f32 %v8074_v44  ;;  %v8041_v16 = vpop.permute.xlu1 %8040 }
0x1784   :  { %v8077_v38 = vadd.f32 %v8041_v16, %v7917_v60  ;;  %v8039_v39 = vpop.permute.xlu0 %8038 }
0x1785   :  { %v8076_v59 = vadd.f32 %v8039_v39, %v7916_v8 }
0x1786   :  { %11789 = vtanh.f32 %v8077_v38 }
0x1787   :  { %11791 = vtanh.f32 %v8076_v59  ;;  %v8045_v6 = vpop.permute.xlu1 %8044 }
0x1788   :  { %v8079_v47 = vadd.f32 %v8045_v6, %v7919_v32  ;;  %v8043_v18 = vpop.permute.xlu0 %8042 }
0x1789   :  { %v8078_v52 = vadd.f32 %v8043_v18, %v7918_v34 }
0x178a   :  { %11793 = vtanh.f32 %v8079_v47 }
0x178b   :  { %11795 = vtanh.f32 %v8078_v52  ;;  %v8049_v29 = vpop.permute.xlu1 %8048 }
0x178c   :  { %v11786_v57 = vpop.eup %11785  ;;  %v8081_v35 = vadd.f32 %v8049_v29, %v7921_v0  ;;  %v8047_v2 = vpop.permute.xlu0 %8046 }
0x178d   :  { %v11788_v56 = vpop.eup %11787  ;;  %v8080_v45 = vadd.f32 %v8047_v2, %v7920_v33  ;;  %8132 = vrot.lane.b32.xlu1 %v11786_v57, %s11892_s0 }
0x178e   :  { %11797 = vtanh.f32 %v8081_v35  ;;  %8130 = vrot.lane.b32.xlu0 %v11788_v56, %s11892_s0  ;;  %v9118_v35 = vld [vmem:[%s15590_s5] ss:$0 sm:$0xff]  ;;  %s11894_s5 = smov [#allocation3]  }
0x178f   :  { %11799 = vtanh.f32 %v8080_v45  ;;  %s8611_s9 = sshll.u32 %s11894_s5, 4  ;;  %s8612_s9 = int_to_ptr.vmem [resolvable:$true] %s8611_s9 }
0x1790   :  { %v11790_v49 = vpop.eup %11789  ;;  %s11865_s10 = scalar_lea.vmem %s8612_s9, 2048  ;;  %p11870_p1 = scmp.lt.s32.totalorder %s8612_s9, %s8612_s9 }
0x1791   :  { %v11792_v24 = vpop.eup %11791  ;;  %8136 = vrot.lane.b32.xlu1 %v11790_v49, %s11892_s0  ;;  %p11866_p0 = scmp.ne.s32.totalorder %s8612_s9, %s11865_s10  ;;  %p11871_p2 = scmp.lt.s32.totalorder %s11865_s10, %s11865_s10 }
0x1792   :  { %8134 = vrot.lane.b32.xlu0 %v11792_v24, %s11892_s0 }
0x1793   :  { %p11872_p3 = por %p11871_p2, %p11870_p1 }
0x1794   :  { %v11794_v23 = vpop.eup %11793 }
0x1795   :  { %v11796_v17 = vpop.eup %11795  ;;  %8140 = vrot.lane.b32.xlu1 %v11794_v23, %s11892_s0  ;;  %p11873_p4 = pnand %p11872_p3, %p11866_p0 }
0x1796   :  { %8138 = vrot.lane.b32.xlu0 %v11796_v17, %s11892_s0 }
0x1798   :  { %v11798_v54 = vpop.eup %11797 }
0x1799   :  { %v11800_v22 = vpop.eup %11799  ;;  %8144 = vrot.lane.b32.xlu1 %v11798_v54, %s11892_s0 }
0x179a   :  { %8142 = vrot.lane.b32.xlu0 %v11800_v22, %s11892_s0 }
0x17dd   :  { %v8117_v4 = vpop.permute.xlu1 %8116 }
0x17de   :  { %v8163_v55 = vmul.f32 %v15246_v3, %v8117_v4  ;;  %v8115_v20 = vpop.permute.xlu0 %8114 }
0x17df   :  { %v8162_v36 = vmul.f32 %v15248_v26, %v8115_v20 }
0x17e0   :  { %8207 = vrot.lane.b32.xlu1 %v8163_v55, %s11893_s24 }
0x17e1   :  { %v8121_v53 = vpop.permute.xlu1 %8120  ;;  %8205 = vrot.lane.b32.xlu0 %v8162_v36, %s11893_s24 }
0x17e2   :  { %v8165_v9 = vmul.f32 %v15254_v25, %v8121_v53  ;;  %v8119_v12 = vpop.permute.xlu0 %8118 }
0x17e3   :  { %v8164_v21 = vmul.f32 %v15258_v31, %v8119_v12 }
0x17e4   :  { %8211 = vrot.lane.b32.xlu1 %v8165_v9, %s11893_s24 }
0x17e5   :  { %v8125_v42 = vpop.permute.xlu1 %8124  ;;  %8209 = vrot.lane.b32.xlu0 %v8164_v21, %s11893_s24 }
0x17e6   :  { %v8167_v3 = vmul.f32 %v15264_v28, %v8125_v42  ;;  %v8123_v1 = vpop.permute.xlu0 %8122 }
0x17e7   :  { %v8166_v26 = vmul.f32 %v15268_v48, %v8123_v1 }
0x17e8   :  { %8215 = vrot.lane.b32.xlu1 %v8167_v3, %s11893_s24 }
0x17e9   :  { %v8129_v5 = vpop.permute.xlu1 %8128  ;;  %8213 = vrot.lane.b32.xlu0 %v8166_v26, %s11893_s24 }
0x17ea   :  { %v8169_v25 = vmul.f32 %v15274_v63, %v8129_v5  ;;  %v8127_v40 = vpop.permute.xlu0 %8126 }
0x17eb   :  { %v8168_v31 = vmul.f32 %v15278_v58, %v8127_v40 }
0x17ec   :  { %8219 = vrot.lane.b32.xlu1 %v8169_v25, %s11893_s24 }
0x17ed   :  { %8217 = vrot.lane.b32.xlu0 %v8168_v31, %s11893_s24 }
0x17ff   :  { %v8133_v37 = vpop.permute.xlu1 %8132 }
0x1800   :  { %v8171_v28 = vmul.f32 %v15286_v10, %v8133_v37  ;;  %v8131_v7 = vpop.permute.xlu0 %8130 }
0x1801   :  { %v8170_v48 = vmul.f32 %v15288_v30, %v8131_v7 }
0x1802   :  { %8223 = vrot.lane.b32.xlu1 %v8171_v28, %s11893_s24 }
0x1803   :  { %v8137_v61 = vpop.permute.xlu1 %8136  ;;  %8221 = vrot.lane.b32.xlu0 %v8170_v48, %s11893_s24 }
0x1804   :  { %v8173_v63 = vmul.f32 %v15293_v11, %v8137_v61  ;;  %v8135_v44 = vpop.permute.xlu0 %8134 }
0x1805   :  { %v8172_v58 = vmul.f32 %v15296_v50, %v8135_v44 }
0x1806   :  { %8227 = vrot.lane.b32.xlu1 %v8173_v63, %s11893_s24 }
0x1807   :  { %v8141_v60 = vpop.permute.xlu1 %8140  ;;  %8225 = vrot.lane.b32.xlu0 %v8172_v58, %s11893_s24 }
0x1808   :  { %v8175_v10 = vmul.f32 %v15301_v43, %v8141_v60  ;;  %v8139_v16 = vpop.permute.xlu0 %8138 }
0x1809   :  { %v8174_v30 = vmul.f32 %v15304_v13, %v8139_v16 }
0x180a   :  { %8231 = vrot.lane.b32.xlu1 %v8175_v10, %s11893_s24 }
0x180b   :  { %v8145_v8 = vpop.permute.xlu1 %8144  ;;  %8229 = vrot.lane.b32.xlu0 %v8174_v30, %s11893_s24 }
0x180c   :  { %v8177_v11 = vmul.f32 %v15309_v19, %v8145_v8  ;;  %v8143_v38 = vpop.permute.xlu0 %8142 }
0x180d   :  { %v8176_v50 = vmul.f32 %v15312_v41, %v8143_v38 }
0x180e   :  { %8235 = vrot.lane.b32.xlu1 %v8177_v11, %s11893_s24 }
0x180f   :  { %8233 = vrot.lane.b32.xlu0 %v8176_v50, %s11893_s24 }
0x1852   :  { %v8208_v39 = vpop.permute.xlu1 %8207 }
0x1853   :  { %v8206_v59 = vpop.permute.xlu0 %8205 }
0x1854   :  { %10283 = vmatprep.mubr.msk.f32.mxu0 %vm3142_vm0, %v8206_v59 }
0x1855   :  { %10284 = vmatmul.mubr.msk.f32.vlgmr.msra.gmra.mrb[64].mxu0 %vm3142_vm0, %v8208_v39 }
0x1856   :  { %v8212_v43 = vpop.permute.xlu1 %8211 }
0x1857   :  { %v8210_v13 = vpop.permute.xlu0 %8209 }
0x1858   :  { %10286 = vmatprep.mubr.msk.f32.mxu0 %vm3142_vm0, %v8210_v13 }
0x1859   :  { %10287 = vmatmul.mubr.msk.f32.gmra.mrb[66].mxu0 %vm3142_vm0, %v8212_v43 }
0x185a   :  { %v8216_v19 = vpop.permute.xlu1 %8215 }
0x185b   :  { %v8214_v32 = vpop.permute.xlu0 %8213 }
0x185c   :  { %10289 = vmatprep.mubr.msk.f32.mxu0 %vm3142_vm0, %v8214_v32 }
0x185d   :  { %10290 = vmatmul.mubr.msk.f32.gmra.mrb[68].mxu0 %vm3142_vm0, %v8216_v19 }
0x185e   :  { %v8220_v6 = vpop.permute.xlu1 %8219 }
0x185f   :  { %v8218_v41 = vpop.permute.xlu0 %8217 }
0x1860   :  { %10292 = vmatprep.mubr.msk.f32.mxu0 %vm3142_vm0, %v8218_v41 }
0x1861   :  { %10293 = vmatmul.mubr.msk.f32.gmra.mrb[70].mxu0 %vm3142_vm0, %v8220_v6 }
0x1874   :  { %v8224_v34 = vpop.permute.xlu1 %8223 }
0x1875   :  { %v8222_v47 = vpop.permute.xlu0 %8221 }
0x1876   :  { %10295 = vmatprep.mubr.msk.f32.mxu0 %vm3142_vm0, %v8222_v47 }
0x1877   :  { %10296 = vmatmul.mubr.msk.f32.gmra.mrb[72].mxu0 %vm3142_vm0, %v8224_v34 }
0x1878   :  { %v8228_v18 = vpop.permute.xlu1 %8227 }
0x1879   :  { %v8226_v52 = vpop.permute.xlu0 %8225 }
0x187a   :  { %10298 = vmatprep.mubr.msk.f32.mxu0 %vm3142_vm0, %v8226_v52 }
0x187b   :  { %10299 = vmatmul.mubr.msk.f32.gmra.mrb[74].mxu0 %vm3142_vm0, %v8228_v18 }
0x187c   :  { %v8232_v0 = vpop.permute.xlu1 %8231 }
0x187d   :  { %v8230_v29 = vpop.permute.xlu0 %8229 }
0x187e   :  { %10301 = vmatprep.mubr.msk.f32.mxu0 %vm3142_vm0, %v8230_v29 }
0x187f   :  { %10302 = vmatmul.mubr.msk.f32.gmra.mrb[76].mxu0 %vm3142_vm0, %v8232_v0 }
0x1880   :  { %v8236_v57 = vpop.permute.xlu1 %8235 }
0x1881   :  { %v8234_v33 = vpop.permute.xlu0 %8233 }
0x1882   :  { %10304 = vmatprep.mubr.msk.f32.mxu0 %vm3142_vm0, %v8234_v33 }
0x1883   :  { %10305 = vmatmul.mubr.msk.f32.gmra.mrb[78].mxu0 %vm3142_vm0, %v8236_v57 }
0x1928   :  { %v10285_v2 = vpop.f32.mrb[64].mxu0 }
0x1929   :  { %v15429_v56 = vadd.f32 %v10285_v2, %v9118_v35  ;;  %v8335_v45 = vpop.f32.mrb[65].mxu0 }
0x192a   :  { %v15431_v46 = vadd.f32 %v9118_v35, %v8335_v45 }
0x192b   :  { %8416 = vmax.xlane.f32.xlu1 %v15429_v56 }
0x192c   :  { %8414 = vmax.xlane.f32.xlu0 %v15431_v46  ;;  %v10288_v62 = vpop.f32.mrb[66].mxu0 }
0x192d   :  { %v15435_v15 = vadd.f32 %v10288_v62, %v9118_v35  ;;  %v8345_v49 = vpop.f32.mrb[67].mxu0 }
0x192e   :  { %v15438_v24 = vadd.f32 %v9118_v35, %v8345_v49 }
0x1930   :  { %8420 = vmax.xlane.f32.xlu0 %v15435_v15  ;;  %v10291_v27 = vpop.f32.mrb[68].mxu0 }
0x1931   :  { %v8355_v14 = vpop.f32.mrb[69].mxu0  ;;  %v15444_v54 = vadd.f32 %v10291_v27, %v9118_v35 }
0x1932   :  { %v15440_v51 = vadd.f32 %v9118_v35, %v8355_v14 }
0x1934   :  { %8418 = vmax.xlane.f32.xlu0 %v15438_v24  ;;  %8422 = vmax.xlane.f32.xlu1 %v15440_v51  ;;  %v10294_v23 = vpop.f32.mrb[70].mxu0 }
0x1935   :  { %v8365_v17 = vpop.f32.mrb[71].mxu0  ;;  %v15450_v4 = vadd.f32 %v10294_v23, %v9118_v35 }
0x1936   :  { %v15446_v22 = vadd.f32 %v9118_v35, %v8365_v17 }
0x1938   :  { %8424 = vmax.xlane.f32.xlu0 %v15444_v54  ;;  %8426 = vmax.xlane.f32.xlu1 %v15446_v22 }
0x193c   :  { %8428 = vmax.xlane.f32.xlu0 %v15450_v4 }
0x194a   :  { %v10297_v55 = vpop.f32.mrb[72].mxu0 }
0x194b   :  { %v15453_v20 = vadd.f32 %v10297_v55, %v9118_v35  ;;  %v8375_v36 = vpop.f32.mrb[73].mxu0 }
0x194c   :  { %v15455_v53 = vadd.f32 %v9118_v35, %v8375_v36 }
0x194d   :  { %8432 = vmax.xlane.f32.xlu0 %v15453_v20 }
0x194e   :  { %8430 = vmax.xlane.f32.xlu1 %v15455_v53  ;;  %v10300_v9 = vpop.f32.mrb[74].mxu0 }
0x194f   :  { %v15459_v12 = vadd.f32 %v10300_v9, %v9118_v35  ;;  %v8385_v21 = vpop.f32.mrb[75].mxu0 }
0x1950   :  { %v15461_v42 = vadd.f32 %v9118_v35, %v8385_v21 }
0x1951   :  { %8436 = vmax.xlane.f32.xlu0 %v15459_v12 }
0x1952   :  { %8434 = vmax.xlane.f32.xlu1 %v15461_v42  ;;  %v10303_v3 = vpop.f32.mrb[76].mxu0 }
0x1953   :  { %v15465_v1 = vadd.f32 %v10303_v3, %v9118_v35  ;;  %v8395_v26 = vpop.f32.mrb[77].mxu0 }
0x1954   :  { %v15467_v5 = vadd.f32 %v9118_v35, %v8395_v26 }
0x1955   :  { %8440 = vmax.xlane.f32.xlu0 %v15465_v1 }
0x1956   :  { %8438 = vmax.xlane.f32.xlu1 %v15467_v5  ;;  %v10306_v25 = vpop.f32.mrb[78].mxu0 }
0x1957   :  { %v15471_v40 = vadd.f32 %v10306_v25, %v9118_v35  ;;  %v8405_v31 = vpop.f32.mrb[79].mxu0 }
0x1958   :  { %v15473_v37 = vadd.f32 %v9118_v35, %v8405_v31 }
0x1959   :  { %8444 = vmax.xlane.f32.xlu0 %v15471_v40 }
0x195a   :  { %8442 = vmax.xlane.f32.xlu1 %v15473_v37 }
0x19b8   :  { %v15477_v28 = vpop.xlane.xlu1 %8416 }
0x19b9   :  { %v8447_v7 = vsub.f32 %v15429_v56, %v15477_v28  ;;  %v15481_v48 = vpop.xlane.xlu0 %8414 }
0x19ba   :  { %v8446_v61 = vsub.f32 %v15431_v46, %v15481_v48 }
0x19bb   :  { %v8464_v63 = vmul.f32 1.442695, %v8447_v7 }
0x19bc   :  { %v8462_v44 = vmul.f32 1.442695, %v8446_v61 }
0x19bd   :  { %11801 = vpow2.f32 %v8464_v63  ;;  %v15485_v58 = vpop.xlane.xlu0 %8420 }
0x19be   :  { %11803 = vpow2.f32 %v8462_v44  ;;  %v8449_v60 = vsub.f32 %v15435_v15, %v15485_v58 }
0x19c0   :  { %v8468_v10 = vmul.f32 1.442695, %v8449_v60 }
0x19c1   :  { %v15489_v16 = vpop.xlane.xlu1 %8422  ;;  %v15491_v30 = vpop.xlane.xlu0 %8418 }
0x19c2   :  { %11805 = vpow2.f32 %v8468_v10  ;;  %v8450_v8 = vsub.f32 %v15440_v51, %v15489_v16  ;;  %v8448_v11 = vsub.f32 %v15438_v24, %v15491_v30 }
0x19c4   :  { %v8466_v38 = vmul.f32 1.442695, %v8448_v11  ;;  %v8470_v59 = vmul.f32 1.442695, %v8450_v8 }
0x19c5   :  { %v15497_v50 = vpop.xlane.xlu1 %8426  ;;  %v15499_v39 = vpop.xlane.xlu0 %8424 }
0x19c6   :  { %v8451_v43 = vsub.f32 %v15444_v54, %v15499_v39  ;;  %11807 = vpow2.f32 %v8466_v38  ;;  %v8452_v19 = vsub.f32 %v15446_v22, %v15497_v50 }
0x19c7   :  { %v11802_v13 = vpop.eup %11801  ;;  %11809 = vpow2.f32 %v8470_v59 }
0x19c8   :  { %v11804_v32 = vpop.eup %11803  ;;  %v8472_v41 = vmul.f32 1.442695, %v8451_v43  ;;  %8496 = vadd.xlane.f32.xlu0 %v11802_v13  ;;  %v8474_v47 = vmul.f32 1.442695, %v8452_v19 }
0x19c9   :  { %8494 = vadd.xlane.f32.xlu1 %v11804_v32  ;;  %v15505_v6 = vpop.xlane.xlu0 %8428 }
0x19ca   :  { %v8453_v34 = vsub.f32 %v15450_v4, %v15505_v6  ;;  %11811 = vpow2.f32 %v8472_v41 }
0x19cc   :  { %v11806_v18 = vpop.eup %11805  ;;  %v8476_v52 = vmul.f32 1.442695, %v8453_v34 }
0x19cd   :  { %8500 = vadd.xlane.f32.xlu0 %v11806_v18 }
0x19ce   :  { %11813 = vpow2.f32 %v8476_v52 }
0x19cf   :  { %11815 = vpow2.f32 %v8474_v47 }
0x19d0   :  { %v11808_v0 = vpop.eup %11807 }
0x19d1   :  { %8498 = vadd.xlane.f32.xlu1 %v11808_v0  ;;  %v11810_v29 = vpop.eup %11809 }
0x19d4   :  { %v11812_v33 = vpop.eup %11811 }
0x19d5   :  { %8502 = vadd.xlane.f32.xlu1 %v11810_v29  ;;  %8504 = vadd.xlane.f32.xlu0 %v11812_v33 }
0x19d8   :  { %v11814_v57 = vpop.eup %11813 }
0x19d9   :  { %v11816_v35 = vpop.eup %11815  ;;  %8508 = vadd.xlane.f32.xlu0 %v11814_v57 }
0x19da   :  { %8506 = vadd.xlane.f32.xlu1 %v11816_v35  ;;  %v15509_v2 = vpop.xlane.xlu0 %8432 }
0x19db   :  { %v8455_v45 = vsub.f32 %v15453_v20, %v15509_v2  ;;  %v15513_v62 = vpop.xlane.xlu1 %8430 }
0x19dc   :  { %v8454_v49 = vsub.f32 %v15455_v53, %v15513_v62 }
0x19dd   :  { %v8480_v27 = vmul.f32 1.442695, %v8455_v45 }
0x19de   :  { %v8478_v14 = vmul.f32 1.442695, %v8454_v49  ;;  %v15517_v23 = vpop.xlane.xlu0 %8436 }
0x19df   :  { %11817 = vpow2.f32 %v8480_v27  ;;  %v8457_v17 = vsub.f32 %v15459_v12, %v15517_v23  ;;  %v15521_v55 = vpop.xlane.xlu1 %8434 }
0x19e0   :  { %11819 = vpow2.f32 %v8478_v14  ;;  %v8456_v36 = vsub.f32 %v15461_v42, %v15521_v55 }
0x19e1   :  { %v8484_v9 = vmul.f32 1.442695, %v8457_v17 }
0x19e2   :  { %v8482_v21 = vmul.f32 1.442695, %v8456_v36  ;;  %v15525_v3 = vpop.xlane.xlu0 %8440 }
0x19e3   :  { %11821 = vpow2.f32 %v8484_v9  ;;  %v8459_v26 = vsub.f32 %v15465_v1, %v15525_v3  ;;  %v15529_v25 = vpop.xlane.xlu1 %8438 }
0x19e4   :  { %11823 = vpow2.f32 %v8482_v21  ;;  %v8458_v31 = vsub.f32 %v15467_v5, %v15529_v25 }
0x19e5   :  { %v8488_v7 = vmul.f32 1.442695, %v8459_v26 }
0x19e6   :  { %v8486_v61 = vmul.f32 1.442695, %v8458_v31  ;;  %v15533_v63 = vpop.xlane.xlu0 %8444 }
0x19e7   :  { %11825 = vpow2.f32 %v8488_v7  ;;  %v8461_v44 = vsub.f32 %v15471_v40, %v15533_v63  ;;  %v15537_v60 = vpop.xlane.xlu1 %8442 }
0x19e8   :  { %11827 = vpow2.f32 %v8486_v61  ;;  %v8460_v10 = vsub.f32 %v15473_v37, %v15537_v60 }
0x19e9   :  { %v11818_v8 = vpop.eup %11817  ;;  %v8492_v11 = vmul.f32 1.442695, %v8461_v44 }
0x19ea   :  { %v11820_v38 = vpop.eup %11819  ;;  %v8490_v59 = vmul.f32 1.442695, %v8460_v10  ;;  %8512 = vadd.xlane.f32.xlu0 %v11818_v8 }
0x19eb   :  { %11829 = vpow2.f32 %v8492_v11  ;;  %8510 = vadd.xlane.f32.xlu1 %v11820_v38 }
0x19ec   :  { %11831 = vpow2.f32 %v8490_v59 }
0x19ed   :  { %v11822_v43 = vpop.eup %11821 }
0x19ee   :  { %v11824_v13 = vpop.eup %11823  ;;  %8516 = vadd.xlane.f32.xlu0 %v11822_v43 }
0x19ef   :  { %8514 = vadd.xlane.f32.xlu1 %v11824_v13 }
0x19f1   :  { %v11826_v19 = vpop.eup %11825 }
0x19f2   :  { %v11828_v32 = vpop.eup %11827  ;;  %8520 = vadd.xlane.f32.xlu0 %v11826_v19 }
0x19f3   :  { %8518 = vadd.xlane.f32.xlu1 %v11828_v32 }
0x19f5   :  { %v11830_v41 = vpop.eup %11829 }
0x19f6   :  { %v11832_v34 = vpop.eup %11831  ;;  %8524 = vadd.xlane.f32.xlu0 %v11830_v41 }
0x19f7   :  { %8522 = vadd.xlane.f32.xlu1 %v11832_v34 }
0x1a55   :  { %v8497_v47 = vpop.xlane.xlu0 %8496 }
0x1a56   :  { %11833 = vlog2.f32 %v8497_v47  ;;  %v8495_v18 = vpop.xlane.xlu1 %8494 }
0x1a57   :  { %11835 = vlog2.f32 %v8495_v18 }
0x1a5a   :  { %v8501_v52 = vpop.xlane.xlu0 %8500 }
0x1a5b   :  { %11837 = vlog2.f32 %v8501_v52 }
0x1a5e   :  { %v8499_v0 = vpop.xlane.xlu1 %8498 }
0x1a5f   :  { %11839 = vlog2.f32 %v8499_v0 }
0x1a60   :  { %v11834_v29 = vpop.eup %11833 }
0x1a61   :  { %v11836_v33 = vpop.eup %11835  ;;  %v8529_v57 = vmul.f32 0.6931472, %v11834_v29 }
0x1a62   :  { %v8527_v35 = vmul.f32 0.6931472, %v11836_v33  ;;  %v8503_v49 = vpop.xlane.xlu1 %8502  ;;  %v8505_v27 = vpop.xlane.xlu0 %8504 }
0x1a63   :  { %v8559_v45 = vadd.f32 %v8529_v57, %v15477_v28  ;;  %11841 = vlog2.f32 %v8503_v49 }
0x1a64   :  { %v8558_v14 = vadd.f32 %v8527_v35, %v15481_v48  ;;  %11843 = vlog2.f32 %v8505_v27 }
0x1a65   :  { %v11838_v17 = vpop.eup %11837  ;;  %v8575_v36 = vsub.f32 %v15429_v56, %v8559_v45 }
0x1a66   :  { %v8574_v9 = vsub.f32 %v15431_v46, %v8558_v14  ;;  %v8533_v21 = vmul.f32 0.6931472, %v11838_v17  ;;  %v8509_v31 = vpop.xlane.xlu0 %8508 }
0x1a67   :  { %8591 = vst [vmem:[#allocation3 + $0x8] sm:$0xff] %v8575_v36  ;;  %v8507_v26 = vpop.xlane.xlu1 %8506 }
0x1a68   :  { %8590 = vst [vmem:[#allocation3] sm:$0xff] %v8574_v9  ;;  %v8561_v7 = vadd.f32 %v8533_v21, %v15485_v58  ;;  %11845 = vlog2.f32 %v8507_v26 }
0x1a69   :  { %11847 = vlog2.f32 %v8509_v31  ;;  %v11840_v28 = vpop.eup %11839 }
0x1a6a   :  { %v8577_v61 = vsub.f32 %v15435_v15, %v8561_v7  ;;  %v8531_v48 = vmul.f32 0.6931472, %v11840_v28 }
0x1a6c   :  { %8593 = vst [vmem:[#allocation3 + $0x18] sm:$0xff] %v8577_v61  ;;  %v8560_v44 = vadd.f32 %v8531_v48, %v15491_v30 }
0x1a6d   :  { %v11842_v56 = vpop.eup %11841 }
0x1a6e   :  { %v11844_v10 = vpop.eup %11843  ;;  %v8576_v46 = vsub.f32 %v15438_v24, %v8560_v44  ;;  %v8535_v8 = vmul.f32 0.6931472, %v11842_v56 }
0x1a6f   :  { %v8537_v11 = vmul.f32 0.6931472, %v11844_v10 }
0x1a70   :  { %8592 = vst [vmem:[#allocation3 + $0x10] sm:$0xff] %v8576_v46  ;;  %v8562_v38 = vadd.f32 %v8535_v8, %v15489_v16 }
0x1a71   :  { %v8563_v58 = vadd.f32 %v8537_v11, %v15499_v39 }
0x1a72   :  { %v11846_v59 = vpop.eup %11845  ;;  %v8578_v13 = vsub.f32 %v15440_v51, %v8562_v38 }
0x1a73   :  { %v11848_v43 = vpop.eup %11847  ;;  %v8539_v15 = vmul.f32 0.6931472, %v11846_v59  ;;  %v8579_v19 = vsub.f32 %v15444_v54, %v8563_v58 }
0x1a74   :  { %v8541_v32 = vmul.f32 0.6931472, %v11848_v43  ;;  %8594 = vst [vmem:[#allocation3 + $0x20] sm:$0xff] %v8578_v13 }
0x1a75   :  { %v8564_v30 = vadd.f32 %v8539_v15, %v15497_v50  ;;  %8595 = vst [vmem:[#allocation3 + $0x28] sm:$0xff] %v8579_v19 }
0x1a76   :  { %v8565_v24 = vadd.f32 %v8541_v32, %v15505_v6 }
0x1a77   :  { %v8580_v41 = vsub.f32 %v15446_v22, %v8564_v30  ;;  %v8513_v34 = vpop.xlane.xlu0 %8512 }
0x1a78   :  { %v8581_v16 = vsub.f32 %v15450_v4, %v8565_v24  ;;  %11849 = vlog2.f32 %v8513_v34  ;;  %v8511_v39 = vpop.xlane.xlu1 %8510 }
0x1a79   :  { %8596 = vst [vmem:[#allocation3 + $0x30] sm:$0xff] %v8580_v41  ;;  %11851 = vlog2.f32 %v8511_v39 }
0x1a7a   :  { %8597 = vst [vmem:[#allocation3 + $0x38] sm:$0xff] %v8581_v16 }
0x1a7b   :  { %v8517_v51 = vpop.xlane.xlu0 %8516 }
0x1a7c   :  { %11853 = vlog2.f32 %v8517_v51  ;;  %v8515_v54 = vpop.xlane.xlu1 %8514 }
0x1a7d   :  { %11855 = vlog2.f32 %v8515_v54 }
0x1a7f   :  { %v8521_v47 = vpop.xlane.xlu0 %8520 }
0x1a80   :  { %11857 = vlog2.f32 %v8521_v47  ;;  %v8519_v50 = vpop.xlane.xlu1 %8518 }
0x1a81   :  { %11859 = vlog2.f32 %v8519_v50 }
0x1a82   :  { %v11850_v18 = vpop.eup %11849 }
0x1a83   :  { %v11852_v6 = vpop.eup %11851  ;;  %v8545_v52 = vmul.f32 0.6931472, %v11850_v18  ;;  %v8525_v22 = vpop.xlane.xlu0 %8524 }
0x1a84   :  { %v8543_v0 = vmul.f32 0.6931472, %v11852_v6  ;;  %11861 = vlog2.f32 %v8525_v22  ;;  %v8523_v4 = vpop.xlane.xlu1 %8522 }
0x1a85   :  { %v8567_v29 = vadd.f32 %v8545_v52, %v15509_v2  ;;  %11863 = vlog2.f32 %v8523_v4 }
0x1a86   :  { %v11854_v33 = vpop.eup %11853  ;;  %v8566_v57 = vadd.f32 %v8543_v0, %v15513_v62 }
0x1a87   :  { %v11856_v35 = vpop.eup %11855  ;;  %v8583_v45 = vsub.f32 %v15453_v20, %v8567_v29  ;;  %v8549_v49 = vmul.f32 0.6931472, %v11854_v33 }
0x1a88   :  { %v8582_v27 = vsub.f32 %v15455_v53, %v8566_v57  ;;  %v8547_v14 = vmul.f32 0.6931472, %v11856_v35 }
0x1a89   :  { %8599 = vst [vmem:[#allocation3 + $0x48] sm:$0xff] %v8583_v45  ;;  %v8569_v17 = vadd.f32 %v8549_v49, %v15517_v23 }
0x1a8a   :  { %v11858_v36 = vpop.eup %11857  ;;  %8598 = vst [vmem:[#allocation3 + $0x40] sm:$0xff] %v8582_v27  ;;  %v8568_v9 = vadd.f32 %v8547_v14, %v15521_v55 }
0x1a8b   :  { %v11860_v21 = vpop.eup %11859  ;;  %v8585_v2 = vsub.f32 %v15459_v12, %v8569_v17  ;;  %v8553_v26 = vmul.f32 0.6931472, %v11858_v36 }
0x1a8c   :  { %v8584_v62 = vsub.f32 %v15461_v42, %v8568_v9  ;;  %v8551_v31 = vmul.f32 0.6931472, %v11860_v21 }
0x1a8d   :  { %8601 = vst [vmem:[#allocation3 + $0x58] sm:$0xff] %v8585_v2  ;;  %v8571_v20 = vadd.f32 %v8553_v26, %v15525_v3 }
0x1a8e   :  { %v11862_v7 = vpop.eup %11861  ;;  %8600 = vst [vmem:[#allocation3 + $0x50] sm:$0xff] %v8584_v62  ;;  %v8570_v53 = vadd.f32 %v8551_v31, %v15529_v25 }
0x1a8f   :  { %v11864_v28 = vpop.eup %11863  ;;  %v8587_v23 = vsub.f32 %v15465_v1, %v8571_v20  ;;  %v8557_v61 = vmul.f32 0.6931472, %v11862_v7 }
0x1a90   :  { %v8586_v55 = vsub.f32 %v15467_v5, %v8570_v53  ;;  %v8555_v48 = vmul.f32 0.6931472, %v11864_v28 }
0x1a91   :  { %8603 = vst [vmem:[#allocation3 + $0x68] sm:$0xff] %v8587_v23  ;;  %v8573_v12 = vadd.f32 %v8557_v61, %v15533_v63 }
0x1a92   :  { %8602 = vst [vmem:[#allocation3 + $0x60] sm:$0xff] %v8586_v55  ;;  %v8572_v42 = vadd.f32 %v8555_v48, %v15537_v60 }
0x1a93   :  { %v8589_v3 = vsub.f32 %v15471_v40, %v8573_v12 }
0x1a94   :  { %v8588_v44 = vsub.f32 %v15473_v37, %v8572_v42 }
0x1a95   :  { %8605 = vst [vmem:[#allocation3 + $0x78] sm:$0xff] %v8589_v3 }
0x1a96   :  { %8604 = vst [vmem:[#allocation3 + $0x70] sm:$0xff] %v8588_v44 }
0x1a97   :  { %11876 = shalt.err (!%p11873_p4)
}
0x1a98   :  { %s11877_s13 = scalar_lea.hbm %s15591_s6, 2048 }
0x1a99   :  { %p11878_p5 = scmp.ne.s32.totalorder %s15591_s6, %s11877_s13  ;;  %p11881_p6 = scmp.lt.u32.totalorder %s11877_s13, %s15591_s6 }
0x1a9b   :  { %p11883_p7 = pnand %p11881_p6, %p11878_p5 }
0x1a9d   :  { %11886 = shalt.err (!%p11883_p7)
}
0x1a9e   :  { %s11895_s17 = smov 128   ;;  %s11896_s18 = smov 8  }
0x1a9f   :  { %8617 = dma.vmem_to_hbm [thread:$0]  %s8612_s9, 2048, %s15591_s6, [#allocation4], %s11895_s17, %s11895_s17, %s11896_s18  }
0x1aa0   :  { %11887 = dma.done.wait [#allocation4], 2048  }
0x1aa1   :  { %11888 = vsyncadd [#allocation4], 4294965248 }
0x1aa2   :  { %8621 = vsyncpa [#allocation4], 1 }

</bundles_post_ra>
